<compile_context>
chip_gen: v7x
topology: tpu7x:2x2x1
jax: 0.10.0
libtpu: 0.0.40
codegen_flags: <defaults>
</compile_context>

<pallas_src>
import numpy as np

import jax
import jax.numpy as jnp
from jax.experimental import pallas as pl
from jax.experimental.pallas import tpu as pltpu


# --------------------------------------------------------------------------
# Wrapper-side helpers (plain XLA / numpy: layout plumbing + constant setup).
# --------------------------------------------------------------------------
def _out_size(s, k, stride, pad):
    return (s + 2 * pad - k) // stride + 1


def _im2col(x_nhwc, kh, kw, stride, pad):
    """(N,H,W,C) -> (N*Ho*Wo, KH*KW*C) patch matrix."""
    n, h, w, c = x_nhwc.shape
    ho = _out_size(h, kh, stride, pad)
    wo = _out_size(w, kw, stride, pad)
    xp = jnp.pad(x_nhwc, ((0, 0), (pad, pad), (pad, pad), (0, 0)))
    taps = []
    for ky in range(kh):
        for kx in range(kw):
            taps.append(xp[:, ky:ky + stride * ho:stride,
                           kx:kx + stride * wo:stride, :])
    p = jnp.stack(taps, axis=3)                     # (N, Ho, Wo, KH*KW, C)
    return p.reshape(n * ho * wo, kh * kw * c)


def _shift_matrices(n, h_in, w_in, kh, kw, stride, pad):
    """0/1 selection matrices S[t]: (N*P_out, N*P_in) row-gather for tap t.

    Encodes padding + stride (out-of-bounds taps are all-zero rows) and is
    block-diagonal over the batch.  Built once with numpy; used as matmul
    operands inside the kernel so the conv stays pure MXU work.
    """
    ho = _out_size(h_in, kh, stride, pad)
    wo = _out_size(w_in, kw, stride, pad)
    p_in, p_out = h_in * w_in, ho * wo
    s = np.zeros((kh * kw, n * p_out, n * p_in), np.float32)
    for b in range(n):
        for oy in range(ho):
            for ox in range(wo):
                m = b * p_out + oy * wo + ox
                for ky in range(kh):
                    for kx in range(kw):
                        iy = oy * stride - pad + ky
                        ix = ox * stride - pad + kx
                        if 0 <= iy < h_in and 0 <= ix < w_in:
                            s[ky * kw + kx, m, b * p_in + iy * w_in + ix] = 1.0
    return jnp.asarray(s)


# --------------------------------------------------------------------------
# The fused Pallas kernel: whole descriptor network in one invocation.
# --------------------------------------------------------------------------
def _descriptors_kernel(p1_ref, w1_ref, b1_ref, s2_ref, w2_ref, b2_ref,
                        sb_ref, wst_ref, bst_ref, o_ref):
    f32 = jnp.float32
    t2 = s2_ref.shape[0]              # 25 taps (5x5, stride-2 layer_2)
    tb = sb_ref.shape[0]              # 9 taps (3x3, stride-1 convs)
    n_conv3 = wst_ref.shape[0] // tb  # 2*n_bl + 1 (block convs + last_layer)
    n_bl = (n_conv3 - 1) // 2
    m2 = sb_ref.shape[1]              # N * H2 * W2
    c = w1_ref.shape[1]               # 32 channels

    # ---- layer_1: conv(3->32, 5x5, s2) + BN + ReLU as ONE im2col matmul ----
    a1 = jnp.dot(p1_ref[...], w1_ref[...], preferred_element_type=f32)
    a1 = jnp.maximum(a1 + b1_ref[...], 0.0)          # (N*H1*W1, 32)

    # ---- layer_2: conv(32->32, 5x5, s2) + BN + ReLU via shift matmuls ------
    acc = jnp.zeros((m2, c), f32)
    for t in range(t2):
        g = jnp.dot(s2_ref[t], a1, preferred_element_type=f32)   # gather tap
        acc = acc + jnp.dot(g, w2_ref[t], preferred_element_type=f32)
    a = jnp.maximum(acc + b2_ref[...], 0.0)          # (N*H2*W2, 32)

    # ---- 3x3 stride-1 convs on the H2 x W2 grid (blocks + last_layer) ------
    def conv3x3(x, li):
        acc = jnp.zeros((m2, c), f32)
        for t in range(tb):
            g = jnp.dot(sb_ref[t], x, preferred_element_type=f32)
            acc = acc + jnp.dot(g, wst_ref[li * tb + t],
                                preferred_element_type=f32)
        return acc + bst_ref[li]

    for blk in range(n_bl):                           # basic_layer blocks
        h = jnp.maximum(conv3x3(a, 2 * blk), 0.0)
        a = jnp.maximum(conv3x3(h, 2 * blk + 1), 0.0) + a

    o_ref[...] = conv3x3(a, 2 * n_bl)                 # last_layer (with bias)


# --------------------------------------------------------------------------
# Forward pass wrapper — mirrors descriptors.forward.
# --------------------------------------------------------------------------
def descriptors_forward(x_nchw, params):
    n_bl = len(params["blocks"])
    x = jnp.transpose(x_nchw, (0, 2, 3, 1)).astype(jnp.float32)   # -> NHWC
    n, h, w, c_in = x.shape
    c = 32

    # layer_1 im2col (5x5, stride 2, pad 2), lane-padded to K = 128.
    h1, w1sp = _out_size(h, 5, 2, 2), _out_size(w, 5, 2, 2)
    h2, w2sp = _out_size(h1, 5, 2, 2), _out_size(w1sp, 5, 2, 2)
    p1 = _im2col(x, 5, 5, 2, 2)                       # (N*H1*W1, 75)
    k1 = 5 * 5 * c_in
    kp = ((k1 + 127) // 128) * 128
    p1 = jnp.pad(p1, ((0, 0), (0, kp - k1)))

    # Fold BN scale into the conv weights; biases stay separate.
    l1 = params["l1"]
    w1f = (l1["w"] * l1["scale"]).reshape(k1, c)
    w1f = jnp.pad(w1f, ((0, kp - k1), (0, 0)))
    b1 = l1["bias"].reshape(1, c)

    l2 = params["l2"]
    w2f = (l2["w"] * l2["scale"]).reshape(25, c, c)
    b2 = l2["bias"].reshape(1, c)

    ws, bs = [], []
    for bl in params["blocks"]:
        for cv in (bl["c1"], bl["c2"]):
            ws.append((cv["w"] * cv["scale"]).reshape(9, c, c))
            bs.append(cv["bias"].reshape(1, c))
    ws.append(params["last_w"].reshape(9, c, c))      # last_layer (scale = 1)
    bs.append(params["last_b"].reshape(1, c))
    wst = jnp.concatenate(ws, axis=0)                 # ((2*n_bl+1)*9, 32, 32)
    bst = jnp.stack(bs, axis=0)                       # (2*n_bl+1, 1, 32)

    # Shift / selection matrices (0/1), built once from static geometry.
    s2 = _shift_matrices(n, h1, w1sp, 5, 5, 2, 2)     # (25, N*16, N*64)
    sb = _shift_matrices(n, h2, w2sp, 3, 3, 1, 1)     # (9,  N*16, N*16)

    m1 = n * h1 * w1sp
    m2 = n * h2 * w2sp
    nconv3 = 2 * n_bl + 1

    out2d = pl.pallas_call(
        _descriptors_kernel,
        out_shape=jax.ShapeDtypeStruct((m2, c), jnp.float32),
        grid=(1,),
        in_specs=[
            pl.BlockSpec((m1, kp), lambda i: (0, 0)),            # p1
            pl.BlockSpec((kp, c), lambda i: (0, 0)),             # w1f
            pl.BlockSpec((1, c), lambda i: (0, 0)),              # b1
            pl.BlockSpec((25, m2, m1), lambda i: (0, 0, 0)),     # s2
            pl.BlockSpec((25, c, c), lambda i: (0, 0, 0)),       # w2f
            pl.BlockSpec((1, c), lambda i: (0, 0)),              # b2
            pl.BlockSpec((9, m2, m2), lambda i: (0, 0, 0)),      # sb
            pl.BlockSpec((nconv3 * 9, c, c), lambda i: (0, 0, 0)),  # wst
            pl.BlockSpec((nconv3, 1, c), lambda i: (0, 0, 0)),      # bst
        ],
        out_specs=pl.BlockSpec((m2, c), lambda i: (0, 0)),
        compiler_params=pltpu.CompilerParams(
            dimension_semantics=("arbitrary",)),
    )(p1, w1f, b1, s2, w2f, b2, sb, wst, bst)

    out = out2d.reshape(n, h2, w2sp, c)
    return jnp.transpose(out, (0, 3, 1, 2))           # -> NCHW


# --------------------------------------------------------------------------
# Parameter construction (deterministic, synthetic; He-style scaling so
# activations stay O(1) through the depth).
# --------------------------------------------------------------------------
def _fold_bn(gamma, beta, mean, var, eps=1e-5):
    scale = gamma / jnp.sqrt(var + eps)
    bias = beta - mean * scale
    return scale, bias


def _init_convbn(key, kh, kw, c_in, c_out):
    kw_, kg, kb, km, kv = jax.random.split(key, 5)
    fan_in = kh * kw * c_in
    w = jax.random.normal(kw_, (kh, kw, c_in, c_out), jnp.float32)
    w = w * jnp.sqrt(2.0 / fan_in)
    gamma = 1.0 + 0.1 * jax.random.normal(kg, (c_out,), jnp.float32)
    beta = 0.1 * jax.random.normal(kb, (c_out,), jnp.float32)
    mean = 0.1 * jax.random.normal(km, (c_out,), jnp.float32)
    var = 1.0 + 0.1 * jnp.abs(jax.random.normal(kv, (c_out,), jnp.float32))
    scale, bias = _fold_bn(gamma, beta, mean, var)
    return {"w": w, "scale": scale, "bias": bias}


def init_params(key, n_bl):
    keys = jax.random.split(key, 3 + 2 * n_bl)
    params = {
        "l1": _init_convbn(keys[0], 5, 5, 3, 32),
        "l2": _init_convbn(keys[1], 5, 5, 32, 32),
        "blocks": [],
    }
    for i in range(n_bl):
        params["blocks"].append({
            "c1": _init_convbn(keys[2 + 2 * i], 3, 3, 32, 32),
            "c2": _init_convbn(keys[3 + 2 * i], 3, 3, 32, 32),
        })
    klw, klb = jax.random.split(keys[-1])
    params["last_w"] = (jax.random.normal(klw, (3, 3, 32, 32), jnp.float32)
                        * jnp.sqrt(2.0 / (9 * 32)))
    params["last_b"] = 0.1 * jax.random.normal(klb, (32,), jnp.float32)
    return params


# --------------------------------------------------------------------------
# Pure-JAX reference (for correctness check).
# --------------------------------------------------------------------------
def _ref_conv(x, w, stride, pad):
    return jax.lax.conv_general_dilated(
        x, w, window_strides=(stride, stride),
        padding=[(pad, pad), (pad, pad)],
        dimension_numbers=("NHWC", "HWIO", "NHWC"),
        precision=jax.lax.Precision.HIGHEST)


def descriptors_ref(x_nchw, params):
    x = jnp.transpose(x_nchw, (0, 2, 3, 1)).astype(jnp.float32)
    p = params["l1"]
    out = jnp.maximum(_ref_conv(x, p["w"], 2, 2) * p["scale"] + p["bias"], 0.0)
    p = params["l2"]
    out = jnp.maximum(_ref_conv(out, p["w"], 2, 2) * p["scale"] + p["bias"], 0.0)
    for bl in params["blocks"]:
        h = jnp.maximum(_ref_conv(out, bl["c1"]["w"], 1, 1) * bl["c1"]["scale"]
                        + bl["c1"]["bias"], 0.0)
        h = jnp.maximum(_ref_conv(h, bl["c2"]["w"], 1, 1) * bl["c2"]["scale"]
                        + bl["c2"]["bias"], 0.0)
        out = h + out
    out = _ref_conv(out, params["last_w"], 1, 1) + params["last_b"]
    return jnp.transpose(out, (0, 3, 1, 2))


# --------------------------------------------------------------------------
if __name__ == "__main__":
    key = jax.random.PRNGKey(0)
    kx, kp_ = jax.random.split(key)

    n_bl = 5                              # matches descriptors(5) in `model`
    x = jax.random.normal(kx, (2, 3, 16, 16), jnp.float32)   # NCHW, PyTorch-like
    params = init_params(kp_, n_bl)

    out = jax.block_until_ready(descriptors_forward(x, params))
    ref = jax.block_until_ready(descriptors_ref(x, params))

    assert out.shape == (2, 32, 4, 4), out.shape
    # Tolerances account for TPU default matmul precision differences between
    # the Pallas/MXU kernel and the XLA convolution reference.
    max_err = float(jnp.max(jnp.abs(out - ref)))
    rel_err = float(jnp.linalg.norm(out - ref) / (jnp.linalg.norm(ref) + 1e-6))
    assert jnp.allclose(out, ref, atol=1e-1, rtol=1e-1), (max_err, rel_err)
    assert rel_err < 5e-2, (max_err, rel_err)

    print("KERNEL_OK")
</pallas_src>

<mosaic_0001>
module attributes {stable_mosaic.version = 11 : i64} {
  func.func @_descriptors_kernel(%arg0: i32, %arg1: memref<128x128xf32, #tpu.memory_space<vmem>>, %arg2: memref<128x32xf32, #tpu.memory_space<vmem>>, %arg3: memref<1x32xf32, #tpu.memory_space<vmem>>, %arg4: memref<25x32x128xf32, #tpu.memory_space<vmem>>, %arg5: memref<25x32x32xf32, #tpu.memory_space<vmem>>, %arg6: memref<1x32xf32, #tpu.memory_space<vmem>>, %arg7: memref<9x32x32xf32, #tpu.memory_space<vmem>>, %arg8: memref<99x32x32xf32, #tpu.memory_space<vmem>>, %arg9: memref<11x1x32xf32, #tpu.memory_space<vmem>>, %arg10: memref<32x32xf32, #tpu.memory_space<vmem>>) attributes {dimension_semantics = [#tpu.dimension_semantics<arbitrary>], iteration_bounds = array<i64: 1>, scalar_prefetch = 0 : i64, scratch_operands = 0 : i64, tpu.core_type = #tpu.core_type<tc>, window_params = [{pipeline_mode = #tpu.pipeline_mode<synchronous>, transform_indices = @transform_0, window_bounds = array<i64: 128, 128>}, {pipeline_mode = #tpu.pipeline_mode<synchronous>, transform_indices = @transform_1, window_bounds = array<i64: 128, 32>}, {pipeline_mode = #tpu.pipeline_mode<synchronous>, transform_indices = @transform_2, window_bounds = array<i64: 1, 32>}, {pipeline_mode = #tpu.pipeline_mode<synchronous>, transform_indices = @transform_3, window_bounds = array<i64: 25, 32, 128>}, {pipeline_mode = #tpu.pipeline_mode<synchronous>, transform_indices = @transform_4, window_bounds = array<i64: 25, 32, 32>}, {pipeline_mode = #tpu.pipeline_mode<synchronous>, transform_indices = @transform_5, window_bounds = array<i64: 1, 32>}, {pipeline_mode = #tpu.pipeline_mode<synchronous>, transform_indices = @transform_6, window_bounds = array<i64: 9, 32, 32>}, {pipeline_mode = #tpu.pipeline_mode<synchronous>, transform_indices = @transform_7, window_bounds = array<i64: 99, 32, 32>}, {pipeline_mode = #tpu.pipeline_mode<synchronous>, transform_indices = @transform_8, window_bounds = array<i64: 11, 1, 32>}, {pipeline_mode = #tpu.pipeline_mode<synchronous>, transform_indices = @transform_9, window_bounds = array<i64: 32, 32>}]} {
    %c0 = arith.constant 0 : index
    %c0_0 = arith.constant 0 : index
    %0 = vector.load %arg1[%c0, %c0_0] : memref<128x128xf32, #tpu.memory_space<vmem>>, vector<128x128xf32>
    %c0_1 = arith.constant 0 : index
    %c0_2 = arith.constant 0 : index
    %1 = vector.load %arg2[%c0_1, %c0_2] : memref<128x32xf32, #tpu.memory_space<vmem>>, vector<128x32xf32>
    %cst = arith.constant dense<0.000000e+00> : vector<128x32xf32>
    %2 = tpu.matmul %0, %1, %cst {dimension_numbers = #tpu.dot_dimension_numbers<[1], [0], [0], [1], [0, 0, 1, 1], [], []>} : vector<128x128xf32>, vector<128x32xf32>, vector<128x32xf32> -> vector<128x32xf32>
    %c0_3 = arith.constant 0 : index
    %c0_4 = arith.constant 0 : index
    %3 = vector.load %arg3[%c0_3, %c0_4] : memref<1x32xf32, #tpu.memory_space<vmem>>, vector<1x32xf32>
    %4 = vector.broadcast %3 : vector<1x32xf32> to vector<128x32xf32>
    %5 = arith.addf %2, %4 : vector<128x32xf32>
    %cst_5 = arith.constant 0.000000e+00 : f32
    %6 = vector.broadcast %cst_5 : f32 to vector<128x32xf32>
    %7 = arith.maximumf %5, %6 : vector<128x32xf32>
    %cst_6 = arith.constant 0.000000e+00 : f32
    %8 = vector.broadcast %cst_6 : f32 to vector<32x32xf32>
    %c0_7 = arith.constant 0 : index
    %c0_8 = arith.constant 0 : index
    %c0_9 = arith.constant 0 : index
    %9 = vector.load %arg4[%c0_7, %c0_8, %c0_9] : memref<25x32x128xf32, #tpu.memory_space<vmem>>, vector<1x32x128xf32>
    %10 = vector.shape_cast %9 : vector<1x32x128xf32> to vector<32x128xf32>
    %cst_10 = arith.constant dense<0.000000e+00> : vector<32x32xf32>
    %11 = tpu.matmul %10, %7, %cst_10 {dimension_numbers = #tpu.dot_dimension_numbers<[1], [0], [0], [1], [0, 0, 1, 1], [], []>} : vector<32x128xf32>, vector<128x32xf32>, vector<32x32xf32> -> vector<32x32xf32>
    %c0_11 = arith.constant 0 : index
    %c0_12 = arith.constant 0 : index
    %c0_13 = arith.constant 0 : index
    %12 = vector.load %arg5[%c0_11, %c0_12, %c0_13] : memref<25x32x32xf32, #tpu.memory_space<vmem>>, vector<1x32x32xf32>
    %13 = vector.shape_cast %12 : vector<1x32x32xf32> to vector<32x32xf32>
    %cst_14 = arith.constant dense<0.000000e+00> : vector<32x32xf32>
    %14 = tpu.matmul %11, %13, %cst_14 {dimension_numbers = #tpu.dot_dimension_numbers<[1], [0], [0], [1], [0, 0, 1, 1], [], []>} : vector<32x32xf32>, vector<32x32xf32>, vector<32x32xf32> -> vector<32x32xf32>
    %15 = arith.addf %8, %14 : vector<32x32xf32>
    %c1 = arith.constant 1 : index
    %c0_15 = arith.constant 0 : index
    %c0_16 = arith.constant 0 : index
    %16 = vector.load %arg4[%c1, %c0_15, %c0_16] : memref<25x32x128xf32, #tpu.memory_space<vmem>>, vector<1x32x128xf32>
    %17 = vector.shape_cast %16 : vector<1x32x128xf32> to vector<32x128xf32>
    %cst_17 = arith.constant dense<0.000000e+00> : vector<32x32xf32>
    %18 = tpu.matmul %17, %7, %cst_17 {dimension_numbers = #tpu.dot_dimension_numbers<[1], [0], [0], [1], [0, 0, 1, 1], [], []>} : vector<32x128xf32>, vector<128x32xf32>, vector<32x32xf32> -> vector<32x32xf32>
    %c1_18 = arith.constant 1 : index
    %c0_19 = arith.constant 0 : index
    %c0_20 = arith.constant 0 : index
    %19 = vector.load %arg5[%c1_18, %c0_19, %c0_20] : memref<25x32x32xf32, #tpu.memory_space<vmem>>, vector<1x32x32xf32>
    %20 = vector.shape_cast %19 : vector<1x32x32xf32> to vector<32x32xf32>
    %cst_21 = arith.constant dense<0.000000e+00> : vector<32x32xf32>
    %21 = tpu.matmul %18, %20, %cst_21 {dimension_numbers = #tpu.dot_dimension_numbers<[1], [0], [0], [1], [0, 0, 1, 1], [], []>} : vector<32x32xf32>, vector<32x32xf32>, vector<32x32xf32> -> vector<32x32xf32>
    %22 = arith.addf %15, %21 : vector<32x32xf32>
    %c2 = arith.constant 2 : index
    %c0_22 = arith.constant 0 : index
    %c0_23 = arith.constant 0 : index
    %23 = vector.load %arg4[%c2, %c0_22, %c0_23] : memref<25x32x128xf32, #tpu.memory_space<vmem>>, vector<1x32x128xf32>
    %24 = vector.shape_cast %23 : vector<1x32x128xf32> to vector<32x128xf32>
    %cst_24 = arith.constant dense<0.000000e+00> : vector<32x32xf32>
    %25 = tpu.matmul %24, %7, %cst_24 {dimension_numbers = #tpu.dot_dimension_numbers<[1], [0], [0], [1], [0, 0, 1, 1], [], []>} : vector<32x128xf32>, vector<128x32xf32>, vector<32x32xf32> -> vector<32x32xf32>
    %c2_25 = arith.constant 2 : index
    %c0_26 = arith.constant 0 : index
    %c0_27 = arith.constant 0 : index
    %26 = vector.load %arg5[%c2_25, %c0_26, %c0_27] : memref<25x32x32xf32, #tpu.memory_space<vmem>>, vector<1x32x32xf32>
    %27 = vector.shape_cast %26 : vector<1x32x32xf32> to vector<32x32xf32>
    %cst_28 = arith.constant dense<0.000000e+00> : vector<32x32xf32>
    %28 = tpu.matmul %25, %27, %cst_28 {dimension_numbers = #tpu.dot_dimension_numbers<[1], [0], [0], [1], [0, 0, 1, 1], [], []>} : vector<32x32xf32>, vector<32x32xf32>, vector<32x32xf32> -> vector<32x32xf32>
    %29 = arith.addf %22, %28 : vector<32x32xf32>
    %c3 = arith.constant 3 : index
    %c0_29 = arith.constant 0 : index
    %c0_30 = arith.constant 0 : index
    %30 = vector.load %arg4[%c3, %c0_29, %c0_30] : memref<25x32x128xf32, #tpu.memory_space<vmem>>, vector<1x32x128xf32>
    %31 = vector.shape_cast %30 : vector<1x32x128xf32> to vector<32x128xf32>
    %cst_31 = arith.constant dense<0.000000e+00> : vector<32x32xf32>
    %32 = tpu.matmul %31, %7, %cst_31 {dimension_numbers = #tpu.dot_dimension_numbers<[1], [0], [0], [1], [0, 0, 1, 1], [], []>} : vector<32x128xf32>, vector<128x32xf32>, vector<32x32xf32> -> vector<32x32xf32>
    %c3_32 = arith.constant 3 : index
    %c0_33 = arith.constant 0 : index
    %c0_34 = arith.constant 0 : index
    %33 = vector.load %arg5[%c3_32, %c0_33, %c0_34] : memref<25x32x32xf32, #tpu.memory_space<vmem>>, vector<1x32x32xf32>
    %34 = vector.shape_cast %33 : vector<1x32x32xf32> to vector<32x32xf32>
    %cst_35 = arith.constant dense<0.000000e+00> : vector<32x32xf32>
    %35 = tpu.matmul %32, %34, %cst_35 {dimension_numbers = #tpu.dot_dimension_numbers<[1], [0], [0], [1], [0, 0, 1, 1], [], []>} : vector<32x32xf32>, vector<32x32xf32>, vector<32x32xf32> -> vector<32x32xf32>
    %36 = arith.addf %29, %35 : vector<32x32xf32>
    %c4 = arith.constant 4 : index
    %c0_36 = arith.constant 0 : index
    %c0_37 = arith.constant 0 : index
    %37 = vector.load %arg4[%c4, %c0_36, %c0_37] : memref<25x32x128xf32, #tpu.memory_space<vmem>>, vector<1x32x128xf32>
    %38 = vector.shape_cast %37 : vector<1x32x128xf32> to vector<32x128xf32>
    %cst_38 = arith.constant dense<0.000000e+00> : vector<32x32xf32>
    %39 = tpu.matmul %38, %7, %cst_38 {dimension_numbers = #tpu.dot_dimension_numbers<[1], [0], [0], [1], [0, 0, 1, 1], [], []>} : vector<32x128xf32>, vector<128x32xf32>, vector<32x32xf32> -> vector<32x32xf32>
    %c4_39 = arith.constant 4 : index
    %c0_40 = arith.constant 0 : index
    %c0_41 = arith.constant 0 : index
    %40 = vector.load %arg5[%c4_39, %c0_40, %c0_41] : memref<25x32x32xf32, #tpu.memory_space<vmem>>, vector<1x32x32xf32>
    %41 = vector.shape_cast %40 : vector<1x32x32xf32> to vector<32x32xf32>
    %cst_42 = arith.constant dense<0.000000e+00> : vector<32x32xf32>
    %42 = tpu.matmul %39, %41, %cst_42 {dimension_numbers = #tpu.dot_dimension_numbers<[1], [0], [0], [1], [0, 0, 1, 1], [], []>} : vector<32x32xf32>, vector<32x32xf32>, vector<32x32xf32> -> vector<32x32xf32>
    %43 = arith.addf %36, %42 : vector<32x32xf32>
    %c5 = arith.constant 5 : index
    %c0_43 = arith.constant 0 : index
    %c0_44 = arith.constant 0 : index
    %44 = vector.load %arg4[%c5, %c0_43, %c0_44] : memref<25x32x128xf32, #tpu.memory_space<vmem>>, vector<1x32x128xf32>
    %45 = vector.shape_cast %44 : vector<1x32x128xf32> to vector<32x128xf32>
    %cst_45 = arith.constant dense<0.000000e+00> : vector<32x32xf32>
    %46 = tpu.matmul %45, %7, %cst_45 {dimension_numbers = #tpu.dot_dimension_numbers<[1], [0], [0], [1], [0, 0, 1, 1], [], []>} : vector<32x128xf32>, vector<128x32xf32>, vector<32x32xf32> -> vector<32x32xf32>
    %c5_46 = arith.constant 5 : index
    %c0_47 = arith.constant 0 : index
    %c0_48 = arith.constant 0 : index
    %47 = vector.load %arg5[%c5_46, %c0_47, %c0_48] : memref<25x32x32xf32, #tpu.memory_space<vmem>>, vector<1x32x32xf32>
    %48 = vector.shape_cast %47 : vector<1x32x32xf32> to vector<32x32xf32>
    %cst_49 = arith.constant dense<0.000000e+00> : vector<32x32xf32>
    %49 = tpu.matmul %46, %48, %cst_49 {dimension_numbers = #tpu.dot_dimension_numbers<[1], [0], [0], [1], [0, 0, 1, 1], [], []>} : vector<32x32xf32>, vector<32x32xf32>, vector<32x32xf32> -> vector<32x32xf32>
    %50 = arith.addf %43, %49 : vector<32x32xf32>
    %c6 = arith.constant 6 : index
    %c0_50 = arith.constant 0 : index
    %c0_51 = arith.constant 0 : index
    %51 = vector.load %arg4[%c6, %c0_50, %c0_51] : memref<25x32x128xf32, #tpu.memory_space<vmem>>, vector<1x32x128xf32>
    %52 = vector.shape_cast %51 : vector<1x32x128xf32> to vector<32x128xf32>
    %cst_52 = arith.constant dense<0.000000e+00> : vector<32x32xf32>
    %53 = tpu.matmul %52, %7, %cst_52 {dimension_numbers = #tpu.dot_dimension_numbers<[1], [0], [0], [1], [0, 0, 1, 1], [], []>} : vector<32x128xf32>, vector<128x32xf32>, vector<32x32xf32> -> vector<32x32xf32>
    %c6_53 = arith.constant 6 : index
    %c0_54 = arith.constant 0 : index
    %c0_55 = arith.constant 0 : index
    %54 = vector.load %arg5[%c6_53, %c0_54, %c0_55] : memref<25x32x32xf32, #tpu.memory_space<vmem>>, vector<1x32x32xf32>
    %55 = vector.shape_cast %54 : vector<1x32x32xf32> to vector<32x32xf32>
    %cst_56 = arith.constant dense<0.000000e+00> : vector<32x32xf32>
    %56 = tpu.matmul %53, %55, %cst_56 {dimension_numbers = #tpu.dot_dimension_numbers<[1], [0], [0], [1], [0, 0, 1, 1], [], []>} : vector<32x32xf32>, vector<32x32xf32>, vector<32x32xf32> -> vector<32x32xf32>
    %57 = arith.addf %50, %56 : vector<32x32xf32>
    %c7 = arith.constant 7 : index
    %c0_57 = arith.constant 0 : index
    %c0_58 = arith.constant 0 : index
    %58 = vector.load %arg4[%c7, %c0_57, %c0_58] : memref<25x32x128xf32, #tpu.memory_space<vmem>>, vector<1x32x128xf32>
    %59 = vector.shape_cast %58 : vector<1x32x128xf32> to vector<32x128xf32>
    %cst_59 = arith.constant dense<0.000000e+00> : vector<32x32xf32>
    %60 = tpu.matmul %59, %7, %cst_59 {dimension_numbers = #tpu.dot_dimension_numbers<[1], [0], [0], [1], [0, 0, 1, 1], [], []>} : vector<32x128xf32>, vector<128x32xf32>, vector<32x32xf32> -> vector<32x32xf32>
    %c7_60 = arith.constant 7 : index
    %c0_61 = arith.constant 0 : index
    %c0_62 = arith.constant 0 : index
    %61 = vector.load %arg5[%c7_60, %c0_61, %c0_62] : memref<25x32x32xf32, #tpu.memory_space<vmem>>, vector<1x32x32xf32>
    %62 = vector.shape_cast %61 : vector<1x32x32xf32> to vector<32x32xf32>
    %cst_63 = arith.constant dense<0.000000e+00> : vector<32x32xf32>
    %63 = tpu.matmul %60, %62, %cst_63 {dimension_numbers = #tpu.dot_dimension_numbers<[1], [0], [0], [1], [0, 0, 1, 1], [], []>} : vector<32x32xf32>, vector<32x32xf32>, vector<32x32xf32> -> vector<32x32xf32>
    %64 = arith.addf %57, %63 : vector<32x32xf32>
    %c8 = arith.constant 8 : index
    %c0_64 = arith.constant 0 : index
    %c0_65 = arith.constant 0 : index
    %65 = vector.load %arg4[%c8, %c0_64, %c0_65] : memref<25x32x128xf32, #tpu.memory_space<vmem>>, vector<1x32x128xf32>
    %66 = vector.shape_cast %65 : vector<1x32x128xf32> to vector<32x128xf32>
    %cst_66 = arith.constant dense<0.000000e+00> : vector<32x32xf32>
    %67 = tpu.matmul %66, %7, %cst_66 {dimension_numbers = #tpu.dot_dimension_numbers<[1], [0], [0], [1], [0, 0, 1, 1], [], []>} : vector<32x128xf32>, vector<128x32xf32>, vector<32x32xf32> -> vector<32x32xf32>
    %c8_67 = arith.constant 8 : index
    %c0_68 = arith.constant 0 : index
    %c0_69 = arith.constant 0 : index
    %68 = vector.load %arg5[%c8_67, %c0_68, %c0_69] : memref<25x32x32xf32, #tpu.memory_space<vmem>>, vector<1x32x32xf32>
    %69 = vector.shape_cast %68 : vector<1x32x32xf32> to vector<32x32xf32>
    %cst_70 = arith.constant dense<0.000000e+00> : vector<32x32xf32>
    %70 = tpu.matmul %67, %69, %cst_70 {dimension_numbers = #tpu.dot_dimension_numbers<[1], [0], [0], [1], [0, 0, 1, 1], [], []>} : vector<32x32xf32>, vector<32x32xf32>, vector<32x32xf32> -> vector<32x32xf32>
    %71 = arith.addf %64, %70 : vector<32x32xf32>
    %c9 = arith.constant 9 : index
    %c0_71 = arith.constant 0 : index
    %c0_72 = arith.constant 0 : index
    %72 = vector.load %arg4[%c9, %c0_71, %c0_72] : memref<25x32x128xf32, #tpu.memory_space<vmem>>, vector<1x32x128xf32>
    %73 = vector.shape_cast %72 : vector<1x32x128xf32> to vector<32x128xf32>
    %cst_73 = arith.constant dense<0.000000e+00> : vector<32x32xf32>
    %74 = tpu.matmul %73, %7, %cst_73 {dimension_numbers = #tpu.dot_dimension_numbers<[1], [0], [0], [1], [0, 0, 1, 1], [], []>} : vector<32x128xf32>, vector<128x32xf32>, vector<32x32xf32> -> vector<32x32xf32>
    %c9_74 = arith.constant 9 : index
    %c0_75 = arith.constant 0 : index
    %c0_76 = arith.constant 0 : index
    %75 = vector.load %arg5[%c9_74, %c0_75, %c0_76] : memref<25x32x32xf32, #tpu.memory_space<vmem>>, vector<1x32x32xf32>
    %76 = vector.shape_cast %75 : vector<1x32x32xf32> to vector<32x32xf32>
    %cst_77 = arith.constant dense<0.000000e+00> : vector<32x32xf32>
    %77 = tpu.matmul %74, %76, %cst_77 {dimension_numbers = #tpu.dot_dimension_numbers<[1], [0], [0], [1], [0, 0, 1, 1], [], []>} : vector<32x32xf32>, vector<32x32xf32>, vector<32x32xf32> -> vector<32x32xf32>
    %78 = arith.addf %71, %77 : vector<32x32xf32>
    %c10 = arith.constant 10 : index
    %c0_78 = arith.constant 0 : index
    %c0_79 = arith.constant 0 : index
    %79 = vector.load %arg4[%c10, %c0_78, %c0_79] : memref<25x32x128xf32, #tpu.memory_space<vmem>>, vector<1x32x128xf32>
    %80 = vector.shape_cast %79 : vector<1x32x128xf32> to vector<32x128xf32>
    %cst_80 = arith.constant dense<0.000000e+00> : vector<32x32xf32>
    %81 = tpu.matmul %80, %7, %cst_80 {dimension_numbers = #tpu.dot_dimension_numbers<[1], [0], [0], [1], [0, 0, 1, 1], [], []>} : vector<32x128xf32>, vector<128x32xf32>, vector<32x32xf32> -> vector<32x32xf32>
    %c10_81 = arith.constant 10 : index
    %c0_82 = arith.constant 0 : index
    %c0_83 = arith.constant 0 : index
    %82 = vector.load %arg5[%c10_81, %c0_82, %c0_83] : memref<25x32x32xf32, #tpu.memory_space<vmem>>, vector<1x32x32xf32>
    %83 = vector.shape_cast %82 : vector<1x32x32xf32> to vector<32x32xf32>
    %cst_84 = arith.constant dense<0.000000e+00> : vector<32x32xf32>
    %84 = tpu.matmul %81, %83, %cst_84 {dimension_numbers = #tpu.dot_dimension_numbers<[1], [0], [0], [1], [0, 0, 1, 1], [], []>} : vector<32x32xf32>, vector<32x32xf32>, vector<32x32xf32> -> vector<32x32xf32>
    %85 = arith.addf %78, %84 : vector<32x32xf32>
    %c11 = arith.constant 11 : index
    %c0_85 = arith.constant 0 : index
    %c0_86 = arith.constant 0 : index
    %86 = vector.load %arg4[%c11, %c0_85, %c0_86] : memref<25x32x128xf32, #tpu.memory_space<vmem>>, vector<1x32x128xf32>
    %87 = vector.shape_cast %86 : vector<1x32x128xf32> to vector<32x128xf32>
    %cst_87 = arith.constant dense<0.000000e+00> : vector<32x32xf32>
    %88 = tpu.matmul %87, %7, %cst_87 {dimension_numbers = #tpu.dot_dimension_numbers<[1], [0], [0], [1], [0, 0, 1, 1], [], []>} : vector<32x128xf32>, vector<128x32xf32>, vector<32x32xf32> -> vector<32x32xf32>
    %c11_88 = arith.constant 11 : index
    %c0_89 = arith.constant 0 : index
    %c0_90 = arith.constant 0 : index
    %89 = vector.load %arg5[%c11_88, %c0_89, %c0_90] : memref<25x32x32xf32, #tpu.memory_space<vmem>>, vector<1x32x32xf32>
    %90 = vector.shape_cast %89 : vector<1x32x32xf32> to vector<32x32xf32>
    %cst_91 = arith.constant dense<0.000000e+00> : vector<32x32xf32>
    %91 = tpu.matmul %88, %90, %cst_91 {dimension_numbers = #tpu.dot_dimension_numbers<[1], [0], [0], [1], [0, 0, 1, 1], [], []>} : vector<32x32xf32>, vector<32x32xf32>, vector<32x32xf32> -> vector<32x32xf32>
    %92 = arith.addf %85, %91 : vector<32x32xf32>
    %c12 = arith.constant 12 : index
    %c0_92 = arith.constant 0 : index
    %c0_93 = arith.constant 0 : index
    %93 = vector.load %arg4[%c12, %c0_92, %c0_93] : memref<25x32x128xf32, #tpu.memory_space<vmem>>, vector<1x32x128xf32>
    %94 = vector.shape_cast %93 : vector<1x32x128xf32> to vector<32x128xf32>
    %cst_94 = arith.constant dense<0.000000e+00> : vector<32x32xf32>
    %95 = tpu.matmul %94, %7, %cst_94 {dimension_numbers = #tpu.dot_dimension_numbers<[1], [0], [0], [1], [0, 0, 1, 1], [], []>} : vector<32x128xf32>, vector<128x32xf32>, vector<32x32xf32> -> vector<32x32xf32>
    %c12_95 = arith.constant 12 : index
    %c0_96 = arith.constant 0 : index
    %c0_97 = arith.constant 0 : index
    %96 = vector.load %arg5[%c12_95, %c0_96, %c0_97] : memref<25x32x32xf32, #tpu.memory_space<vmem>>, vector<1x32x32xf32>
    %97 = vector.shape_cast %96 : vector<1x32x32xf32> to vector<32x32xf32>
    %cst_98 = arith.constant dense<0.000000e+00> : vector<32x32xf32>
    %98 = tpu.matmul %95, %97, %cst_98 {dimension_numbers = #tpu.dot_dimension_numbers<[1], [0], [0], [1], [0, 0, 1, 1], [], []>} : vector<32x32xf32>, vector<32x32xf32>, vector<32x32xf32> -> vector<32x32xf32>
    %99 = arith.addf %92, %98 : vector<32x32xf32>
    %c13 = arith.constant 13 : index
    %c0_99 = arith.constant 0 : index
    %c0_100 = arith.constant 0 : index
    %100 = vector.load %arg4[%c13, %c0_99, %c0_100] : memref<25x32x128xf32, #tpu.memory_space<vmem>>, vector<1x32x128xf32>
    %101 = vector.shape_cast %100 : vector<1x32x128xf32> to vector<32x128xf32>
    %cst_101 = arith.constant dense<0.000000e+00> : vector<32x32xf32>
    %102 = tpu.matmul %101, %7, %cst_101 {dimension_numbers = #tpu.dot_dimension_numbers<[1], [0], [0], [1], [0, 0, 1, 1], [], []>} : vector<32x128xf32>, vector<128x32xf32>, vector<32x32xf32> -> vector<32x32xf32>
    %c13_102 = arith.constant 13 : index
    %c0_103 = arith.constant 0 : index
    %c0_104 = arith.constant 0 : index
    %103 = vector.load %arg5[%c13_102, %c0_103, %c0_104] : memref<25x32x32xf32, #tpu.memory_space<vmem>>, vector<1x32x32xf32>
    %104 = vector.shape_cast %103 : vector<1x32x32xf32> to vector<32x32xf32>
    %cst_105 = arith.constant dense<0.000000e+00> : vector<32x32xf32>
    %105 = tpu.matmul %102, %104, %cst_105 {dimension_numbers = #tpu.dot_dimension_numbers<[1], [0], [0], [1], [0, 0, 1, 1], [], []>} : vector<32x32xf32>, vector<32x32xf32>, vector<32x32xf32> -> vector<32x32xf32>
    %106 = arith.addf %99, %105 : vector<32x32xf32>
    %c14 = arith.constant 14 : index
    %c0_106 = arith.constant 0 : index
    %c0_107 = arith.constant 0 : index
    %107 = vector.load %arg4[%c14, %c0_106, %c0_107] : memref<25x32x128xf32, #tpu.memory_space<vmem>>, vector<1x32x128xf32>
    %108 = vector.shape_cast %107 : vector<1x32x128xf32> to vector<32x128xf32>
    %cst_108 = arith.constant dense<0.000000e+00> : vector<32x32xf32>
    %109 = tpu.matmul %108, %7, %cst_108 {dimension_numbers = #tpu.dot_dimension_numbers<[1], [0], [0], [1], [0, 0, 1, 1], [], []>} : vector<32x128xf32>, vector<128x32xf32>, vector<32x32xf32> -> vector<32x32xf32>
    %c14_109 = arith.constant 14 : index
    %c0_110 = arith.constant 0 : index
    %c0_111 = arith.constant 0 : index
    %110 = vector.load %arg5[%c14_109, %c0_110, %c0_111] : memref<25x32x32xf32, #tpu.memory_space<vmem>>, vector<1x32x32xf32>
    %111 = vector.shape_cast %110 : vector<1x32x32xf32> to vector<32x32xf32>
    %cst_112 = arith.constant dense<0.000000e+00> : vector<32x32xf32>
    %112 = tpu.matmul %109, %111, %cst_112 {dimension_numbers = #tpu.dot_dimension_numbers<[1], [0], [0], [1], [0, 0, 1, 1], [], []>} : vector<32x32xf32>, vector<32x32xf32>, vector<32x32xf32> -> vector<32x32xf32>
    %113 = arith.addf %106, %112 : vector<32x32xf32>
    %c15 = arith.constant 15 : index
    %c0_113 = arith.constant 0 : index
    %c0_114 = arith.constant 0 : index
    %114 = vector.load %arg4[%c15, %c0_113, %c0_114] : memref<25x32x128xf32, #tpu.memory_space<vmem>>, vector<1x32x128xf32>
    %115 = vector.shape_cast %114 : vector<1x32x128xf32> to vector<32x128xf32>
    %cst_115 = arith.constant dense<0.000000e+00> : vector<32x32xf32>
    %116 = tpu.matmul %115, %7, %cst_115 {dimension_numbers = #tpu.dot_dimension_numbers<[1], [0], [0], [1], [0, 0, 1, 1], [], []>} : vector<32x128xf32>, vector<128x32xf32>, vector<32x32xf32> -> vector<32x32xf32>
    %c15_116 = arith.constant 15 : index
    %c0_117 = arith.constant 0 : index
    %c0_118 = arith.constant 0 : index
    %117 = vector.load %arg5[%c15_116, %c0_117, %c0_118] : memref<25x32x32xf32, #tpu.memory_space<vmem>>, vector<1x32x32xf32>
    %118 = vector.shape_cast %117 : vector<1x32x32xf32> to vector<32x32xf32>
    %cst_119 = arith.constant dense<0.000000e+00> : vector<32x32xf32>
    %119 = tpu.matmul %116, %118, %cst_119 {dimension_numbers = #tpu.dot_dimension_numbers<[1], [0], [0], [1], [0, 0, 1, 1], [], []>} : vector<32x32xf32>, vector<32x32xf32>, vector<32x32xf32> -> vector<32x32xf32>
    %120 = arith.addf %113, %119 : vector<32x32xf32>
    %c16 = arith.constant 16 : index
    %c0_120 = arith.constant 0 : index
    %c0_121 = arith.constant 0 : index
    %121 = vector.load %arg4[%c16, %c0_120, %c0_121] : memref<25x32x128xf32, #tpu.memory_space<vmem>>, vector<1x32x128xf32>
    %122 = vector.shape_cast %121 : vector<1x32x128xf32> to vector<32x128xf32>
    %cst_122 = arith.constant dense<0.000000e+00> : vector<32x32xf32>
    %123 = tpu.matmul %122, %7, %cst_122 {dimension_numbers = #tpu.dot_dimension_numbers<[1], [0], [0], [1], [0, 0, 1, 1], [], []>} : vector<32x128xf32>, vector<128x32xf32>, vector<32x32xf32> -> vector<32x32xf32>
    %c16_123 = arith.constant 16 : index
    %c0_124 = arith.constant 0 : index
    %c0_125 = arith.constant 0 : index
    %124 = vector.load %arg5[%c16_123, %c0_124, %c0_125] : memref<25x32x32xf32, #tpu.memory_space<vmem>>, vector<1x32x32xf32>
    %125 = vector.shape_cast %124 : vector<1x32x32xf32> to vector<32x32xf32>
    %cst_126 = arith.constant dense<0.000000e+00> : vector<32x32xf32>
    %126 = tpu.matmul %123, %125, %cst_126 {dimension_numbers = #tpu.dot_dimension_numbers<[1], [0], [0], [1], [0, 0, 1, 1], [], []>} : vector<32x32xf32>, vector<32x32xf32>, vector<32x32xf32> -> vector<32x32xf32>
    %127 = arith.addf %120, %126 : vector<32x32xf32>
    %c17 = arith.constant 17 : index
    %c0_127 = arith.constant 0 : index
    %c0_128 = arith.constant 0 : index
    %128 = vector.load %arg4[%c17, %c0_127, %c0_128] : memref<25x32x128xf32, #tpu.memory_space<vmem>>, vector<1x32x128xf32>
    %129 = vector.shape_cast %128 : vector<1x32x128xf32> to vector<32x128xf32>
    %cst_129 = arith.constant dense<0.000000e+00> : vector<32x32xf32>
    %130 = tpu.matmul %129, %7, %cst_129 {dimension_numbers = #tpu.dot_dimension_numbers<[1], [0], [0], [1], [0, 0, 1, 1], [], []>} : vector<32x128xf32>, vector<128x32xf32>, vector<32x32xf32> -> vector<32x32xf32>
    %c17_130 = arith.constant 17 : index
    %c0_131 = arith.constant 0 : index
    %c0_132 = arith.constant 0 : index
    %131 = vector.load %arg5[%c17_130, %c0_131, %c0_132] : memref<25x32x32xf32, #tpu.memory_space<vmem>>, vector<1x32x32xf32>
    %132 = vector.shape_cast %131 : vector<1x32x32xf32> to vector<32x32xf32>
    %cst_133 = arith.constant dense<0.000000e+00> : vector<32x32xf32>
    %133 = tpu.matmul %130, %132, %cst_133 {dimension_numbers = #tpu.dot_dimension_numbers<[1], [0], [0], [1], [0, 0, 1, 1], [], []>} : vector<32x32xf32>, vector<32x32xf32>, vector<32x32xf32> -> vector<32x32xf32>
    %134 = arith.addf %127, %133 : vector<32x32xf32>
    %c18 = arith.constant 18 : index
    %c0_134 = arith.constant 0 : index
    %c0_135 = arith.constant 0 : index
    %135 = vector.load %arg4[%c18, %c0_134, %c0_135] : memref<25x32x128xf32, #tpu.memory_space<vmem>>, vector<1x32x128xf32>
    %136 = vector.shape_cast %135 : vector<1x32x128xf32> to vector<32x128xf32>
    %cst_136 = arith.constant dense<0.000000e+00> : vector<32x32xf32>
    %137 = tpu.matmul %136, %7, %cst_136 {dimension_numbers = #tpu.dot_dimension_numbers<[1], [0], [0], [1], [0, 0, 1, 1], [], []>} : vector<32x128xf32>, vector<128x32xf32>, vector<32x32xf32> -> vector<32x32xf32>
    %c18_137 = arith.constant 18 : index
    %c0_138 = arith.constant 0 : index
    %c0_139 = arith.constant 0 : index
    %138 = vector.load %arg5[%c18_137, %c0_138, %c0_139] : memref<25x32x32xf32, #tpu.memory_space<vmem>>, vector<1x32x32xf32>
    %139 = vector.shape_cast %138 : vector<1x32x32xf32> to vector<32x32xf32>
    %cst_140 = arith.constant dense<0.000000e+00> : vector<32x32xf32>
    %140 = tpu.matmul %137, %139, %cst_140 {dimension_numbers = #tpu.dot_dimension_numbers<[1], [0], [0], [1], [0, 0, 1, 1], [], []>} : vector<32x32xf32>, vector<32x32xf32>, vector<32x32xf32> -> vector<32x32xf32>
    %141 = arith.addf %134, %140 : vector<32x32xf32>
    %c19 = arith.constant 19 : index
    %c0_141 = arith.constant 0 : index
    %c0_142 = arith.constant 0 : index
    %142 = vector.load %arg4[%c19, %c0_141, %c0_142] : memref<25x32x128xf32, #tpu.memory_space<vmem>>, vector<1x32x128xf32>
    %143 = vector.shape_cast %142 : vector<1x32x128xf32> to vector<32x128xf32>
    %cst_143 = arith.constant dense<0.000000e+00> : vector<32x32xf32>
    %144 = tpu.matmul %143, %7, %cst_143 {dimension_numbers = #tpu.dot_dimension_numbers<[1], [0], [0], [1], [0, 0, 1, 1], [], []>} : vector<32x128xf32>, vector<128x32xf32>, vector<32x32xf32> -> vector<32x32xf32>
    %c19_144 = arith.constant 19 : index
    %c0_145 = arith.constant 0 : index
    %c0_146 = arith.constant 0 : index
    %145 = vector.load %arg5[%c19_144, %c0_145, %c0_146] : memref<25x32x32xf32, #tpu.memory_space<vmem>>, vector<1x32x32xf32>
    %146 = vector.shape_cast %145 : vector<1x32x32xf32> to vector<32x32xf32>
    %cst_147 = arith.constant dense<0.000000e+00> : vector<32x32xf32>
    %147 = tpu.matmul %144, %146, %cst_147 {dimension_numbers = #tpu.dot_dimension_numbers<[1], [0], [0], [1], [0, 0, 1, 1], [], []>} : vector<32x32xf32>, vector<32x32xf32>, vector<32x32xf32> -> vector<32x32xf32>
    %148 = arith.addf %141, %147 : vector<32x32xf32>
    %c20 = arith.constant 20 : index
    %c0_148 = arith.constant 0 : index
    %c0_149 = arith.constant 0 : index
    %149 = vector.load %arg4[%c20, %c0_148, %c0_149] : memref<25x32x128xf32, #tpu.memory_space<vmem>>, vector<1x32x128xf32>
    %150 = vector.shape_cast %149 : vector<1x32x128xf32> to vector<32x128xf32>
    %cst_150 = arith.constant dense<0.000000e+00> : vector<32x32xf32>
    %151 = tpu.matmul %150, %7, %cst_150 {dimension_numbers = #tpu.dot_dimension_numbers<[1], [0], [0], [1], [0, 0, 1, 1], [], []>} : vector<32x128xf32>, vector<128x32xf32>, vector<32x32xf32> -> vector<32x32xf32>
    %c20_151 = arith.constant 20 : index
    %c0_152 = arith.constant 0 : index
    %c0_153 = arith.constant 0 : index
    %152 = vector.load %arg5[%c20_151, %c0_152, %c0_153] : memref<25x32x32xf32, #tpu.memory_space<vmem>>, vector<1x32x32xf32>
    %153 = vector.shape_cast %152 : vector<1x32x32xf32> to vector<32x32xf32>
    %cst_154 = arith.constant dense<0.000000e+00> : vector<32x32xf32>
    %154 = tpu.matmul %151, %153, %cst_154 {dimension_numbers = #tpu.dot_dimension_numbers<[1], [0], [0], [1], [0, 0, 1, 1], [], []>} : vector<32x32xf32>, vector<32x32xf32>, vector<32x32xf32> -> vector<32x32xf32>
    %155 = arith.addf %148, %154 : vector<32x32xf32>
    %c21 = arith.constant 21 : index
    %c0_155 = arith.constant 0 : index
    %c0_156 = arith.constant 0 : index
    %156 = vector.load %arg4[%c21, %c0_155, %c0_156] : memref<25x32x128xf32, #tpu.memory_space<vmem>>, vector<1x32x128xf32>
    %157 = vector.shape_cast %156 : vector<1x32x128xf32> to vector<32x128xf32>
    %cst_157 = arith.constant dense<0.000000e+00> : vector<32x32xf32>
    %158 = tpu.matmul %157, %7, %cst_157 {dimension_numbers = #tpu.dot_dimension_numbers<[1], [0], [0], [1], [0, 0, 1, 1], [], []>} : vector<32x128xf32>, vector<128x32xf32>, vector<32x32xf32> -> vector<32x32xf32>
    %c21_158 = arith.constant 21 : index
    %c0_159 = arith.constant 0 : index
    %c0_160 = arith.constant 0 : index
    %159 = vector.load %arg5[%c21_158, %c0_159, %c0_160] : memref<25x32x32xf32, #tpu.memory_space<vmem>>, vector<1x32x32xf32>
    %160 = vector.shape_cast %159 : vector<1x32x32xf32> to vector<32x32xf32>
    %cst_161 = arith.constant dense<0.000000e+00> : vector<32x32xf32>
    %161 = tpu.matmul %158, %160, %cst_161 {dimension_numbers = #tpu.dot_dimension_numbers<[1], [0], [0], [1], [0, 0, 1, 1], [], []>} : vector<32x32xf32>, vector<32x32xf32>, vector<32x32xf32> -> vector<32x32xf32>
    %162 = arith.addf %155, %161 : vector<32x32xf32>
    %c22 = arith.constant 22 : index
    %c0_162 = arith.constant 0 : index
    %c0_163 = arith.constant 0 : index
    %163 = vector.load %arg4[%c22, %c0_162, %c0_163] : memref<25x32x128xf32, #tpu.memory_space<vmem>>, vector<1x32x128xf32>
    %164 = vector.shape_cast %163 : vector<1x32x128xf32> to vector<32x128xf32>
    %cst_164 = arith.constant dense<0.000000e+00> : vector<32x32xf32>
    %165 = tpu.matmul %164, %7, %cst_164 {dimension_numbers = #tpu.dot_dimension_numbers<[1], [0], [0], [1], [0, 0, 1, 1], [], []>} : vector<32x128xf32>, vector<128x32xf32>, vector<32x32xf32> -> vector<32x32xf32>
    %c22_165 = arith.constant 22 : index
    %c0_166 = arith.constant 0 : index
    %c0_167 = arith.constant 0 : index
    %166 = vector.load %arg5[%c22_165, %c0_166, %c0_167] : memref<25x32x32xf32, #tpu.memory_space<vmem>>, vector<1x32x32xf32>
    %167 = vector.shape_cast %166 : vector<1x32x32xf32> to vector<32x32xf32>
    %cst_168 = arith.constant dense<0.000000e+00> : vector<32x32xf32>
    %168 = tpu.matmul %165, %167, %cst_168 {dimension_numbers = #tpu.dot_dimension_numbers<[1], [0], [0], [1], [0, 0, 1, 1], [], []>} : vector<32x32xf32>, vector<32x32xf32>, vector<32x32xf32> -> vector<32x32xf32>
    %169 = arith.addf %162, %168 : vector<32x32xf32>
    %c23 = arith.constant 23 : index
    %c0_169 = arith.constant 0 : index
    %c0_170 = arith.constant 0 : index
    %170 = vector.load %arg4[%c23, %c0_169, %c0_170] : memref<25x32x128xf32, #tpu.memory_space<vmem>>, vector<1x32x128xf32>
    %171 = vector.shape_cast %170 : vector<1x32x128xf32> to vector<32x128xf32>
    %cst_171 = arith.constant dense<0.000000e+00> : vector<32x32xf32>
    %172 = tpu.matmul %171, %7, %cst_171 {dimension_numbers = #tpu.dot_dimension_numbers<[1], [0], [0], [1], [0, 0, 1, 1], [], []>} : vector<32x128xf32>, vector<128x32xf32>, vector<32x32xf32> -> vector<32x32xf32>
    %c23_172 = arith.constant 23 : index
    %c0_173 = arith.constant 0 : index
    %c0_174 = arith.constant 0 : index
    %173 = vector.load %arg5[%c23_172, %c0_173, %c0_174] : memref<25x32x32xf32, #tpu.memory_space<vmem>>, vector<1x32x32xf32>
    %174 = vector.shape_cast %173 : vector<1x32x32xf32> to vector<32x32xf32>
    %cst_175 = arith.constant dense<0.000000e+00> : vector<32x32xf32>
    %175 = tpu.matmul %172, %174, %cst_175 {dimension_numbers = #tpu.dot_dimension_numbers<[1], [0], [0], [1], [0, 0, 1, 1], [], []>} : vector<32x32xf32>, vector<32x32xf32>, vector<32x32xf32> -> vector<32x32xf32>
    %176 = arith.addf %169, %175 : vector<32x32xf32>
    %c24 = arith.constant 24 : index
    %c0_176 = arith.constant 0 : index
    %c0_177 = arith.constant 0 : index
    %177 = vector.load %arg4[%c24, %c0_176, %c0_177] : memref<25x32x128xf32, #tpu.memory_space<vmem>>, vector<1x32x128xf32>
    %178 = vector.shape_cast %177 : vector<1x32x128xf32> to vector<32x128xf32>
    %cst_178 = arith.constant dense<0.000000e+00> : vector<32x32xf32>
    %179 = tpu.matmul %178, %7, %cst_178 {dimension_numbers = #tpu.dot_dimension_numbers<[1], [0], [0], [1], [0, 0, 1, 1], [], []>} : vector<32x128xf32>, vector<128x32xf32>, vector<32x32xf32> -> vector<32x32xf32>
    %c24_179 = arith.constant 24 : index
    %c0_180 = arith.constant 0 : index
    %c0_181 = arith.constant 0 : index
    %180 = vector.load %arg5[%c24_179, %c0_180, %c0_181] : memref<25x32x32xf32, #tpu.memory_space<vmem>>, vector<1x32x32xf32>
    %181 = vector.shape_cast %180 : vector<1x32x32xf32> to vector<32x32xf32>
    %cst_182 = arith.constant dense<0.000000e+00> : vector<32x32xf32>
    %182 = tpu.matmul %179, %181, %cst_182 {dimension_numbers = #tpu.dot_dimension_numbers<[1], [0], [0], [1], [0, 0, 1, 1], [], []>} : vector<32x32xf32>, vector<32x32xf32>, vector<32x32xf32> -> vector<32x32xf32>
    %183 = arith.addf %176, %182 : vector<32x32xf32>
    %c0_183 = arith.constant 0 : index
    %c0_184 = arith.constant 0 : index
    %184 = vector.load %arg6[%c0_183, %c0_184] : memref<1x32xf32, #tpu.memory_space<vmem>>, vector<1x32xf32>
    %185 = vector.broadcast %184 : vector<1x32xf32> to vector<32x32xf32>
    %186 = arith.addf %183, %185 : vector<32x32xf32>
    %cst_185 = arith.constant 0.000000e+00 : f32
    %187 = vector.broadcast %cst_185 : f32 to vector<32x32xf32>
    %188 = arith.maximumf %186, %187 : vector<32x32xf32>
    %cst_186 = arith.constant 0.000000e+00 : f32
    %189 = vector.broadcast %cst_186 : f32 to vector<32x32xf32>
    %c0_187 = arith.constant 0 : index
    %c0_188 = arith.constant 0 : index
    %c0_189 = arith.constant 0 : index
    %190 = vector.load %arg7[%c0_187, %c0_188, %c0_189] : memref<9x32x32xf32, #tpu.memory_space<vmem>>, vector<1x32x32xf32>
    %191 = vector.shape_cast %190 : vector<1x32x32xf32> to vector<32x32xf32>
    %cst_190 = arith.constant dense<0.000000e+00> : vector<32x32xf32>
    %192 = tpu.matmul %191, %188, %cst_190 {dimension_numbers = #tpu.dot_dimension_numbers<[1], [0], [0], [1], [0, 0, 1, 1], [], []>} : vector<32x32xf32>, vector<32x32xf32>, vector<32x32xf32> -> vector<32x32xf32>
    %c0_191 = arith.constant 0 : index
    %c0_192 = arith.constant 0 : index
    %c0_193 = arith.constant 0 : index
    %193 = vector.load %arg8[%c0_191, %c0_192, %c0_193] : memref<99x32x32xf32, #tpu.memory_space<vmem>>, vector<1x32x32xf32>
    %194 = vector.shape_cast %193 : vector<1x32x32xf32> to vector<32x32xf32>
    %cst_194 = arith.constant dense<0.000000e+00> : vector<32x32xf32>
    %195 = tpu.matmul %192, %194, %cst_194 {dimension_numbers = #tpu.dot_dimension_numbers<[1], [0], [0], [1], [0, 0, 1, 1], [], []>} : vector<32x32xf32>, vector<32x32xf32>, vector<32x32xf32> -> vector<32x32xf32>
    %196 = arith.addf %189, %195 : vector<32x32xf32>
    %c1_195 = arith.constant 1 : index
    %c0_196 = arith.constant 0 : index
    %c0_197 = arith.constant 0 : index
    %197 = vector.load %arg7[%c1_195, %c0_196, %c0_197] : memref<9x32x32xf32, #tpu.memory_space<vmem>>, vector<1x32x32xf32>
    %198 = vector.shape_cast %197 : vector<1x32x32xf32> to vector<32x32xf32>
    %cst_198 = arith.constant dense<0.000000e+00> : vector<32x32xf32>
    %199 = tpu.matmul %198, %188, %cst_198 {dimension_numbers = #tpu.dot_dimension_numbers<[1], [0], [0], [1], [0, 0, 1, 1], [], []>} : vector<32x32xf32>, vector<32x32xf32>, vector<32x32xf32> -> vector<32x32xf32>
    %c1_199 = arith.constant 1 : index
    %c0_200 = arith.constant 0 : index
    %c0_201 = arith.constant 0 : index
    %200 = vector.load %arg8[%c1_199, %c0_200, %c0_201] : memref<99x32x32xf32, #tpu.memory_space<vmem>>, vector<1x32x32xf32>
    %201 = vector.shape_cast %200 : vector<1x32x32xf32> to vector<32x32xf32>
    %cst_202 = arith.constant dense<0.000000e+00> : vector<32x32xf32>
    %202 = tpu.matmul %199, %201, %cst_202 {dimension_numbers = #tpu.dot_dimension_numbers<[1], [0], [0], [1], [0, 0, 1, 1], [], []>} : vector<32x32xf32>, vector<32x32xf32>, vector<32x32xf32> -> vector<32x32xf32>
    %203 = arith.addf %196, %202 : vector<32x32xf32>
    %c2_203 = arith.constant 2 : index
    %c0_204 = arith.constant 0 : index
    %c0_205 = arith.constant 0 : index
    %204 = vector.load %arg7[%c2_203, %c0_204, %c0_205] : memref<9x32x32xf32, #tpu.memory_space<vmem>>, vector<1x32x32xf32>
    %205 = vector.shape_cast %204 : vector<1x32x32xf32> to vector<32x32xf32>
    %cst_206 = arith.constant dense<0.000000e+00> : vector<32x32xf32>
    %206 = tpu.matmul %205, %188, %cst_206 {dimension_numbers = #tpu.dot_dimension_numbers<[1], [0], [0], [1], [0, 0, 1, 1], [], []>} : vector<32x32xf32>, vector<32x32xf32>, vector<32x32xf32> -> vector<32x32xf32>
    %c2_207 = arith.constant 2 : index
    %c0_208 = arith.constant 0 : index
    %c0_209 = arith.constant 0 : index
    %207 = vector.load %arg8[%c2_207, %c0_208, %c0_209] : memref<99x32x32xf32, #tpu.memory_space<vmem>>, vector<1x32x32xf32>
    %208 = vector.shape_cast %207 : vector<1x32x32xf32> to vector<32x32xf32>
    %cst_210 = arith.constant dense<0.000000e+00> : vector<32x32xf32>
    %209 = tpu.matmul %206, %208, %cst_210 {dimension_numbers = #tpu.dot_dimension_numbers<[1], [0], [0], [1], [0, 0, 1, 1], [], []>} : vector<32x32xf32>, vector<32x32xf32>, vector<32x32xf32> -> vector<32x32xf32>
    %210 = arith.addf %203, %209 : vector<32x32xf32>
    %c3_211 = arith.constant 3 : index
    %c0_212 = arith.constant 0 : index
    %c0_213 = arith.constant 0 : index
    %211 = vector.load %arg7[%c3_211, %c0_212, %c0_213] : memref<9x32x32xf32, #tpu.memory_space<vmem>>, vector<1x32x32xf32>
    %212 = vector.shape_cast %211 : vector<1x32x32xf32> to vector<32x32xf32>
    %cst_214 = arith.constant dense<0.000000e+00> : vector<32x32xf32>
    %213 = tpu.matmul %212, %188, %cst_214 {dimension_numbers = #tpu.dot_dimension_numbers<[1], [0], [0], [1], [0, 0, 1, 1], [], []>} : vector<32x32xf32>, vector<32x32xf32>, vector<32x32xf32> -> vector<32x32xf32>
    %c3_215 = arith.constant 3 : index
    %c0_216 = arith.constant 0 : index
    %c0_217 = arith.constant 0 : index
    %214 = vector.load %arg8[%c3_215, %c0_216, %c0_217] : memref<99x32x32xf32, #tpu.memory_space<vmem>>, vector<1x32x32xf32>
    %215 = vector.shape_cast %214 : vector<1x32x32xf32> to vector<32x32xf32>
    %cst_218 = arith.constant dense<0.000000e+00> : vector<32x32xf32>
    %216 = tpu.matmul %213, %215, %cst_218 {dimension_numbers = #tpu.dot_dimension_numbers<[1], [0], [0], [1], [0, 0, 1, 1], [], []>} : vector<32x32xf32>, vector<32x32xf32>, vector<32x32xf32> -> vector<32x32xf32>
    %217 = arith.addf %210, %216 : vector<32x32xf32>
    %c4_219 = arith.constant 4 : index
    %c0_220 = arith.constant 0 : index
    %c0_221 = arith.constant 0 : index
    %218 = vector.load %arg7[%c4_219, %c0_220, %c0_221] : memref<9x32x32xf32, #tpu.memory_space<vmem>>, vector<1x32x32xf32>
    %219 = vector.shape_cast %218 : vector<1x32x32xf32> to vector<32x32xf32>
    %cst_222 = arith.constant dense<0.000000e+00> : vector<32x32xf32>
    %220 = tpu.matmul %219, %188, %cst_222 {dimension_numbers = #tpu.dot_dimension_numbers<[1], [0], [0], [1], [0, 0, 1, 1], [], []>} : vector<32x32xf32>, vector<32x32xf32>, vector<32x32xf32> -> vector<32x32xf32>
    %c4_223 = arith.constant 4 : index
    %c0_224 = arith.constant 0 : index
    %c0_225 = arith.constant 0 : index
    %221 = vector.load %arg8[%c4_223, %c0_224, %c0_225] : memref<99x32x32xf32, #tpu.memory_space<vmem>>, vector<1x32x32xf32>
    %222 = vector.shape_cast %221 : vector<1x32x32xf32> to vector<32x32xf32>
    %cst_226 = arith.constant dense<0.000000e+00> : vector<32x32xf32>
    %223 = tpu.matmul %220, %222, %cst_226 {dimension_numbers = #tpu.dot_dimension_numbers<[1], [0], [0], [1], [0, 0, 1, 1], [], []>} : vector<32x32xf32>, vector<32x32xf32>, vector<32x32xf32> -> vector<32x32xf32>
    %224 = arith.addf %217, %223 : vector<32x32xf32>
    %c5_227 = arith.constant 5 : index
    %c0_228 = arith.constant 0 : index
    %c0_229 = arith.constant 0 : index
    %225 = vector.load %arg7[%c5_227, %c0_228, %c0_229] : memref<9x32x32xf32, #tpu.memory_space<vmem>>, vector<1x32x32xf32>
    %226 = vector.shape_cast %225 : vector<1x32x32xf32> to vector<32x32xf32>
    %cst_230 = arith.constant dense<0.000000e+00> : vector<32x32xf32>
    %227 = tpu.matmul %226, %188, %cst_230 {dimension_numbers = #tpu.dot_dimension_numbers<[1], [0], [0], [1], [0, 0, 1, 1], [], []>} : vector<32x32xf32>, vector<32x32xf32>, vector<32x32xf32> -> vector<32x32xf32>
    %c5_231 = arith.constant 5 : index
    %c0_232 = arith.constant 0 : index
    %c0_233 = arith.constant 0 : index
    %228 = vector.load %arg8[%c5_231, %c0_232, %c0_233] : memref<99x32x32xf32, #tpu.memory_space<vmem>>, vector<1x32x32xf32>
    %229 = vector.shape_cast %228 : vector<1x32x32xf32> to vector<32x32xf32>
    %cst_234 = arith.constant dense<0.000000e+00> : vector<32x32xf32>
    %230 = tpu.matmul %227, %229, %cst_234 {dimension_numbers = #tpu.dot_dimension_numbers<[1], [0], [0], [1], [0, 0, 1, 1], [], []>} : vector<32x32xf32>, vector<32x32xf32>, vector<32x32xf32> -> vector<32x32xf32>
    %231 = arith.addf %224, %230 : vector<32x32xf32>
    %c6_235 = arith.constant 6 : index
    %c0_236 = arith.constant 0 : index
    %c0_237 = arith.constant 0 : index
    %232 = vector.load %arg7[%c6_235, %c0_236, %c0_237] : memref<9x32x32xf32, #tpu.memory_space<vmem>>, vector<1x32x32xf32>
    %233 = vector.shape_cast %232 : vector<1x32x32xf32> to vector<32x32xf32>
    %cst_238 = arith.constant dense<0.000000e+00> : vector<32x32xf32>
    %234 = tpu.matmul %233, %188, %cst_238 {dimension_numbers = #tpu.dot_dimension_numbers<[1], [0], [0], [1], [0, 0, 1, 1], [], []>} : vector<32x32xf32>, vector<32x32xf32>, vector<32x32xf32> -> vector<32x32xf32>
    %c6_239 = arith.constant 6 : index
    %c0_240 = arith.constant 0 : index
    %c0_241 = arith.constant 0 : index
    %235 = vector.load %arg8[%c6_239, %c0_240, %c0_241] : memref<99x32x32xf32, #tpu.memory_space<vmem>>, vector<1x32x32xf32>
    %236 = vector.shape_cast %235 : vector<1x32x32xf32> to vector<32x32xf32>
    %cst_242 = arith.constant dense<0.000000e+00> : vector<32x32xf32>
    %237 = tpu.matmul %234, %236, %cst_242 {dimension_numbers = #tpu.dot_dimension_numbers<[1], [0], [0], [1], [0, 0, 1, 1], [], []>} : vector<32x32xf32>, vector<32x32xf32>, vector<32x32xf32> -> vector<32x32xf32>
    %238 = arith.addf %231, %237 : vector<32x32xf32>
    %c7_243 = arith.constant 7 : index
    %c0_244 = arith.constant 0 : index
    %c0_245 = arith.constant 0 : index
    %239 = vector.load %arg7[%c7_243, %c0_244, %c0_245] : memref<9x32x32xf32, #tpu.memory_space<vmem>>, vector<1x32x32xf32>
    %240 = vector.shape_cast %239 : vector<1x32x32xf32> to vector<32x32xf32>
    %cst_246 = arith.constant dense<0.000000e+00> : vector<32x32xf32>
    %241 = tpu.matmul %240, %188, %cst_246 {dimension_numbers = #tpu.dot_dimension_numbers<[1], [0], [0], [1], [0, 0, 1, 1], [], []>} : vector<32x32xf32>, vector<32x32xf32>, vector<32x32xf32> -> vector<32x32xf32>
    %c7_247 = arith.constant 7 : index
    %c0_248 = arith.constant 0 : index
    %c0_249 = arith.constant 0 : index
    %242 = vector.load %arg8[%c7_247, %c0_248, %c0_249] : memref<99x32x32xf32, #tpu.memory_space<vmem>>, vector<1x32x32xf32>
    %243 = vector.shape_cast %242 : vector<1x32x32xf32> to vector<32x32xf32>
    %cst_250 = arith.constant dense<0.000000e+00> : vector<32x32xf32>
    %244 = tpu.matmul %241, %243, %cst_250 {dimension_numbers = #tpu.dot_dimension_numbers<[1], [0], [0], [1], [0, 0, 1, 1], [], []>} : vector<32x32xf32>, vector<32x32xf32>, vector<32x32xf32> -> vector<32x32xf32>
    %245 = arith.addf %238, %244 : vector<32x32xf32>
    %c8_251 = arith.constant 8 : index
    %c0_252 = arith.constant 0 : index
    %c0_253 = arith.constant 0 : index
    %246 = vector.load %arg7[%c8_251, %c0_252, %c0_253] : memref<9x32x32xf32, #tpu.memory_space<vmem>>, vector<1x32x32xf32>
    %247 = vector.shape_cast %246 : vector<1x32x32xf32> to vector<32x32xf32>
    %cst_254 = arith.constant dense<0.000000e+00> : vector<32x32xf32>
    %248 = tpu.matmul %247, %188, %cst_254 {dimension_numbers = #tpu.dot_dimension_numbers<[1], [0], [0], [1], [0, 0, 1, 1], [], []>} : vector<32x32xf32>, vector<32x32xf32>, vector<32x32xf32> -> vector<32x32xf32>
    %c8_255 = arith.constant 8 : index
    %c0_256 = arith.constant 0 : index
    %c0_257 = arith.constant 0 : index
    %249 = vector.load %arg8[%c8_255, %c0_256, %c0_257] : memref<99x32x32xf32, #tpu.memory_space<vmem>>, vector<1x32x32xf32>
    %250 = vector.shape_cast %249 : vector<1x32x32xf32> to vector<32x32xf32>
    %cst_258 = arith.constant dense<0.000000e+00> : vector<32x32xf32>
    %251 = tpu.matmul %248, %250, %cst_258 {dimension_numbers = #tpu.dot_dimension_numbers<[1], [0], [0], [1], [0, 0, 1, 1], [], []>} : vector<32x32xf32>, vector<32x32xf32>, vector<32x32xf32> -> vector<32x32xf32>
    %252 = arith.addf %245, %251 : vector<32x32xf32>
    %c0_259 = arith.constant 0 : index
    %c0_260 = arith.constant 0 : index
    %c0_261 = arith.constant 0 : index
    %253 = vector.load %arg9[%c0_259, %c0_260, %c0_261] : memref<11x1x32xf32, #tpu.memory_space<vmem>>, vector<1x1x32xf32>
    %254 = vector.shape_cast %253 : vector<1x1x32xf32> to vector<1x32xf32>
    %255 = vector.broadcast %254 : vector<1x32xf32> to vector<32x32xf32>
    %256 = arith.addf %252, %255 : vector<32x32xf32>
    %cst_262 = arith.constant 0.000000e+00 : f32
    %257 = vector.broadcast %cst_262 : f32 to vector<32x32xf32>
    %258 = arith.maximumf %256, %257 : vector<32x32xf32>
    %cst_263 = arith.constant 0.000000e+00 : f32
    %259 = vector.broadcast %cst_263 : f32 to vector<32x32xf32>
    %c0_264 = arith.constant 0 : index
    %c0_265 = arith.constant 0 : index
    %c0_266 = arith.constant 0 : index
    %260 = vector.load %arg7[%c0_264, %c0_265, %c0_266] : memref<9x32x32xf32, #tpu.memory_space<vmem>>, vector<1x32x32xf32>
    %261 = vector.shape_cast %260 : vector<1x32x32xf32> to vector<32x32xf32>
    %cst_267 = arith.constant dense<0.000000e+00> : vector<32x32xf32>
    %262 = tpu.matmul %261, %258, %cst_267 {dimension_numbers = #tpu.dot_dimension_numbers<[1], [0], [0], [1], [0, 0, 1, 1], [], []>} : vector<32x32xf32>, vector<32x32xf32>, vector<32x32xf32> -> vector<32x32xf32>
    %c9_268 = arith.constant 9 : index
    %c0_269 = arith.constant 0 : index
    %c0_270 = arith.constant 0 : index
    %263 = vector.load %arg8[%c9_268, %c0_269, %c0_270] : memref<99x32x32xf32, #tpu.memory_space<vmem>>, vector<1x32x32xf32>
    %264 = vector.shape_cast %263 : vector<1x32x32xf32> to vector<32x32xf32>
    %cst_271 = arith.constant dense<0.000000e+00> : vector<32x32xf32>
    %265 = tpu.matmul %262, %264, %cst_271 {dimension_numbers = #tpu.dot_dimension_numbers<[1], [0], [0], [1], [0, 0, 1, 1], [], []>} : vector<32x32xf32>, vector<32x32xf32>, vector<32x32xf32> -> vector<32x32xf32>
    %266 = arith.addf %259, %265 : vector<32x32xf32>
    %c1_272 = arith.constant 1 : index
    %c0_273 = arith.constant 0 : index
    %c0_274 = arith.constant 0 : index
    %267 = vector.load %arg7[%c1_272, %c0_273, %c0_274] : memref<9x32x32xf32, #tpu.memory_space<vmem>>, vector<1x32x32xf32>
    %268 = vector.shape_cast %267 : vector<1x32x32xf32> to vector<32x32xf32>
    %cst_275 = arith.constant dense<0.000000e+00> : vector<32x32xf32>
    %269 = tpu.matmul %268, %258, %cst_275 {dimension_numbers = #tpu.dot_dimension_numbers<[1], [0], [0], [1], [0, 0, 1, 1], [], []>} : vector<32x32xf32>, vector<32x32xf32>, vector<32x32xf32> -> vector<32x32xf32>
    %c10_276 = arith.constant 10 : index
    %c0_277 = arith.constant 0 : index
    %c0_278 = arith.constant 0 : index
    %270 = vector.load %arg8[%c10_276, %c0_277, %c0_278] : memref<99x32x32xf32, #tpu.memory_space<vmem>>, vector<1x32x32xf32>
    %271 = vector.shape_cast %270 : vector<1x32x32xf32> to vector<32x32xf32>
    %cst_279 = arith.constant dense<0.000000e+00> : vector<32x32xf32>
    %272 = tpu.matmul %269, %271, %cst_279 {dimension_numbers = #tpu.dot_dimension_numbers<[1], [0], [0], [1], [0, 0, 1, 1], [], []>} : vector<32x32xf32>, vector<32x32xf32>, vector<32x32xf32> -> vector<32x32xf32>
    %273 = arith.addf %266, %272 : vector<32x32xf32>
    %c2_280 = arith.constant 2 : index
    %c0_281 = arith.constant 0 : index
    %c0_282 = arith.constant 0 : index
    %274 = vector.load %arg7[%c2_280, %c0_281, %c0_282] : memref<9x32x32xf32, #tpu.memory_space<vmem>>, vector<1x32x32xf32>
    %275 = vector.shape_cast %274 : vector<1x32x32xf32> to vector<32x32xf32>
    %cst_283 = arith.constant dense<0.000000e+00> : vector<32x32xf32>
    %276 = tpu.matmul %275, %258, %cst_283 {dimension_numbers = #tpu.dot_dimension_numbers<[1], [0], [0], [1], [0, 0, 1, 1], [], []>} : vector<32x32xf32>, vector<32x32xf32>, vector<32x32xf32> -> vector<32x32xf32>
    %c11_284 = arith.constant 11 : index
    %c0_285 = arith.constant 0 : index
    %c0_286 = arith.constant 0 : index
    %277 = vector.load %arg8[%c11_284, %c0_285, %c0_286] : memref<99x32x32xf32, #tpu.memory_space<vmem>>, vector<1x32x32xf32>
    %278 = vector.shape_cast %277 : vector<1x32x32xf32> to vector<32x32xf32>
    %cst_287 = arith.constant dense<0.000000e+00> : vector<32x32xf32>
    %279 = tpu.matmul %276, %278, %cst_287 {dimension_numbers = #tpu.dot_dimension_numbers<[1], [0], [0], [1], [0, 0, 1, 1], [], []>} : vector<32x32xf32>, vector<32x32xf32>, vector<32x32xf32> -> vector<32x32xf32>
    %280 = arith.addf %273, %279 : vector<32x32xf32>
    %c3_288 = arith.constant 3 : index
    %c0_289 = arith.constant 0 : index
    %c0_290 = arith.constant 0 : index
    %281 = vector.load %arg7[%c3_288, %c0_289, %c0_290] : memref<9x32x32xf32, #tpu.memory_space<vmem>>, vector<1x32x32xf32>
    %282 = vector.shape_cast %281 : vector<1x32x32xf32> to vector<32x32xf32>
    %cst_291 = arith.constant dense<0.000000e+00> : vector<32x32xf32>
    %283 = tpu.matmul %282, %258, %cst_291 {dimension_numbers = #tpu.dot_dimension_numbers<[1], [0], [0], [1], [0, 0, 1, 1], [], []>} : vector<32x32xf32>, vector<32x32xf32>, vector<32x32xf32> -> vector<32x32xf32>
    %c12_292 = arith.constant 12 : index
    %c0_293 = arith.constant 0 : index
    %c0_294 = arith.constant 0 : index
    %284 = vector.load %arg8[%c12_292, %c0_293, %c0_294] : memref<99x32x32xf32, #tpu.memory_space<vmem>>, vector<1x32x32xf32>
    %285 = vector.shape_cast %284 : vector<1x32x32xf32> to vector<32x32xf32>
    %cst_295 = arith.constant dense<0.000000e+00> : vector<32x32xf32>
    %286 = tpu.matmul %283, %285, %cst_295 {dimension_numbers = #tpu.dot_dimension_numbers<[1], [0], [0], [1], [0, 0, 1, 1], [], []>} : vector<32x32xf32>, vector<32x32xf32>, vector<32x32xf32> -> vector<32x32xf32>
    %287 = arith.addf %280, %286 : vector<32x32xf32>
    %c4_296 = arith.constant 4 : index
    %c0_297 = arith.constant 0 : index
    %c0_298 = arith.constant 0 : index
    %288 = vector.load %arg7[%c4_296, %c0_297, %c0_298] : memref<9x32x32xf32, #tpu.memory_space<vmem>>, vector<1x32x32xf32>
    %289 = vector.shape_cast %288 : vector<1x32x32xf32> to vector<32x32xf32>
    %cst_299 = arith.constant dense<0.000000e+00> : vector<32x32xf32>
    %290 = tpu.matmul %289, %258, %cst_299 {dimension_numbers = #tpu.dot_dimension_numbers<[1], [0], [0], [1], [0, 0, 1, 1], [], []>} : vector<32x32xf32>, vector<32x32xf32>, vector<32x32xf32> -> vector<32x32xf32>
    %c13_300 = arith.constant 13 : index
    %c0_301 = arith.constant 0 : index
    %c0_302 = arith.constant 0 : index
    %291 = vector.load %arg8[%c13_300, %c0_301, %c0_302] : memref<99x32x32xf32, #tpu.memory_space<vmem>>, vector<1x32x32xf32>
    %292 = vector.shape_cast %291 : vector<1x32x32xf32> to vector<32x32xf32>
    %cst_303 = arith.constant dense<0.000000e+00> : vector<32x32xf32>
    %293 = tpu.matmul %290, %292, %cst_303 {dimension_numbers = #tpu.dot_dimension_numbers<[1], [0], [0], [1], [0, 0, 1, 1], [], []>} : vector<32x32xf32>, vector<32x32xf32>, vector<32x32xf32> -> vector<32x32xf32>
    %294 = arith.addf %287, %293 : vector<32x32xf32>
    %c5_304 = arith.constant 5 : index
    %c0_305 = arith.constant 0 : index
    %c0_306 = arith.constant 0 : index
    %295 = vector.load %arg7[%c5_304, %c0_305, %c0_306] : memref<9x32x32xf32, #tpu.memory_space<vmem>>, vector<1x32x32xf32>
    %296 = vector.shape_cast %295 : vector<1x32x32xf32> to vector<32x32xf32>
    %cst_307 = arith.constant dense<0.000000e+00> : vector<32x32xf32>
    %297 = tpu.matmul %296, %258, %cst_307 {dimension_numbers = #tpu.dot_dimension_numbers<[1], [0], [0], [1], [0, 0, 1, 1], [], []>} : vector<32x32xf32>, vector<32x32xf32>, vector<32x32xf32> -> vector<32x32xf32>
    %c14_308 = arith.constant 14 : index
    %c0_309 = arith.constant 0 : index
    %c0_310 = arith.constant 0 : index
    %298 = vector.load %arg8[%c14_308, %c0_309, %c0_310] : memref<99x32x32xf32, #tpu.memory_space<vmem>>, vector<1x32x32xf32>
    %299 = vector.shape_cast %298 : vector<1x32x32xf32> to vector<32x32xf32>
    %cst_311 = arith.constant dense<0.000000e+00> : vector<32x32xf32>
    %300 = tpu.matmul %297, %299, %cst_311 {dimension_numbers = #tpu.dot_dimension_numbers<[1], [0], [0], [1], [0, 0, 1, 1], [], []>} : vector<32x32xf32>, vector<32x32xf32>, vector<32x32xf32> -> vector<32x32xf32>
    %301 = arith.addf %294, %300 : vector<32x32xf32>
    %c6_312 = arith.constant 6 : index
    %c0_313 = arith.constant 0 : index
    %c0_314 = arith.constant 0 : index
    %302 = vector.load %arg7[%c6_312, %c0_313, %c0_314] : memref<9x32x32xf32, #tpu.memory_space<vmem>>, vector<1x32x32xf32>
    %303 = vector.shape_cast %302 : vector<1x32x32xf32> to vector<32x32xf32>
    %cst_315 = arith.constant dense<0.000000e+00> : vector<32x32xf32>
    %304 = tpu.matmul %303, %258, %cst_315 {dimension_numbers = #tpu.dot_dimension_numbers<[1], [0], [0], [1], [0, 0, 1, 1], [], []>} : vector<32x32xf32>, vector<32x32xf32>, vector<32x32xf32> -> vector<32x32xf32>
    %c15_316 = arith.constant 15 : index
    %c0_317 = arith.constant 0 : index
    %c0_318 = arith.constant 0 : index
    %305 = vector.load %arg8[%c15_316, %c0_317, %c0_318] : memref<99x32x32xf32, #tpu.memory_space<vmem>>, vector<1x32x32xf32>
    %306 = vector.shape_cast %305 : vector<1x32x32xf32> to vector<32x32xf32>
    %cst_319 = arith.constant dense<0.000000e+00> : vector<32x32xf32>
    %307 = tpu.matmul %304, %306, %cst_319 {dimension_numbers = #tpu.dot_dimension_numbers<[1], [0], [0], [1], [0, 0, 1, 1], [], []>} : vector<32x32xf32>, vector<32x32xf32>, vector<32x32xf32> -> vector<32x32xf32>
    %308 = arith.addf %301, %307 : vector<32x32xf32>
    %c7_320 = arith.constant 7 : index
    %c0_321 = arith.constant 0 : index
    %c0_322 = arith.constant 0 : index
    %309 = vector.load %arg7[%c7_320, %c0_321, %c0_322] : memref<9x32x32xf32, #tpu.memory_space<vmem>>, vector<1x32x32xf32>
    %310 = vector.shape_cast %309 : vector<1x32x32xf32> to vector<32x32xf32>
    %cst_323 = arith.constant dense<0.000000e+00> : vector<32x32xf32>
    %311 = tpu.matmul %310, %258, %cst_323 {dimension_numbers = #tpu.dot_dimension_numbers<[1], [0], [0], [1], [0, 0, 1, 1], [], []>} : vector<32x32xf32>, vector<32x32xf32>, vector<32x32xf32> -> vector<32x32xf32>
    %c16_324 = arith.constant 16 : index
    %c0_325 = arith.constant 0 : index
    %c0_326 = arith.constant 0 : index
    %312 = vector.load %arg8[%c16_324, %c0_325, %c0_326] : memref<99x32x32xf32, #tpu.memory_space<vmem>>, vector<1x32x32xf32>
    %313 = vector.shape_cast %312 : vector<1x32x32xf32> to vector<32x32xf32>
    %cst_327 = arith.constant dense<0.000000e+00> : vector<32x32xf32>
    %314 = tpu.matmul %311, %313, %cst_327 {dimension_numbers = #tpu.dot_dimension_numbers<[1], [0], [0], [1], [0, 0, 1, 1], [], []>} : vector<32x32xf32>, vector<32x32xf32>, vector<32x32xf32> -> vector<32x32xf32>
    %315 = arith.addf %308, %314 : vector<32x32xf32>
    %c8_328 = arith.constant 8 : index
    %c0_329 = arith.constant 0 : index
    %c0_330 = arith.constant 0 : index
    %316 = vector.load %arg7[%c8_328, %c0_329, %c0_330] : memref<9x32x32xf32, #tpu.memory_space<vmem>>, vector<1x32x32xf32>
    %317 = vector.shape_cast %316 : vector<1x32x32xf32> to vector<32x32xf32>
    %cst_331 = arith.constant dense<0.000000e+00> : vector<32x32xf32>
    %318 = tpu.matmul %317, %258, %cst_331 {dimension_numbers = #tpu.dot_dimension_numbers<[1], [0], [0], [1], [0, 0, 1, 1], [], []>} : vector<32x32xf32>, vector<32x32xf32>, vector<32x32xf32> -> vector<32x32xf32>
    %c17_332 = arith.constant 17 : index
    %c0_333 = arith.constant 0 : index
    %c0_334 = arith.constant 0 : index
    %319 = vector.load %arg8[%c17_332, %c0_333, %c0_334] : memref<99x32x32xf32, #tpu.memory_space<vmem>>, vector<1x32x32xf32>
    %320 = vector.shape_cast %319 : vector<1x32x32xf32> to vector<32x32xf32>
    %cst_335 = arith.constant dense<0.000000e+00> : vector<32x32xf32>
    %321 = tpu.matmul %318, %320, %cst_335 {dimension_numbers = #tpu.dot_dimension_numbers<[1], [0], [0], [1], [0, 0, 1, 1], [], []>} : vector<32x32xf32>, vector<32x32xf32>, vector<32x32xf32> -> vector<32x32xf32>
    %322 = arith.addf %315, %321 : vector<32x32xf32>
    %c1_336 = arith.constant 1 : index
    %c0_337 = arith.constant 0 : index
    %c0_338 = arith.constant 0 : index
    %323 = vector.load %arg9[%c1_336, %c0_337, %c0_338] : memref<11x1x32xf32, #tpu.memory_space<vmem>>, vector<1x1x32xf32>
    %324 = vector.shape_cast %323 : vector<1x1x32xf32> to vector<1x32xf32>
    %325 = vector.broadcast %324 : vector<1x32xf32> to vector<32x32xf32>
    %326 = arith.addf %322, %325 : vector<32x32xf32>
    %cst_339 = arith.constant 0.000000e+00 : f32
    %327 = vector.broadcast %cst_339 : f32 to vector<32x32xf32>
    %328 = arith.maximumf %326, %327 : vector<32x32xf32>
    %329 = arith.addf %328, %188 : vector<32x32xf32>
    %cst_340 = arith.constant 0.000000e+00 : f32
    %330 = vector.broadcast %cst_340 : f32 to vector<32x32xf32>
    %c0_341 = arith.constant 0 : index
    %c0_342 = arith.constant 0 : index
    %c0_343 = arith.constant 0 : index
    %331 = vector.load %arg7[%c0_341, %c0_342, %c0_343] : memref<9x32x32xf32, #tpu.memory_space<vmem>>, vector<1x32x32xf32>
    %332 = vector.shape_cast %331 : vector<1x32x32xf32> to vector<32x32xf32>
    %cst_344 = arith.constant dense<0.000000e+00> : vector<32x32xf32>
    %333 = tpu.matmul %332, %329, %cst_344 {dimension_numbers = #tpu.dot_dimension_numbers<[1], [0], [0], [1], [0, 0, 1, 1], [], []>} : vector<32x32xf32>, vector<32x32xf32>, vector<32x32xf32> -> vector<32x32xf32>
    %c18_345 = arith.constant 18 : index
    %c0_346 = arith.constant 0 : index
    %c0_347 = arith.constant 0 : index
    %334 = vector.load %arg8[%c18_345, %c0_346, %c0_347] : memref<99x32x32xf32, #tpu.memory_space<vmem>>, vector<1x32x32xf32>
    %335 = vector.shape_cast %334 : vector<1x32x32xf32> to vector<32x32xf32>
    %cst_348 = arith.constant dense<0.000000e+00> : vector<32x32xf32>
    %336 = tpu.matmul %333, %335, %cst_348 {dimension_numbers = #tpu.dot_dimension_numbers<[1], [0], [0], [1], [0, 0, 1, 1], [], []>} : vector<32x32xf32>, vector<32x32xf32>, vector<32x32xf32> -> vector<32x32xf32>
    %337 = arith.addf %330, %336 : vector<32x32xf32>
    %c1_349 = arith.constant 1 : index
    %c0_350 = arith.constant 0 : index
    %c0_351 = arith.constant 0 : index
    %338 = vector.load %arg7[%c1_349, %c0_350, %c0_351] : memref<9x32x32xf32, #tpu.memory_space<vmem>>, vector<1x32x32xf32>
    %339 = vector.shape_cast %338 : vector<1x32x32xf32> to vector<32x32xf32>
    %cst_352 = arith.constant dense<0.000000e+00> : vector<32x32xf32>
    %340 = tpu.matmul %339, %329, %cst_352 {dimension_numbers = #tpu.dot_dimension_numbers<[1], [0], [0], [1], [0, 0, 1, 1], [], []>} : vector<32x32xf32>, vector<32x32xf32>, vector<32x32xf32> -> vector<32x32xf32>
    %c19_353 = arith.constant 19 : index
    %c0_354 = arith.constant 0 : index
    %c0_355 = arith.constant 0 : index
    %341 = vector.load %arg8[%c19_353, %c0_354, %c0_355] : memref<99x32x32xf32, #tpu.memory_space<vmem>>, vector<1x32x32xf32>
    %342 = vector.shape_cast %341 : vector<1x32x32xf32> to vector<32x32xf32>
    %cst_356 = arith.constant dense<0.000000e+00> : vector<32x32xf32>
    %343 = tpu.matmul %340, %342, %cst_356 {dimension_numbers = #tpu.dot_dimension_numbers<[1], [0], [0], [1], [0, 0, 1, 1], [], []>} : vector<32x32xf32>, vector<32x32xf32>, vector<32x32xf32> -> vector<32x32xf32>
    %344 = arith.addf %337, %343 : vector<32x32xf32>
    %c2_357 = arith.constant 2 : index
    %c0_358 = arith.constant 0 : index
    %c0_359 = arith.constant 0 : index
    %345 = vector.load %arg7[%c2_357, %c0_358, %c0_359] : memref<9x32x32xf32, #tpu.memory_space<vmem>>, vector<1x32x32xf32>
    %346 = vector.shape_cast %345 : vector<1x32x32xf32> to vector<32x32xf32>
    %cst_360 = arith.constant dense<0.000000e+00> : vector<32x32xf32>
    %347 = tpu.matmul %346, %329, %cst_360 {dimension_numbers = #tpu.dot_dimension_numbers<[1], [0], [0], [1], [0, 0, 1, 1], [], []>} : vector<32x32xf32>, vector<32x32xf32>, vector<32x32xf32> -> vector<32x32xf32>
    %c20_361 = arith.constant 20 : index
    %c0_362 = arith.constant 0 : index
    %c0_363 = arith.constant 0 : index
    %348 = vector.load %arg8[%c20_361, %c0_362, %c0_363] : memref<99x32x32xf32, #tpu.memory_space<vmem>>, vector<1x32x32xf32>
    %349 = vector.shape_cast %348 : vector<1x32x32xf32> to vector<32x32xf32>
    %cst_364 = arith.constant dense<0.000000e+00> : vector<32x32xf32>
    %350 = tpu.matmul %347, %349, %cst_364 {dimension_numbers = #tpu.dot_dimension_numbers<[1], [0], [0], [1], [0, 0, 1, 1], [], []>} : vector<32x32xf32>, vector<32x32xf32>, vector<32x32xf32> -> vector<32x32xf32>
    %351 = arith.addf %344, %350 : vector<32x32xf32>
    %c3_365 = arith.constant 3 : index
    %c0_366 = arith.constant 0 : index
    %c0_367 = arith.constant 0 : index
    %352 = vector.load %arg7[%c3_365, %c0_366, %c0_367] : memref<9x32x32xf32, #tpu.memory_space<vmem>>, vector<1x32x32xf32>
    %353 = vector.shape_cast %352 : vector<1x32x32xf32> to vector<32x32xf32>
    %cst_368 = arith.constant dense<0.000000e+00> : vector<32x32xf32>
    %354 = tpu.matmul %353, %329, %cst_368 {dimension_numbers = #tpu.dot_dimension_numbers<[1], [0], [0], [1], [0, 0, 1, 1], [], []>} : vector<32x32xf32>, vector<32x32xf32>, vector<32x32xf32> -> vector<32x32xf32>
    %c21_369 = arith.constant 21 : index
    %c0_370 = arith.constant 0 : index
    %c0_371 = arith.constant 0 : index
    %355 = vector.load %arg8[%c21_369, %c0_370, %c0_371] : memref<99x32x32xf32, #tpu.memory_space<vmem>>, vector<1x32x32xf32>
    %356 = vector.shape_cast %355 : vector<1x32x32xf32> to vector<32x32xf32>
    %cst_372 = arith.constant dense<0.000000e+00> : vector<32x32xf32>
    %357 = tpu.matmul %354, %356, %cst_372 {dimension_numbers = #tpu.dot_dimension_numbers<[1], [0], [0], [1], [0, 0, 1, 1], [], []>} : vector<32x32xf32>, vector<32x32xf32>, vector<32x32xf32> -> vector<32x32xf32>
    %358 = arith.addf %351, %357 : vector<32x32xf32>
    %c4_373 = arith.constant 4 : index
    %c0_374 = arith.constant 0 : index
    %c0_375 = arith.constant 0 : index
    %359 = vector.load %arg7[%c4_373, %c0_374, %c0_375] : memref<9x32x32xf32, #tpu.memory_space<vmem>>, vector<1x32x32xf32>
    %360 = vector.shape_cast %359 : vector<1x32x32xf32> to vector<32x32xf32>
    %cst_376 = arith.constant dense<0.000000e+00> : vector<32x32xf32>
    %361 = tpu.matmul %360, %329, %cst_376 {dimension_numbers = #tpu.dot_dimension_numbers<[1], [0], [0], [1], [0, 0, 1, 1], [], []>} : vector<32x32xf32>, vector<32x32xf32>, vector<32x32xf32> -> vector<32x32xf32>
    %c22_377 = arith.constant 22 : index
    %c0_378 = arith.constant 0 : index
    %c0_379 = arith.constant 0 : index
    %362 = vector.load %arg8[%c22_377, %c0_378, %c0_379] : memref<99x32x32xf32, #tpu.memory_space<vmem>>, vector<1x32x32xf32>
    %363 = vector.shape_cast %362 : vector<1x32x32xf32> to vector<32x32xf32>
    %cst_380 = arith.constant dense<0.000000e+00> : vector<32x32xf32>
    %364 = tpu.matmul %361, %363, %cst_380 {dimension_numbers = #tpu.dot_dimension_numbers<[1], [0], [0], [1], [0, 0, 1, 1], [], []>} : vector<32x32xf32>, vector<32x32xf32>, vector<32x32xf32> -> vector<32x32xf32>
    %365 = arith.addf %358, %364 : vector<32x32xf32>
    %c5_381 = arith.constant 5 : index
    %c0_382 = arith.constant 0 : index
    %c0_383 = arith.constant 0 : index
    %366 = vector.load %arg7[%c5_381, %c0_382, %c0_383] : memref<9x32x32xf32, #tpu.memory_space<vmem>>, vector<1x32x32xf32>
    %367 = vector.shape_cast %366 : vector<1x32x32xf32> to vector<32x32xf32>
    %cst_384 = arith.constant dense<0.000000e+00> : vector<32x32xf32>
    %368 = tpu.matmul %367, %329, %cst_384 {dimension_numbers = #tpu.dot_dimension_numbers<[1], [0], [0], [1], [0, 0, 1, 1], [], []>} : vector<32x32xf32>, vector<32x32xf32>, vector<32x32xf32> -> vector<32x32xf32>
    %c23_385 = arith.constant 23 : index
    %c0_386 = arith.constant 0 : index
    %c0_387 = arith.constant 0 : index
    %369 = vector.load %arg8[%c23_385, %c0_386, %c0_387] : memref<99x32x32xf32, #tpu.memory_space<vmem>>, vector<1x32x32xf32>
    %370 = vector.shape_cast %369 : vector<1x32x32xf32> to vector<32x32xf32>
    %cst_388 = arith.constant dense<0.000000e+00> : vector<32x32xf32>
    %371 = tpu.matmul %368, %370, %cst_388 {dimension_numbers = #tpu.dot_dimension_numbers<[1], [0], [0], [1], [0, 0, 1, 1], [], []>} : vector<32x32xf32>, vector<32x32xf32>, vector<32x32xf32> -> vector<32x32xf32>
    %372 = arith.addf %365, %371 : vector<32x32xf32>
    %c6_389 = arith.constant 6 : index
    %c0_390 = arith.constant 0 : index
    %c0_391 = arith.constant 0 : index
    %373 = vector.load %arg7[%c6_389, %c0_390, %c0_391] : memref<9x32x32xf32, #tpu.memory_space<vmem>>, vector<1x32x32xf32>
    %374 = vector.shape_cast %373 : vector<1x32x32xf32> to vector<32x32xf32>
    %cst_392 = arith.constant dense<0.000000e+00> : vector<32x32xf32>
    %375 = tpu.matmul %374, %329, %cst_392 {dimension_numbers = #tpu.dot_dimension_numbers<[1], [0], [0], [1], [0, 0, 1, 1], [], []>} : vector<32x32xf32>, vector<32x32xf32>, vector<32x32xf32> -> vector<32x32xf32>
    %c24_393 = arith.constant 24 : index
    %c0_394 = arith.constant 0 : index
    %c0_395 = arith.constant 0 : index
    %376 = vector.load %arg8[%c24_393, %c0_394, %c0_395] : memref<99x32x32xf32, #tpu.memory_space<vmem>>, vector<1x32x32xf32>
    %377 = vector.shape_cast %376 : vector<1x32x32xf32> to vector<32x32xf32>
    %cst_396 = arith.constant dense<0.000000e+00> : vector<32x32xf32>
    %378 = tpu.matmul %375, %377, %cst_396 {dimension_numbers = #tpu.dot_dimension_numbers<[1], [0], [0], [1], [0, 0, 1, 1], [], []>} : vector<32x32xf32>, vector<32x32xf32>, vector<32x32xf32> -> vector<32x32xf32>
    %379 = arith.addf %372, %378 : vector<32x32xf32>
    %c7_397 = arith.constant 7 : index
    %c0_398 = arith.constant 0 : index
    %c0_399 = arith.constant 0 : index
    %380 = vector.load %arg7[%c7_397, %c0_398, %c0_399] : memref<9x32x32xf32, #tpu.memory_space<vmem>>, vector<1x32x32xf32>
    %381 = vector.shape_cast %380 : vector<1x32x32xf32> to vector<32x32xf32>
    %cst_400 = arith.constant dense<0.000000e+00> : vector<32x32xf32>
    %382 = tpu.matmul %381, %329, %cst_400 {dimension_numbers = #tpu.dot_dimension_numbers<[1], [0], [0], [1], [0, 0, 1, 1], [], []>} : vector<32x32xf32>, vector<32x32xf32>, vector<32x32xf32> -> vector<32x32xf32>
    %c25 = arith.constant 25 : index
    %c0_401 = arith.constant 0 : index
    %c0_402 = arith.constant 0 : index
    %383 = vector.load %arg8[%c25, %c0_401, %c0_402] : memref<99x32x32xf32, #tpu.memory_space<vmem>>, vector<1x32x32xf32>
    %384 = vector.shape_cast %383 : vector<1x32x32xf32> to vector<32x32xf32>
    %cst_403 = arith.constant dense<0.000000e+00> : vector<32x32xf32>
    %385 = tpu.matmul %382, %384, %cst_403 {dimension_numbers = #tpu.dot_dimension_numbers<[1], [0], [0], [1], [0, 0, 1, 1], [], []>} : vector<32x32xf32>, vector<32x32xf32>, vector<32x32xf32> -> vector<32x32xf32>
    %386 = arith.addf %379, %385 : vector<32x32xf32>
    %c8_404 = arith.constant 8 : index
    %c0_405 = arith.constant 0 : index
    %c0_406 = arith.constant 0 : index
    %387 = vector.load %arg7[%c8_404, %c0_405, %c0_406] : memref<9x32x32xf32, #tpu.memory_space<vmem>>, vector<1x32x32xf32>
    %388 = vector.shape_cast %387 : vector<1x32x32xf32> to vector<32x32xf32>
    %cst_407 = arith.constant dense<0.000000e+00> : vector<32x32xf32>
    %389 = tpu.matmul %388, %329, %cst_407 {dimension_numbers = #tpu.dot_dimension_numbers<[1], [0], [0], [1], [0, 0, 1, 1], [], []>} : vector<32x32xf32>, vector<32x32xf32>, vector<32x32xf32> -> vector<32x32xf32>
    %c26 = arith.constant 26 : index
    %c0_408 = arith.constant 0 : index
    %c0_409 = arith.constant 0 : index
    %390 = vector.load %arg8[%c26, %c0_408, %c0_409] : memref<99x32x32xf32, #tpu.memory_space<vmem>>, vector<1x32x32xf32>
    %391 = vector.shape_cast %390 : vector<1x32x32xf32> to vector<32x32xf32>
    %cst_410 = arith.constant dense<0.000000e+00> : vector<32x32xf32>
    %392 = tpu.matmul %389, %391, %cst_410 {dimension_numbers = #tpu.dot_dimension_numbers<[1], [0], [0], [1], [0, 0, 1, 1], [], []>} : vector<32x32xf32>, vector<32x32xf32>, vector<32x32xf32> -> vector<32x32xf32>
    %393 = arith.addf %386, %392 : vector<32x32xf32>
    %c2_411 = arith.constant 2 : index
    %c0_412 = arith.constant 0 : index
    %c0_413 = arith.constant 0 : index
    %394 = vector.load %arg9[%c2_411, %c0_412, %c0_413] : memref<11x1x32xf32, #tpu.memory_space<vmem>>, vector<1x1x32xf32>
    %395 = vector.shape_cast %394 : vector<1x1x32xf32> to vector<1x32xf32>
    %396 = vector.broadcast %395 : vector<1x32xf32> to vector<32x32xf32>
    %397 = arith.addf %393, %396 : vector<32x32xf32>
    %cst_414 = arith.constant 0.000000e+00 : f32
    %398 = vector.broadcast %cst_414 : f32 to vector<32x32xf32>
    %399 = arith.maximumf %397, %398 : vector<32x32xf32>
    %cst_415 = arith.constant 0.000000e+00 : f32
    %400 = vector.broadcast %cst_415 : f32 to vector<32x32xf32>
    %c0_416 = arith.constant 0 : index
    %c0_417 = arith.constant 0 : index
    %c0_418 = arith.constant 0 : index
    %401 = vector.load %arg7[%c0_416, %c0_417, %c0_418] : memref<9x32x32xf32, #tpu.memory_space<vmem>>, vector<1x32x32xf32>
    %402 = vector.shape_cast %401 : vector<1x32x32xf32> to vector<32x32xf32>
    %cst_419 = arith.constant dense<0.000000e+00> : vector<32x32xf32>
    %403 = tpu.matmul %402, %399, %cst_419 {dimension_numbers = #tpu.dot_dimension_numbers<[1], [0], [0], [1], [0, 0, 1, 1], [], []>} : vector<32x32xf32>, vector<32x32xf32>, vector<32x32xf32> -> vector<32x32xf32>
    %c27 = arith.constant 27 : index
    %c0_420 = arith.constant 0 : index
    %c0_421 = arith.constant 0 : index
    %404 = vector.load %arg8[%c27, %c0_420, %c0_421] : memref<99x32x32xf32, #tpu.memory_space<vmem>>, vector<1x32x32xf32>
    %405 = vector.shape_cast %404 : vector<1x32x32xf32> to vector<32x32xf32>
    %cst_422 = arith.constant dense<0.000000e+00> : vector<32x32xf32>
    %406 = tpu.matmul %403, %405, %cst_422 {dimension_numbers = #tpu.dot_dimension_numbers<[1], [0], [0], [1], [0, 0, 1, 1], [], []>} : vector<32x32xf32>, vector<32x32xf32>, vector<32x32xf32> -> vector<32x32xf32>
    %407 = arith.addf %400, %406 : vector<32x32xf32>
    %c1_423 = arith.constant 1 : index
    %c0_424 = arith.constant 0 : index
    %c0_425 = arith.constant 0 : index
    %408 = vector.load %arg7[%c1_423, %c0_424, %c0_425] : memref<9x32x32xf32, #tpu.memory_space<vmem>>, vector<1x32x32xf32>
    %409 = vector.shape_cast %408 : vector<1x32x32xf32> to vector<32x32xf32>
    %cst_426 = arith.constant dense<0.000000e+00> : vector<32x32xf32>
    %410 = tpu.matmul %409, %399, %cst_426 {dimension_numbers = #tpu.dot_dimension_numbers<[1], [0], [0], [1], [0, 0, 1, 1], [], []>} : vector<32x32xf32>, vector<32x32xf32>, vector<32x32xf32> -> vector<32x32xf32>
    %c28 = arith.constant 28 : index
    %c0_427 = arith.constant 0 : index
    %c0_428 = arith.constant 0 : index
    %411 = vector.load %arg8[%c28, %c0_427, %c0_428] : memref<99x32x32xf32, #tpu.memory_space<vmem>>, vector<1x32x32xf32>
    %412 = vector.shape_cast %411 : vector<1x32x32xf32> to vector<32x32xf32>
    %cst_429 = arith.constant dense<0.000000e+00> : vector<32x32xf32>
    %413 = tpu.matmul %410, %412, %cst_429 {dimension_numbers = #tpu.dot_dimension_numbers<[1], [0], [0], [1], [0, 0, 1, 1], [], []>} : vector<32x32xf32>, vector<32x32xf32>, vector<32x32xf32> -> vector<32x32xf32>
    %414 = arith.addf %407, %413 : vector<32x32xf32>
    %c2_430 = arith.constant 2 : index
    %c0_431 = arith.constant 0 : index
    %c0_432 = arith.constant 0 : index
    %415 = vector.load %arg7[%c2_430, %c0_431, %c0_432] : memref<9x32x32xf32, #tpu.memory_space<vmem>>, vector<1x32x32xf32>
    %416 = vector.shape_cast %415 : vector<1x32x32xf32> to vector<32x32xf32>
    %cst_433 = arith.constant dense<0.000000e+00> : vector<32x32xf32>
    %417 = tpu.matmul %416, %399, %cst_433 {dimension_numbers = #tpu.dot_dimension_numbers<[1], [0], [0], [1], [0, 0, 1, 1], [], []>} : vector<32x32xf32>, vector<32x32xf32>, vector<32x32xf32> -> vector<32x32xf32>
    %c29 = arith.constant 29 : index
    %c0_434 = arith.constant 0 : index
    %c0_435 = arith.constant 0 : index
    %418 = vector.load %arg8[%c29, %c0_434, %c0_435] : memref<99x32x32xf32, #tpu.memory_space<vmem>>, vector<1x32x32xf32>
    %419 = vector.shape_cast %418 : vector<1x32x32xf32> to vector<32x32xf32>
    %cst_436 = arith.constant dense<0.000000e+00> : vector<32x32xf32>
    %420 = tpu.matmul %417, %419, %cst_436 {dimension_numbers = #tpu.dot_dimension_numbers<[1], [0], [0], [1], [0, 0, 1, 1], [], []>} : vector<32x32xf32>, vector<32x32xf32>, vector<32x32xf32> -> vector<32x32xf32>
    %421 = arith.addf %414, %420 : vector<32x32xf32>
    %c3_437 = arith.constant 3 : index
    %c0_438 = arith.constant 0 : index
    %c0_439 = arith.constant 0 : index
    %422 = vector.load %arg7[%c3_437, %c0_438, %c0_439] : memref<9x32x32xf32, #tpu.memory_space<vmem>>, vector<1x32x32xf32>
    %423 = vector.shape_cast %422 : vector<1x32x32xf32> to vector<32x32xf32>
    %cst_440 = arith.constant dense<0.000000e+00> : vector<32x32xf32>
    %424 = tpu.matmul %423, %399, %cst_440 {dimension_numbers = #tpu.dot_dimension_numbers<[1], [0], [0], [1], [0, 0, 1, 1], [], []>} : vector<32x32xf32>, vector<32x32xf32>, vector<32x32xf32> -> vector<32x32xf32>
    %c30 = arith.constant 30 : index
    %c0_441 = arith.constant 0 : index
    %c0_442 = arith.constant 0 : index
    %425 = vector.load %arg8[%c30, %c0_441, %c0_442] : memref<99x32x32xf32, #tpu.memory_space<vmem>>, vector<1x32x32xf32>
    %426 = vector.shape_cast %425 : vector<1x32x32xf32> to vector<32x32xf32>
    %cst_443 = arith.constant dense<0.000000e+00> : vector<32x32xf32>
    %427 = tpu.matmul %424, %426, %cst_443 {dimension_numbers = #tpu.dot_dimension_numbers<[1], [0], [0], [1], [0, 0, 1, 1], [], []>} : vector<32x32xf32>, vector<32x32xf32>, vector<32x32xf32> -> vector<32x32xf32>
    %428 = arith.addf %421, %427 : vector<32x32xf32>
    %c4_444 = arith.constant 4 : index
    %c0_445 = arith.constant 0 : index
    %c0_446 = arith.constant 0 : index
    %429 = vector.load %arg7[%c4_444, %c0_445, %c0_446] : memref<9x32x32xf32, #tpu.memory_space<vmem>>, vector<1x32x32xf32>
    %430 = vector.shape_cast %429 : vector<1x32x32xf32> to vector<32x32xf32>
    %cst_447 = arith.constant dense<0.000000e+00> : vector<32x32xf32>
    %431 = tpu.matmul %430, %399, %cst_447 {dimension_numbers = #tpu.dot_dimension_numbers<[1], [0], [0], [1], [0, 0, 1, 1], [], []>} : vector<32x32xf32>, vector<32x32xf32>, vector<32x32xf32> -> vector<32x32xf32>
    %c31 = arith.constant 31 : index
    %c0_448 = arith.constant 0 : index
    %c0_449 = arith.constant 0 : index
    %432 = vector.load %arg8[%c31, %c0_448, %c0_449] : memref<99x32x32xf32, #tpu.memory_space<vmem>>, vector<1x32x32xf32>
    %433 = vector.shape_cast %432 : vector<1x32x32xf32> to vector<32x32xf32>
    %cst_450 = arith.constant dense<0.000000e+00> : vector<32x32xf32>
    %434 = tpu.matmul %431, %433, %cst_450 {dimension_numbers = #tpu.dot_dimension_numbers<[1], [0], [0], [1], [0, 0, 1, 1], [], []>} : vector<32x32xf32>, vector<32x32xf32>, vector<32x32xf32> -> vector<32x32xf32>
    %435 = arith.addf %428, %434 : vector<32x32xf32>
    %c5_451 = arith.constant 5 : index
    %c0_452 = arith.constant 0 : index
    %c0_453 = arith.constant 0 : index
    %436 = vector.load %arg7[%c5_451, %c0_452, %c0_453] : memref<9x32x32xf32, #tpu.memory_space<vmem>>, vector<1x32x32xf32>
    %437 = vector.shape_cast %436 : vector<1x32x32xf32> to vector<32x32xf32>
    %cst_454 = arith.constant dense<0.000000e+00> : vector<32x32xf32>
    %438 = tpu.matmul %437, %399, %cst_454 {dimension_numbers = #tpu.dot_dimension_numbers<[1], [0], [0], [1], [0, 0, 1, 1], [], []>} : vector<32x32xf32>, vector<32x32xf32>, vector<32x32xf32> -> vector<32x32xf32>
    %c32 = arith.constant 32 : index
    %c0_455 = arith.constant 0 : index
    %c0_456 = arith.constant 0 : index
    %439 = vector.load %arg8[%c32, %c0_455, %c0_456] : memref<99x32x32xf32, #tpu.memory_space<vmem>>, vector<1x32x32xf32>
    %440 = vector.shape_cast %439 : vector<1x32x32xf32> to vector<32x32xf32>
    %cst_457 = arith.constant dense<0.000000e+00> : vector<32x32xf32>
    %441 = tpu.matmul %438, %440, %cst_457 {dimension_numbers = #tpu.dot_dimension_numbers<[1], [0], [0], [1], [0, 0, 1, 1], [], []>} : vector<32x32xf32>, vector<32x32xf32>, vector<32x32xf32> -> vector<32x32xf32>
    %442 = arith.addf %435, %441 : vector<32x32xf32>
    %c6_458 = arith.constant 6 : index
    %c0_459 = arith.constant 0 : index
    %c0_460 = arith.constant 0 : index
    %443 = vector.load %arg7[%c6_458, %c0_459, %c0_460] : memref<9x32x32xf32, #tpu.memory_space<vmem>>, vector<1x32x32xf32>
    %444 = vector.shape_cast %443 : vector<1x32x32xf32> to vector<32x32xf32>
    %cst_461 = arith.constant dense<0.000000e+00> : vector<32x32xf32>
    %445 = tpu.matmul %444, %399, %cst_461 {dimension_numbers = #tpu.dot_dimension_numbers<[1], [0], [0], [1], [0, 0, 1, 1], [], []>} : vector<32x32xf32>, vector<32x32xf32>, vector<32x32xf32> -> vector<32x32xf32>
    %c33 = arith.constant 33 : index
    %c0_462 = arith.constant 0 : index
    %c0_463 = arith.constant 0 : index
    %446 = vector.load %arg8[%c33, %c0_462, %c0_463] : memref<99x32x32xf32, #tpu.memory_space<vmem>>, vector<1x32x32xf32>
    %447 = vector.shape_cast %446 : vector<1x32x32xf32> to vector<32x32xf32>
    %cst_464 = arith.constant dense<0.000000e+00> : vector<32x32xf32>
    %448 = tpu.matmul %445, %447, %cst_464 {dimension_numbers = #tpu.dot_dimension_numbers<[1], [0], [0], [1], [0, 0, 1, 1], [], []>} : vector<32x32xf32>, vector<32x32xf32>, vector<32x32xf32> -> vector<32x32xf32>
    %449 = arith.addf %442, %448 : vector<32x32xf32>
    %c7_465 = arith.constant 7 : index
    %c0_466 = arith.constant 0 : index
    %c0_467 = arith.constant 0 : index
    %450 = vector.load %arg7[%c7_465, %c0_466, %c0_467] : memref<9x32x32xf32, #tpu.memory_space<vmem>>, vector<1x32x32xf32>
    %451 = vector.shape_cast %450 : vector<1x32x32xf32> to vector<32x32xf32>
    %cst_468 = arith.constant dense<0.000000e+00> : vector<32x32xf32>
    %452 = tpu.matmul %451, %399, %cst_468 {dimension_numbers = #tpu.dot_dimension_numbers<[1], [0], [0], [1], [0, 0, 1, 1], [], []>} : vector<32x32xf32>, vector<32x32xf32>, vector<32x32xf32> -> vector<32x32xf32>
    %c34 = arith.constant 34 : index
    %c0_469 = arith.constant 0 : index
    %c0_470 = arith.constant 0 : index
    %453 = vector.load %arg8[%c34, %c0_469, %c0_470] : memref<99x32x32xf32, #tpu.memory_space<vmem>>, vector<1x32x32xf32>
    %454 = vector.shape_cast %453 : vector<1x32x32xf32> to vector<32x32xf32>
    %cst_471 = arith.constant dense<0.000000e+00> : vector<32x32xf32>
    %455 = tpu.matmul %452, %454, %cst_471 {dimension_numbers = #tpu.dot_dimension_numbers<[1], [0], [0], [1], [0, 0, 1, 1], [], []>} : vector<32x32xf32>, vector<32x32xf32>, vector<32x32xf32> -> vector<32x32xf32>
    %456 = arith.addf %449, %455 : vector<32x32xf32>
    %c8_472 = arith.constant 8 : index
    %c0_473 = arith.constant 0 : index
    %c0_474 = arith.constant 0 : index
    %457 = vector.load %arg7[%c8_472, %c0_473, %c0_474] : memref<9x32x32xf32, #tpu.memory_space<vmem>>, vector<1x32x32xf32>
    %458 = vector.shape_cast %457 : vector<1x32x32xf32> to vector<32x32xf32>
    %cst_475 = arith.constant dense<0.000000e+00> : vector<32x32xf32>
    %459 = tpu.matmul %458, %399, %cst_475 {dimension_numbers = #tpu.dot_dimension_numbers<[1], [0], [0], [1], [0, 0, 1, 1], [], []>} : vector<32x32xf32>, vector<32x32xf32>, vector<32x32xf32> -> vector<32x32xf32>
    %c35 = arith.constant 35 : index
    %c0_476 = arith.constant 0 : index
    %c0_477 = arith.constant 0 : index
    %460 = vector.load %arg8[%c35, %c0_476, %c0_477] : memref<99x32x32xf32, #tpu.memory_space<vmem>>, vector<1x32x32xf32>
    %461 = vector.shape_cast %460 : vector<1x32x32xf32> to vector<32x32xf32>
    %cst_478 = arith.constant dense<0.000000e+00> : vector<32x32xf32>
    %462 = tpu.matmul %459, %461, %cst_478 {dimension_numbers = #tpu.dot_dimension_numbers<[1], [0], [0], [1], [0, 0, 1, 1], [], []>} : vector<32x32xf32>, vector<32x32xf32>, vector<32x32xf32> -> vector<32x32xf32>
    %463 = arith.addf %456, %462 : vector<32x32xf32>
    %c3_479 = arith.constant 3 : index
    %c0_480 = arith.constant 0 : index
    %c0_481 = arith.constant 0 : index
    %464 = vector.load %arg9[%c3_479, %c0_480, %c0_481] : memref<11x1x32xf32, #tpu.memory_space<vmem>>, vector<1x1x32xf32>
    %465 = vector.shape_cast %464 : vector<1x1x32xf32> to vector<1x32xf32>
    %466 = vector.broadcast %465 : vector<1x32xf32> to vector<32x32xf32>
    %467 = arith.addf %463, %466 : vector<32x32xf32>
    %cst_482 = arith.constant 0.000000e+00 : f32
    %468 = vector.broadcast %cst_482 : f32 to vector<32x32xf32>
    %469 = arith.maximumf %467, %468 : vector<32x32xf32>
    %470 = arith.addf %469, %329 : vector<32x32xf32>
    %cst_483 = arith.constant 0.000000e+00 : f32
    %471 = vector.broadcast %cst_483 : f32 to vector<32x32xf32>
    %c0_484 = arith.constant 0 : index
    %c0_485 = arith.constant 0 : index
    %c0_486 = arith.constant 0 : index
    %472 = vector.load %arg7[%c0_484, %c0_485, %c0_486] : memref<9x32x32xf32, #tpu.memory_space<vmem>>, vector<1x32x32xf32>
    %473 = vector.shape_cast %472 : vector<1x32x32xf32> to vector<32x32xf32>
    %cst_487 = arith.constant dense<0.000000e+00> : vector<32x32xf32>
    %474 = tpu.matmul %473, %470, %cst_487 {dimension_numbers = #tpu.dot_dimension_numbers<[1], [0], [0], [1], [0, 0, 1, 1], [], []>} : vector<32x32xf32>, vector<32x32xf32>, vector<32x32xf32> -> vector<32x32xf32>
    %c36 = arith.constant 36 : index
    %c0_488 = arith.constant 0 : index
    %c0_489 = arith.constant 0 : index
    %475 = vector.load %arg8[%c36, %c0_488, %c0_489] : memref<99x32x32xf32, #tpu.memory_space<vmem>>, vector<1x32x32xf32>
    %476 = vector.shape_cast %475 : vector<1x32x32xf32> to vector<32x32xf32>
    %cst_490 = arith.constant dense<0.000000e+00> : vector<32x32xf32>
    %477 = tpu.matmul %474, %476, %cst_490 {dimension_numbers = #tpu.dot_dimension_numbers<[1], [0], [0], [1], [0, 0, 1, 1], [], []>} : vector<32x32xf32>, vector<32x32xf32>, vector<32x32xf32> -> vector<32x32xf32>
    %478 = arith.addf %471, %477 : vector<32x32xf32>
    %c1_491 = arith.constant 1 : index
    %c0_492 = arith.constant 0 : index
    %c0_493 = arith.constant 0 : index
    %479 = vector.load %arg7[%c1_491, %c0_492, %c0_493] : memref<9x32x32xf32, #tpu.memory_space<vmem>>, vector<1x32x32xf32>
    %480 = vector.shape_cast %479 : vector<1x32x32xf32> to vector<32x32xf32>
    %cst_494 = arith.constant dense<0.000000e+00> : vector<32x32xf32>
    %481 = tpu.matmul %480, %470, %cst_494 {dimension_numbers = #tpu.dot_dimension_numbers<[1], [0], [0], [1], [0, 0, 1, 1], [], []>} : vector<32x32xf32>, vector<32x32xf32>, vector<32x32xf32> -> vector<32x32xf32>
    %c37 = arith.constant 37 : index
    %c0_495 = arith.constant 0 : index
    %c0_496 = arith.constant 0 : index
    %482 = vector.load %arg8[%c37, %c0_495, %c0_496] : memref<99x32x32xf32, #tpu.memory_space<vmem>>, vector<1x32x32xf32>
    %483 = vector.shape_cast %482 : vector<1x32x32xf32> to vector<32x32xf32>
    %cst_497 = arith.constant dense<0.000000e+00> : vector<32x32xf32>
    %484 = tpu.matmul %481, %483, %cst_497 {dimension_numbers = #tpu.dot_dimension_numbers<[1], [0], [0], [1], [0, 0, 1, 1], [], []>} : vector<32x32xf32>, vector<32x32xf32>, vector<32x32xf32> -> vector<32x32xf32>
    %485 = arith.addf %478, %484 : vector<32x32xf32>
    %c2_498 = arith.constant 2 : index
    %c0_499 = arith.constant 0 : index
    %c0_500 = arith.constant 0 : index
    %486 = vector.load %arg7[%c2_498, %c0_499, %c0_500] : memref<9x32x32xf32, #tpu.memory_space<vmem>>, vector<1x32x32xf32>
    %487 = vector.shape_cast %486 : vector<1x32x32xf32> to vector<32x32xf32>
    %cst_501 = arith.constant dense<0.000000e+00> : vector<32x32xf32>
    %488 = tpu.matmul %487, %470, %cst_501 {dimension_numbers = #tpu.dot_dimension_numbers<[1], [0], [0], [1], [0, 0, 1, 1], [], []>} : vector<32x32xf32>, vector<32x32xf32>, vector<32x32xf32> -> vector<32x32xf32>
    %c38 = arith.constant 38 : index
    %c0_502 = arith.constant 0 : index
    %c0_503 = arith.constant 0 : index
    %489 = vector.load %arg8[%c38, %c0_502, %c0_503] : memref<99x32x32xf32, #tpu.memory_space<vmem>>, vector<1x32x32xf32>
    %490 = vector.shape_cast %489 : vector<1x32x32xf32> to vector<32x32xf32>
    %cst_504 = arith.constant dense<0.000000e+00> : vector<32x32xf32>
    %491 = tpu.matmul %488, %490, %cst_504 {dimension_numbers = #tpu.dot_dimension_numbers<[1], [0], [0], [1], [0, 0, 1, 1], [], []>} : vector<32x32xf32>, vector<32x32xf32>, vector<32x32xf32> -> vector<32x32xf32>
    %492 = arith.addf %485, %491 : vector<32x32xf32>
    %c3_505 = arith.constant 3 : index
    %c0_506 = arith.constant 0 : index
    %c0_507 = arith.constant 0 : index
    %493 = vector.load %arg7[%c3_505, %c0_506, %c0_507] : memref<9x32x32xf32, #tpu.memory_space<vmem>>, vector<1x32x32xf32>
    %494 = vector.shape_cast %493 : vector<1x32x32xf32> to vector<32x32xf32>
    %cst_508 = arith.constant dense<0.000000e+00> : vector<32x32xf32>
    %495 = tpu.matmul %494, %470, %cst_508 {dimension_numbers = #tpu.dot_dimension_numbers<[1], [0], [0], [1], [0, 0, 1, 1], [], []>} : vector<32x32xf32>, vector<32x32xf32>, vector<32x32xf32> -> vector<32x32xf32>
    %c39 = arith.constant 39 : index
    %c0_509 = arith.constant 0 : index
    %c0_510 = arith.constant 0 : index
    %496 = vector.load %arg8[%c39, %c0_509, %c0_510] : memref<99x32x32xf32, #tpu.memory_space<vmem>>, vector<1x32x32xf32>
    %497 = vector.shape_cast %496 : vector<1x32x32xf32> to vector<32x32xf32>
    %cst_511 = arith.constant dense<0.000000e+00> : vector<32x32xf32>
    %498 = tpu.matmul %495, %497, %cst_511 {dimension_numbers = #tpu.dot_dimension_numbers<[1], [0], [0], [1], [0, 0, 1, 1], [], []>} : vector<32x32xf32>, vector<32x32xf32>, vector<32x32xf32> -> vector<32x32xf32>
    %499 = arith.addf %492, %498 : vector<32x32xf32>
    %c4_512 = arith.constant 4 : index
    %c0_513 = arith.constant 0 : index
    %c0_514 = arith.constant 0 : index
    %500 = vector.load %arg7[%c4_512, %c0_513, %c0_514] : memref<9x32x32xf32, #tpu.memory_space<vmem>>, vector<1x32x32xf32>
    %501 = vector.shape_cast %500 : vector<1x32x32xf32> to vector<32x32xf32>
    %cst_515 = arith.constant dense<0.000000e+00> : vector<32x32xf32>
    %502 = tpu.matmul %501, %470, %cst_515 {dimension_numbers = #tpu.dot_dimension_numbers<[1], [0], [0], [1], [0, 0, 1, 1], [], []>} : vector<32x32xf32>, vector<32x32xf32>, vector<32x32xf32> -> vector<32x32xf32>
    %c40 = arith.constant 40 : index
    %c0_516 = arith.constant 0 : index
    %c0_517 = arith.constant 0 : index
    %503 = vector.load %arg8[%c40, %c0_516, %c0_517] : memref<99x32x32xf32, #tpu.memory_space<vmem>>, vector<1x32x32xf32>
    %504 = vector.shape_cast %503 : vector<1x32x32xf32> to vector<32x32xf32>
    %cst_518 = arith.constant dense<0.000000e+00> : vector<32x32xf32>
    %505 = tpu.matmul %502, %504, %cst_518 {dimension_numbers = #tpu.dot_dimension_numbers<[1], [0], [0], [1], [0, 0, 1, 1], [], []>} : vector<32x32xf32>, vector<32x32xf32>, vector<32x32xf32> -> vector<32x32xf32>
    %506 = arith.addf %499, %505 : vector<32x32xf32>
    %c5_519 = arith.constant 5 : index
    %c0_520 = arith.constant 0 : index
    %c0_521 = arith.constant 0 : index
    %507 = vector.load %arg7[%c5_519, %c0_520, %c0_521] : memref<9x32x32xf32, #tpu.memory_space<vmem>>, vector<1x32x32xf32>
    %508 = vector.shape_cast %507 : vector<1x32x32xf32> to vector<32x32xf32>
    %cst_522 = arith.constant dense<0.000000e+00> : vector<32x32xf32>
    %509 = tpu.matmul %508, %470, %cst_522 {dimension_numbers = #tpu.dot_dimension_numbers<[1], [0], [0], [1], [0, 0, 1, 1], [], []>} : vector<32x32xf32>, vector<32x32xf32>, vector<32x32xf32> -> vector<32x32xf32>
    %c41 = arith.constant 41 : index
    %c0_523 = arith.constant 0 : index
    %c0_524 = arith.constant 0 : index
    %510 = vector.load %arg8[%c41, %c0_523, %c0_524] : memref<99x32x32xf32, #tpu.memory_space<vmem>>, vector<1x32x32xf32>
    %511 = vector.shape_cast %510 : vector<1x32x32xf32> to vector<32x32xf32>
    %cst_525 = arith.constant dense<0.000000e+00> : vector<32x32xf32>
    %512 = tpu.matmul %509, %511, %cst_525 {dimension_numbers = #tpu.dot_dimension_numbers<[1], [0], [0], [1], [0, 0, 1, 1], [], []>} : vector<32x32xf32>, vector<32x32xf32>, vector<32x32xf32> -> vector<32x32xf32>
    %513 = arith.addf %506, %512 : vector<32x32xf32>
    %c6_526 = arith.constant 6 : index
    %c0_527 = arith.constant 0 : index
    %c0_528 = arith.constant 0 : index
    %514 = vector.load %arg7[%c6_526, %c0_527, %c0_528] : memref<9x32x32xf32, #tpu.memory_space<vmem>>, vector<1x32x32xf32>
    %515 = vector.shape_cast %514 : vector<1x32x32xf32> to vector<32x32xf32>
    %cst_529 = arith.constant dense<0.000000e+00> : vector<32x32xf32>
    %516 = tpu.matmul %515, %470, %cst_529 {dimension_numbers = #tpu.dot_dimension_numbers<[1], [0], [0], [1], [0, 0, 1, 1], [], []>} : vector<32x32xf32>, vector<32x32xf32>, vector<32x32xf32> -> vector<32x32xf32>
    %c42 = arith.constant 42 : index
    %c0_530 = arith.constant 0 : index
    %c0_531 = arith.constant 0 : index
    %517 = vector.load %arg8[%c42, %c0_530, %c0_531] : memref<99x32x32xf32, #tpu.memory_space<vmem>>, vector<1x32x32xf32>
    %518 = vector.shape_cast %517 : vector<1x32x32xf32> to vector<32x32xf32>
    %cst_532 = arith.constant dense<0.000000e+00> : vector<32x32xf32>
    %519 = tpu.matmul %516, %518, %cst_532 {dimension_numbers = #tpu.dot_dimension_numbers<[1], [0], [0], [1], [0, 0, 1, 1], [], []>} : vector<32x32xf32>, vector<32x32xf32>, vector<32x32xf32> -> vector<32x32xf32>
    %520 = arith.addf %513, %519 : vector<32x32xf32>
    %c7_533 = arith.constant 7 : index
    %c0_534 = arith.constant 0 : index
    %c0_535 = arith.constant 0 : index
    %521 = vector.load %arg7[%c7_533, %c0_534, %c0_535] : memref<9x32x32xf32, #tpu.memory_space<vmem>>, vector<1x32x32xf32>
    %522 = vector.shape_cast %521 : vector<1x32x32xf32> to vector<32x32xf32>
    %cst_536 = arith.constant dense<0.000000e+00> : vector<32x32xf32>
    %523 = tpu.matmul %522, %470, %cst_536 {dimension_numbers = #tpu.dot_dimension_numbers<[1], [0], [0], [1], [0, 0, 1, 1], [], []>} : vector<32x32xf32>, vector<32x32xf32>, vector<32x32xf32> -> vector<32x32xf32>
    %c43 = arith.constant 43 : index
    %c0_537 = arith.constant 0 : index
    %c0_538 = arith.constant 0 : index
    %524 = vector.load %arg8[%c43, %c0_537, %c0_538] : memref<99x32x32xf32, #tpu.memory_space<vmem>>, vector<1x32x32xf32>
    %525 = vector.shape_cast %524 : vector<1x32x32xf32> to vector<32x32xf32>
    %cst_539 = arith.constant dense<0.000000e+00> : vector<32x32xf32>
    %526 = tpu.matmul %523, %525, %cst_539 {dimension_numbers = #tpu.dot_dimension_numbers<[1], [0], [0], [1], [0, 0, 1, 1], [], []>} : vector<32x32xf32>, vector<32x32xf32>, vector<32x32xf32> -> vector<32x32xf32>
    %527 = arith.addf %520, %526 : vector<32x32xf32>
    %c8_540 = arith.constant 8 : index
    %c0_541 = arith.constant 0 : index
    %c0_542 = arith.constant 0 : index
    %528 = vector.load %arg7[%c8_540, %c0_541, %c0_542] : memref<9x32x32xf32, #tpu.memory_space<vmem>>, vector<1x32x32xf32>
    %529 = vector.shape_cast %528 : vector<1x32x32xf32> to vector<32x32xf32>
    %cst_543 = arith.constant dense<0.000000e+00> : vector<32x32xf32>
    %530 = tpu.matmul %529, %470, %cst_543 {dimension_numbers = #tpu.dot_dimension_numbers<[1], [0], [0], [1], [0, 0, 1, 1], [], []>} : vector<32x32xf32>, vector<32x32xf32>, vector<32x32xf32> -> vector<32x32xf32>
    %c44 = arith.constant 44 : index
    %c0_544 = arith.constant 0 : index
    %c0_545 = arith.constant 0 : index
    %531 = vector.load %arg8[%c44, %c0_544, %c0_545] : memref<99x32x32xf32, #tpu.memory_space<vmem>>, vector<1x32x32xf32>
    %532 = vector.shape_cast %531 : vector<1x32x32xf32> to vector<32x32xf32>
    %cst_546 = arith.constant dense<0.000000e+00> : vector<32x32xf32>
    %533 = tpu.matmul %530, %532, %cst_546 {dimension_numbers = #tpu.dot_dimension_numbers<[1], [0], [0], [1], [0, 0, 1, 1], [], []>} : vector<32x32xf32>, vector<32x32xf32>, vector<32x32xf32> -> vector<32x32xf32>
    %534 = arith.addf %527, %533 : vector<32x32xf32>
    %c4_547 = arith.constant 4 : index
    %c0_548 = arith.constant 0 : index
    %c0_549 = arith.constant 0 : index
    %535 = vector.load %arg9[%c4_547, %c0_548, %c0_549] : memref<11x1x32xf32, #tpu.memory_space<vmem>>, vector<1x1x32xf32>
    %536 = vector.shape_cast %535 : vector<1x1x32xf32> to vector<1x32xf32>
    %537 = vector.broadcast %536 : vector<1x32xf32> to vector<32x32xf32>
    %538 = arith.addf %534, %537 : vector<32x32xf32>
    %cst_550 = arith.constant 0.000000e+00 : f32
    %539 = vector.broadcast %cst_550 : f32 to vector<32x32xf32>
    %540 = arith.maximumf %538, %539 : vector<32x32xf32>
    %cst_551 = arith.constant 0.000000e+00 : f32
    %541 = vector.broadcast %cst_551 : f32 to vector<32x32xf32>
    %c0_552 = arith.constant 0 : index
    %c0_553 = arith.constant 0 : index
    %c0_554 = arith.constant 0 : index
    %542 = vector.load %arg7[%c0_552, %c0_553, %c0_554] : memref<9x32x32xf32, #tpu.memory_space<vmem>>, vector<1x32x32xf32>
    %543 = vector.shape_cast %542 : vector<1x32x32xf32> to vector<32x32xf32>
    %cst_555 = arith.constant dense<0.000000e+00> : vector<32x32xf32>
    %544 = tpu.matmul %543, %540, %cst_555 {dimension_numbers = #tpu.dot_dimension_numbers<[1], [0], [0], [1], [0, 0, 1, 1], [], []>} : vector<32x32xf32>, vector<32x32xf32>, vector<32x32xf32> -> vector<32x32xf32>
    %c45 = arith.constant 45 : index
    %c0_556 = arith.constant 0 : index
    %c0_557 = arith.constant 0 : index
    %545 = vector.load %arg8[%c45, %c0_556, %c0_557] : memref<99x32x32xf32, #tpu.memory_space<vmem>>, vector<1x32x32xf32>
    %546 = vector.shape_cast %545 : vector<1x32x32xf32> to vector<32x32xf32>
    %cst_558 = arith.constant dense<0.000000e+00> : vector<32x32xf32>
    %547 = tpu.matmul %544, %546, %cst_558 {dimension_numbers = #tpu.dot_dimension_numbers<[1], [0], [0], [1], [0, 0, 1, 1], [], []>} : vector<32x32xf32>, vector<32x32xf32>, vector<32x32xf32> -> vector<32x32xf32>
    %548 = arith.addf %541, %547 : vector<32x32xf32>
    %c1_559 = arith.constant 1 : index
    %c0_560 = arith.constant 0 : index
    %c0_561 = arith.constant 0 : index
    %549 = vector.load %arg7[%c1_559, %c0_560, %c0_561] : memref<9x32x32xf32, #tpu.memory_space<vmem>>, vector<1x32x32xf32>
    %550 = vector.shape_cast %549 : vector<1x32x32xf32> to vector<32x32xf32>
    %cst_562 = arith.constant dense<0.000000e+00> : vector<32x32xf32>
    %551 = tpu.matmul %550, %540, %cst_562 {dimension_numbers = #tpu.dot_dimension_numbers<[1], [0], [0], [1], [0, 0, 1, 1], [], []>} : vector<32x32xf32>, vector<32x32xf32>, vector<32x32xf32> -> vector<32x32xf32>
    %c46 = arith.constant 46 : index
    %c0_563 = arith.constant 0 : index
    %c0_564 = arith.constant 0 : index
    %552 = vector.load %arg8[%c46, %c0_563, %c0_564] : memref<99x32x32xf32, #tpu.memory_space<vmem>>, vector<1x32x32xf32>
    %553 = vector.shape_cast %552 : vector<1x32x32xf32> to vector<32x32xf32>
    %cst_565 = arith.constant dense<0.000000e+00> : vector<32x32xf32>
    %554 = tpu.matmul %551, %553, %cst_565 {dimension_numbers = #tpu.dot_dimension_numbers<[1], [0], [0], [1], [0, 0, 1, 1], [], []>} : vector<32x32xf32>, vector<32x32xf32>, vector<32x32xf32> -> vector<32x32xf32>
    %555 = arith.addf %548, %554 : vector<32x32xf32>
    %c2_566 = arith.constant 2 : index
    %c0_567 = arith.constant 0 : index
    %c0_568 = arith.constant 0 : index
    %556 = vector.load %arg7[%c2_566, %c0_567, %c0_568] : memref<9x32x32xf32, #tpu.memory_space<vmem>>, vector<1x32x32xf32>
    %557 = vector.shape_cast %556 : vector<1x32x32xf32> to vector<32x32xf32>
    %cst_569 = arith.constant dense<0.000000e+00> : vector<32x32xf32>
    %558 = tpu.matmul %557, %540, %cst_569 {dimension_numbers = #tpu.dot_dimension_numbers<[1], [0], [0], [1], [0, 0, 1, 1], [], []>} : vector<32x32xf32>, vector<32x32xf32>, vector<32x32xf32> -> vector<32x32xf32>
    %c47 = arith.constant 47 : index
    %c0_570 = arith.constant 0 : index
    %c0_571 = arith.constant 0 : index
    %559 = vector.load %arg8[%c47, %c0_570, %c0_571] : memref<99x32x32xf32, #tpu.memory_space<vmem>>, vector<1x32x32xf32>
    %560 = vector.shape_cast %559 : vector<1x32x32xf32> to vector<32x32xf32>
    %cst_572 = arith.constant dense<0.000000e+00> : vector<32x32xf32>
    %561 = tpu.matmul %558, %560, %cst_572 {dimension_numbers = #tpu.dot_dimension_numbers<[1], [0], [0], [1], [0, 0, 1, 1], [], []>} : vector<32x32xf32>, vector<32x32xf32>, vector<32x32xf32> -> vector<32x32xf32>
    %562 = arith.addf %555, %561 : vector<32x32xf32>
    %c3_573 = arith.constant 3 : index
    %c0_574 = arith.constant 0 : index
    %c0_575 = arith.constant 0 : index
    %563 = vector.load %arg7[%c3_573, %c0_574, %c0_575] : memref<9x32x32xf32, #tpu.memory_space<vmem>>, vector<1x32x32xf32>
    %564 = vector.shape_cast %563 : vector<1x32x32xf32> to vector<32x32xf32>
    %cst_576 = arith.constant dense<0.000000e+00> : vector<32x32xf32>
    %565 = tpu.matmul %564, %540, %cst_576 {dimension_numbers = #tpu.dot_dimension_numbers<[1], [0], [0], [1], [0, 0, 1, 1], [], []>} : vector<32x32xf32>, vector<32x32xf32>, vector<32x32xf32> -> vector<32x32xf32>
    %c48 = arith.constant 48 : index
    %c0_577 = arith.constant 0 : index
    %c0_578 = arith.constant 0 : index
    %566 = vector.load %arg8[%c48, %c0_577, %c0_578] : memref<99x32x32xf32, #tpu.memory_space<vmem>>, vector<1x32x32xf32>
    %567 = vector.shape_cast %566 : vector<1x32x32xf32> to vector<32x32xf32>
    %cst_579 = arith.constant dense<0.000000e+00> : vector<32x32xf32>
    %568 = tpu.matmul %565, %567, %cst_579 {dimension_numbers = #tpu.dot_dimension_numbers<[1], [0], [0], [1], [0, 0, 1, 1], [], []>} : vector<32x32xf32>, vector<32x32xf32>, vector<32x32xf32> -> vector<32x32xf32>
    %569 = arith.addf %562, %568 : vector<32x32xf32>
    %c4_580 = arith.constant 4 : index
    %c0_581 = arith.constant 0 : index
    %c0_582 = arith.constant 0 : index
    %570 = vector.load %arg7[%c4_580, %c0_581, %c0_582] : memref<9x32x32xf32, #tpu.memory_space<vmem>>, vector<1x32x32xf32>
    %571 = vector.shape_cast %570 : vector<1x32x32xf32> to vector<32x32xf32>
    %cst_583 = arith.constant dense<0.000000e+00> : vector<32x32xf32>
    %572 = tpu.matmul %571, %540, %cst_583 {dimension_numbers = #tpu.dot_dimension_numbers<[1], [0], [0], [1], [0, 0, 1, 1], [], []>} : vector<32x32xf32>, vector<32x32xf32>, vector<32x32xf32> -> vector<32x32xf32>
    %c49 = arith.constant 49 : index
    %c0_584 = arith.constant 0 : index
    %c0_585 = arith.constant 0 : index
    %573 = vector.load %arg8[%c49, %c0_584, %c0_585] : memref<99x32x32xf32, #tpu.memory_space<vmem>>, vector<1x32x32xf32>
    %574 = vector.shape_cast %573 : vector<1x32x32xf32> to vector<32x32xf32>
    %cst_586 = arith.constant dense<0.000000e+00> : vector<32x32xf32>
    %575 = tpu.matmul %572, %574, %cst_586 {dimension_numbers = #tpu.dot_dimension_numbers<[1], [0], [0], [1], [0, 0, 1, 1], [], []>} : vector<32x32xf32>, vector<32x32xf32>, vector<32x32xf32> -> vector<32x32xf32>
    %576 = arith.addf %569, %575 : vector<32x32xf32>
    %c5_587 = arith.constant 5 : index
    %c0_588 = arith.constant 0 : index
    %c0_589 = arith.constant 0 : index
    %577 = vector.load %arg7[%c5_587, %c0_588, %c0_589] : memref<9x32x32xf32, #tpu.memory_space<vmem>>, vector<1x32x32xf32>
    %578 = vector.shape_cast %577 : vector<1x32x32xf32> to vector<32x32xf32>
    %cst_590 = arith.constant dense<0.000000e+00> : vector<32x32xf32>
    %579 = tpu.matmul %578, %540, %cst_590 {dimension_numbers = #tpu.dot_dimension_numbers<[1], [0], [0], [1], [0, 0, 1, 1], [], []>} : vector<32x32xf32>, vector<32x32xf32>, vector<32x32xf32> -> vector<32x32xf32>
    %c50 = arith.constant 50 : index
    %c0_591 = arith.constant 0 : index
    %c0_592 = arith.constant 0 : index
    %580 = vector.load %arg8[%c50, %c0_591, %c0_592] : memref<99x32x32xf32, #tpu.memory_space<vmem>>, vector<1x32x32xf32>
    %581 = vector.shape_cast %580 : vector<1x32x32xf32> to vector<32x32xf32>
    %cst_593 = arith.constant dense<0.000000e+00> : vector<32x32xf32>
    %582 = tpu.matmul %579, %581, %cst_593 {dimension_numbers = #tpu.dot_dimension_numbers<[1], [0], [0], [1], [0, 0, 1, 1], [], []>} : vector<32x32xf32>, vector<32x32xf32>, vector<32x32xf32> -> vector<32x32xf32>
    %583 = arith.addf %576, %582 : vector<32x32xf32>
    %c6_594 = arith.constant 6 : index
    %c0_595 = arith.constant 0 : index
    %c0_596 = arith.constant 0 : index
    %584 = vector.load %arg7[%c6_594, %c0_595, %c0_596] : memref<9x32x32xf32, #tpu.memory_space<vmem>>, vector<1x32x32xf32>
    %585 = vector.shape_cast %584 : vector<1x32x32xf32> to vector<32x32xf32>
    %cst_597 = arith.constant dense<0.000000e+00> : vector<32x32xf32>
    %586 = tpu.matmul %585, %540, %cst_597 {dimension_numbers = #tpu.dot_dimension_numbers<[1], [0], [0], [1], [0, 0, 1, 1], [], []>} : vector<32x32xf32>, vector<32x32xf32>, vector<32x32xf32> -> vector<32x32xf32>
    %c51 = arith.constant 51 : index
    %c0_598 = arith.constant 0 : index
    %c0_599 = arith.constant 0 : index
    %587 = vector.load %arg8[%c51, %c0_598, %c0_599] : memref<99x32x32xf32, #tpu.memory_space<vmem>>, vector<1x32x32xf32>
    %588 = vector.shape_cast %587 : vector<1x32x32xf32> to vector<32x32xf32>
    %cst_600 = arith.constant dense<0.000000e+00> : vector<32x32xf32>
    %589 = tpu.matmul %586, %588, %cst_600 {dimension_numbers = #tpu.dot_dimension_numbers<[1], [0], [0], [1], [0, 0, 1, 1], [], []>} : vector<32x32xf32>, vector<32x32xf32>, vector<32x32xf32> -> vector<32x32xf32>
    %590 = arith.addf %583, %589 : vector<32x32xf32>
    %c7_601 = arith.constant 7 : index
    %c0_602 = arith.constant 0 : index
    %c0_603 = arith.constant 0 : index
    %591 = vector.load %arg7[%c7_601, %c0_602, %c0_603] : memref<9x32x32xf32, #tpu.memory_space<vmem>>, vector<1x32x32xf32>
    %592 = vector.shape_cast %591 : vector<1x32x32xf32> to vector<32x32xf32>
    %cst_604 = arith.constant dense<0.000000e+00> : vector<32x32xf32>
    %593 = tpu.matmul %592, %540, %cst_604 {dimension_numbers = #tpu.dot_dimension_numbers<[1], [0], [0], [1], [0, 0, 1, 1], [], []>} : vector<32x32xf32>, vector<32x32xf32>, vector<32x32xf32> -> vector<32x32xf32>
    %c52 = arith.constant 52 : index
    %c0_605 = arith.constant 0 : index
    %c0_606 = arith.constant 0 : index
    %594 = vector.load %arg8[%c52, %c0_605, %c0_606] : memref<99x32x32xf32, #tpu.memory_space<vmem>>, vector<1x32x32xf32>
    %595 = vector.shape_cast %594 : vector<1x32x32xf32> to vector<32x32xf32>
    %cst_607 = arith.constant dense<0.000000e+00> : vector<32x32xf32>
    %596 = tpu.matmul %593, %595, %cst_607 {dimension_numbers = #tpu.dot_dimension_numbers<[1], [0], [0], [1], [0, 0, 1, 1], [], []>} : vector<32x32xf32>, vector<32x32xf32>, vector<32x32xf32> -> vector<32x32xf32>
    %597 = arith.addf %590, %596 : vector<32x32xf32>
    %c8_608 = arith.constant 8 : index
    %c0_609 = arith.constant 0 : index
    %c0_610 = arith.constant 0 : index
    %598 = vector.load %arg7[%c8_608, %c0_609, %c0_610] : memref<9x32x32xf32, #tpu.memory_space<vmem>>, vector<1x32x32xf32>
    %599 = vector.shape_cast %598 : vector<1x32x32xf32> to vector<32x32xf32>
    %cst_611 = arith.constant dense<0.000000e+00> : vector<32x32xf32>
    %600 = tpu.matmul %599, %540, %cst_611 {dimension_numbers = #tpu.dot_dimension_numbers<[1], [0], [0], [1], [0, 0, 1, 1], [], []>} : vector<32x32xf32>, vector<32x32xf32>, vector<32x32xf32> -> vector<32x32xf32>
    %c53 = arith.constant 53 : index
    %c0_612 = arith.constant 0 : index
    %c0_613 = arith.constant 0 : index
    %601 = vector.load %arg8[%c53, %c0_612, %c0_613] : memref<99x32x32xf32, #tpu.memory_space<vmem>>, vector<1x32x32xf32>
    %602 = vector.shape_cast %601 : vector<1x32x32xf32> to vector<32x32xf32>
    %cst_614 = arith.constant dense<0.000000e+00> : vector<32x32xf32>
    %603 = tpu.matmul %600, %602, %cst_614 {dimension_numbers = #tpu.dot_dimension_numbers<[1], [0], [0], [1], [0, 0, 1, 1], [], []>} : vector<32x32xf32>, vector<32x32xf32>, vector<32x32xf32> -> vector<32x32xf32>
    %604 = arith.addf %597, %603 : vector<32x32xf32>
    %c5_615 = arith.constant 5 : index
    %c0_616 = arith.constant 0 : index
    %c0_617 = arith.constant 0 : index
    %605 = vector.load %arg9[%c5_615, %c0_616, %c0_617] : memref<11x1x32xf32, #tpu.memory_space<vmem>>, vector<1x1x32xf32>
    %606 = vector.shape_cast %605 : vector<1x1x32xf32> to vector<1x32xf32>
    %607 = vector.broadcast %606 : vector<1x32xf32> to vector<32x32xf32>
    %608 = arith.addf %604, %607 : vector<32x32xf32>
    %cst_618 = arith.constant 0.000000e+00 : f32
    %609 = vector.broadcast %cst_618 : f32 to vector<32x32xf32>
    %610 = arith.maximumf %608, %609 : vector<32x32xf32>
    %611 = arith.addf %610, %470 : vector<32x32xf32>
    %cst_619 = arith.constant 0.000000e+00 : f32
    %612 = vector.broadcast %cst_619 : f32 to vector<32x32xf32>
    %c0_620 = arith.constant 0 : index
    %c0_621 = arith.constant 0 : index
    %c0_622 = arith.constant 0 : index
    %613 = vector.load %arg7[%c0_620, %c0_621, %c0_622] : memref<9x32x32xf32, #tpu.memory_space<vmem>>, vector<1x32x32xf32>
    %614 = vector.shape_cast %613 : vector<1x32x32xf32> to vector<32x32xf32>
    %cst_623 = arith.constant dense<0.000000e+00> : vector<32x32xf32>
    %615 = tpu.matmul %614, %611, %cst_623 {dimension_numbers = #tpu.dot_dimension_numbers<[1], [0], [0], [1], [0, 0, 1, 1], [], []>} : vector<32x32xf32>, vector<32x32xf32>, vector<32x32xf32> -> vector<32x32xf32>
    %c54 = arith.constant 54 : index
    %c0_624 = arith.constant 0 : index
    %c0_625 = arith.constant 0 : index
    %616 = vector.load %arg8[%c54, %c0_624, %c0_625] : memref<99x32x32xf32, #tpu.memory_space<vmem>>, vector<1x32x32xf32>
    %617 = vector.shape_cast %616 : vector<1x32x32xf32> to vector<32x32xf32>
    %cst_626 = arith.constant dense<0.000000e+00> : vector<32x32xf32>
    %618 = tpu.matmul %615, %617, %cst_626 {dimension_numbers = #tpu.dot_dimension_numbers<[1], [0], [0], [1], [0, 0, 1, 1], [], []>} : vector<32x32xf32>, vector<32x32xf32>, vector<32x32xf32> -> vector<32x32xf32>
    %619 = arith.addf %612, %618 : vector<32x32xf32>
    %c1_627 = arith.constant 1 : index
    %c0_628 = arith.constant 0 : index
    %c0_629 = arith.constant 0 : index
    %620 = vector.load %arg7[%c1_627, %c0_628, %c0_629] : memref<9x32x32xf32, #tpu.memory_space<vmem>>, vector<1x32x32xf32>
    %621 = vector.shape_cast %620 : vector<1x32x32xf32> to vector<32x32xf32>
    %cst_630 = arith.constant dense<0.000000e+00> : vector<32x32xf32>
    %622 = tpu.matmul %621, %611, %cst_630 {dimension_numbers = #tpu.dot_dimension_numbers<[1], [0], [0], [1], [0, 0, 1, 1], [], []>} : vector<32x32xf32>, vector<32x32xf32>, vector<32x32xf32> -> vector<32x32xf32>
    %c55 = arith.constant 55 : index
    %c0_631 = arith.constant 0 : index
    %c0_632 = arith.constant 0 : index
    %623 = vector.load %arg8[%c55, %c0_631, %c0_632] : memref<99x32x32xf32, #tpu.memory_space<vmem>>, vector<1x32x32xf32>
    %624 = vector.shape_cast %623 : vector<1x32x32xf32> to vector<32x32xf32>
    %cst_633 = arith.constant dense<0.000000e+00> : vector<32x32xf32>
    %625 = tpu.matmul %622, %624, %cst_633 {dimension_numbers = #tpu.dot_dimension_numbers<[1], [0], [0], [1], [0, 0, 1, 1], [], []>} : vector<32x32xf32>, vector<32x32xf32>, vector<32x32xf32> -> vector<32x32xf32>
    %626 = arith.addf %619, %625 : vector<32x32xf32>
    %c2_634 = arith.constant 2 : index
    %c0_635 = arith.constant 0 : index
    %c0_636 = arith.constant 0 : index
    %627 = vector.load %arg7[%c2_634, %c0_635, %c0_636] : memref<9x32x32xf32, #tpu.memory_space<vmem>>, vector<1x32x32xf32>
    %628 = vector.shape_cast %627 : vector<1x32x32xf32> to vector<32x32xf32>
    %cst_637 = arith.constant dense<0.000000e+00> : vector<32x32xf32>
    %629 = tpu.matmul %628, %611, %cst_637 {dimension_numbers = #tpu.dot_dimension_numbers<[1], [0], [0], [1], [0, 0, 1, 1], [], []>} : vector<32x32xf32>, vector<32x32xf32>, vector<32x32xf32> -> vector<32x32xf32>
    %c56 = arith.constant 56 : index
    %c0_638 = arith.constant 0 : index
    %c0_639 = arith.constant 0 : index
    %630 = vector.load %arg8[%c56, %c0_638, %c0_639] : memref<99x32x32xf32, #tpu.memory_space<vmem>>, vector<1x32x32xf32>
    %631 = vector.shape_cast %630 : vector<1x32x32xf32> to vector<32x32xf32>
    %cst_640 = arith.constant dense<0.000000e+00> : vector<32x32xf32>
    %632 = tpu.matmul %629, %631, %cst_640 {dimension_numbers = #tpu.dot_dimension_numbers<[1], [0], [0], [1], [0, 0, 1, 1], [], []>} : vector<32x32xf32>, vector<32x32xf32>, vector<32x32xf32> -> vector<32x32xf32>
    %633 = arith.addf %626, %632 : vector<32x32xf32>
    %c3_641 = arith.constant 3 : index
    %c0_642 = arith.constant 0 : index
    %c0_643 = arith.constant 0 : index
    %634 = vector.load %arg7[%c3_641, %c0_642, %c0_643] : memref<9x32x32xf32, #tpu.memory_space<vmem>>, vector<1x32x32xf32>
    %635 = vector.shape_cast %634 : vector<1x32x32xf32> to vector<32x32xf32>
    %cst_644 = arith.constant dense<0.000000e+00> : vector<32x32xf32>
    %636 = tpu.matmul %635, %611, %cst_644 {dimension_numbers = #tpu.dot_dimension_numbers<[1], [0], [0], [1], [0, 0, 1, 1], [], []>} : vector<32x32xf32>, vector<32x32xf32>, vector<32x32xf32> -> vector<32x32xf32>
    %c57 = arith.constant 57 : index
    %c0_645 = arith.constant 0 : index
    %c0_646 = arith.constant 0 : index
    %637 = vector.load %arg8[%c57, %c0_645, %c0_646] : memref<99x32x32xf32, #tpu.memory_space<vmem>>, vector<1x32x32xf32>
    %638 = vector.shape_cast %637 : vector<1x32x32xf32> to vector<32x32xf32>
    %cst_647 = arith.constant dense<0.000000e+00> : vector<32x32xf32>
    %639 = tpu.matmul %636, %638, %cst_647 {dimension_numbers = #tpu.dot_dimension_numbers<[1], [0], [0], [1], [0, 0, 1, 1], [], []>} : vector<32x32xf32>, vector<32x32xf32>, vector<32x32xf32> -> vector<32x32xf32>
    %640 = arith.addf %633, %639 : vector<32x32xf32>
    %c4_648 = arith.constant 4 : index
    %c0_649 = arith.constant 0 : index
    %c0_650 = arith.constant 0 : index
    %641 = vector.load %arg7[%c4_648, %c0_649, %c0_650] : memref<9x32x32xf32, #tpu.memory_space<vmem>>, vector<1x32x32xf32>
    %642 = vector.shape_cast %641 : vector<1x32x32xf32> to vector<32x32xf32>
    %cst_651 = arith.constant dense<0.000000e+00> : vector<32x32xf32>
    %643 = tpu.matmul %642, %611, %cst_651 {dimension_numbers = #tpu.dot_dimension_numbers<[1], [0], [0], [1], [0, 0, 1, 1], [], []>} : vector<32x32xf32>, vector<32x32xf32>, vector<32x32xf32> -> vector<32x32xf32>
    %c58 = arith.constant 58 : index
    %c0_652 = arith.constant 0 : index
    %c0_653 = arith.constant 0 : index
    %644 = vector.load %arg8[%c58, %c0_652, %c0_653] : memref<99x32x32xf32, #tpu.memory_space<vmem>>, vector<1x32x32xf32>
    %645 = vector.shape_cast %644 : vector<1x32x32xf32> to vector<32x32xf32>
    %cst_654 = arith.constant dense<0.000000e+00> : vector<32x32xf32>
    %646 = tpu.matmul %643, %645, %cst_654 {dimension_numbers = #tpu.dot_dimension_numbers<[1], [0], [0], [1], [0, 0, 1, 1], [], []>} : vector<32x32xf32>, vector<32x32xf32>, vector<32x32xf32> -> vector<32x32xf32>
    %647 = arith.addf %640, %646 : vector<32x32xf32>
    %c5_655 = arith.constant 5 : index
    %c0_656 = arith.constant 0 : index
    %c0_657 = arith.constant 0 : index
    %648 = vector.load %arg7[%c5_655, %c0_656, %c0_657] : memref<9x32x32xf32, #tpu.memory_space<vmem>>, vector<1x32x32xf32>
    %649 = vector.shape_cast %648 : vector<1x32x32xf32> to vector<32x32xf32>
    %cst_658 = arith.constant dense<0.000000e+00> : vector<32x32xf32>
    %650 = tpu.matmul %649, %611, %cst_658 {dimension_numbers = #tpu.dot_dimension_numbers<[1], [0], [0], [1], [0, 0, 1, 1], [], []>} : vector<32x32xf32>, vector<32x32xf32>, vector<32x32xf32> -> vector<32x32xf32>
    %c59 = arith.constant 59 : index
    %c0_659 = arith.constant 0 : index
    %c0_660 = arith.constant 0 : index
    %651 = vector.load %arg8[%c59, %c0_659, %c0_660] : memref<99x32x32xf32, #tpu.memory_space<vmem>>, vector<1x32x32xf32>
    %652 = vector.shape_cast %651 : vector<1x32x32xf32> to vector<32x32xf32>
    %cst_661 = arith.constant dense<0.000000e+00> : vector<32x32xf32>
    %653 = tpu.matmul %650, %652, %cst_661 {dimension_numbers = #tpu.dot_dimension_numbers<[1], [0], [0], [1], [0, 0, 1, 1], [], []>} : vector<32x32xf32>, vector<32x32xf32>, vector<32x32xf32> -> vector<32x32xf32>
    %654 = arith.addf %647, %653 : vector<32x32xf32>
    %c6_662 = arith.constant 6 : index
    %c0_663 = arith.constant 0 : index
    %c0_664 = arith.constant 0 : index
    %655 = vector.load %arg7[%c6_662, %c0_663, %c0_664] : memref<9x32x32xf32, #tpu.memory_space<vmem>>, vector<1x32x32xf32>
    %656 = vector.shape_cast %655 : vector<1x32x32xf32> to vector<32x32xf32>
    %cst_665 = arith.constant dense<0.000000e+00> : vector<32x32xf32>
    %657 = tpu.matmul %656, %611, %cst_665 {dimension_numbers = #tpu.dot_dimension_numbers<[1], [0], [0], [1], [0, 0, 1, 1], [], []>} : vector<32x32xf32>, vector<32x32xf32>, vector<32x32xf32> -> vector<32x32xf32>
    %c60 = arith.constant 60 : index
    %c0_666 = arith.constant 0 : index
    %c0_667 = arith.constant 0 : index
    %658 = vector.load %arg8[%c60, %c0_666, %c0_667] : memref<99x32x32xf32, #tpu.memory_space<vmem>>, vector<1x32x32xf32>
    %659 = vector.shape_cast %658 : vector<1x32x32xf32> to vector<32x32xf32>
    %cst_668 = arith.constant dense<0.000000e+00> : vector<32x32xf32>
    %660 = tpu.matmul %657, %659, %cst_668 {dimension_numbers = #tpu.dot_dimension_numbers<[1], [0], [0], [1], [0, 0, 1, 1], [], []>} : vector<32x32xf32>, vector<32x32xf32>, vector<32x32xf32> -> vector<32x32xf32>
    %661 = arith.addf %654, %660 : vector<32x32xf32>
    %c7_669 = arith.constant 7 : index
    %c0_670 = arith.constant 0 : index
    %c0_671 = arith.constant 0 : index
    %662 = vector.load %arg7[%c7_669, %c0_670, %c0_671] : memref<9x32x32xf32, #tpu.memory_space<vmem>>, vector<1x32x32xf32>
    %663 = vector.shape_cast %662 : vector<1x32x32xf32> to vector<32x32xf32>
    %cst_672 = arith.constant dense<0.000000e+00> : vector<32x32xf32>
    %664 = tpu.matmul %663, %611, %cst_672 {dimension_numbers = #tpu.dot_dimension_numbers<[1], [0], [0], [1], [0, 0, 1, 1], [], []>} : vector<32x32xf32>, vector<32x32xf32>, vector<32x32xf32> -> vector<32x32xf32>
    %c61 = arith.constant 61 : index
    %c0_673 = arith.constant 0 : index
    %c0_674 = arith.constant 0 : index
    %665 = vector.load %arg8[%c61, %c0_673, %c0_674] : memref<99x32x32xf32, #tpu.memory_space<vmem>>, vector<1x32x32xf32>
    %666 = vector.shape_cast %665 : vector<1x32x32xf32> to vector<32x32xf32>
    %cst_675 = arith.constant dense<0.000000e+00> : vector<32x32xf32>
    %667 = tpu.matmul %664, %666, %cst_675 {dimension_numbers = #tpu.dot_dimension_numbers<[1], [0], [0], [1], [0, 0, 1, 1], [], []>} : vector<32x32xf32>, vector<32x32xf32>, vector<32x32xf32> -> vector<32x32xf32>
    %668 = arith.addf %661, %667 : vector<32x32xf32>
    %c8_676 = arith.constant 8 : index
    %c0_677 = arith.constant 0 : index
    %c0_678 = arith.constant 0 : index
    %669 = vector.load %arg7[%c8_676, %c0_677, %c0_678] : memref<9x32x32xf32, #tpu.memory_space<vmem>>, vector<1x32x32xf32>
    %670 = vector.shape_cast %669 : vector<1x32x32xf32> to vector<32x32xf32>
    %cst_679 = arith.constant dense<0.000000e+00> : vector<32x32xf32>
    %671 = tpu.matmul %670, %611, %cst_679 {dimension_numbers = #tpu.dot_dimension_numbers<[1], [0], [0], [1], [0, 0, 1, 1], [], []>} : vector<32x32xf32>, vector<32x32xf32>, vector<32x32xf32> -> vector<32x32xf32>
    %c62 = arith.constant 62 : index
    %c0_680 = arith.constant 0 : index
    %c0_681 = arith.constant 0 : index
    %672 = vector.load %arg8[%c62, %c0_680, %c0_681] : memref<99x32x32xf32, #tpu.memory_space<vmem>>, vector<1x32x32xf32>
    %673 = vector.shape_cast %672 : vector<1x32x32xf32> to vector<32x32xf32>
    %cst_682 = arith.constant dense<0.000000e+00> : vector<32x32xf32>
    %674 = tpu.matmul %671, %673, %cst_682 {dimension_numbers = #tpu.dot_dimension_numbers<[1], [0], [0], [1], [0, 0, 1, 1], [], []>} : vector<32x32xf32>, vector<32x32xf32>, vector<32x32xf32> -> vector<32x32xf32>
    %675 = arith.addf %668, %674 : vector<32x32xf32>
    %c6_683 = arith.constant 6 : index
    %c0_684 = arith.constant 0 : index
    %c0_685 = arith.constant 0 : index
    %676 = vector.load %arg9[%c6_683, %c0_684, %c0_685] : memref<11x1x32xf32, #tpu.memory_space<vmem>>, vector<1x1x32xf32>
    %677 = vector.shape_cast %676 : vector<1x1x32xf32> to vector<1x32xf32>
    %678 = vector.broadcast %677 : vector<1x32xf32> to vector<32x32xf32>
    %679 = arith.addf %675, %678 : vector<32x32xf32>
    %cst_686 = arith.constant 0.000000e+00 : f32
    %680 = vector.broadcast %cst_686 : f32 to vector<32x32xf32>
    %681 = arith.maximumf %679, %680 : vector<32x32xf32>
    %cst_687 = arith.constant 0.000000e+00 : f32
    %682 = vector.broadcast %cst_687 : f32 to vector<32x32xf32>
    %c0_688 = arith.constant 0 : index
    %c0_689 = arith.constant 0 : index
    %c0_690 = arith.constant 0 : index
    %683 = vector.load %arg7[%c0_688, %c0_689, %c0_690] : memref<9x32x32xf32, #tpu.memory_space<vmem>>, vector<1x32x32xf32>
    %684 = vector.shape_cast %683 : vector<1x32x32xf32> to vector<32x32xf32>
    %cst_691 = arith.constant dense<0.000000e+00> : vector<32x32xf32>
    %685 = tpu.matmul %684, %681, %cst_691 {dimension_numbers = #tpu.dot_dimension_numbers<[1], [0], [0], [1], [0, 0, 1, 1], [], []>} : vector<32x32xf32>, vector<32x32xf32>, vector<32x32xf32> -> vector<32x32xf32>
    %c63 = arith.constant 63 : index
    %c0_692 = arith.constant 0 : index
    %c0_693 = arith.constant 0 : index
    %686 = vector.load %arg8[%c63, %c0_692, %c0_693] : memref<99x32x32xf32, #tpu.memory_space<vmem>>, vector<1x32x32xf32>
    %687 = vector.shape_cast %686 : vector<1x32x32xf32> to vector<32x32xf32>
    %cst_694 = arith.constant dense<0.000000e+00> : vector<32x32xf32>
    %688 = tpu.matmul %685, %687, %cst_694 {dimension_numbers = #tpu.dot_dimension_numbers<[1], [0], [0], [1], [0, 0, 1, 1], [], []>} : vector<32x32xf32>, vector<32x32xf32>, vector<32x32xf32> -> vector<32x32xf32>
    %689 = arith.addf %682, %688 : vector<32x32xf32>
    %c1_695 = arith.constant 1 : index
    %c0_696 = arith.constant 0 : index
    %c0_697 = arith.constant 0 : index
    %690 = vector.load %arg7[%c1_695, %c0_696, %c0_697] : memref<9x32x32xf32, #tpu.memory_space<vmem>>, vector<1x32x32xf32>
    %691 = vector.shape_cast %690 : vector<1x32x32xf32> to vector<32x32xf32>
    %cst_698 = arith.constant dense<0.000000e+00> : vector<32x32xf32>
    %692 = tpu.matmul %691, %681, %cst_698 {dimension_numbers = #tpu.dot_dimension_numbers<[1], [0], [0], [1], [0, 0, 1, 1], [], []>} : vector<32x32xf32>, vector<32x32xf32>, vector<32x32xf32> -> vector<32x32xf32>
    %c64 = arith.constant 64 : index
    %c0_699 = arith.constant 0 : index
    %c0_700 = arith.constant 0 : index
    %693 = vector.load %arg8[%c64, %c0_699, %c0_700] : memref<99x32x32xf32, #tpu.memory_space<vmem>>, vector<1x32x32xf32>
    %694 = vector.shape_cast %693 : vector<1x32x32xf32> to vector<32x32xf32>
    %cst_701 = arith.constant dense<0.000000e+00> : vector<32x32xf32>
    %695 = tpu.matmul %692, %694, %cst_701 {dimension_numbers = #tpu.dot_dimension_numbers<[1], [0], [0], [1], [0, 0, 1, 1], [], []>} : vector<32x32xf32>, vector<32x32xf32>, vector<32x32xf32> -> vector<32x32xf32>
    %696 = arith.addf %689, %695 : vector<32x32xf32>
    %c2_702 = arith.constant 2 : index
    %c0_703 = arith.constant 0 : index
    %c0_704 = arith.constant 0 : index
    %697 = vector.load %arg7[%c2_702, %c0_703, %c0_704] : memref<9x32x32xf32, #tpu.memory_space<vmem>>, vector<1x32x32xf32>
    %698 = vector.shape_cast %697 : vector<1x32x32xf32> to vector<32x32xf32>
    %cst_705 = arith.constant dense<0.000000e+00> : vector<32x32xf32>
    %699 = tpu.matmul %698, %681, %cst_705 {dimension_numbers = #tpu.dot_dimension_numbers<[1], [0], [0], [1], [0, 0, 1, 1], [], []>} : vector<32x32xf32>, vector<32x32xf32>, vector<32x32xf32> -> vector<32x32xf32>
    %c65 = arith.constant 65 : index
    %c0_706 = arith.constant 0 : index
    %c0_707 = arith.constant 0 : index
    %700 = vector.load %arg8[%c65, %c0_706, %c0_707] : memref<99x32x32xf32, #tpu.memory_space<vmem>>, vector<1x32x32xf32>
    %701 = vector.shape_cast %700 : vector<1x32x32xf32> to vector<32x32xf32>
    %cst_708 = arith.constant dense<0.000000e+00> : vector<32x32xf32>
    %702 = tpu.matmul %699, %701, %cst_708 {dimension_numbers = #tpu.dot_dimension_numbers<[1], [0], [0], [1], [0, 0, 1, 1], [], []>} : vector<32x32xf32>, vector<32x32xf32>, vector<32x32xf32> -> vector<32x32xf32>
    %703 = arith.addf %696, %702 : vector<32x32xf32>
    %c3_709 = arith.constant 3 : index
    %c0_710 = arith.constant 0 : index
    %c0_711 = arith.constant 0 : index
    %704 = vector.load %arg7[%c3_709, %c0_710, %c0_711] : memref<9x32x32xf32, #tpu.memory_space<vmem>>, vector<1x32x32xf32>
    %705 = vector.shape_cast %704 : vector<1x32x32xf32> to vector<32x32xf32>
    %cst_712 = arith.constant dense<0.000000e+00> : vector<32x32xf32>
    %706 = tpu.matmul %705, %681, %cst_712 {dimension_numbers = #tpu.dot_dimension_numbers<[1], [0], [0], [1], [0, 0, 1, 1], [], []>} : vector<32x32xf32>, vector<32x32xf32>, vector<32x32xf32> -> vector<32x32xf32>
    %c66 = arith.constant 66 : index
    %c0_713 = arith.constant 0 : index
    %c0_714 = arith.constant 0 : index
    %707 = vector.load %arg8[%c66, %c0_713, %c0_714] : memref<99x32x32xf32, #tpu.memory_space<vmem>>, vector<1x32x32xf32>
    %708 = vector.shape_cast %707 : vector<1x32x32xf32> to vector<32x32xf32>
    %cst_715 = arith.constant dense<0.000000e+00> : vector<32x32xf32>
    %709 = tpu.matmul %706, %708, %cst_715 {dimension_numbers = #tpu.dot_dimension_numbers<[1], [0], [0], [1], [0, 0, 1, 1], [], []>} : vector<32x32xf32>, vector<32x32xf32>, vector<32x32xf32> -> vector<32x32xf32>
    %710 = arith.addf %703, %709 : vector<32x32xf32>
    %c4_716 = arith.constant 4 : index
    %c0_717 = arith.constant 0 : index
    %c0_718 = arith.constant 0 : index
    %711 = vector.load %arg7[%c4_716, %c0_717, %c0_718] : memref<9x32x32xf32, #tpu.memory_space<vmem>>, vector<1x32x32xf32>
    %712 = vector.shape_cast %711 : vector<1x32x32xf32> to vector<32x32xf32>
    %cst_719 = arith.constant dense<0.000000e+00> : vector<32x32xf32>
    %713 = tpu.matmul %712, %681, %cst_719 {dimension_numbers = #tpu.dot_dimension_numbers<[1], [0], [0], [1], [0, 0, 1, 1], [], []>} : vector<32x32xf32>, vector<32x32xf32>, vector<32x32xf32> -> vector<32x32xf32>
    %c67 = arith.constant 67 : index
    %c0_720 = arith.constant 0 : index
    %c0_721 = arith.constant 0 : index
    %714 = vector.load %arg8[%c67, %c0_720, %c0_721] : memref<99x32x32xf32, #tpu.memory_space<vmem>>, vector<1x32x32xf32>
    %715 = vector.shape_cast %714 : vector<1x32x32xf32> to vector<32x32xf32>
    %cst_722 = arith.constant dense<0.000000e+00> : vector<32x32xf32>
    %716 = tpu.matmul %713, %715, %cst_722 {dimension_numbers = #tpu.dot_dimension_numbers<[1], [0], [0], [1], [0, 0, 1, 1], [], []>} : vector<32x32xf32>, vector<32x32xf32>, vector<32x32xf32> -> vector<32x32xf32>
    %717 = arith.addf %710, %716 : vector<32x32xf32>
    %c5_723 = arith.constant 5 : index
    %c0_724 = arith.constant 0 : index
    %c0_725 = arith.constant 0 : index
    %718 = vector.load %arg7[%c5_723, %c0_724, %c0_725] : memref<9x32x32xf32, #tpu.memory_space<vmem>>, vector<1x32x32xf32>
    %719 = vector.shape_cast %718 : vector<1x32x32xf32> to vector<32x32xf32>
    %cst_726 = arith.constant dense<0.000000e+00> : vector<32x32xf32>
    %720 = tpu.matmul %719, %681, %cst_726 {dimension_numbers = #tpu.dot_dimension_numbers<[1], [0], [0], [1], [0, 0, 1, 1], [], []>} : vector<32x32xf32>, vector<32x32xf32>, vector<32x32xf32> -> vector<32x32xf32>
    %c68 = arith.constant 68 : index
    %c0_727 = arith.constant 0 : index
    %c0_728 = arith.constant 0 : index
    %721 = vector.load %arg8[%c68, %c0_727, %c0_728] : memref<99x32x32xf32, #tpu.memory_space<vmem>>, vector<1x32x32xf32>
    %722 = vector.shape_cast %721 : vector<1x32x32xf32> to vector<32x32xf32>
    %cst_729 = arith.constant dense<0.000000e+00> : vector<32x32xf32>
    %723 = tpu.matmul %720, %722, %cst_729 {dimension_numbers = #tpu.dot_dimension_numbers<[1], [0], [0], [1], [0, 0, 1, 1], [], []>} : vector<32x32xf32>, vector<32x32xf32>, vector<32x32xf32> -> vector<32x32xf32>
    %724 = arith.addf %717, %723 : vector<32x32xf32>
    %c6_730 = arith.constant 6 : index
    %c0_731 = arith.constant 0 : index
    %c0_732 = arith.constant 0 : index
    %725 = vector.load %arg7[%c6_730, %c0_731, %c0_732] : memref<9x32x32xf32, #tpu.memory_space<vmem>>, vector<1x32x32xf32>
    %726 = vector.shape_cast %725 : vector<1x32x32xf32> to vector<32x32xf32>
    %cst_733 = arith.constant dense<0.000000e+00> : vector<32x32xf32>
    %727 = tpu.matmul %726, %681, %cst_733 {dimension_numbers = #tpu.dot_dimension_numbers<[1], [0], [0], [1], [0, 0, 1, 1], [], []>} : vector<32x32xf32>, vector<32x32xf32>, vector<32x32xf32> -> vector<32x32xf32>
    %c69 = arith.constant 69 : index
    %c0_734 = arith.constant 0 : index
    %c0_735 = arith.constant 0 : index
    %728 = vector.load %arg8[%c69, %c0_734, %c0_735] : memref<99x32x32xf32, #tpu.memory_space<vmem>>, vector<1x32x32xf32>
    %729 = vector.shape_cast %728 : vector<1x32x32xf32> to vector<32x32xf32>
    %cst_736 = arith.constant dense<0.000000e+00> : vector<32x32xf32>
    %730 = tpu.matmul %727, %729, %cst_736 {dimension_numbers = #tpu.dot_dimension_numbers<[1], [0], [0], [1], [0, 0, 1, 1], [], []>} : vector<32x32xf32>, vector<32x32xf32>, vector<32x32xf32> -> vector<32x32xf32>
    %731 = arith.addf %724, %730 : vector<32x32xf32>
    %c7_737 = arith.constant 7 : index
    %c0_738 = arith.constant 0 : index
    %c0_739 = arith.constant 0 : index
    %732 = vector.load %arg7[%c7_737, %c0_738, %c0_739] : memref<9x32x32xf32, #tpu.memory_space<vmem>>, vector<1x32x32xf32>
    %733 = vector.shape_cast %732 : vector<1x32x32xf32> to vector<32x32xf32>
    %cst_740 = arith.constant dense<0.000000e+00> : vector<32x32xf32>
    %734 = tpu.matmul %733, %681, %cst_740 {dimension_numbers = #tpu.dot_dimension_numbers<[1], [0], [0], [1], [0, 0, 1, 1], [], []>} : vector<32x32xf32>, vector<32x32xf32>, vector<32x32xf32> -> vector<32x32xf32>
    %c70 = arith.constant 70 : index
    %c0_741 = arith.constant 0 : index
    %c0_742 = arith.constant 0 : index
    %735 = vector.load %arg8[%c70, %c0_741, %c0_742] : memref<99x32x32xf32, #tpu.memory_space<vmem>>, vector<1x32x32xf32>
    %736 = vector.shape_cast %735 : vector<1x32x32xf32> to vector<32x32xf32>
    %cst_743 = arith.constant dense<0.000000e+00> : vector<32x32xf32>
    %737 = tpu.matmul %734, %736, %cst_743 {dimension_numbers = #tpu.dot_dimension_numbers<[1], [0], [0], [1], [0, 0, 1, 1], [], []>} : vector<32x32xf32>, vector<32x32xf32>, vector<32x32xf32> -> vector<32x32xf32>
    %738 = arith.addf %731, %737 : vector<32x32xf32>
    %c8_744 = arith.constant 8 : index
    %c0_745 = arith.constant 0 : index
    %c0_746 = arith.constant 0 : index
    %739 = vector.load %arg7[%c8_744, %c0_745, %c0_746] : memref<9x32x32xf32, #tpu.memory_space<vmem>>, vector<1x32x32xf32>
    %740 = vector.shape_cast %739 : vector<1x32x32xf32> to vector<32x32xf32>
    %cst_747 = arith.constant dense<0.000000e+00> : vector<32x32xf32>
    %741 = tpu.matmul %740, %681, %cst_747 {dimension_numbers = #tpu.dot_dimension_numbers<[1], [0], [0], [1], [0, 0, 1, 1], [], []>} : vector<32x32xf32>, vector<32x32xf32>, vector<32x32xf32> -> vector<32x32xf32>
    %c71 = arith.constant 71 : index
    %c0_748 = arith.constant 0 : index
    %c0_749 = arith.constant 0 : index
    %742 = vector.load %arg8[%c71, %c0_748, %c0_749] : memref<99x32x32xf32, #tpu.memory_space<vmem>>, vector<1x32x32xf32>
    %743 = vector.shape_cast %742 : vector<1x32x32xf32> to vector<32x32xf32>
    %cst_750 = arith.constant dense<0.000000e+00> : vector<32x32xf32>
    %744 = tpu.matmul %741, %743, %cst_750 {dimension_numbers = #tpu.dot_dimension_numbers<[1], [0], [0], [1], [0, 0, 1, 1], [], []>} : vector<32x32xf32>, vector<32x32xf32>, vector<32x32xf32> -> vector<32x32xf32>
    %745 = arith.addf %738, %744 : vector<32x32xf32>
    %c7_751 = arith.constant 7 : index
    %c0_752 = arith.constant 0 : index
    %c0_753 = arith.constant 0 : index
    %746 = vector.load %arg9[%c7_751, %c0_752, %c0_753] : memref<11x1x32xf32, #tpu.memory_space<vmem>>, vector<1x1x32xf32>
    %747 = vector.shape_cast %746 : vector<1x1x32xf32> to vector<1x32xf32>
    %748 = vector.broadcast %747 : vector<1x32xf32> to vector<32x32xf32>
    %749 = arith.addf %745, %748 : vector<32x32xf32>
    %cst_754 = arith.constant 0.000000e+00 : f32
    %750 = vector.broadcast %cst_754 : f32 to vector<32x32xf32>
    %751 = arith.maximumf %749, %750 : vector<32x32xf32>
    %752 = arith.addf %751, %611 : vector<32x32xf32>
    %cst_755 = arith.constant 0.000000e+00 : f32
    %753 = vector.broadcast %cst_755 : f32 to vector<32x32xf32>
    %c0_756 = arith.constant 0 : index
    %c0_757 = arith.constant 0 : index
    %c0_758 = arith.constant 0 : index
    %754 = vector.load %arg7[%c0_756, %c0_757, %c0_758] : memref<9x32x32xf32, #tpu.memory_space<vmem>>, vector<1x32x32xf32>
    %755 = vector.shape_cast %754 : vector<1x32x32xf32> to vector<32x32xf32>
    %cst_759 = arith.constant dense<0.000000e+00> : vector<32x32xf32>
    %756 = tpu.matmul %755, %752, %cst_759 {dimension_numbers = #tpu.dot_dimension_numbers<[1], [0], [0], [1], [0, 0, 1, 1], [], []>} : vector<32x32xf32>, vector<32x32xf32>, vector<32x32xf32> -> vector<32x32xf32>
    %c72 = arith.constant 72 : index
    %c0_760 = arith.constant 0 : index
    %c0_761 = arith.constant 0 : index
    %757 = vector.load %arg8[%c72, %c0_760, %c0_761] : memref<99x32x32xf32, #tpu.memory_space<vmem>>, vector<1x32x32xf32>
    %758 = vector.shape_cast %757 : vector<1x32x32xf32> to vector<32x32xf32>
    %cst_762 = arith.constant dense<0.000000e+00> : vector<32x32xf32>
    %759 = tpu.matmul %756, %758, %cst_762 {dimension_numbers = #tpu.dot_dimension_numbers<[1], [0], [0], [1], [0, 0, 1, 1], [], []>} : vector<32x32xf32>, vector<32x32xf32>, vector<32x32xf32> -> vector<32x32xf32>
    %760 = arith.addf %753, %759 : vector<32x32xf32>
    %c1_763 = arith.constant 1 : index
    %c0_764 = arith.constant 0 : index
    %c0_765 = arith.constant 0 : index
    %761 = vector.load %arg7[%c1_763, %c0_764, %c0_765] : memref<9x32x32xf32, #tpu.memory_space<vmem>>, vector<1x32x32xf32>
    %762 = vector.shape_cast %761 : vector<1x32x32xf32> to vector<32x32xf32>
    %cst_766 = arith.constant dense<0.000000e+00> : vector<32x32xf32>
    %763 = tpu.matmul %762, %752, %cst_766 {dimension_numbers = #tpu.dot_dimension_numbers<[1], [0], [0], [1], [0, 0, 1, 1], [], []>} : vector<32x32xf32>, vector<32x32xf32>, vector<32x32xf32> -> vector<32x32xf32>
    %c73 = arith.constant 73 : index
    %c0_767 = arith.constant 0 : index
    %c0_768 = arith.constant 0 : index
    %764 = vector.load %arg8[%c73, %c0_767, %c0_768] : memref<99x32x32xf32, #tpu.memory_space<vmem>>, vector<1x32x32xf32>
    %765 = vector.shape_cast %764 : vector<1x32x32xf32> to vector<32x32xf32>
    %cst_769 = arith.constant dense<0.000000e+00> : vector<32x32xf32>
    %766 = tpu.matmul %763, %765, %cst_769 {dimension_numbers = #tpu.dot_dimension_numbers<[1], [0], [0], [1], [0, 0, 1, 1], [], []>} : vector<32x32xf32>, vector<32x32xf32>, vector<32x32xf32> -> vector<32x32xf32>
    %767 = arith.addf %760, %766 : vector<32x32xf32>
    %c2_770 = arith.constant 2 : index
    %c0_771 = arith.constant 0 : index
    %c0_772 = arith.constant 0 : index
    %768 = vector.load %arg7[%c2_770, %c0_771, %c0_772] : memref<9x32x32xf32, #tpu.memory_space<vmem>>, vector<1x32x32xf32>
    %769 = vector.shape_cast %768 : vector<1x32x32xf32> to vector<32x32xf32>
    %cst_773 = arith.constant dense<0.000000e+00> : vector<32x32xf32>
    %770 = tpu.matmul %769, %752, %cst_773 {dimension_numbers = #tpu.dot_dimension_numbers<[1], [0], [0], [1], [0, 0, 1, 1], [], []>} : vector<32x32xf32>, vector<32x32xf32>, vector<32x32xf32> -> vector<32x32xf32>
    %c74 = arith.constant 74 : index
    %c0_774 = arith.constant 0 : index
    %c0_775 = arith.constant 0 : index
    %771 = vector.load %arg8[%c74, %c0_774, %c0_775] : memref<99x32x32xf32, #tpu.memory_space<vmem>>, vector<1x32x32xf32>
    %772 = vector.shape_cast %771 : vector<1x32x32xf32> to vector<32x32xf32>
    %cst_776 = arith.constant dense<0.000000e+00> : vector<32x32xf32>
    %773 = tpu.matmul %770, %772, %cst_776 {dimension_numbers = #tpu.dot_dimension_numbers<[1], [0], [0], [1], [0, 0, 1, 1], [], []>} : vector<32x32xf32>, vector<32x32xf32>, vector<32x32xf32> -> vector<32x32xf32>
    %774 = arith.addf %767, %773 : vector<32x32xf32>
    %c3_777 = arith.constant 3 : index
    %c0_778 = arith.constant 0 : index
    %c0_779 = arith.constant 0 : index
    %775 = vector.load %arg7[%c3_777, %c0_778, %c0_779] : memref<9x32x32xf32, #tpu.memory_space<vmem>>, vector<1x32x32xf32>
    %776 = vector.shape_cast %775 : vector<1x32x32xf32> to vector<32x32xf32>
    %cst_780 = arith.constant dense<0.000000e+00> : vector<32x32xf32>
    %777 = tpu.matmul %776, %752, %cst_780 {dimension_numbers = #tpu.dot_dimension_numbers<[1], [0], [0], [1], [0, 0, 1, 1], [], []>} : vector<32x32xf32>, vector<32x32xf32>, vector<32x32xf32> -> vector<32x32xf32>
    %c75 = arith.constant 75 : index
    %c0_781 = arith.constant 0 : index
    %c0_782 = arith.constant 0 : index
    %778 = vector.load %arg8[%c75, %c0_781, %c0_782] : memref<99x32x32xf32, #tpu.memory_space<vmem>>, vector<1x32x32xf32>
    %779 = vector.shape_cast %778 : vector<1x32x32xf32> to vector<32x32xf32>
    %cst_783 = arith.constant dense<0.000000e+00> : vector<32x32xf32>
    %780 = tpu.matmul %777, %779, %cst_783 {dimension_numbers = #tpu.dot_dimension_numbers<[1], [0], [0], [1], [0, 0, 1, 1], [], []>} : vector<32x32xf32>, vector<32x32xf32>, vector<32x32xf32> -> vector<32x32xf32>
    %781 = arith.addf %774, %780 : vector<32x32xf32>
    %c4_784 = arith.constant 4 : index
    %c0_785 = arith.constant 0 : index
    %c0_786 = arith.constant 0 : index
    %782 = vector.load %arg7[%c4_784, %c0_785, %c0_786] : memref<9x32x32xf32, #tpu.memory_space<vmem>>, vector<1x32x32xf32>
    %783 = vector.shape_cast %782 : vector<1x32x32xf32> to vector<32x32xf32>
    %cst_787 = arith.constant dense<0.000000e+00> : vector<32x32xf32>
    %784 = tpu.matmul %783, %752, %cst_787 {dimension_numbers = #tpu.dot_dimension_numbers<[1], [0], [0], [1], [0, 0, 1, 1], [], []>} : vector<32x32xf32>, vector<32x32xf32>, vector<32x32xf32> -> vector<32x32xf32>
    %c76 = arith.constant 76 : index
    %c0_788 = arith.constant 0 : index
    %c0_789 = arith.constant 0 : index
    %785 = vector.load %arg8[%c76, %c0_788, %c0_789] : memref<99x32x32xf32, #tpu.memory_space<vmem>>, vector<1x32x32xf32>
    %786 = vector.shape_cast %785 : vector<1x32x32xf32> to vector<32x32xf32>
    %cst_790 = arith.constant dense<0.000000e+00> : vector<32x32xf32>
    %787 = tpu.matmul %784, %786, %cst_790 {dimension_numbers = #tpu.dot_dimension_numbers<[1], [0], [0], [1], [0, 0, 1, 1], [], []>} : vector<32x32xf32>, vector<32x32xf32>, vector<32x32xf32> -> vector<32x32xf32>
    %788 = arith.addf %781, %787 : vector<32x32xf32>
    %c5_791 = arith.constant 5 : index
    %c0_792 = arith.constant 0 : index
    %c0_793 = arith.constant 0 : index
    %789 = vector.load %arg7[%c5_791, %c0_792, %c0_793] : memref<9x32x32xf32, #tpu.memory_space<vmem>>, vector<1x32x32xf32>
    %790 = vector.shape_cast %789 : vector<1x32x32xf32> to vector<32x32xf32>
    %cst_794 = arith.constant dense<0.000000e+00> : vector<32x32xf32>
    %791 = tpu.matmul %790, %752, %cst_794 {dimension_numbers = #tpu.dot_dimension_numbers<[1], [0], [0], [1], [0, 0, 1, 1], [], []>} : vector<32x32xf32>, vector<32x32xf32>, vector<32x32xf32> -> vector<32x32xf32>
    %c77 = arith.constant 77 : index
    %c0_795 = arith.constant 0 : index
    %c0_796 = arith.constant 0 : index
    %792 = vector.load %arg8[%c77, %c0_795, %c0_796] : memref<99x32x32xf32, #tpu.memory_space<vmem>>, vector<1x32x32xf32>
    %793 = vector.shape_cast %792 : vector<1x32x32xf32> to vector<32x32xf32>
    %cst_797 = arith.constant dense<0.000000e+00> : vector<32x32xf32>
    %794 = tpu.matmul %791, %793, %cst_797 {dimension_numbers = #tpu.dot_dimension_numbers<[1], [0], [0], [1], [0, 0, 1, 1], [], []>} : vector<32x32xf32>, vector<32x32xf32>, vector<32x32xf32> -> vector<32x32xf32>
    %795 = arith.addf %788, %794 : vector<32x32xf32>
    %c6_798 = arith.constant 6 : index
    %c0_799 = arith.constant 0 : index
    %c0_800 = arith.constant 0 : index
    %796 = vector.load %arg7[%c6_798, %c0_799, %c0_800] : memref<9x32x32xf32, #tpu.memory_space<vmem>>, vector<1x32x32xf32>
    %797 = vector.shape_cast %796 : vector<1x32x32xf32> to vector<32x32xf32>
    %cst_801 = arith.constant dense<0.000000e+00> : vector<32x32xf32>
    %798 = tpu.matmul %797, %752, %cst_801 {dimension_numbers = #tpu.dot_dimension_numbers<[1], [0], [0], [1], [0, 0, 1, 1], [], []>} : vector<32x32xf32>, vector<32x32xf32>, vector<32x32xf32> -> vector<32x32xf32>
    %c78 = arith.constant 78 : index
    %c0_802 = arith.constant 0 : index
    %c0_803 = arith.constant 0 : index
    %799 = vector.load %arg8[%c78, %c0_802, %c0_803] : memref<99x32x32xf32, #tpu.memory_space<vmem>>, vector<1x32x32xf32>
    %800 = vector.shape_cast %799 : vector<1x32x32xf32> to vector<32x32xf32>
    %cst_804 = arith.constant dense<0.000000e+00> : vector<32x32xf32>
    %801 = tpu.matmul %798, %800, %cst_804 {dimension_numbers = #tpu.dot_dimension_numbers<[1], [0], [0], [1], [0, 0, 1, 1], [], []>} : vector<32x32xf32>, vector<32x32xf32>, vector<32x32xf32> -> vector<32x32xf32>
    %802 = arith.addf %795, %801 : vector<32x32xf32>
    %c7_805 = arith.constant 7 : index
    %c0_806 = arith.constant 0 : index
    %c0_807 = arith.constant 0 : index
    %803 = vector.load %arg7[%c7_805, %c0_806, %c0_807] : memref<9x32x32xf32, #tpu.memory_space<vmem>>, vector<1x32x32xf32>
    %804 = vector.shape_cast %803 : vector<1x32x32xf32> to vector<32x32xf32>
    %cst_808 = arith.constant dense<0.000000e+00> : vector<32x32xf32>
    %805 = tpu.matmul %804, %752, %cst_808 {dimension_numbers = #tpu.dot_dimension_numbers<[1], [0], [0], [1], [0, 0, 1, 1], [], []>} : vector<32x32xf32>, vector<32x32xf32>, vector<32x32xf32> -> vector<32x32xf32>
    %c79 = arith.constant 79 : index
    %c0_809 = arith.constant 0 : index
    %c0_810 = arith.constant 0 : index
    %806 = vector.load %arg8[%c79, %c0_809, %c0_810] : memref<99x32x32xf32, #tpu.memory_space<vmem>>, vector<1x32x32xf32>
    %807 = vector.shape_cast %806 : vector<1x32x32xf32> to vector<32x32xf32>
    %cst_811 = arith.constant dense<0.000000e+00> : vector<32x32xf32>
    %808 = tpu.matmul %805, %807, %cst_811 {dimension_numbers = #tpu.dot_dimension_numbers<[1], [0], [0], [1], [0, 0, 1, 1], [], []>} : vector<32x32xf32>, vector<32x32xf32>, vector<32x32xf32> -> vector<32x32xf32>
    %809 = arith.addf %802, %808 : vector<32x32xf32>
    %c8_812 = arith.constant 8 : index
    %c0_813 = arith.constant 0 : index
    %c0_814 = arith.constant 0 : index
    %810 = vector.load %arg7[%c8_812, %c0_813, %c0_814] : memref<9x32x32xf32, #tpu.memory_space<vmem>>, vector<1x32x32xf32>
    %811 = vector.shape_cast %810 : vector<1x32x32xf32> to vector<32x32xf32>
    %cst_815 = arith.constant dense<0.000000e+00> : vector<32x32xf32>
    %812 = tpu.matmul %811, %752, %cst_815 {dimension_numbers = #tpu.dot_dimension_numbers<[1], [0], [0], [1], [0, 0, 1, 1], [], []>} : vector<32x32xf32>, vector<32x32xf32>, vector<32x32xf32> -> vector<32x32xf32>
    %c80 = arith.constant 80 : index
    %c0_816 = arith.constant 0 : index
    %c0_817 = arith.constant 0 : index
    %813 = vector.load %arg8[%c80, %c0_816, %c0_817] : memref<99x32x32xf32, #tpu.memory_space<vmem>>, vector<1x32x32xf32>
    %814 = vector.shape_cast %813 : vector<1x32x32xf32> to vector<32x32xf32>
    %cst_818 = arith.constant dense<0.000000e+00> : vector<32x32xf32>
    %815 = tpu.matmul %812, %814, %cst_818 {dimension_numbers = #tpu.dot_dimension_numbers<[1], [0], [0], [1], [0, 0, 1, 1], [], []>} : vector<32x32xf32>, vector<32x32xf32>, vector<32x32xf32> -> vector<32x32xf32>
    %816 = arith.addf %809, %815 : vector<32x32xf32>
    %c8_819 = arith.constant 8 : index
    %c0_820 = arith.constant 0 : index
    %c0_821 = arith.constant 0 : index
    %817 = vector.load %arg9[%c8_819, %c0_820, %c0_821] : memref<11x1x32xf32, #tpu.memory_space<vmem>>, vector<1x1x32xf32>
    %818 = vector.shape_cast %817 : vector<1x1x32xf32> to vector<1x32xf32>
    %819 = vector.broadcast %818 : vector<1x32xf32> to vector<32x32xf32>
    %820 = arith.addf %816, %819 : vector<32x32xf32>
    %cst_822 = arith.constant 0.000000e+00 : f32
    %821 = vector.broadcast %cst_822 : f32 to vector<32x32xf32>
    %822 = arith.maximumf %820, %821 : vector<32x32xf32>
    %cst_823 = arith.constant 0.000000e+00 : f32
    %823 = vector.broadcast %cst_823 : f32 to vector<32x32xf32>
    %c0_824 = arith.constant 0 : index
    %c0_825 = arith.constant 0 : index
    %c0_826 = arith.constant 0 : index
    %824 = vector.load %arg7[%c0_824, %c0_825, %c0_826] : memref<9x32x32xf32, #tpu.memory_space<vmem>>, vector<1x32x32xf32>
    %825 = vector.shape_cast %824 : vector<1x32x32xf32> to vector<32x32xf32>
    %cst_827 = arith.constant dense<0.000000e+00> : vector<32x32xf32>
    %826 = tpu.matmul %825, %822, %cst_827 {dimension_numbers = #tpu.dot_dimension_numbers<[1], [0], [0], [1], [0, 0, 1, 1], [], []>} : vector<32x32xf32>, vector<32x32xf32>, vector<32x32xf32> -> vector<32x32xf32>
    %c81 = arith.constant 81 : index
    %c0_828 = arith.constant 0 : index
    %c0_829 = arith.constant 0 : index
    %827 = vector.load %arg8[%c81, %c0_828, %c0_829] : memref<99x32x32xf32, #tpu.memory_space<vmem>>, vector<1x32x32xf32>
    %828 = vector.shape_cast %827 : vector<1x32x32xf32> to vector<32x32xf32>
    %cst_830 = arith.constant dense<0.000000e+00> : vector<32x32xf32>
    %829 = tpu.matmul %826, %828, %cst_830 {dimension_numbers = #tpu.dot_dimension_numbers<[1], [0], [0], [1], [0, 0, 1, 1], [], []>} : vector<32x32xf32>, vector<32x32xf32>, vector<32x32xf32> -> vector<32x32xf32>
    %830 = arith.addf %823, %829 : vector<32x32xf32>
    %c1_831 = arith.constant 1 : index
    %c0_832 = arith.constant 0 : index
    %c0_833 = arith.constant 0 : index
    %831 = vector.load %arg7[%c1_831, %c0_832, %c0_833] : memref<9x32x32xf32, #tpu.memory_space<vmem>>, vector<1x32x32xf32>
    %832 = vector.shape_cast %831 : vector<1x32x32xf32> to vector<32x32xf32>
    %cst_834 = arith.constant dense<0.000000e+00> : vector<32x32xf32>
    %833 = tpu.matmul %832, %822, %cst_834 {dimension_numbers = #tpu.dot_dimension_numbers<[1], [0], [0], [1], [0, 0, 1, 1], [], []>} : vector<32x32xf32>, vector<32x32xf32>, vector<32x32xf32> -> vector<32x32xf32>
    %c82 = arith.constant 82 : index
    %c0_835 = arith.constant 0 : index
    %c0_836 = arith.constant 0 : index
    %834 = vector.load %arg8[%c82, %c0_835, %c0_836] : memref<99x32x32xf32, #tpu.memory_space<vmem>>, vector<1x32x32xf32>
    %835 = vector.shape_cast %834 : vector<1x32x32xf32> to vector<32x32xf32>
    %cst_837 = arith.constant dense<0.000000e+00> : vector<32x32xf32>
    %836 = tpu.matmul %833, %835, %cst_837 {dimension_numbers = #tpu.dot_dimension_numbers<[1], [0], [0], [1], [0, 0, 1, 1], [], []>} : vector<32x32xf32>, vector<32x32xf32>, vector<32x32xf32> -> vector<32x32xf32>
    %837 = arith.addf %830, %836 : vector<32x32xf32>
    %c2_838 = arith.constant 2 : index
    %c0_839 = arith.constant 0 : index
    %c0_840 = arith.constant 0 : index
    %838 = vector.load %arg7[%c2_838, %c0_839, %c0_840] : memref<9x32x32xf32, #tpu.memory_space<vmem>>, vector<1x32x32xf32>
    %839 = vector.shape_cast %838 : vector<1x32x32xf32> to vector<32x32xf32>
    %cst_841 = arith.constant dense<0.000000e+00> : vector<32x32xf32>
    %840 = tpu.matmul %839, %822, %cst_841 {dimension_numbers = #tpu.dot_dimension_numbers<[1], [0], [0], [1], [0, 0, 1, 1], [], []>} : vector<32x32xf32>, vector<32x32xf32>, vector<32x32xf32> -> vector<32x32xf32>
    %c83 = arith.constant 83 : index
    %c0_842 = arith.constant 0 : index
    %c0_843 = arith.constant 0 : index
    %841 = vector.load %arg8[%c83, %c0_842, %c0_843] : memref<99x32x32xf32, #tpu.memory_space<vmem>>, vector<1x32x32xf32>
    %842 = vector.shape_cast %841 : vector<1x32x32xf32> to vector<32x32xf32>
    %cst_844 = arith.constant dense<0.000000e+00> : vector<32x32xf32>
    %843 = tpu.matmul %840, %842, %cst_844 {dimension_numbers = #tpu.dot_dimension_numbers<[1], [0], [0], [1], [0, 0, 1, 1], [], []>} : vector<32x32xf32>, vector<32x32xf32>, vector<32x32xf32> -> vector<32x32xf32>
    %844 = arith.addf %837, %843 : vector<32x32xf32>
    %c3_845 = arith.constant 3 : index
    %c0_846 = arith.constant 0 : index
    %c0_847 = arith.constant 0 : index
    %845 = vector.load %arg7[%c3_845, %c0_846, %c0_847] : memref<9x32x32xf32, #tpu.memory_space<vmem>>, vector<1x32x32xf32>
    %846 = vector.shape_cast %845 : vector<1x32x32xf32> to vector<32x32xf32>
    %cst_848 = arith.constant dense<0.000000e+00> : vector<32x32xf32>
    %847 = tpu.matmul %846, %822, %cst_848 {dimension_numbers = #tpu.dot_dimension_numbers<[1], [0], [0], [1], [0, 0, 1, 1], [], []>} : vector<32x32xf32>, vector<32x32xf32>, vector<32x32xf32> -> vector<32x32xf32>
    %c84 = arith.constant 84 : index
    %c0_849 = arith.constant 0 : index
    %c0_850 = arith.constant 0 : index
    %848 = vector.load %arg8[%c84, %c0_849, %c0_850] : memref<99x32x32xf32, #tpu.memory_space<vmem>>, vector<1x32x32xf32>
    %849 = vector.shape_cast %848 : vector<1x32x32xf32> to vector<32x32xf32>
    %cst_851 = arith.constant dense<0.000000e+00> : vector<32x32xf32>
    %850 = tpu.matmul %847, %849, %cst_851 {dimension_numbers = #tpu.dot_dimension_numbers<[1], [0], [0], [1], [0, 0, 1, 1], [], []>} : vector<32x32xf32>, vector<32x32xf32>, vector<32x32xf32> -> vector<32x32xf32>
    %851 = arith.addf %844, %850 : vector<32x32xf32>
    %c4_852 = arith.constant 4 : index
    %c0_853 = arith.constant 0 : index
    %c0_854 = arith.constant 0 : index
    %852 = vector.load %arg7[%c4_852, %c0_853, %c0_854] : memref<9x32x32xf32, #tpu.memory_space<vmem>>, vector<1x32x32xf32>
    %853 = vector.shape_cast %852 : vector<1x32x32xf32> to vector<32x32xf32>
    %cst_855 = arith.constant dense<0.000000e+00> : vector<32x32xf32>
    %854 = tpu.matmul %853, %822, %cst_855 {dimension_numbers = #tpu.dot_dimension_numbers<[1], [0], [0], [1], [0, 0, 1, 1], [], []>} : vector<32x32xf32>, vector<32x32xf32>, vector<32x32xf32> -> vector<32x32xf32>
    %c85 = arith.constant 85 : index
    %c0_856 = arith.constant 0 : index
    %c0_857 = arith.constant 0 : index
    %855 = vector.load %arg8[%c85, %c0_856, %c0_857] : memref<99x32x32xf32, #tpu.memory_space<vmem>>, vector<1x32x32xf32>
    %856 = vector.shape_cast %855 : vector<1x32x32xf32> to vector<32x32xf32>
    %cst_858 = arith.constant dense<0.000000e+00> : vector<32x32xf32>
    %857 = tpu.matmul %854, %856, %cst_858 {dimension_numbers = #tpu.dot_dimension_numbers<[1], [0], [0], [1], [0, 0, 1, 1], [], []>} : vector<32x32xf32>, vector<32x32xf32>, vector<32x32xf32> -> vector<32x32xf32>
    %858 = arith.addf %851, %857 : vector<32x32xf32>
    %c5_859 = arith.constant 5 : index
    %c0_860 = arith.constant 0 : index
    %c0_861 = arith.constant 0 : index
    %859 = vector.load %arg7[%c5_859, %c0_860, %c0_861] : memref<9x32x32xf32, #tpu.memory_space<vmem>>, vector<1x32x32xf32>
    %860 = vector.shape_cast %859 : vector<1x32x32xf32> to vector<32x32xf32>
    %cst_862 = arith.constant dense<0.000000e+00> : vector<32x32xf32>
    %861 = tpu.matmul %860, %822, %cst_862 {dimension_numbers = #tpu.dot_dimension_numbers<[1], [0], [0], [1], [0, 0, 1, 1], [], []>} : vector<32x32xf32>, vector<32x32xf32>, vector<32x32xf32> -> vector<32x32xf32>
    %c86 = arith.constant 86 : index
    %c0_863 = arith.constant 0 : index
    %c0_864 = arith.constant 0 : index
    %862 = vector.load %arg8[%c86, %c0_863, %c0_864] : memref<99x32x32xf32, #tpu.memory_space<vmem>>, vector<1x32x32xf32>
    %863 = vector.shape_cast %862 : vector<1x32x32xf32> to vector<32x32xf32>
    %cst_865 = arith.constant dense<0.000000e+00> : vector<32x32xf32>
    %864 = tpu.matmul %861, %863, %cst_865 {dimension_numbers = #tpu.dot_dimension_numbers<[1], [0], [0], [1], [0, 0, 1, 1], [], []>} : vector<32x32xf32>, vector<32x32xf32>, vector<32x32xf32> -> vector<32x32xf32>
    %865 = arith.addf %858, %864 : vector<32x32xf32>
    %c6_866 = arith.constant 6 : index
    %c0_867 = arith.constant 0 : index
    %c0_868 = arith.constant 0 : index
    %866 = vector.load %arg7[%c6_866, %c0_867, %c0_868] : memref<9x32x32xf32, #tpu.memory_space<vmem>>, vector<1x32x32xf32>
    %867 = vector.shape_cast %866 : vector<1x32x32xf32> to vector<32x32xf32>
    %cst_869 = arith.constant dense<0.000000e+00> : vector<32x32xf32>
    %868 = tpu.matmul %867, %822, %cst_869 {dimension_numbers = #tpu.dot_dimension_numbers<[1], [0], [0], [1], [0, 0, 1, 1], [], []>} : vector<32x32xf32>, vector<32x32xf32>, vector<32x32xf32> -> vector<32x32xf32>
    %c87 = arith.constant 87 : index
    %c0_870 = arith.constant 0 : index
    %c0_871 = arith.constant 0 : index
    %869 = vector.load %arg8[%c87, %c0_870, %c0_871] : memref<99x32x32xf32, #tpu.memory_space<vmem>>, vector<1x32x32xf32>
    %870 = vector.shape_cast %869 : vector<1x32x32xf32> to vector<32x32xf32>
    %cst_872 = arith.constant dense<0.000000e+00> : vector<32x32xf32>
    %871 = tpu.matmul %868, %870, %cst_872 {dimension_numbers = #tpu.dot_dimension_numbers<[1], [0], [0], [1], [0, 0, 1, 1], [], []>} : vector<32x32xf32>, vector<32x32xf32>, vector<32x32xf32> -> vector<32x32xf32>
    %872 = arith.addf %865, %871 : vector<32x32xf32>
    %c7_873 = arith.constant 7 : index
    %c0_874 = arith.constant 0 : index
    %c0_875 = arith.constant 0 : index
    %873 = vector.load %arg7[%c7_873, %c0_874, %c0_875] : memref<9x32x32xf32, #tpu.memory_space<vmem>>, vector<1x32x32xf32>
    %874 = vector.shape_cast %873 : vector<1x32x32xf32> to vector<32x32xf32>
    %cst_876 = arith.constant dense<0.000000e+00> : vector<32x32xf32>
    %875 = tpu.matmul %874, %822, %cst_876 {dimension_numbers = #tpu.dot_dimension_numbers<[1], [0], [0], [1], [0, 0, 1, 1], [], []>} : vector<32x32xf32>, vector<32x32xf32>, vector<32x32xf32> -> vector<32x32xf32>
    %c88 = arith.constant 88 : index
    %c0_877 = arith.constant 0 : index
    %c0_878 = arith.constant 0 : index
    %876 = vector.load %arg8[%c88, %c0_877, %c0_878] : memref<99x32x32xf32, #tpu.memory_space<vmem>>, vector<1x32x32xf32>
    %877 = vector.shape_cast %876 : vector<1x32x32xf32> to vector<32x32xf32>
    %cst_879 = arith.constant dense<0.000000e+00> : vector<32x32xf32>
    %878 = tpu.matmul %875, %877, %cst_879 {dimension_numbers = #tpu.dot_dimension_numbers<[1], [0], [0], [1], [0, 0, 1, 1], [], []>} : vector<32x32xf32>, vector<32x32xf32>, vector<32x32xf32> -> vector<32x32xf32>
    %879 = arith.addf %872, %878 : vector<32x32xf32>
    %c8_880 = arith.constant 8 : index
    %c0_881 = arith.constant 0 : index
    %c0_882 = arith.constant 0 : index
    %880 = vector.load %arg7[%c8_880, %c0_881, %c0_882] : memref<9x32x32xf32, #tpu.memory_space<vmem>>, vector<1x32x32xf32>
    %881 = vector.shape_cast %880 : vector<1x32x32xf32> to vector<32x32xf32>
    %cst_883 = arith.constant dense<0.000000e+00> : vector<32x32xf32>
    %882 = tpu.matmul %881, %822, %cst_883 {dimension_numbers = #tpu.dot_dimension_numbers<[1], [0], [0], [1], [0, 0, 1, 1], [], []>} : vector<32x32xf32>, vector<32x32xf32>, vector<32x32xf32> -> vector<32x32xf32>
    %c89 = arith.constant 89 : index
    %c0_884 = arith.constant 0 : index
    %c0_885 = arith.constant 0 : index
    %883 = vector.load %arg8[%c89, %c0_884, %c0_885] : memref<99x32x32xf32, #tpu.memory_space<vmem>>, vector<1x32x32xf32>
    %884 = vector.shape_cast %883 : vector<1x32x32xf32> to vector<32x32xf32>
    %cst_886 = arith.constant dense<0.000000e+00> : vector<32x32xf32>
    %885 = tpu.matmul %882, %884, %cst_886 {dimension_numbers = #tpu.dot_dimension_numbers<[1], [0], [0], [1], [0, 0, 1, 1], [], []>} : vector<32x32xf32>, vector<32x32xf32>, vector<32x32xf32> -> vector<32x32xf32>
    %886 = arith.addf %879, %885 : vector<32x32xf32>
    %c9_887 = arith.constant 9 : index
    %c0_888 = arith.constant 0 : index
    %c0_889 = arith.constant 0 : index
    %887 = vector.load %arg9[%c9_887, %c0_888, %c0_889] : memref<11x1x32xf32, #tpu.memory_space<vmem>>, vector<1x1x32xf32>
    %888 = vector.shape_cast %887 : vector<1x1x32xf32> to vector<1x32xf32>
    %889 = vector.broadcast %888 : vector<1x32xf32> to vector<32x32xf32>
    %890 = arith.addf %886, %889 : vector<32x32xf32>
    %cst_890 = arith.constant 0.000000e+00 : f32
    %891 = vector.broadcast %cst_890 : f32 to vector<32x32xf32>
    %892 = arith.maximumf %890, %891 : vector<32x32xf32>
    %893 = arith.addf %892, %752 : vector<32x32xf32>
    %cst_891 = arith.constant 0.000000e+00 : f32
    %894 = vector.broadcast %cst_891 : f32 to vector<32x32xf32>
    %c0_892 = arith.constant 0 : index
    %c0_893 = arith.constant 0 : index
    %c0_894 = arith.constant 0 : index
    %895 = vector.load %arg7[%c0_892, %c0_893, %c0_894] : memref<9x32x32xf32, #tpu.memory_space<vmem>>, vector<1x32x32xf32>
    %896 = vector.shape_cast %895 : vector<1x32x32xf32> to vector<32x32xf32>
    %cst_895 = arith.constant dense<0.000000e+00> : vector<32x32xf32>
    %897 = tpu.matmul %896, %893, %cst_895 {dimension_numbers = #tpu.dot_dimension_numbers<[1], [0], [0], [1], [0, 0, 1, 1], [], []>} : vector<32x32xf32>, vector<32x32xf32>, vector<32x32xf32> -> vector<32x32xf32>
    %c90 = arith.constant 90 : index
    %c0_896 = arith.constant 0 : index
    %c0_897 = arith.constant 0 : index
    %898 = vector.load %arg8[%c90, %c0_896, %c0_897] : memref<99x32x32xf32, #tpu.memory_space<vmem>>, vector<1x32x32xf32>
    %899 = vector.shape_cast %898 : vector<1x32x32xf32> to vector<32x32xf32>
    %cst_898 = arith.constant dense<0.000000e+00> : vector<32x32xf32>
    %900 = tpu.matmul %897, %899, %cst_898 {dimension_numbers = #tpu.dot_dimension_numbers<[1], [0], [0], [1], [0, 0, 1, 1], [], []>} : vector<32x32xf32>, vector<32x32xf32>, vector<32x32xf32> -> vector<32x32xf32>
    %901 = arith.addf %894, %900 : vector<32x32xf32>
    %c1_899 = arith.constant 1 : index
    %c0_900 = arith.constant 0 : index
    %c0_901 = arith.constant 0 : index
    %902 = vector.load %arg7[%c1_899, %c0_900, %c0_901] : memref<9x32x32xf32, #tpu.memory_space<vmem>>, vector<1x32x32xf32>
    %903 = vector.shape_cast %902 : vector<1x32x32xf32> to vector<32x32xf32>
    %cst_902 = arith.constant dense<0.000000e+00> : vector<32x32xf32>
    %904 = tpu.matmul %903, %893, %cst_902 {dimension_numbers = #tpu.dot_dimension_numbers<[1], [0], [0], [1], [0, 0, 1, 1], [], []>} : vector<32x32xf32>, vector<32x32xf32>, vector<32x32xf32> -> vector<32x32xf32>
    %c91 = arith.constant 91 : index
    %c0_903 = arith.constant 0 : index
    %c0_904 = arith.constant 0 : index
    %905 = vector.load %arg8[%c91, %c0_903, %c0_904] : memref<99x32x32xf32, #tpu.memory_space<vmem>>, vector<1x32x32xf32>
    %906 = vector.shape_cast %905 : vector<1x32x32xf32> to vector<32x32xf32>
    %cst_905 = arith.constant dense<0.000000e+00> : vector<32x32xf32>
    %907 = tpu.matmul %904, %906, %cst_905 {dimension_numbers = #tpu.dot_dimension_numbers<[1], [0], [0], [1], [0, 0, 1, 1], [], []>} : vector<32x32xf32>, vector<32x32xf32>, vector<32x32xf32> -> vector<32x32xf32>
    %908 = arith.addf %901, %907 : vector<32x32xf32>
    %c2_906 = arith.constant 2 : index
    %c0_907 = arith.constant 0 : index
    %c0_908 = arith.constant 0 : index
    %909 = vector.load %arg7[%c2_906, %c0_907, %c0_908] : memref<9x32x32xf32, #tpu.memory_space<vmem>>, vector<1x32x32xf32>
    %910 = vector.shape_cast %909 : vector<1x32x32xf32> to vector<32x32xf32>
    %cst_909 = arith.constant dense<0.000000e+00> : vector<32x32xf32>
    %911 = tpu.matmul %910, %893, %cst_909 {dimension_numbers = #tpu.dot_dimension_numbers<[1], [0], [0], [1], [0, 0, 1, 1], [], []>} : vector<32x32xf32>, vector<32x32xf32>, vector<32x32xf32> -> vector<32x32xf32>
    %c92 = arith.constant 92 : index
    %c0_910 = arith.constant 0 : index
    %c0_911 = arith.constant 0 : index
    %912 = vector.load %arg8[%c92, %c0_910, %c0_911] : memref<99x32x32xf32, #tpu.memory_space<vmem>>, vector<1x32x32xf32>
    %913 = vector.shape_cast %912 : vector<1x32x32xf32> to vector<32x32xf32>
    %cst_912 = arith.constant dense<0.000000e+00> : vector<32x32xf32>
    %914 = tpu.matmul %911, %913, %cst_912 {dimension_numbers = #tpu.dot_dimension_numbers<[1], [0], [0], [1], [0, 0, 1, 1], [], []>} : vector<32x32xf32>, vector<32x32xf32>, vector<32x32xf32> -> vector<32x32xf32>
    %915 = arith.addf %908, %914 : vector<32x32xf32>
    %c3_913 = arith.constant 3 : index
    %c0_914 = arith.constant 0 : index
    %c0_915 = arith.constant 0 : index
    %916 = vector.load %arg7[%c3_913, %c0_914, %c0_915] : memref<9x32x32xf32, #tpu.memory_space<vmem>>, vector<1x32x32xf32>
    %917 = vector.shape_cast %916 : vector<1x32x32xf32> to vector<32x32xf32>
    %cst_916 = arith.constant dense<0.000000e+00> : vector<32x32xf32>
    %918 = tpu.matmul %917, %893, %cst_916 {dimension_numbers = #tpu.dot_dimension_numbers<[1], [0], [0], [1], [0, 0, 1, 1], [], []>} : vector<32x32xf32>, vector<32x32xf32>, vector<32x32xf32> -> vector<32x32xf32>
    %c93 = arith.constant 93 : index
    %c0_917 = arith.constant 0 : index
    %c0_918 = arith.constant 0 : index
    %919 = vector.load %arg8[%c93, %c0_917, %c0_918] : memref<99x32x32xf32, #tpu.memory_space<vmem>>, vector<1x32x32xf32>
    %920 = vector.shape_cast %919 : vector<1x32x32xf32> to vector<32x32xf32>
    %cst_919 = arith.constant dense<0.000000e+00> : vector<32x32xf32>
    %921 = tpu.matmul %918, %920, %cst_919 {dimension_numbers = #tpu.dot_dimension_numbers<[1], [0], [0], [1], [0, 0, 1, 1], [], []>} : vector<32x32xf32>, vector<32x32xf32>, vector<32x32xf32> -> vector<32x32xf32>
    %922 = arith.addf %915, %921 : vector<32x32xf32>
    %c4_920 = arith.constant 4 : index
    %c0_921 = arith.constant 0 : index
    %c0_922 = arith.constant 0 : index
    %923 = vector.load %arg7[%c4_920, %c0_921, %c0_922] : memref<9x32x32xf32, #tpu.memory_space<vmem>>, vector<1x32x32xf32>
    %924 = vector.shape_cast %923 : vector<1x32x32xf32> to vector<32x32xf32>
    %cst_923 = arith.constant dense<0.000000e+00> : vector<32x32xf32>
    %925 = tpu.matmul %924, %893, %cst_923 {dimension_numbers = #tpu.dot_dimension_numbers<[1], [0], [0], [1], [0, 0, 1, 1], [], []>} : vector<32x32xf32>, vector<32x32xf32>, vector<32x32xf32> -> vector<32x32xf32>
    %c94 = arith.constant 94 : index
    %c0_924 = arith.constant 0 : index
    %c0_925 = arith.constant 0 : index
    %926 = vector.load %arg8[%c94, %c0_924, %c0_925] : memref<99x32x32xf32, #tpu.memory_space<vmem>>, vector<1x32x32xf32>
    %927 = vector.shape_cast %926 : vector<1x32x32xf32> to vector<32x32xf32>
    %cst_926 = arith.constant dense<0.000000e+00> : vector<32x32xf32>
    %928 = tpu.matmul %925, %927, %cst_926 {dimension_numbers = #tpu.dot_dimension_numbers<[1], [0], [0], [1], [0, 0, 1, 1], [], []>} : vector<32x32xf32>, vector<32x32xf32>, vector<32x32xf32> -> vector<32x32xf32>
    %929 = arith.addf %922, %928 : vector<32x32xf32>
    %c5_927 = arith.constant 5 : index
    %c0_928 = arith.constant 0 : index
    %c0_929 = arith.constant 0 : index
    %930 = vector.load %arg7[%c5_927, %c0_928, %c0_929] : memref<9x32x32xf32, #tpu.memory_space<vmem>>, vector<1x32x32xf32>
    %931 = vector.shape_cast %930 : vector<1x32x32xf32> to vector<32x32xf32>
    %cst_930 = arith.constant dense<0.000000e+00> : vector<32x32xf32>
    %932 = tpu.matmul %931, %893, %cst_930 {dimension_numbers = #tpu.dot_dimension_numbers<[1], [0], [0], [1], [0, 0, 1, 1], [], []>} : vector<32x32xf32>, vector<32x32xf32>, vector<32x32xf32> -> vector<32x32xf32>
    %c95 = arith.constant 95 : index
    %c0_931 = arith.constant 0 : index
    %c0_932 = arith.constant 0 : index
    %933 = vector.load %arg8[%c95, %c0_931, %c0_932] : memref<99x32x32xf32, #tpu.memory_space<vmem>>, vector<1x32x32xf32>
    %934 = vector.shape_cast %933 : vector<1x32x32xf32> to vector<32x32xf32>
    %cst_933 = arith.constant dense<0.000000e+00> : vector<32x32xf32>
    %935 = tpu.matmul %932, %934, %cst_933 {dimension_numbers = #tpu.dot_dimension_numbers<[1], [0], [0], [1], [0, 0, 1, 1], [], []>} : vector<32x32xf32>, vector<32x32xf32>, vector<32x32xf32> -> vector<32x32xf32>
    %936 = arith.addf %929, %935 : vector<32x32xf32>
    %c6_934 = arith.constant 6 : index
    %c0_935 = arith.constant 0 : index
    %c0_936 = arith.constant 0 : index
    %937 = vector.load %arg7[%c6_934, %c0_935, %c0_936] : memref<9x32x32xf32, #tpu.memory_space<vmem>>, vector<1x32x32xf32>
    %938 = vector.shape_cast %937 : vector<1x32x32xf32> to vector<32x32xf32>
    %cst_937 = arith.constant dense<0.000000e+00> : vector<32x32xf32>
    %939 = tpu.matmul %938, %893, %cst_937 {dimension_numbers = #tpu.dot_dimension_numbers<[1], [0], [0], [1], [0, 0, 1, 1], [], []>} : vector<32x32xf32>, vector<32x32xf32>, vector<32x32xf32> -> vector<32x32xf32>
    %c96 = arith.constant 96 : index
    %c0_938 = arith.constant 0 : index
    %c0_939 = arith.constant 0 : index
    %940 = vector.load %arg8[%c96, %c0_938, %c0_939] : memref<99x32x32xf32, #tpu.memory_space<vmem>>, vector<1x32x32xf32>
    %941 = vector.shape_cast %940 : vector<1x32x32xf32> to vector<32x32xf32>
    %cst_940 = arith.constant dense<0.000000e+00> : vector<32x32xf32>
    %942 = tpu.matmul %939, %941, %cst_940 {dimension_numbers = #tpu.dot_dimension_numbers<[1], [0], [0], [1], [0, 0, 1, 1], [], []>} : vector<32x32xf32>, vector<32x32xf32>, vector<32x32xf32> -> vector<32x32xf32>
    %943 = arith.addf %936, %942 : vector<32x32xf32>
    %c7_941 = arith.constant 7 : index
    %c0_942 = arith.constant 0 : index
    %c0_943 = arith.constant 0 : index
    %944 = vector.load %arg7[%c7_941, %c0_942, %c0_943] : memref<9x32x32xf32, #tpu.memory_space<vmem>>, vector<1x32x32xf32>
    %945 = vector.shape_cast %944 : vector<1x32x32xf32> to vector<32x32xf32>
    %cst_944 = arith.constant dense<0.000000e+00> : vector<32x32xf32>
    %946 = tpu.matmul %945, %893, %cst_944 {dimension_numbers = #tpu.dot_dimension_numbers<[1], [0], [0], [1], [0, 0, 1, 1], [], []>} : vector<32x32xf32>, vector<32x32xf32>, vector<32x32xf32> -> vector<32x32xf32>
    %c97 = arith.constant 97 : index
    %c0_945 = arith.constant 0 : index
    %c0_946 = arith.constant 0 : index
    %947 = vector.load %arg8[%c97, %c0_945, %c0_946] : memref<99x32x32xf32, #tpu.memory_space<vmem>>, vector<1x32x32xf32>
    %948 = vector.shape_cast %947 : vector<1x32x32xf32> to vector<32x32xf32>
    %cst_947 = arith.constant dense<0.000000e+00> : vector<32x32xf32>
    %949 = tpu.matmul %946, %948, %cst_947 {dimension_numbers = #tpu.dot_dimension_numbers<[1], [0], [0], [1], [0, 0, 1, 1], [], []>} : vector<32x32xf32>, vector<32x32xf32>, vector<32x32xf32> -> vector<32x32xf32>
    %950 = arith.addf %943, %949 : vector<32x32xf32>
    %c8_948 = arith.constant 8 : index
    %c0_949 = arith.constant 0 : index
    %c0_950 = arith.constant 0 : index
    %951 = vector.load %arg7[%c8_948, %c0_949, %c0_950] : memref<9x32x32xf32, #tpu.memory_space<vmem>>, vector<1x32x32xf32>
    %952 = vector.shape_cast %951 : vector<1x32x32xf32> to vector<32x32xf32>
    %cst_951 = arith.constant dense<0.000000e+00> : vector<32x32xf32>
    %953 = tpu.matmul %952, %893, %cst_951 {dimension_numbers = #tpu.dot_dimension_numbers<[1], [0], [0], [1], [0, 0, 1, 1], [], []>} : vector<32x32xf32>, vector<32x32xf32>, vector<32x32xf32> -> vector<32x32xf32>
    %c98 = arith.constant 98 : index
    %c0_952 = arith.constant 0 : index
    %c0_953 = arith.constant 0 : index
    %954 = vector.load %arg8[%c98, %c0_952, %c0_953] : memref<99x32x32xf32, #tpu.memory_space<vmem>>, vector<1x32x32xf32>
    %955 = vector.shape_cast %954 : vector<1x32x32xf32> to vector<32x32xf32>
    %cst_954 = arith.constant dense<0.000000e+00> : vector<32x32xf32>
    %956 = tpu.matmul %953, %955, %cst_954 {dimension_numbers = #tpu.dot_dimension_numbers<[1], [0], [0], [1], [0, 0, 1, 1], [], []>} : vector<32x32xf32>, vector<32x32xf32>, vector<32x32xf32> -> vector<32x32xf32>
    %957 = arith.addf %950, %956 : vector<32x32xf32>
    %c10_955 = arith.constant 10 : index
    %c0_956 = arith.constant 0 : index
    %c0_957 = arith.constant 0 : index
    %958 = vector.load %arg9[%c10_955, %c0_956, %c0_957] : memref<11x1x32xf32, #tpu.memory_space<vmem>>, vector<1x1x32xf32>
    %959 = vector.shape_cast %958 : vector<1x1x32xf32> to vector<1x32xf32>
    %960 = vector.broadcast %959 : vector<1x32xf32> to vector<32x32xf32>
    %961 = arith.addf %957, %960 : vector<32x32xf32>
    %c0_958 = arith.constant 0 : index
    %c0_959 = arith.constant 0 : index
    %962 = vector.load %arg10[%c0_958, %c0_959] : memref<32x32xf32, #tpu.memory_space<vmem>>, vector<32x32xf32>
    tpu.vector_store %arg10[%c0_958, %c0_959], %961 {strides = array<i32>} : memref<32x32xf32, #tpu.memory_space<vmem>>, vector<32x32xf32>,
    return
  }
  func.func @transform_0(%arg0: i32) -> (i32, i32) {
    %c0_i32 = arith.constant 0 : i32
    %c0_i32_0 = arith.constant 0 : i32
    %c0_i32_1 = arith.constant 0 : i32
    return %c0_i32, %c0_i32_0 : i32, i32
  }
  func.func @transform_1(%arg0: i32) -> (i32, i32) {
    %c0_i32 = arith.constant 0 : i32
    %c0_i32_0 = arith.constant 0 : i32
    %c0_i32_1 = arith.constant 0 : i32
    return %c0_i32, %c0_i32_0 : i32, i32
  }
  func.func @transform_2(%arg0: i32) -> (i32, i32) {
    %c0_i32 = arith.constant 0 : i32
    %c0_i32_0 = arith.constant 0 : i32
    %c0_i32_1 = arith.constant 0 : i32
    return %c0_i32, %c0_i32_0 : i32, i32
  }
  func.func @transform_3(%arg0: i32) -> (i32, i32, i32) {
    %c0_i32 = arith.constant 0 : i32
    %c0_i32_0 = arith.constant 0 : i32
    %c0_i32_1 = arith.constant 0 : i32
    %c0_i32_2 = arith.constant 0 : i32
    return %c0_i32, %c0_i32_0, %c0_i32_1 : i32, i32, i32
  }
  func.func @transform_4(%arg0: i32) -> (i32, i32, i32) {
    %c0_i32 = arith.constant 0 : i32
    %c0_i32_0 = arith.constant 0 : i32
    %c0_i32_1 = arith.constant 0 : i32
    %c0_i32_2 = arith.constant 0 : i32
    return %c0_i32, %c0_i32_0, %c0_i32_1 : i32, i32, i32
  }
  func.func @transform_5(%arg0: i32) -> (i32, i32) {
    %c0_i32 = arith.constant 0 : i32
    %c0_i32_0 = arith.constant 0 : i32
    %c0_i32_1 = arith.constant 0 : i32
    return %c0_i32, %c0_i32_0 : i32, i32
  }
  func.func @transform_6(%arg0: i32) -> (i32, i32, i32) {
    %c0_i32 = arith.constant 0 : i32
    %c0_i32_0 = arith.constant 0 : i32
    %c0_i32_1 = arith.constant 0 : i32
    %c0_i32_2 = arith.constant 0 : i32
    return %c0_i32, %c0_i32_0, %c0_i32_1 : i32, i32, i32
  }
  func.func @transform_7(%arg0: i32) -> (i32, i32, i32) {
    %c0_i32 = arith.constant 0 : i32
    %c0_i32_0 = arith.constant 0 : i32
    %c0_i32_1 = arith.constant 0 : i32
    %c0_i32_2 = arith.constant 0 : i32
    return %c0_i32, %c0_i32_0, %c0_i32_1 : i32, i32, i32
  }
  func.func @transform_8(%arg0: i32) -> (i32, i32, i32) {
    %c0_i32 = arith.constant 0 : i32
    %c0_i32_0 = arith.constant 0 : i32
    %c0_i32_1 = arith.constant 0 : i32
    %c0_i32_2 = arith.constant 0 : i32
    return %c0_i32, %c0_i32_0, %c0_i32_1 : i32, i32, i32
  }
  func.func @transform_9(%arg0: i32) -> (i32, i32) {
    %c0_i32 = arith.constant 0 : i32
    %c0_i32_0 = arith.constant 0 : i32
    %c0_i32_1 = arith.constant 0 : i32
    return %c0_i32, %c0_i32_0 : i32, i32
  }
}

</mosaic_0001>

<bundles_post_ra>
// kernel: tpu_custom_call.1
= control target key start
LH: loop header
LB: loop body
LE: loop exit
PB: predicated region body
PF: predicated region fallthrough
CT: control target
= control target key end

     0   :  { %s40534_s0 = inlined_call_operand.vmem [shape: f32[128,128], index: 0, kind: input, shape index: {}]   ;;  %s40535_s1 = inlined_call_operand.vmem [shape: f32[128,32], index: 1, kind: input, shape index: {}]   ;;  %s40536_s2 = inlined_call_operand.vmem [shape: f32[1,32], index: 2, kind: input, shape index: {}]   ;;  %s40537_s3 = inlined_call_operand.vmem [shape: f32[25,32,128], index: 3, kind: input, shape index: {}]   ;;  %s40538_s4 = inlined_call_operand.vmem [shape: f32[25,32,32], index: 4, kind: input, shape index: {}]   ;;  %s40539_s5 = inlined_call_operand.vmem [shape: f32[1,32], index: 5, kind: input, shape index: {}]   ;;  %s40540_s6 = inlined_call_operand.vmem [shape: f32[9,32,32], index: 6, kind: input, shape index: {}]   ;;  %s40541_s7 = inlined_call_operand.vmem [shape: f32[99,32,32], index: 7, kind: input, shape index: {}]   ;;  %s40542_s8 = inlined_call_operand.vmem [shape: f32[11,1,32], index: 8, kind: input, shape index: {}]   ;;  %s40543_s9 = inlined_call_operand.hbm [shape: f32[32,32], index: 9, kind: output, shape index: {}]  }
   0x1   :  { %v49_v0 = vld [vmem:[%s40535_s1] sm:$0xff]  ;;  %v50_v1 = vld [vmem:[%s40535_s1 + $0x8] sm:$0xff]  ;;  %v51_v2 = vld [vmem:[%s40535_s1 + $0x10] sm:$0xff] }
   0x2   :  { %v32297_v3 = vpack.c.bf16 %v50_v1, %v49_v0  ;;  %v52_v4 = vld [vmem:[%s40535_s1 + $0x18] sm:$0xff]  ;;  %v53_v6 = vld [vmem:[%s40535_s1 + $0x20] sm:$0xff]  ;;  %v54_v7 = vld [vmem:[%s40535_s1 + $0x28] sm:$0xff] }
   0x3   :  { %v32301_v5 = vpack.c.bf16 %v52_v4, %v51_v2  ;;  %v32305_v8 = vpack.c.bf16 %v54_v7, %v53_v6  ;;  %v33_v9 = vld [vmem:[%s40534_s0] sm:$0xff]  ;;  %v55_v10 = vld [vmem:[%s40535_s1 + $0x30] sm:$0xff]  ;;  %v56_v11 = vld [vmem:[%s40535_s1 + $0x38] sm:$0xff] }
   0x4   :  { %32298 = vmatprep.subr.bf16.mxu0 %v32297_v3  ;;  %28201 = vmatprep.mubr.f32.mxu0 %v33_v9  ;;  %v32309_v12 = vpack.c.bf16 %v56_v11, %v55_v10  ;;  %v57_v13 = vld [vmem:[%s40535_s1 + $0x40] sm:$0xff]  ;;  %v58_v14 = vld [vmem:[%s40535_s1 + $0x48] sm:$0xff] }
   0x5   :  { %32300 = vmatpush3.bf16.msra.mxu0 %v32297_v3 }
   0x6   :  { %32302 = vmatprep.subr.bf16.mxu0 %v32301_v5 }
   0x9   :  { %32304 = vmatpush3.bf16.msra.mxu0 %v32301_v5 }
   0xa   :  { %32306 = vmatprep.subr.bf16.mxu0 %v32305_v8 }
   0xb   :  { %14 = vsyncpa [#allocation3], 0  ;;  %v32313_v15 = vpack.c.bf16 %v58_v14, %v57_v13  ;;  %v59_v16 = vld [vmem:[%s40535_s1 + $0x50] sm:$0xff]  ;;  %v60_v17 = vld [vmem:[%s40535_s1 + $0x58] sm:$0xff]  ;;  %vm421_vm0 = vcmask 261120   ;;  %s35500_s14 = smov [#allocation2]  }
   0xc   :  { %v32317_v18 = vpack.c.bf16 %v60_v17, %v59_v16  ;;  %v61_v19 = vld [vmem:[%s40535_s1 + $0x60] sm:$0xff]  ;;  %v62_v20 = vld [vmem:[%s40535_s1 + $0x68] sm:$0xff]  ;;  %v63_v22 = vld [vmem:[%s40535_s1 + $0x70] sm:$0xff]  ;;  %s24311_s15 = sshll.u32 %s35500_s14, 4  ;;  %s24312_s15 = int_to_ptr.vmem [resolvable:$true] %s24311_s15 }
   0xd   :  { %32308 = vmatpush3.bf16.msra.mxu0 %v32305_v8  ;;  %v32321_v21 = vpack.c.bf16 %v62_v20, %v61_v19  ;;  %v64_v23 = vld [vmem:[%s40535_s1 + $0x78] sm:$0xff]  ;;  %v34_v25 = vld [vmem:[%s40534_s0 + $0x8] sm:$0xff]  ;;  %v35_v26 = vld [vmem:[%s40534_s0 + $0x10] sm:$0xff]  ;;  %p35481_p1 = scmp.lt.s32.totalorder %s24312_s15, %s24312_s15 }
   0xe   :  { %32310 = vmatprep.subr.bf16.mxu0 %v32309_v12  ;;  %v32325_v24 = vpack.c.bf16 %v64_v23, %v63_v22  ;;  %v36_v27 = vld [vmem:[%s40534_s0 + $0x18] sm:$0xff]  ;;  %v37_v28 = vld [vmem:[%s40534_s0 + $0x20] sm:$0xff]  ;;  %v38_v29 = vld [vmem:[%s40534_s0 + $0x28] sm:$0xff] }
   0xf   :  { %v39_v30 = vld [vmem:[%s40534_s0 + $0x30] sm:$0xff]  ;;  %v40_v31 = vld [vmem:[%s40534_s0 + $0x38] sm:$0xff]  ;;  %v41_v32 = vld [vmem:[%s40534_s0 + $0x40] sm:$0xff] }
  0x10   :  { %v42_v33 = vld [vmem:[%s40534_s0 + $0x48] sm:$0xff]  ;;  %v43_v34 = vld [vmem:[%s40534_s0 + $0x50] sm:$0xff]  ;;  %v44_v35 = vld [vmem:[%s40534_s0 + $0x58] sm:$0xff] }
  0x11   :  { %32312 = vmatpush3.bf16.msra.mxu0 %v32309_v12  ;;  %v45_v36 = vld [vmem:[%s40534_s0 + $0x60] sm:$0xff]  ;;  %v46_v37 = vld [vmem:[%s40534_s0 + $0x68] sm:$0xff]  ;;  %v47_v38 = vld [vmem:[%s40534_s0 + $0x70] sm:$0xff] }
  0x12   :  { %32314 = vmatprep.subr.bf16.mxu0 %v32313_v15  ;;  %v48_v39 = vld [vmem:[%s40534_s0 + $0x78] sm:$0xff]  ;;  %v24323_v40 = vld [vmem:[%s40537_s3 + $0x20] sm:$0xff] }
  0x13   :  { %v233_v41 = vld [vmem:[%s40537_s3] sm:$0xff] }
  0x14   :  { %28257 = vmatprep.mubr.f32.mxu1 %v233_v41  ;;  %v35658_v42 = vld [vmem:[%s40536_s2] ss:$0 sm:$0xff] }
  0x15   :  { %32316 = vmatpush3.bf16.msra.mxu0 %v32313_v15  ;;  %v24351_v41 = vld [vmem:[%s40537_s3 + $0x60] sm:$0xff] }
  0x16   :  { %32318 = vmatprep.subr.bf16.mxu0 %v32317_v18 }
  0x19   :  { %32320 = vmatpush3.bf16.msra.mxu0 %v32317_v18 }
  0x1a   :  { %32322 = vmatprep.subr.bf16.mxu0 %v32321_v21 }
  0x1d   :  { %32324 = vmatpush3.bf16.msra.mxu0 %v32321_v21 }
  0x1e   :  { %32326 = vmatprep.subr.bf16.mxu0 %v32325_v24 }
  0x21   :  { %32328 = vmatpush3.bf16.msra.mxu0 %v32325_v24 }
  0x24   :  { %28202 = vmatmul.mubr.f32.vlgmr.msra.gmra.mrb[0].mxu0 %v34_v25 }
  0x25   :  { %28204 = vmatprep.mubr.f32.mxu0 %v35_v26 }
  0x28   :  { %28205 = vmatmul.mubr.f32.gmra.mrb[2].mxu0 %v36_v27 }
  0x29   :  { %28207 = vmatprep.mubr.f32.mxu0 %v37_v28 }
  0x2c   :  { %28208 = vmatmul.mubr.f32.gmra.mrb[4].mxu0 %v38_v29 }
  0x2d   :  { %28210 = vmatprep.mubr.f32.mxu0 %v39_v30 }
  0x30   :  { %28211 = vmatmul.mubr.f32.gmra.mrb[6].mxu0 %v40_v31 }
  0x31   :  { %28213 = vmatprep.mubr.f32.mxu0 %v41_v32 }
  0x34   :  { %28214 = vmatmul.mubr.f32.gmra.mrb[8].mxu0 %v42_v33 }
  0x35   :  { %28216 = vmatprep.mubr.f32.mxu0 %v43_v34 }
  0x38   :  { %28217 = vmatmul.mubr.f32.gmra.mrb[10].mxu0 %v44_v35  ;;  %v24324_v35 = vld [vmem:[%s40537_s3 + $0x28] sm:$0xff] }
  0x39   :  { %28219 = vmatprep.mubr.f32.mxu0 %v45_v36  ;;  %v234_v36 = vld [vmem:[%s40537_s3 + $0x8] sm:$0xff] }
  0x3c   :  { %28220 = vmatmul.mubr.f32.gmra.mrb[12].mxu0 %v46_v37  ;;  %v24325_v37 = vld [vmem:[%s40537_s3 + $0x30] sm:$0xff] }
  0x3d   :  { %28222 = vmatprep.mubr.f32.mxu0 %v47_v38  ;;  %v235_v38 = vld [vmem:[%s40537_s3 + $0x10] sm:$0xff] }
  0x40   :  { %28223 = vmatmul.mubr.f32.gmra.mrb[14].mxu0 %v48_v39  ;;  %v24326_v39 = vld [vmem:[%s40537_s3 + $0x38] sm:$0xff] }
  0x41   :  { %28295 = vmatprep.mubr.f32.mxu0 %v24323_v40  ;;  %v236_v40 = vld [vmem:[%s40537_s3 + $0x18] sm:$0xff] }
  0xf7   :  { %v28203_v43 = vpop.f32.mrb[0].mxu0 }
  0xf8   :  { %v144_v44 = vadd.f32 %v28203_v43, %v35658_v42  ;;  %v138_v45 = vpop.f32.mrb[1].mxu0  ;;  %v24353_v43 = vld [vmem:[%s40537_s3 + $0x70] sm:$0xff] }
  0xf9   :  { %v139_v46 = vadd.f32 %v35658_v42, %v138_v45  ;;  %v24363_v45 = vld [vmem:[%s40537_s3 + $0x80] sm:$0xff] }
  0xfa   :  { %v218_v47 = vmax.f32 %v144_v44, 0.0  ;;  %v24354_v44 = vld [vmem:[%s40537_s3 + $0x78] sm:$0xff] }
  0xfb   :  { %v217_v48 = vmax.f32 %v139_v46, 0.0  ;;  %v28206_v49 = vpop.f32.mrb[2].mxu0  ;;  %v24364_v46 = vld [vmem:[%s40537_s3 + $0x88] sm:$0xff] }
  0xfc   :  { %v154_v50 = vadd.f32 %v28206_v49, %v35658_v42  ;;  %v148_v51 = vpop.f32.mrb[3].mxu0  ;;  %v24387_v49 = vld [vmem:[%s40537_s3 + $0xc0] sm:$0xff] }
  0xfd   :  { %v35663_v52 = vpack.c.bf16 %v218_v47, %v217_v48  ;;  %v149_v53 = vadd.f32 %v35658_v42, %v148_v51  ;;  %v24365_v47 = vld [vmem:[%s40537_s3 + $0x90] sm:$0xff]  ;;  %v24366_v48 = vld [vmem:[%s40537_s3 + $0x98] sm:$0xff]  ;;  %v24328_v51 = vld [vmem:[%s40538_s4 + $0x28] sm:$0xff] }
  0xfe   :  { %v220_v54 = vmax.f32 %v154_v50, 0.0  ;;  %v24327_v50 = vld [vmem:[%s40538_s4 + $0x20] sm:$0xff] }
  0xff   :  { %v219_v55 = vmax.f32 %v149_v53, 0.0  ;;  %v28209_v56 = vpop.f32.mrb[4].mxu0  ;;  %32330 = vmatprep.subr.bf16.mxu1 %v35663_v52  ;;  %32362 = vmatprep.subr.bf16.mxu0 %v35663_v52  ;;  %v32393_v53 = vpack.c.bf16 %v24328_v51, %v24327_v50  ;;  %v24345_v50 = vld [vmem:[%s40538_s4 + $0x50] sm:$0xff] }
 0x100   :  { %v164_v57 = vadd.f32 %v28209_v56, %v35658_v42  ;;  %v158_v58 = vpop.f32.mrb[5].mxu0  ;;  %32332 = vmatpush3.bf16.msra.mxu1 %v35663_v52  ;;  %32364 = vmatpush3.bf16.msra.mxu0 %v35663_v52  ;;  %v24521_v51 = vld [vmem:[%s40537_s3 + $0x230] sm:$0xff] }
 0x101   :  { %v35671_v59 = vpack.c.bf16 %v220_v54, %v219_v55  ;;  %v159_v60 = vadd.f32 %v35658_v42, %v158_v58  ;;  %v24329_v54 = vld [vmem:[%s40538_s4 + $0x30] sm:$0xff]  ;;  %v24330_v55 = vld [vmem:[%s40538_s4 + $0x38] sm:$0xff]  ;;  %v323_v58 = vld [vmem:[%s40538_s4 + $0x8] sm:$0xff] }
 0x102   :  { %v222_v61 = vmax.f32 %v164_v57, 0.0  ;;  %v32397_v56 = vpack.c.bf16 %v24330_v55, %v24329_v54  ;;  %v322_v57 = vld [vmem:[%s40538_s4] sm:$0xff]  ;;  %v24346_v55 = vld [vmem:[%s40538_s4 + $0x58] sm:$0xff] }
 0x103   :  { %v221_v62 = vmax.f32 %v159_v60, 0.0  ;;  %v28212_v63 = vpop.f32.mrb[6].mxu0  ;;  %32334 = vmatprep.subr.bf16.mxu1 %v35671_v59  ;;  %32366 = vmatprep.subr.bf16.mxu0 %v35671_v59  ;;  %v35830_v60 = vpack.c.bf16 %v323_v58, %v322_v57  ;;  %v24522_v57 = vld [vmem:[%s40537_s3 + $0x238] sm:$0xff]  ;;  %v24543_v58 = vld [vmem:[%s40537_s3 + $0x260] sm:$0xff] }
 0x104   :  { %v174_v0 = vadd.f32 %v28212_v63, %v35658_v42  ;;  %v168_v1 = vpop.f32.mrb[7].mxu0  ;;  %32336 = vmatpush3.bf16.msra.mxu1 %v35671_v59  ;;  %32368 = vmatpush3.bf16.msra.mxu0 %v35671_v59  ;;  %v24390_v63 = vld [vmem:[%s40537_s3 + $0xd8] sm:$0xff] }
 0x105   :  { %v35679_v2 = vpack.c.bf16 %v222_v61, %v221_v62  ;;  %v169_v3 = vadd.f32 %v35658_v42, %v168_v1  ;;  %v24388_v61 = vld [vmem:[%s40537_s3 + $0xc8] sm:$0xff]  ;;  %v24389_v62 = vld [vmem:[%s40537_s3 + $0xd0] sm:$0xff] }
 0x106   :  { %v224_v4 = vmax.f32 %v174_v0, 0.0  ;;  %v24411_v0 = vld [vmem:[%s40537_s3 + $0x100] sm:$0xff]  ;;  %v24412_v1 = vld [vmem:[%s40537_s3 + $0x108] sm:$0xff] }
 0x107   :  { %v223_v5 = vmax.f32 %v169_v3, 0.0  ;;  %v28215_v6 = vpop.f32.mrb[8].mxu0  ;;  %32338 = vmatprep.subr.bf16.mxu1 %v35679_v2  ;;  %32370 = vmatprep.subr.bf16.mxu0 %v35679_v2  ;;  %v24413_v3 = vld [vmem:[%s40537_s3 + $0x110] sm:$0xff] }
 0x108   :  { %v184_v7 = vadd.f32 %v28215_v6, %v35658_v42  ;;  %v178_v8 = vpop.f32.mrb[9].mxu0  ;;  %32340 = vmatpush3.bf16.msra.mxu1 %v35679_v2  ;;  %32372 = vmatpush3.bf16.msra.mxu0 %v35679_v2  ;;  %v24424_v6 = vld [vmem:[%s40537_s3 + $0x128] sm:$0xff] }
 0x109   :  { %v35687_v9 = vpack.c.bf16 %v224_v4, %v223_v5  ;;  %v179_v10 = vadd.f32 %v35658_v42, %v178_v8  ;;  %v24414_v4 = vld [vmem:[%s40537_s3 + $0x118] sm:$0xff]  ;;  %v24423_v5 = vld [vmem:[%s40537_s3 + $0x120] sm:$0xff] }
 0x10a   :  { %v226_v11 = vmax.f32 %v184_v7, 0.0  ;;  %v24425_v7 = vld [vmem:[%s40537_s3 + $0x130] sm:$0xff]  ;;  %v24426_v8 = vld [vmem:[%s40537_s3 + $0x138] sm:$0xff] }
 0x10b   :  { %v225_v12 = vmax.f32 %v179_v10, 0.0  ;;  %v28218_v13 = vpop.f32.mrb[10].mxu0  ;;  %32342 = vmatprep.subr.bf16.mxu1 %v35687_v9  ;;  %32374 = vmatprep.subr.bf16.mxu0 %v35687_v9  ;;  %v24447_v10 = vld [vmem:[%s40537_s3 + $0x160] sm:$0xff] }
 0x10c   :  { %v194_v14 = vadd.f32 %v28218_v13, %v35658_v42  ;;  %v188_v15 = vpop.f32.mrb[11].mxu0  ;;  %32344 = vmatpush3.bf16.msra.mxu1 %v35687_v9  ;;  %32376 = vmatpush3.bf16.msra.mxu0 %v35687_v9  ;;  %v24450_v13 = vld [vmem:[%s40537_s3 + $0x178] sm:$0xff] }
 0x10d   :  { %v35695_v16 = vpack.c.bf16 %v226_v11, %v225_v12  ;;  %v189_v17 = vadd.f32 %v35658_v42, %v188_v15  ;;  %v24448_v11 = vld [vmem:[%s40537_s3 + $0x168] sm:$0xff]  ;;  %v24449_v12 = vld [vmem:[%s40537_s3 + $0x170] sm:$0xff] }
 0x10e   :  { %v228_v18 = vmax.f32 %v194_v14, 0.0  ;;  %v24459_v14 = vld [vmem:[%s40537_s3 + $0x180] sm:$0xff]  ;;  %v324_v15 = vld [vmem:[%s40538_s4 + $0x10] sm:$0xff] }
 0x10f   :  { %v227_v19 = vmax.f32 %v189_v17, 0.0  ;;  %v28221_v20 = vpop.f32.mrb[12].mxu0  ;;  %32346 = vmatprep.subr.bf16.mxu1 %v35695_v16  ;;  %32378 = vmatprep.subr.bf16.mxu0 %v35695_v16  ;;  %v325_v17 = vld [vmem:[%s40538_s4 + $0x18] sm:$0xff] }
 0x110   :  { %v204_v21 = vadd.f32 %v28221_v20, %v35658_v42  ;;  %v198_v22 = vpop.f32.mrb[13].mxu0  ;;  %32348 = vmatpush3.bf16.msra.mxu1 %v35695_v16  ;;  %32380 = vmatpush3.bf16.msra.mxu0 %v35695_v16 }
 0x111   :  { %v35703_v23 = vpack.c.bf16 %v228_v18, %v227_v19  ;;  %v199_v24 = vadd.f32 %v35658_v42, %v198_v22 }
 0x112   :  { %v230_v25 = vmax.f32 %v204_v21, 0.0  ;;  %v32405_v21 = vpack.c.bf16 %v325_v17, %v324_v15  ;;  %v24580_v15 = vld [vmem:[%s40537_s3 + $0x2c8] sm:$0xff]  ;;  %v24357_v17 = vld [vmem:[%s40538_s4 + $0x70] sm:$0xff] }
 0x113   :  { %v229_v26 = vmax.f32 %v199_v24, 0.0  ;;  %v28224_v27 = vpop.f32.mrb[14].mxu0  ;;  %32350 = vmatprep.subr.bf16.mxu1 %v35703_v23  ;;  %32382 = vmatprep.subr.bf16.mxu0 %v35703_v23 }
 0x114   :  { %v214_v28 = vadd.f32 %v28224_v27, %v35658_v42  ;;  %v208_v29 = vpop.f32.mrb[15].mxu0  ;;  %32352 = vmatpush3.bf16.msra.mxu1 %v35703_v23  ;;  %32384 = vmatpush3.bf16.msra.mxu0 %v35703_v23 }
 0x115   :  { %v35711_v30 = vpack.c.bf16 %v230_v25, %v229_v26  ;;  %v209_v31 = vadd.f32 %v35658_v42, %v208_v29  ;;  %v24352_v42 = vld [vmem:[%s40537_s3 + $0x68] sm:$0xff]  ;;  %v24461_v29 = vld [vmem:[%s40537_s3 + $0x190] sm:$0xff] }
 0x116   :  { %v232_v32 = vmax.f32 %v214_v28, 0.0  ;;  %v24460_v28 = vld [vmem:[%s40537_s3 + $0x188] sm:$0xff] }
 0x117   :  { %v231_v33 = vmax.f32 %v209_v31, 0.0  ;;  %32354 = vmatprep.subr.bf16.mxu1 %v35711_v30  ;;  %32386 = vmatprep.subr.bf16.mxu0 %v35711_v30  ;;  %v24339_v31 = vld [vmem:[%s40537_s3 + $0x40] sm:$0xff] }
 0x118   :  { %32356 = vmatpush3.bf16.msra.mxu1 %v35711_v30  ;;  %32388 = vmatpush3.bf16.msra.mxu0 %v35711_v30 }
 0x119   :  { %v35718_v34 = vpack.c.bf16 %v232_v32, %v231_v33  ;;  %v24462_v32 = vld [vmem:[%s40537_s3 + $0x198] sm:$0xff]  ;;  %v24483_v33 = vld [vmem:[%s40537_s3 + $0x1c0] sm:$0xff] }
 0x11b   :  { %32358 = vmatprep.subr.bf16.mxu1 %v35718_v34  ;;  %32390 = vmatprep.subr.bf16.mxu0 %v35718_v34 }
 0x11c   :  { %32360 = vmatpush3.bf16.msra.mxu1 %v35718_v34  ;;  %32392 = vmatpush3.bf16.msra.mxu0 %v35718_v34 }
 0x11d   :  { %32450 = vmatprep.subr.bf16.mxu0 %v35663_v52  ;;  %32394 = vmatprep.subr.bf16.mxu1 %v32393_v53 }
 0x11f   :  { %28296 = vmatmul.mubr.f32.vlgmr.msra.gmra.mrb[16].mxu0 %v24324_v35  ;;  %28258 = vmatmul.mubr.f32.vlgmr.msra.gmra.mrb[0].mxu1 %v234_v36  ;;  %v24340_v35 = vld [vmem:[%s40537_s3 + $0x48] sm:$0xff]  ;;  %v24341_v36 = vld [vmem:[%s40537_s3 + $0x50] sm:$0xff] }
 0x120   :  { %32452 = vmatpush3.bf16.msra.mxu0 %v35663_v52  ;;  %28298 = vmatprep.mubr.f32.mxu0 %v24325_v37  ;;  %v24484_v37 = vld [vmem:[%s40537_s3 + $0x1c8] sm:$0xff] }
 0x121   :  { %32454 = vmatprep.subr.bf16.mxu0 %v35671_v59  ;;  %28260 = vmatprep.mubr.f32.mxu1 %v235_v38  ;;  %v24485_v38 = vld [vmem:[%s40537_s3 + $0x1d0] sm:$0xff] }
 0x122   :  { %32396 = vmatpush3.bf16.msra.mxu1 %v32393_v53 }
 0x123   :  { %28299 = vmatmul.mubr.f32.gmra.mrb[18].mxu0 %v24326_v39  ;;  %28261 = vmatmul.mubr.f32.gmra.mrb[2].mxu1 %v236_v40  ;;  %v24342_v39 = vld [vmem:[%s40537_s3 + $0x58] sm:$0xff] }
 0x124   :  { %32456 = vmatpush3.bf16.msra.mxu0 %v35671_v59  ;;  %28413 = vmatprep.mubr.f32.mxu0 %v24351_v41  ;;  %v24486_v40 = vld [vmem:[%s40537_s3 + $0x1d8] sm:$0xff]  ;;  %v24507_v41 = vld [vmem:[%s40537_s3 + $0x200] sm:$0xff] }
 0x125   :  { %32458 = vmatprep.subr.bf16.mxu0 %v35679_v2  ;;  %32398 = vmatprep.subr.bf16.mxu1 %v32397_v56 }
 0x126   :  { %32400 = vmatpush3.bf16.msra.mxu1 %v32397_v56  ;;  %v32445_v56 = vpack.c.bf16 %v24346_v55, %v24345_v50 }
 0x127   :  { %32402 = vmatprep.subr.bf16.mxu1 %v35830_v60 }
 0x128   :  { %32460 = vmatpush3.bf16.msra.mxu0 %v35679_v2 }
 0x129   :  { %32462 = vmatprep.subr.bf16.mxu0 %v35687_v9 }
 0x12c   :  { %32464 = vmatpush3.bf16.msra.mxu0 %v35687_v9 }
 0x12d   :  { %32466 = vmatprep.subr.bf16.mxu0 %v35695_v16 }
 0x130   :  { %32468 = vmatpush3.bf16.msra.mxu0 %v35695_v16 }
 0x131   :  { %32470 = vmatprep.subr.bf16.mxu0 %v35703_v23 }
 0x134   :  { %32472 = vmatpush3.bf16.msra.mxu0 %v35703_v23 }
 0x135   :  { %32474 = vmatprep.subr.bf16.mxu0 %v35711_v30 }
 0x138   :  { %32476 = vmatpush3.bf16.msra.mxu0 %v35711_v30 }
 0x139   :  { %32478 = vmatprep.subr.bf16.mxu0 %v35718_v34 }
 0x13c   :  { %32480 = vmatpush3.bf16.msra.mxu0 %v35718_v34 }
 0x13d   :  { %32490 = vmatprep.subr.bf16.mxu0 %v35663_v52 }
 0x13f   :  { %28414 = vmatmul.mubr.f32.vlgmr.msra.gmra.mrb[20].mxu0 %v24352_v42  ;;  %v24508_v42 = vld [vmem:[%s40537_s3 + $0x208] sm:$0xff] }
 0x140   :  { %32492 = vmatpush3.bf16.msra.mxu0 %v35663_v52  ;;  %28416 = vmatprep.mubr.f32.mxu0 %v24353_v43  ;;  %v24509_v43 = vld [vmem:[%s40537_s3 + $0x210] sm:$0xff] }
 0x141   :  { %32494 = vmatprep.subr.bf16.mxu0 %v35671_v59 }
 0x143   :  { %28417 = vmatmul.mubr.f32.gmra.mrb[22].mxu0 %v24354_v44  ;;  %v24510_v44 = vld [vmem:[%s40537_s3 + $0x218] sm:$0xff] }
 0x144   :  { %32496 = vmatpush3.bf16.msra.mxu0 %v35671_v59  ;;  %28465 = vmatprep.mubr.f32.mxu0 %v24363_v45  ;;  %v24519_v45 = vld [vmem:[%s40537_s3 + $0x220] sm:$0xff] }
 0x145   :  { %32498 = vmatprep.subr.bf16.mxu0 %v35679_v2 }
 0x148   :  { %32500 = vmatpush3.bf16.msra.mxu0 %v35679_v2 }
 0x149   :  { %32502 = vmatprep.subr.bf16.mxu0 %v35687_v9 }
 0x14c   :  { %32504 = vmatpush3.bf16.msra.mxu0 %v35687_v9 }
 0x14d   :  { %32506 = vmatprep.subr.bf16.mxu0 %v35695_v16 }
 0x150   :  { %32508 = vmatpush3.bf16.msra.mxu0 %v35695_v16 }
 0x151   :  { %32510 = vmatprep.subr.bf16.mxu0 %v35703_v23 }
 0x154   :  { %32512 = vmatpush3.bf16.msra.mxu0 %v35703_v23 }
 0x155   :  { %32514 = vmatprep.subr.bf16.mxu0 %v35711_v30 }
 0x158   :  { %32516 = vmatpush3.bf16.msra.mxu0 %v35711_v30 }
 0x159   :  { %32518 = vmatprep.subr.bf16.mxu0 %v35718_v34 }
 0x15c   :  { %32520 = vmatpush3.bf16.msra.mxu0 %v35718_v34 }
 0x15d   :  { %32570 = vmatprep.subr.bf16.mxu0 %v35663_v52 }
 0x15f   :  { %28466 = vmatmul.mubr.f32.vlgmr.msra.gmra.mrb[24].mxu0 %v24364_v46  ;;  %v24520_v46 = vld [vmem:[%s40537_s3 + $0x228] sm:$0xff] }
 0x160   :  { %32572 = vmatpush3.bf16.msra.mxu0 %v35663_v52  ;;  %28468 = vmatprep.mubr.f32.mxu0 %v24365_v47 }
 0x161   :  { %32574 = vmatprep.subr.bf16.mxu0 %v35671_v59 }
 0x163   :  { %28469 = vmatmul.mubr.f32.gmra.mrb[26].mxu0 %v24366_v48  ;;  %v24343_v48 = vld [vmem:[%s40538_s4 + $0x40] sm:$0xff] }
 0x164   :  { %32576 = vmatpush3.bf16.msra.mxu0 %v35671_v59  ;;  %28569 = vmatprep.mubr.f32.mxu0 %v24387_v49  ;;  %v24344_v49 = vld [vmem:[%s40538_s4 + $0x48] sm:$0xff] }
 0x165   :  { %32578 = vmatprep.subr.bf16.mxu0 %v35679_v2  ;;  %v32441_v54 = vpack.c.bf16 %v24344_v49, %v24343_v48 }
 0x168   :  { %32580 = vmatpush3.bf16.msra.mxu0 %v35679_v2 }
 0x169   :  { %32582 = vmatprep.subr.bf16.mxu0 %v35687_v9 }
 0x16c   :  { %32584 = vmatpush3.bf16.msra.mxu0 %v35687_v9 }
 0x16d   :  { %32586 = vmatprep.subr.bf16.mxu0 %v35695_v16 }
 0x170   :  { %32588 = vmatpush3.bf16.msra.mxu0 %v35695_v16 }
 0x171   :  { %32590 = vmatprep.subr.bf16.mxu0 %v35703_v23 }
 0x174   :  { %32592 = vmatpush3.bf16.msra.mxu0 %v35703_v23 }
 0x175   :  { %32594 = vmatprep.subr.bf16.mxu0 %v35711_v30 }
 0x178   :  { %32596 = vmatpush3.bf16.msra.mxu0 %v35711_v30 }
 0x179   :  { %32598 = vmatprep.subr.bf16.mxu0 %v35718_v34 }
 0x17c   :  { %32600 = vmatpush3.bf16.msra.mxu0 %v35718_v34 }
 0x17d   :  { %32650 = vmatprep.subr.bf16.mxu0 %v35663_v52 }
 0x17f   :  { %28570 = vmatmul.mubr.f32.vlgmr.msra.gmra.mrb[28].mxu0 %v24388_v61  ;;  %v24356_v61 = vld [vmem:[%s40538_s4 + $0x68] sm:$0xff] }
 0x180   :  { %32652 = vmatpush3.bf16.msra.mxu0 %v35663_v52  ;;  %28572 = vmatprep.mubr.f32.mxu0 %v24389_v62 }
 0x181   :  { %32654 = vmatprep.subr.bf16.mxu0 %v35671_v59 }
 0x183   :  { %28573 = vmatmul.mubr.f32.gmra.mrb[30].mxu0 %v24390_v63 }
 0x184   :  { %32656 = vmatpush3.bf16.msra.mxu0 %v35671_v59  ;;  %28673 = vmatprep.mubr.f32.mxu0 %v24411_v0  ;;  %v24544_v0 = vld [vmem:[%s40537_s3 + $0x268] sm:$0xff] }
 0x185   :  { %32658 = vmatprep.subr.bf16.mxu0 %v35679_v2 }
 0x188   :  { %32660 = vmatpush3.bf16.msra.mxu0 %v35679_v2 }
 0x189   :  { %32662 = vmatprep.subr.bf16.mxu0 %v35687_v9 }
 0x18c   :  { %32664 = vmatpush3.bf16.msra.mxu0 %v35687_v9 }
 0x18d   :  { %32666 = vmatprep.subr.bf16.mxu0 %v35695_v16 }
 0x190   :  { %32668 = vmatpush3.bf16.msra.mxu0 %v35695_v16 }
 0x191   :  { %32670 = vmatprep.subr.bf16.mxu0 %v35703_v23 }
 0x194   :  { %32672 = vmatpush3.bf16.msra.mxu0 %v35703_v23 }
 0x195   :  { %32674 = vmatprep.subr.bf16.mxu0 %v35711_v30 }
 0x198   :  { %32676 = vmatpush3.bf16.msra.mxu0 %v35711_v30 }
 0x199   :  { %32678 = vmatprep.subr.bf16.mxu0 %v35718_v34 }
 0x19c   :  { %32680 = vmatpush3.bf16.msra.mxu0 %v35718_v34 }
 0x19d   :  { %32690 = vmatprep.subr.bf16.mxu0 %v35663_v52 }
 0x19f   :  { %28674 = vmatmul.mubr.f32.vlgmr.msra.gmra.mrb[32].mxu0 %v24412_v1 }
 0x1a0   :  { %32692 = vmatpush3.bf16.msra.mxu0 %v35663_v52  ;;  %28676 = vmatprep.mubr.f32.mxu0 %v24413_v3  ;;  %v24545_v3 = vld [vmem:[%s40537_s3 + $0x270] sm:$0xff] }
 0x1a1   :  { %32694 = vmatprep.subr.bf16.mxu0 %v35671_v59 }
 0x1a3   :  { %28677 = vmatmul.mubr.f32.gmra.mrb[34].mxu0 %v24414_v4 }
 0x1a4   :  { %32696 = vmatpush3.bf16.msra.mxu0 %v35671_v59  ;;  %28725 = vmatprep.mubr.f32.mxu0 %v24423_v5  ;;  %v24546_v5 = vld [vmem:[%s40537_s3 + $0x278] sm:$0xff] }
 0x1a5   :  { %32698 = vmatprep.subr.bf16.mxu0 %v35679_v2 }
 0x1a8   :  { %32700 = vmatpush3.bf16.msra.mxu0 %v35679_v2 }
 0x1a9   :  { %32702 = vmatprep.subr.bf16.mxu0 %v35687_v9 }
 0x1ac   :  { %32704 = vmatpush3.bf16.msra.mxu0 %v35687_v9 }
 0x1ad   :  { %32706 = vmatprep.subr.bf16.mxu0 %v35695_v16 }
 0x1b0   :  { %32708 = vmatpush3.bf16.msra.mxu0 %v35695_v16 }
 0x1b1   :  { %32710 = vmatprep.subr.bf16.mxu0 %v35703_v23 }
 0x1b4   :  { %32712 = vmatpush3.bf16.msra.mxu0 %v35703_v23 }
 0x1b5   :  { %32714 = vmatprep.subr.bf16.mxu0 %v35711_v30 }
 0x1b8   :  { %32716 = vmatpush3.bf16.msra.mxu0 %v35711_v30 }
 0x1b9   :  { %32718 = vmatprep.subr.bf16.mxu0 %v35718_v34 }
 0x1bc   :  { %32720 = vmatpush3.bf16.msra.mxu0 %v35718_v34 }
 0x1bd   :  { %32770 = vmatprep.subr.bf16.mxu0 %v35663_v52 }
 0x1bf   :  { %28726 = vmatmul.mubr.f32.vlgmr.msra.gmra.mrb[36].mxu0 %v24424_v6 }
 0x1c0   :  { %32772 = vmatpush3.bf16.msra.mxu0 %v35663_v52  ;;  %28728 = vmatprep.mubr.f32.mxu0 %v24425_v7  ;;  %v24555_v7 = vld [vmem:[%s40537_s3 + $0x280] sm:$0xff] }
 0x1c1   :  { %32774 = vmatprep.subr.bf16.mxu0 %v35671_v59 }
 0x1c3   :  { %28729 = vmatmul.mubr.f32.gmra.mrb[38].mxu0 %v24426_v8 }
 0x1c4   :  { %32776 = vmatpush3.bf16.msra.mxu0 %v35671_v59  ;;  %28829 = vmatprep.mubr.f32.mxu0 %v24447_v10 }
 0x1c5   :  { %32778 = vmatprep.subr.bf16.mxu0 %v35679_v2 }
 0x1c8   :  { %32780 = vmatpush3.bf16.msra.mxu0 %v35679_v2 }
 0x1c9   :  { %32782 = vmatprep.subr.bf16.mxu0 %v35687_v9 }
 0x1cc   :  { %32784 = vmatpush3.bf16.msra.mxu0 %v35687_v9 }
 0x1cd   :  { %32786 = vmatprep.subr.bf16.mxu0 %v35695_v16 }
 0x1d0   :  { %32788 = vmatpush3.bf16.msra.mxu0 %v35695_v16 }
 0x1d1   :  { %32790 = vmatprep.subr.bf16.mxu0 %v35703_v23 }
 0x1d4   :  { %32792 = vmatpush3.bf16.msra.mxu0 %v35703_v23 }
 0x1d5   :  { %32794 = vmatprep.subr.bf16.mxu0 %v35711_v30 }
 0x1d8   :  { %32796 = vmatpush3.bf16.msra.mxu0 %v35711_v30 }
 0x1d9   :  { %32798 = vmatprep.subr.bf16.mxu0 %v35718_v34 }
 0x1dc   :  { %32800 = vmatpush3.bf16.msra.mxu0 %v35718_v34 }
 0x1dd   :  { %32810 = vmatprep.subr.bf16.mxu0 %v35663_v52 }
 0x1df   :  { %28830 = vmatmul.mubr.f32.vlgmr.msra.gmra.mrb[40].mxu0 %v24448_v11  ;;  %v24556_v11 = vld [vmem:[%s40537_s3 + $0x288] sm:$0xff] }
 0x1e0   :  { %32812 = vmatpush3.bf16.msra.mxu0 %v35663_v52  ;;  %28832 = vmatprep.mubr.f32.mxu0 %v24449_v12  ;;  %v24557_v12 = vld [vmem:[%s40537_s3 + $0x290] sm:$0xff] }
 0x1e1   :  { %32814 = vmatprep.subr.bf16.mxu0 %v35671_v59 }
 0x1e3   :  { %28833 = vmatmul.mubr.f32.gmra.mrb[42].mxu0 %v24450_v13  ;;  %v24558_v13 = vld [vmem:[%s40537_s3 + $0x298] sm:$0xff] }
 0x1e4   :  { %32816 = vmatpush3.bf16.msra.mxu0 %v35671_v59  ;;  %28881 = vmatprep.mubr.f32.mxu0 %v24459_v14  ;;  %v24579_v14 = vld [vmem:[%s40537_s3 + $0x2c0] sm:$0xff] }
 0x1e5   :  { %32818 = vmatprep.subr.bf16.mxu0 %v35679_v2 }
 0x1e8   :  { %32820 = vmatpush3.bf16.msra.mxu0 %v35679_v2 }
 0x1e9   :  { %32822 = vmatprep.subr.bf16.mxu0 %v35687_v9 }
 0x1ec   :  { %32824 = vmatpush3.bf16.msra.mxu0 %v35687_v9 }
 0x1ed   :  { %32826 = vmatprep.subr.bf16.mxu0 %v35695_v16 }
 0x1f0   :  { %32828 = vmatpush3.bf16.msra.mxu0 %v35695_v16 }
 0x1f1   :  { %32830 = vmatprep.subr.bf16.mxu0 %v35703_v23 }
 0x1f2   :  { %v28297_v18 = vpop.f32.mrb[16].mxu0  ;;  %v28259_v19 = vpop.f32.mrb[0].mxu1 }
 0x1f3   :  { %v397_v20 = vpop.f32.mrb[17].mxu0  ;;  %v303_v22 = vpop.f32.mrb[1].mxu1 }
 0x1f4   :  { %28309 = vmatprep.mubr.msk.f32.mxu1 %vm421_vm0, %v397_v20  ;;  %32832 = vmatpush3.bf16.msra.mxu0 %v35703_v23 }
 0x1f5   :  { %28310 = vmatmul.mubr.msk.f32.vlgmr.msra.gmra.mrb[4].mxu1 %vm421_vm0, %v28297_v18  ;;  %32834 = vmatprep.subr.bf16.mxu0 %v35711_v30  ;;  %v24358_v18 = vld [vmem:[%s40538_s4 + $0x78] sm:$0xff] }
 0x1f6   :  { %32404 = vmatpush3.bf16.msra.mxu1 %v35830_v60  ;;  %v28300_v24 = vpop.f32.mrb[18].mxu0  ;;  %v28262_v25 = vpop.f32.mrb[2].mxu1  ;;  %v24355_v60 = vld [vmem:[%s40538_s4 + $0x60] sm:$0xff] }
 0x1f7   :  { %v407_v26 = vpop.f32.mrb[19].mxu0  ;;  %32406 = vmatprep.subr.bf16.mxu1 %v32405_v21  ;;  %v313_v27 = vpop.f32.mrb[3].mxu1  ;;  %v36121_v62 = vpack.c.bf16 %v24356_v61, %v24355_v60  ;;  %v24399_v61 = vld [vmem:[%s40537_s3 + $0xe0] sm:$0xff] }
 0x1f8   :  { %28312 = vmatprep.mubr.msk.f32.mxu1 %vm421_vm0, %v407_v26  ;;  %32836 = vmatpush3.bf16.msra.mxu0 %v35711_v30 }
 0x1f9   :  { %28313 = vmatmul.mubr.msk.f32.gmra.mrb[6].mxu1 %vm421_vm0, %v28300_v24  ;;  %32838 = vmatprep.subr.bf16.mxu0 %v35718_v34  ;;  %v24368_v24 = vld [vmem:[%s40538_s4 + $0x88] sm:$0xff] }
 0x1fa   :  { %32408 = vmatpush3.bf16.msra.mxu1 %v32405_v21  ;;  %28323 = vmatprep.mubr.msk.f32.mxu1 %vm421_vm0, %v303_v22  ;;  %v32485_v21 = vpack.c.bf16 %v24358_v18, %v24357_v17  ;;  %v24367_v22 = vld [vmem:[%s40538_s4 + $0x80] sm:$0xff] }
 0x1fb   :  { %32410 = vmatprep.subr.bf16.mxu1 %v35663_v52 }
 0x1fc   :  { %32840 = vmatpush3.bf16.msra.mxu0 %v35718_v34 }
 0x1fd   :  { %28324 = vmatmul.mubr.msk.f32.vlgmr.msra.gmra.mrb[4].mxu1 %vm421_vm0, %v28259_v19  ;;  %32890 = vmatprep.subr.bf16.mxu0 %v35663_v52 }
 0x1fe   :  { %32412 = vmatpush3.bf16.msra.mxu1 %v35663_v52  ;;  %28326 = vmatprep.mubr.msk.f32.mxu1 %vm421_vm0, %v313_v27  ;;  %v32521_v27 = vpack.c.bf16 %v24368_v24, %v24367_v22  ;;  %v24418_v22 = vld [vmem:[%s40538_s4 + $0x118] sm:$0xff] }
 0x1ff   :  { %32414 = vmatprep.subr.bf16.mxu1 %v35671_v59  ;;  %28882 = vmatmul.mubr.f32.vlgmr.msra.gmra.mrb[44].mxu0 %v24460_v28  ;;  %v24369_v28 = vld [vmem:[%s40538_s4 + $0x90] sm:$0xff] }
 0x200   :  { %32892 = vmatpush3.bf16.msra.mxu0 %v35663_v52  ;;  %28884 = vmatprep.mubr.f32.mxu0 %v24461_v29  ;;  %v24370_v29 = vld [vmem:[%s40538_s4 + $0x98] sm:$0xff] }
 0x201   :  { %32894 = vmatprep.subr.bf16.mxu0 %v35671_v59  ;;  %28327 = vmatmul.mubr.msk.f32.gmra.mrb[6].mxu1 %vm421_vm0, %v28262_v25 }
 0x202   :  { %32416 = vmatpush3.bf16.msra.mxu1 %v35671_v59  ;;  %28361 = vmatprep.mubr.f32.mxu1 %v24339_v31  ;;  %v32525_v31 = vpack.c.bf16 %v24370_v29, %v24369_v28  ;;  %v24428_v28 = vld [vmem:[%s40538_s4 + $0x128] sm:$0xff] }
 0x203   :  { %32418 = vmatprep.subr.bf16.mxu1 %v35679_v2  ;;  %28885 = vmatmul.mubr.f32.gmra.mrb[46].mxu0 %v24462_v32  ;;  %v24375_v32 = vld [vmem:[%s40537_s3 + $0xa0] sm:$0xff] }
 0x204   :  { %32896 = vmatpush3.bf16.msra.mxu0 %v35671_v59  ;;  %28985 = vmatprep.mubr.f32.mxu0 %v24483_v33  ;;  %v24379_v33 = vld [vmem:[%s40538_s4 + $0xa0] sm:$0xff] }
 0x205   :  { %32898 = vmatprep.subr.bf16.mxu0 %v35679_v2 }
 0x206   :  { %32420 = vmatpush3.bf16.msra.mxu1 %v35679_v2 }
 0x207   :  { %32422 = vmatprep.subr.bf16.mxu1 %v35687_v9 }
 0x208   :  { %32900 = vmatpush3.bf16.msra.mxu0 %v35679_v2 }
 0x209   :  { %32902 = vmatprep.subr.bf16.mxu0 %v35687_v9 }
 0x20a   :  { %32424 = vmatpush3.bf16.msra.mxu1 %v35687_v9 }
 0x20b   :  { %32426 = vmatprep.subr.bf16.mxu1 %v35695_v16 }
 0x20c   :  { %32904 = vmatpush3.bf16.msra.mxu0 %v35687_v9 }
 0x20d   :  { %32906 = vmatprep.subr.bf16.mxu0 %v35695_v16 }
 0x20e   :  { %32428 = vmatpush3.bf16.msra.mxu1 %v35695_v16 }
 0x20f   :  { %32430 = vmatprep.subr.bf16.mxu1 %v35703_v23 }
 0x210   :  { %32908 = vmatpush3.bf16.msra.mxu0 %v35695_v16 }
 0x211   :  { %32910 = vmatprep.subr.bf16.mxu0 %v35703_v23 }
 0x212   :  { %32432 = vmatpush3.bf16.msra.mxu1 %v35703_v23  ;;  %v36080_v47 = vpop.f32.mrb[20].mxu0 }
 0x213   :  { %32434 = vmatprep.subr.bf16.mxu1 %v35711_v30  ;;  %v36095_v53 = vpop.f32.mrb[21].mxu0 }
 0x214   :  { %32912 = vmatpush3.bf16.msra.mxu0 %v35703_v23 }
 0x215   :  { %32914 = vmatprep.subr.bf16.mxu0 %v35711_v30 }
 0x216   :  { %32436 = vmatpush3.bf16.msra.mxu1 %v35711_v30  ;;  %v36129_v63 = vpop.f32.mrb[22].mxu0 }
 0x217   :  { %32438 = vmatprep.subr.bf16.mxu1 %v35718_v34  ;;  %v36135_v1 = vpop.f32.mrb[23].mxu0 }
 0x218   :  { %32916 = vmatpush3.bf16.msra.mxu0 %v35711_v30 }
 0x219   :  { %32918 = vmatprep.subr.bf16.mxu0 %v35718_v34 }
 0x21a   :  { %32440 = vmatpush3.bf16.msra.mxu1 %v35718_v34 }
 0x21b   :  { %32442 = vmatprep.subr.bf16.mxu1 %v32441_v54 }
 0x21c   :  { %32920 = vmatpush3.bf16.msra.mxu0 %v35718_v34 }
 0x21d   :  { %28362 = vmatmul.mubr.f32.vlgmr.msra.gmra.mrb[8].mxu1 %v24340_v35  ;;  %32970 = vmatprep.subr.bf16.mxu0 %v35663_v52  ;;  %v24380_v35 = vld [vmem:[%s40538_s4 + $0xa8] sm:$0xff] }
 0x21e   :  { %28364 = vmatprep.mubr.f32.mxu1 %v24341_v36  ;;  %32444 = vmatpush3.bf16.msra.mxu1 %v32441_v54  ;;  %v32561_v36 = vpack.c.bf16 %v24380_v35, %v24379_v33  ;;  %v24394_v54 = vld [vmem:[%s40538_s4 + $0xd8] sm:$0xff]  ;;  %v24429_v33 = vld [vmem:[%s40538_s4 + $0x130] sm:$0xff] }
 0x21f   :  { %28986 = vmatmul.mubr.f32.vlgmr.msra.gmra.mrb[48].mxu0 %v24484_v37  ;;  %32446 = vmatprep.subr.bf16.mxu1 %v32445_v56  ;;  %v24381_v37 = vld [vmem:[%s40538_s4 + $0xb0] sm:$0xff]  ;;  %v24430_v35 = vld [vmem:[%s40538_s4 + $0x138] sm:$0xff] }
 0x220   :  { %32972 = vmatpush3.bf16.msra.mxu0 %v35663_v52  ;;  %28988 = vmatprep.mubr.f32.mxu0 %v24485_v38  ;;  %v24382_v38 = vld [vmem:[%s40538_s4 + $0xb8] sm:$0xff] }
 0x221   :  { %28365 = vmatmul.mubr.f32.gmra.mrb[10].mxu1 %v24342_v39  ;;  %32974 = vmatprep.subr.bf16.mxu0 %v35671_v59  ;;  %v24376_v39 = vld [vmem:[%s40537_s3 + $0xa8] sm:$0xff] }
 0x222   :  { %32448 = vmatpush3.bf16.msra.mxu1 %v32445_v56 }
 0x223   :  { %28989 = vmatmul.mubr.f32.gmra.mrb[50].mxu0 %v24486_v40  ;;  %32482 = vmatprep.subr.bf16.mxu1 %v36121_v62  ;;  %v24377_v40 = vld [vmem:[%s40537_s3 + $0xb0] sm:$0xff] }
 0x224   :  { %32976 = vmatpush3.bf16.msra.mxu0 %v35671_v59  ;;  %29089 = vmatprep.mubr.f32.mxu0 %v24507_v41  ;;  %v32565_v41 = vpack.c.bf16 %v24382_v38, %v24381_v37  ;;  %v24435_v37 = vld [vmem:[%s40537_s3 + $0x140] sm:$0xff] }
 0x225   :  { %32978 = vmatprep.subr.bf16.mxu0 %v35679_v2  ;;  %v24439_v38 = vld [vmem:[%s40538_s4 + $0x140] sm:$0xff] }
 0x228   :  { %32980 = vmatpush3.bf16.msra.mxu0 %v35679_v2 }
 0x229   :  { %32982 = vmatprep.subr.bf16.mxu0 %v35687_v9 }
 0x22c   :  { %32984 = vmatpush3.bf16.msra.mxu0 %v35687_v9 }
 0x22d   :  { %32986 = vmatprep.subr.bf16.mxu0 %v35695_v16 }
 0x230   :  { %32988 = vmatpush3.bf16.msra.mxu0 %v35695_v16 }
 0x231   :  { %32990 = vmatprep.subr.bf16.mxu0 %v35703_v23 }
 0x232   :  { %v36141_v4 = vpop.f32.mrb[24].mxu0 }
 0x233   :  { %v36147_v6 = vpop.f32.mrb[25].mxu0 }
 0x234   :  { %32992 = vmatpush3.bf16.msra.mxu0 %v35703_v23 }
 0x235   :  { %32994 = vmatprep.subr.bf16.mxu0 %v35711_v30 }
 0x236   :  { %v36165_v8 = vpop.f32.mrb[26].mxu0 }
 0x237   :  { %v36167_v10 = vpop.f32.mrb[27].mxu0 }
 0x238   :  { %32996 = vmatpush3.bf16.msra.mxu0 %v35711_v30 }
 0x239   :  { %32998 = vmatprep.subr.bf16.mxu0 %v35718_v34 }
 0x23c   :  { %33000 = vmatpush3.bf16.msra.mxu0 %v35718_v34 }
 0x23d   :  { %33010 = vmatprep.subr.bf16.mxu0 %v35663_v52 }
 0x23f   :  { %29090 = vmatmul.mubr.f32.vlgmr.msra.gmra.mrb[52].mxu0 %v24508_v42  ;;  %v24378_v42 = vld [vmem:[%s40537_s3 + $0xb8] sm:$0xff] }
 0x240   :  { %33012 = vmatpush3.bf16.msra.mxu0 %v35663_v52  ;;  %29092 = vmatprep.mubr.f32.mxu0 %v24509_v43  ;;  %v24391_v43 = vld [vmem:[%s40538_s4 + $0xc0] sm:$0xff] }
 0x241   :  { %33014 = vmatprep.subr.bf16.mxu0 %v35671_v59 }
 0x243   :  { %29093 = vmatmul.mubr.f32.gmra.mrb[54].mxu0 %v24510_v44  ;;  %v24392_v44 = vld [vmem:[%s40538_s4 + $0xc8] sm:$0xff] }
 0x244   :  { %33016 = vmatpush3.bf16.msra.mxu0 %v35671_v59  ;;  %29141 = vmatprep.mubr.f32.mxu0 %v24519_v45  ;;  %v32601_v45 = vpack.c.bf16 %v24392_v44, %v24391_v43  ;;  %v24436_v43 = vld [vmem:[%s40537_s3 + $0x148] sm:$0xff]  ;;  %v24437_v44 = vld [vmem:[%s40537_s3 + $0x150] sm:$0xff] }
 0x245   :  { %33018 = vmatprep.subr.bf16.mxu0 %v35679_v2 }
 0x248   :  { %33020 = vmatpush3.bf16.msra.mxu0 %v35679_v2 }
 0x249   :  { %33022 = vmatprep.subr.bf16.mxu0 %v35687_v9 }
 0x24c   :  { %33024 = vmatpush3.bf16.msra.mxu0 %v35687_v9 }
 0x24d   :  { %33026 = vmatprep.subr.bf16.mxu0 %v35695_v16 }
 0x250   :  { %33028 = vmatpush3.bf16.msra.mxu0 %v35695_v16 }
 0x251   :  { %33030 = vmatprep.subr.bf16.mxu0 %v35703_v23 }
 0x254   :  { %33032 = vmatpush3.bf16.msra.mxu0 %v35703_v23 }
 0x255   :  { %33034 = vmatprep.subr.bf16.mxu0 %v35711_v30 }
 0x258   :  { %33036 = vmatpush3.bf16.msra.mxu0 %v35711_v30 }
 0x259   :  { %33038 = vmatprep.subr.bf16.mxu0 %v35718_v34 }
 0x25c   :  { %33040 = vmatpush3.bf16.msra.mxu0 %v35718_v34 }
 0x25d   :  { %33090 = vmatprep.subr.bf16.mxu0 %v35663_v52 }
 0x25f   :  { %29142 = vmatmul.mubr.f32.vlgmr.msra.gmra.mrb[56].mxu0 %v24520_v46  ;;  %v28571_v46 = vpop.f32.mrb[28].mxu0 }
 0x260   :  { %33092 = vmatpush3.bf16.msra.mxu0 %v35663_v52  ;;  %29144 = vmatprep.mubr.f32.mxu0 %v24521_v51 }
 0x261   :  { %33094 = vmatprep.subr.bf16.mxu0 %v35671_v59 }
 0x263   :  { %29145 = vmatmul.mubr.f32.gmra.mrb[58].mxu0 %v24522_v57 }
 0x264   :  { %33096 = vmatpush3.bf16.msra.mxu0 %v35671_v59  ;;  %29245 = vmatprep.mubr.f32.mxu0 %v24543_v58 }
 0x265   :  { %33098 = vmatprep.subr.bf16.mxu0 %v35679_v2 }
 0x268   :  { %33100 = vmatpush3.bf16.msra.mxu0 %v35679_v2 }
 0x269   :  { %33102 = vmatprep.subr.bf16.mxu0 %v35687_v9 }
 0x26c   :  { %33104 = vmatpush3.bf16.msra.mxu0 %v35687_v9 }
 0x26d   :  { %33106 = vmatprep.subr.bf16.mxu0 %v35695_v16 }
 0x270   :  { %33108 = vmatpush3.bf16.msra.mxu0 %v35695_v16 }
 0x271   :  { %33110 = vmatprep.subr.bf16.mxu0 %v35703_v23 }
 0x274   :  { %33112 = vmatpush3.bf16.msra.mxu0 %v35703_v23 }
 0x275   :  { %33114 = vmatprep.subr.bf16.mxu0 %v35711_v30 }
 0x278   :  { %33116 = vmatpush3.bf16.msra.mxu0 %v35711_v30 }
 0x279   :  { %33118 = vmatprep.subr.bf16.mxu0 %v35718_v34 }
 0x27c   :  { %33120 = vmatpush3.bf16.msra.mxu0 %v35718_v34 }
 0x27d   :  { %33130 = vmatprep.subr.bf16.mxu0 %v35663_v52 }
 0x27f   :  { %29246 = vmatmul.mubr.f32.vlgmr.msra.gmra.mrb[60].mxu0 %v24544_v0 }
 0x280   :  { %33132 = vmatpush3.bf16.msra.mxu0 %v35663_v52  ;;  %29248 = vmatprep.mubr.f32.mxu0 %v24545_v3  ;;  %v24406_v3 = vld [vmem:[%s40538_s4 + $0xf8] sm:$0xff] }
 0x281   :  { %33134 = vmatprep.subr.bf16.mxu0 %v35671_v59 }
 0x283   :  { %29249 = vmatmul.mubr.f32.gmra.mrb[62].mxu0 %v24546_v5  ;;  %v24401_v5 = vld [vmem:[%s40537_s3 + $0xf0] sm:$0xff] }
 0x284   :  { %33136 = vmatpush3.bf16.msra.mxu0 %v35671_v59  ;;  %29297 = vmatprep.mubr.f32.mxu0 %v24555_v7  ;;  %v24402_v7 = vld [vmem:[%s40537_s3 + $0xf8] sm:$0xff] }
 0x285   :  { %33138 = vmatprep.subr.bf16.mxu0 %v35679_v2 }
 0x288   :  { %33140 = vmatpush3.bf16.msra.mxu0 %v35679_v2 }
 0x289   :  { %33142 = vmatprep.subr.bf16.mxu0 %v35687_v9 }
 0x28c   :  { %33144 = vmatpush3.bf16.msra.mxu0 %v35687_v9 }
 0x28d   :  { %33146 = vmatprep.subr.bf16.mxu0 %v35695_v16 }
 0x290   :  { %33148 = vmatpush3.bf16.msra.mxu0 %v35695_v16 }
 0x291   :  { %33150 = vmatprep.subr.bf16.mxu0 %v35703_v23 }
 0x294   :  { %33152 = vmatpush3.bf16.msra.mxu0 %v35703_v23 }
 0x295   :  { %33154 = vmatprep.subr.bf16.mxu0 %v35711_v30 }
 0x298   :  { %33156 = vmatpush3.bf16.msra.mxu0 %v35711_v30 }
 0x299   :  { %33158 = vmatprep.subr.bf16.mxu0 %v35718_v34 }
 0x29c   :  { %33160 = vmatpush3.bf16.msra.mxu0 %v35718_v34 }
 0x29d   :  { %33210 = vmatprep.subr.bf16.mxu0 %v35663_v52 }
 0x29f   :  { %29298 = vmatmul.mubr.f32.vlgmr.msra.gmra.mrb[64].mxu0 %v24556_v11 }
 0x2a0   :  { %33212 = vmatpush3.bf16.msra.mxu0 %v35663_v52  ;;  %29300 = vmatprep.mubr.f32.mxu0 %v24557_v12 }
 0x2a1   :  { %33214 = vmatprep.subr.bf16.mxu0 %v35671_v59 }
 0x2a3   :  { %29301 = vmatmul.mubr.f32.gmra.mrb[66].mxu0 %v24558_v13 }
 0x2a4   :  { %33216 = vmatpush3.bf16.msra.mxu0 %v35671_v59  ;;  %29401 = vmatprep.mubr.f32.mxu0 %v24579_v14 }
 0x2a5   :  { %33218 = vmatprep.subr.bf16.mxu0 %v35679_v2 }
 0x2a8   :  { %33220 = vmatpush3.bf16.msra.mxu0 %v35679_v2 }
 0x2a9   :  { %33222 = vmatprep.subr.bf16.mxu0 %v35687_v9 }
 0x2ac   :  { %33224 = vmatpush3.bf16.msra.mxu0 %v35687_v9 }
 0x2ad   :  { %33226 = vmatprep.subr.bf16.mxu0 %v35695_v16 }
 0x2b0   :  { %33228 = vmatpush3.bf16.msra.mxu0 %v35695_v16 }
 0x2b1   :  { %33230 = vmatprep.subr.bf16.mxu0 %v35703_v23 }
 0x2b4   :  { %33232 = vmatpush3.bf16.msra.mxu0 %v35703_v23 }
 0x2b5   :  { %33234 = vmatprep.subr.bf16.mxu0 %v35711_v30 }
 0x2b8   :  { %33236 = vmatpush3.bf16.msra.mxu0 %v35711_v30 }
 0x2b9   :  { %33238 = vmatprep.subr.bf16.mxu0 %v35718_v34 }
 0x2bc   :  { %33240 = vmatpush3.bf16.msra.mxu0 %v35718_v34 }
 0x2bd   :  { %33290 = vmatprep.subr.bf16.mxu0 %v35663_v52 }
 0x2bf   :  { %29402 = vmatmul.mubr.f32.vlgmr.msra.gmra.mrb[68].mxu0 %v24580_v15 }
 0x2c0   :  { %33292 = vmatpush3.bf16.msra.mxu0 %v35663_v52 }
 0x2c1   :  { %33294 = vmatprep.subr.bf16.mxu0 %v35671_v59 }
 0x2c4   :  { %33296 = vmatpush3.bf16.msra.mxu0 %v35671_v59 }
 0x2c5   :  { %33298 = vmatprep.subr.bf16.mxu0 %v35679_v2 }
 0x2c8   :  { %33300 = vmatpush3.bf16.msra.mxu0 %v35679_v2 }
 0x2c9   :  { %33302 = vmatprep.subr.bf16.mxu0 %v35687_v9 }
 0x2cc   :  { %33304 = vmatpush3.bf16.msra.mxu0 %v35687_v9 }
 0x2cd   :  { %33306 = vmatprep.subr.bf16.mxu0 %v35695_v16 }
 0x2d0   :  { %33308 = vmatpush3.bf16.msra.mxu0 %v35695_v16 }
 0x2d1   :  { %33310 = vmatprep.subr.bf16.mxu0 %v35703_v23 }
 0x2d4   :  { %33312 = vmatpush3.bf16.msra.mxu0 %v35703_v23 }
 0x2d5   :  { %33314 = vmatprep.subr.bf16.mxu0 %v35711_v30 }
 0x2d8   :  { %33316 = vmatpush3.bf16.msra.mxu0 %v35711_v30 }
 0x2d9   :  { %33318 = vmatprep.subr.bf16.mxu0 %v35718_v34 }
 0x2dc   :  { %33320 = vmatpush3.bf16.msra.mxu0 %v35718_v34 }
 0x2f0   :  { %v28363_v19 = vpop.f32.mrb[8].mxu1 }
 0x2f1   :  { %v687_v20 = vpop.f32.mrb[9].mxu1 }
 0x2f2   :  { %28375 = vmatprep.mubr.msk.f32.mxu1 %vm421_vm0, %v687_v20 }
 0x2f3   :  { %28376 = vmatmul.mubr.msk.f32.vlgmr.msra.gmra.mrb[4].mxu1 %vm421_vm0, %v28363_v19 }
 0x2f4   :  { %32484 = vmatpush3.bf16.msra.mxu1 %v36121_v62  ;;  %v28366_v25 = vpop.f32.mrb[10].mxu1  ;;  %v24403_v62 = vld [vmem:[%s40538_s4 + $0xe0] sm:$0xff] }
 0x2f5   :  { %v697_v26 = vpop.f32.mrb[11].mxu1  ;;  %32486 = vmatprep.subr.bf16.mxu1 %v32485_v21 }
 0x2f6   :  { %28378 = vmatprep.mubr.msk.f32.mxu1 %vm421_vm0, %v697_v26 }
 0x2f7   :  { %28379 = vmatmul.mubr.msk.f32.gmra.mrb[6].mxu1 %vm421_vm0, %v28366_v25 }
 0x2f8   :  { %32488 = vmatpush3.bf16.msra.mxu1 %v32485_v21  ;;  %28427 = vmatprep.mubr.msk.f32.mxu1 %vm421_vm0, %v36095_v53  ;;  %v24393_v53 = vld [vmem:[%s40538_s4 + $0xd0] sm:$0xff] }
 0x2f9   :  { %32522 = vmatprep.subr.bf16.mxu1 %v32521_v27  ;;  %v32605_v57 = vpack.c.bf16 %v24394_v54, %v24393_v53  ;;  %v24417_v21 = vld [vmem:[%s40538_s4 + $0x110] sm:$0xff] }
 0x2fa   :  { %v32685_v26 = vpack.c.bf16 %v24418_v22, %v24417_v21  ;;  %v24488_v21 = vld [vmem:[%s40538_s4 + $0x1c8] sm:$0xff] }
 0x2fb   :  { %28428 = vmatmul.mubr.msk.f32.vlgmr.msra.gmra.mrb[4].mxu1 %vm421_vm0, %v36080_v47  ;;  %v1471_v47 = vpop.f32.mrb[29].mxu0 }
 0x2fc   :  { %32524 = vmatpush3.bf16.msra.mxu1 %v32521_v27  ;;  %28430 = vmatprep.mubr.msk.f32.mxu1 %vm421_vm0, %v36135_v1  ;;  %v28574_v48 = vpop.f32.mrb[30].mxu0  ;;  %v24405_v1 = vld [vmem:[%s40538_s4 + $0xf0] sm:$0xff]  ;;  %v24427_v27 = vld [vmem:[%s40538_s4 + $0x120] sm:$0xff] }
 0x2fd   :  { %32526 = vmatprep.subr.bf16.mxu1 %v32525_v31  ;;  %v1481_v49 = vpop.f32.mrb[31].mxu0 }
 0x2fe   :  { %v36302_v50 = vpop.f32.mrb[32].mxu0 }
 0x2ff   :  { %28431 = vmatmul.mubr.msk.f32.gmra.mrb[6].mxu1 %vm421_vm0, %v36129_v63  ;;  %v36304_v51 = vpop.f32.mrb[33].mxu0  ;;  %v24404_v63 = vld [vmem:[%s40538_s4 + $0xe8] sm:$0xff] }
 0x300   :  { %32528 = vmatpush3.bf16.msra.mxu1 %v32525_v31  ;;  %28479 = vmatprep.mubr.msk.f32.mxu1 %vm421_vm0, %v36147_v6  ;;  %v32641_v0 = vpack.c.bf16 %v24404_v63, %v24403_v62  ;;  %v32645_v6 = vpack.c.bf16 %v24406_v3, %v24405_v1  ;;  %v28678_v12 = vpop.f32.mrb[34].mxu0  ;;  %v24463_v63 = vld [vmem:[%s40538_s4 + $0x180] sm:$0xff] }
 0x301   :  { %32530 = vmatprep.subr.bf16.mxu1 %v35663_v52  ;;  %v1873_v13 = vpop.f32.mrb[35].mxu0 }
 0x302   :  { %v28727_v14 = vpop.f32.mrb[36].mxu0 }
 0x303   :  { %28480 = vmatmul.mubr.msk.f32.vlgmr.msra.gmra.mrb[4].mxu1 %vm421_vm0, %v36141_v4  ;;  %v24400_v4 = vld [vmem:[%s40537_s3 + $0xe8] sm:$0xff]  ;;  %v2059_v15 = vpop.f32.mrb[37].mxu0 }
 0x304   :  { %32532 = vmatpush3.bf16.msra.mxu1 %v35663_v52  ;;  %28482 = vmatprep.mubr.msk.f32.mxu1 %vm421_vm0, %v36167_v10  ;;  %v24416_v10 = vld [vmem:[%s40538_s4 + $0x108] sm:$0xff]  ;;  %v28730_v17 = vpop.f32.mrb[38].mxu0 }
 0x305   :  { %32534 = vmatprep.subr.bf16.mxu1 %v35671_v59  ;;  %v2069_v18 = vpop.f32.mrb[39].mxu0 }
 0x306   :  { %v36366_v19 = vpop.f32.mrb[40].mxu0 }
 0x307   :  { %28483 = vmatmul.mubr.msk.f32.gmra.mrb[6].mxu1 %vm421_vm0, %v36165_v8  ;;  %v24415_v8 = vld [vmem:[%s40538_s4 + $0x100] sm:$0xff]  ;;  %v36368_v20 = vpop.f32.mrb[41].mxu0 }
 0x308   :  { %32536 = vmatpush3.bf16.msra.mxu1 %v35671_v59  ;;  %28517 = vmatprep.mubr.f32.mxu1 %v24375_v32  ;;  %v32681_v11 = vpack.c.bf16 %v24416_v10, %v24415_v8  ;;  %v32721_v32 = vpack.c.bf16 %v24428_v28, %v24427_v27  ;;  %v24471_v8 = vld [vmem:[%s40537_s3 + $0x1a0] sm:$0xff] }
 0x309   :  { %32538 = vmatprep.subr.bf16.mxu1 %v35679_v2  ;;  %v24475_v10 = vld [vmem:[%s40538_s4 + $0x1a0] sm:$0xff] }
 0x30c   :  { %32540 = vmatpush3.bf16.msra.mxu1 %v35679_v2 }
 0x30d   :  { %32542 = vmatprep.subr.bf16.mxu1 %v35687_v9 }
 0x310   :  { %32544 = vmatpush3.bf16.msra.mxu1 %v35687_v9 }
 0x311   :  { %32546 = vmatprep.subr.bf16.mxu1 %v35695_v16 }
 0x314   :  { %32548 = vmatpush3.bf16.msra.mxu1 %v35695_v16 }
 0x315   :  { %32550 = vmatprep.subr.bf16.mxu1 %v35703_v23 }
 0x318   :  { %32552 = vmatpush3.bf16.msra.mxu1 %v35703_v23 }
 0x319   :  { %32554 = vmatprep.subr.bf16.mxu1 %v35711_v30 }
 0x31c   :  { %32556 = vmatpush3.bf16.msra.mxu1 %v35711_v30 }
 0x31d   :  { %32558 = vmatprep.subr.bf16.mxu1 %v35718_v34 }
 0x320   :  { %32560 = vmatpush3.bf16.msra.mxu1 %v35718_v34 }
 0x321   :  { %32562 = vmatprep.subr.bf16.mxu1 %v32561_v36 }
 0x323   :  { %28518 = vmatmul.mubr.f32.vlgmr.msra.gmra.mrb[12].mxu1 %v24376_v39  ;;  %v24440_v39 = vld [vmem:[%s40538_s4 + $0x148] sm:$0xff] }
 0x324   :  { %28520 = vmatprep.mubr.f32.mxu1 %v24377_v40  ;;  %32564 = vmatpush3.bf16.msra.mxu1 %v32561_v36  ;;  %v32725_v36 = vpack.c.bf16 %v24430_v35, %v24429_v33  ;;  %v32761_v40 = vpack.c.bf16 %v24440_v39, %v24439_v38  ;;  %v24495_v39 = vld [vmem:[%s40537_s3 + $0x1e0] sm:$0xff] }
 0x325   :  { %32566 = vmatprep.subr.bf16.mxu1 %v32565_v41 }
 0x327   :  { %28521 = vmatmul.mubr.f32.gmra.mrb[14].mxu1 %v24378_v42  ;;  %v24442_v42 = vld [vmem:[%s40538_s4 + $0x158] sm:$0xff] }
 0x328   :  { %32568 = vmatpush3.bf16.msra.mxu1 %v32565_v41  ;;  %v24441_v41 = vld [vmem:[%s40538_s4 + $0x150] sm:$0xff] }
 0x329   :  { %32602 = vmatprep.subr.bf16.mxu1 %v32601_v45 }
 0x3f6   :  { %v28519_v55 = vpop.f32.mrb[12].mxu1 }
 0x3f7   :  { %v1275_v56 = vpop.f32.mrb[13].mxu1 }
 0x3f8   :  { %28531 = vmatprep.mubr.msk.f32.mxu1 %vm421_vm0, %v1275_v56 }
 0x3f9   :  { %28532 = vmatmul.mubr.msk.f32.vlgmr.msra.gmra.mrb[4].mxu1 %vm421_vm0, %v28519_v55 }
 0x3fa   :  { %32604 = vmatpush3.bf16.msra.mxu1 %v32601_v45  ;;  %v28522_v58 = vpop.f32.mrb[14].mxu1  ;;  %v32765_v45 = vpack.c.bf16 %v24442_v42, %v24441_v41  ;;  %v24500_v41 = vld [vmem:[%s40538_s4 + $0x1e8] sm:$0xff] }
 0x3fb   :  { %v1285_v60 = vpop.f32.mrb[15].mxu1  ;;  %32606 = vmatprep.subr.bf16.mxu1 %v32605_v57 }
 0x3fc   :  { %28534 = vmatprep.mubr.msk.f32.mxu1 %vm421_vm0, %v1285_v60 }
 0x3fd   :  { %28535 = vmatmul.mubr.msk.f32.gmra.mrb[6].mxu1 %vm421_vm0, %v28522_v58  ;;  %v24454_v58 = vld [vmem:[%s40538_s4 + $0x178] sm:$0xff] }
 0x3fe   :  { %32608 = vmatpush3.bf16.msra.mxu1 %v32605_v57  ;;  %28583 = vmatprep.mubr.msk.f32.mxu1 %vm421_vm0, %v1471_v47  ;;  %v24451_v47 = vld [vmem:[%s40538_s4 + $0x160] sm:$0xff]  ;;  %v24453_v57 = vld [vmem:[%s40538_s4 + $0x170] sm:$0xff] }
 0x3ff   :  { %32610 = vmatprep.subr.bf16.mxu1 %v35663_v52  ;;  %v32805_v62 = vpack.c.bf16 %v24454_v58, %v24453_v57 }
 0x401   :  { %28584 = vmatmul.mubr.msk.f32.vlgmr.msra.gmra.mrb[4].mxu1 %vm421_vm0, %v28571_v46  ;;  %v24438_v46 = vld [vmem:[%s40537_s3 + $0x158] sm:$0xff] }
 0x402   :  { %32612 = vmatpush3.bf16.msra.mxu1 %v35663_v52  ;;  %28586 = vmatprep.mubr.msk.f32.mxu1 %vm421_vm0, %v1481_v49 }
 0x403   :  { %32614 = vmatprep.subr.bf16.mxu1 %v35671_v59 }
 0x405   :  { %28587 = vmatmul.mubr.msk.f32.gmra.mrb[6].mxu1 %vm421_vm0, %v28574_v48  ;;  %v24452_v48 = vld [vmem:[%s40538_s4 + $0x168] sm:$0xff] }
 0x406   :  { %32616 = vmatpush3.bf16.msra.mxu1 %v35671_v59  ;;  %28621 = vmatprep.mubr.f32.mxu1 %v24399_v61  ;;  %v32801_v49 = vpack.c.bf16 %v24452_v48, %v24451_v47  ;;  %v24498_v48 = vld [vmem:[%s40537_s3 + $0x1f8] sm:$0xff] }
 0x407   :  { %32618 = vmatprep.subr.bf16.mxu1 %v35679_v2 }
 0x40a   :  { %32620 = vmatpush3.bf16.msra.mxu1 %v35679_v2 }
 0x40b   :  { %32622 = vmatprep.subr.bf16.mxu1 %v35687_v9 }
 0x40e   :  { %32624 = vmatpush3.bf16.msra.mxu1 %v35687_v9 }
 0x40f   :  { %32626 = vmatprep.subr.bf16.mxu1 %v35695_v16 }
 0x412   :  { %32628 = vmatpush3.bf16.msra.mxu1 %v35695_v16 }
 0x413   :  { %32630 = vmatprep.subr.bf16.mxu1 %v35703_v23 }
 0x416   :  { %32632 = vmatpush3.bf16.msra.mxu1 %v35703_v23 }
 0x417   :  { %32634 = vmatprep.subr.bf16.mxu1 %v35711_v30 }
 0x41a   :  { %32636 = vmatpush3.bf16.msra.mxu1 %v35711_v30 }
 0x41b   :  { %32638 = vmatprep.subr.bf16.mxu1 %v35718_v34 }
 0x41e   :  { %32640 = vmatpush3.bf16.msra.mxu1 %v35718_v34 }
 0x41f   :  { %32642 = vmatprep.subr.bf16.mxu1 %v32641_v0 }
 0x421   :  { %28622 = vmatmul.mubr.f32.vlgmr.msra.gmra.mrb[16].mxu1 %v24400_v4 }
 0x422   :  { %28624 = vmatprep.mubr.f32.mxu1 %v24401_v5  ;;  %32644 = vmatpush3.bf16.msra.mxu1 %v32641_v0  ;;  %v24464_v0 = vld [vmem:[%s40538_s4 + $0x188] sm:$0xff]  ;;  %v24465_v5 = vld [vmem:[%s40538_s4 + $0x190] sm:$0xff] }
 0x423   :  { %32646 = vmatprep.subr.bf16.mxu1 %v32645_v6  ;;  %v32841_v4 = vpack.c.bf16 %v24464_v0, %v24463_v63  ;;  %v24514_v63 = vld [vmem:[%s40538_s4 + $0x218] sm:$0xff] }
 0x425   :  { %28625 = vmatmul.mubr.f32.gmra.mrb[18].mxu1 %v24402_v7 }
 0x426   :  { %32648 = vmatpush3.bf16.msra.mxu1 %v32645_v6  ;;  %v24466_v6 = vld [vmem:[%s40538_s4 + $0x198] sm:$0xff] }
 0x427   :  { %32682 = vmatprep.subr.bf16.mxu1 %v32681_v11  ;;  %v32845_v7 = vpack.c.bf16 %v24466_v6, %v24465_v5  ;;  %v24524_v5 = vld [vmem:[%s40538_s4 + $0x228] sm:$0xff] }
 0x4f4   :  { %v28623_v24 = vpop.f32.mrb[16].mxu1 }
 0x4f5   :  { %v1667_v25 = vpop.f32.mrb[17].mxu1 }
 0x4f6   :  { %28635 = vmatprep.mubr.msk.f32.mxu1 %vm421_vm0, %v1667_v25 }
 0x4f7   :  { %28636 = vmatmul.mubr.msk.f32.vlgmr.msra.gmra.mrb[4].mxu1 %vm421_vm0, %v28623_v24 }
 0x4f8   :  { %32684 = vmatpush3.bf16.msra.mxu1 %v32681_v11  ;;  %v28626_v29 = vpop.f32.mrb[18].mxu1  ;;  %v24476_v11 = vld [vmem:[%s40538_s4 + $0x1a8] sm:$0xff] }
 0x4f9   :  { %v1677_v31 = vpop.f32.mrb[19].mxu1  ;;  %32686 = vmatprep.subr.bf16.mxu1 %v32685_v26 }
 0x4fa   :  { %28638 = vmatprep.mubr.msk.f32.mxu1 %vm421_vm0, %v1677_v31  ;;  %v24489_v31 = vld [vmem:[%s40538_s4 + $0x1d0] sm:$0xff] }
 0x4fb   :  { %28639 = vmatmul.mubr.msk.f32.gmra.mrb[6].mxu1 %vm421_vm0, %v28626_v29 }
 0x4fc   :  { %32688 = vmatpush3.bf16.msra.mxu1 %v32685_v26  ;;  %28687 = vmatprep.mubr.msk.f32.mxu1 %vm421_vm0, %v36304_v51 }
 0x4fd   :  { %32722 = vmatprep.subr.bf16.mxu1 %v32721_v32 }
 0x4ff   :  { %28688 = vmatmul.mubr.msk.f32.vlgmr.msra.gmra.mrb[4].mxu1 %vm421_vm0, %v36302_v50  ;;  %v28834_v50 = vpop.f32.mrb[42].mxu0 }
 0x500   :  { %32724 = vmatpush3.bf16.msra.mxu1 %v32721_v32  ;;  %28690 = vmatprep.mubr.msk.f32.mxu1 %vm421_vm0, %v1873_v13  ;;  %v2461_v51 = vpop.f32.mrb[43].mxu0  ;;  %v24477_v13 = vld [vmem:[%s40538_s4 + $0x1b0] sm:$0xff]  ;;  %v24490_v32 = vld [vmem:[%s40538_s4 + $0x1d8] sm:$0xff] }
 0x501   :  { %32726 = vmatprep.subr.bf16.mxu1 %v32725_v36  ;;  %v28883_v53 = vpop.f32.mrb[44].mxu0 }
 0x502   :  { %v2647_v54 = vpop.f32.mrb[45].mxu0 }
 0x503   :  { %28691 = vmatmul.mubr.msk.f32.gmra.mrb[6].mxu1 %vm421_vm0, %v28678_v12  ;;  %v28886_v55 = vpop.f32.mrb[46].mxu0  ;;  %v32881_v12 = vpack.c.bf16 %v24476_v11, %v24475_v10  ;;  %v24525_v10 = vld [vmem:[%s40538_s4 + $0x230] sm:$0xff]  ;;  %v24526_v11 = vld [vmem:[%s40538_s4 + $0x238] sm:$0xff] }
 0x504   :  { %32728 = vmatpush3.bf16.msra.mxu1 %v32725_v36  ;;  %28739 = vmatprep.mubr.msk.f32.mxu1 %vm421_vm0, %v2059_v15  ;;  %v2657_v56 = vpop.f32.mrb[47].mxu0  ;;  %v24472_v15 = vld [vmem:[%s40537_s3 + $0x1a8] sm:$0xff]  ;;  %v32925_v36 = vpack.c.bf16 %v24490_v32, %v24489_v31 }
 0x505   :  { %32730 = vmatprep.subr.bf16.mxu1 %v35663_v52  ;;  %v28987_v24 = vpop.f32.mrb[48].mxu0 }
 0x506   :  { %v3039_v25 = vpop.f32.mrb[49].mxu0 }
 0x507   :  { %28740 = vmatmul.mubr.msk.f32.vlgmr.msra.gmra.mrb[4].mxu1 %vm421_vm0, %v28727_v14  ;;  %v24478_v14 = vld [vmem:[%s40538_s4 + $0x1b8] sm:$0xff]  ;;  %v28990_v26 = vpop.f32.mrb[50].mxu0 }
 0x508   :  { %32732 = vmatpush3.bf16.msra.mxu1 %v35663_v52  ;;  %28742 = vmatprep.mubr.msk.f32.mxu1 %vm421_vm0, %v2069_v18  ;;  %v32885_v18 = vpack.c.bf16 %v24478_v14, %v24477_v13  ;;  %v3049_v27 = vpop.f32.mrb[51].mxu0  ;;  %v24531_v13 = vld [vmem:[%s40537_s3 + $0x240] sm:$0xff] }
 0x509   :  { %32734 = vmatprep.subr.bf16.mxu1 %v35671_v59  ;;  %v36526_v28 = vpop.f32.mrb[52].mxu0  ;;  %v24535_v14 = vld [vmem:[%s40538_s4 + $0x240] sm:$0xff] }
 0x50a   :  { %v36528_v29 = vpop.f32.mrb[53].mxu0 }
 0x50b   :  { %28743 = vmatmul.mubr.msk.f32.gmra.mrb[6].mxu1 %vm421_vm0, %v28730_v17  ;;  %v24473_v17 = vld [vmem:[%s40537_s3 + $0x1b0] sm:$0xff] }
 0x50c   :  { %32736 = vmatpush3.bf16.msra.mxu1 %v35671_v59  ;;  %28777 = vmatprep.mubr.f32.mxu1 %v24435_v37 }
 0x50d   :  { %32738 = vmatprep.subr.bf16.mxu1 %v35679_v2 }
 0x510   :  { %32740 = vmatpush3.bf16.msra.mxu1 %v35679_v2 }
 0x511   :  { %32742 = vmatprep.subr.bf16.mxu1 %v35687_v9 }
 0x514   :  { %32744 = vmatpush3.bf16.msra.mxu1 %v35687_v9 }
 0x515   :  { %32746 = vmatprep.subr.bf16.mxu1 %v35695_v16 }
 0x518   :  { %32748 = vmatpush3.bf16.msra.mxu1 %v35695_v16 }
 0x519   :  { %32750 = vmatprep.subr.bf16.mxu1 %v35703_v23 }
 0x51c   :  { %32752 = vmatpush3.bf16.msra.mxu1 %v35703_v23 }
 0x51d   :  { %32754 = vmatprep.subr.bf16.mxu1 %v35711_v30 }
 0x520   :  { %32756 = vmatpush3.bf16.msra.mxu1 %v35711_v30 }
 0x521   :  { %32758 = vmatprep.subr.bf16.mxu1 %v35718_v34 }
 0x524   :  { %32760 = vmatpush3.bf16.msra.mxu1 %v35718_v34 }
 0x525   :  { %32762 = vmatprep.subr.bf16.mxu1 %v32761_v40 }
 0x527   :  { %28778 = vmatmul.mubr.f32.vlgmr.msra.gmra.mrb[20].mxu1 %v24436_v43  ;;  %v24501_v43 = vld [vmem:[%s40538_s4 + $0x1f0] sm:$0xff] }
 0x528   :  { %28780 = vmatprep.mubr.f32.mxu1 %v24437_v44  ;;  %32764 = vmatpush3.bf16.msra.mxu1 %v32761_v40  ;;  %v24499_v40 = vld [vmem:[%s40538_s4 + $0x1e0] sm:$0xff]  ;;  %v24502_v44 = vld [vmem:[%s40538_s4 + $0x1f8] sm:$0xff] }
 0x529   :  { %32766 = vmatprep.subr.bf16.mxu1 %v32765_v45  ;;  %v32961_v42 = vpack.c.bf16 %v24500_v41, %v24499_v40  ;;  %v32965_v47 = vpack.c.bf16 %v24502_v44, %v24501_v43  ;;  %v24559_v43 = vld [vmem:[%s40538_s4 + $0x280] sm:$0xff]  ;;  %v24560_v44 = vld [vmem:[%s40538_s4 + $0x288] sm:$0xff] }
 0x52b   :  { %28781 = vmatmul.mubr.f32.gmra.mrb[22].mxu1 %v24438_v46  ;;  %v24497_v46 = vld [vmem:[%s40537_s3 + $0x1f0] sm:$0xff] }
 0x52c   :  { %32768 = vmatpush3.bf16.msra.mxu1 %v32765_v45  ;;  %v24496_v45 = vld [vmem:[%s40537_s3 + $0x1e8] sm:$0xff] }
 0x52d   :  { %32802 = vmatprep.subr.bf16.mxu1 %v32801_v49 }
 0x5fa   :  { %v28779_v60 = vpop.f32.mrb[20].mxu1 }
 0x5fb   :  { %v2255_v61 = vpop.f32.mrb[21].mxu1 }
 0x5fc   :  { %28791 = vmatprep.mubr.msk.f32.mxu1 %vm421_vm0, %v2255_v61 }
 0x5fd   :  { %28792 = vmatmul.mubr.msk.f32.vlgmr.msra.gmra.mrb[4].mxu1 %vm421_vm0, %v28779_v60 }
 0x5fe   :  { %32804 = vmatpush3.bf16.msra.mxu1 %v32801_v49  ;;  %v28782_v1 = vpop.f32.mrb[22].mxu1  ;;  %v24511_v49 = vld [vmem:[%s40538_s4 + $0x200] sm:$0xff] }
 0x5ff   :  { %v2265_v3 = vpop.f32.mrb[23].mxu1  ;;  %32806 = vmatprep.subr.bf16.mxu1 %v32805_v62 }
 0x600   :  { %28794 = vmatprep.mubr.msk.f32.mxu1 %vm421_vm0, %v2265_v3 }
 0x601   :  { %28795 = vmatmul.mubr.msk.f32.gmra.mrb[6].mxu1 %vm421_vm0, %v28782_v1 }
 0x602   :  { %32808 = vmatpush3.bf16.msra.mxu1 %v32805_v62  ;;  %28843 = vmatprep.mubr.msk.f32.mxu1 %vm421_vm0, %v36368_v20  ;;  %v24487_v20 = vld [vmem:[%s40538_s4 + $0x1c0] sm:$0xff]  ;;  %v24513_v62 = vld [vmem:[%s40538_s4 + $0x210] sm:$0xff] }
 0x603   :  { %32842 = vmatprep.subr.bf16.mxu1 %v32841_v4  ;;  %v32921_v22 = vpack.c.bf16 %v24488_v21, %v24487_v20  ;;  %v33005_v3 = vpack.c.bf16 %v24514_v63, %v24513_v62  ;;  %v24532_v20 = vld [vmem:[%s40537_s3 + $0x248] sm:$0xff]  ;;  %v24533_v21 = vld [vmem:[%s40537_s3 + $0x250] sm:$0xff]  ;;  %v24570_v62 = vld [vmem:[%s40537_s3 + $0x2b8] sm:$0xff] }
 0x604   :  { %v24583_v63 = vld [vmem:[%s40538_s4 + $0x2c0] sm:$0xff] }
 0x605   :  { %28844 = vmatmul.mubr.msk.f32.vlgmr.msra.gmra.mrb[4].mxu1 %vm421_vm0, %v36366_v19  ;;  %v24474_v19 = vld [vmem:[%s40537_s3 + $0x1b8] sm:$0xff] }
 0x606   :  { %32844 = vmatpush3.bf16.msra.mxu1 %v32841_v4  ;;  %28846 = vmatprep.mubr.msk.f32.mxu1 %vm421_vm0, %v2461_v51  ;;  %v24523_v4 = vld [vmem:[%s40538_s4 + $0x220] sm:$0xff] }
 0x607   :  { %32846 = vmatprep.subr.bf16.mxu1 %v32845_v7 }
 0x609   :  { %28847 = vmatmul.mubr.msk.f32.gmra.mrb[6].mxu1 %vm421_vm0, %v28834_v50  ;;  %v24512_v50 = vld [vmem:[%s40538_s4 + $0x208] sm:$0xff] }
 0x60a   :  { %32848 = vmatpush3.bf16.msra.mxu1 %v32845_v7  ;;  %28895 = vmatprep.mubr.msk.f32.mxu1 %vm421_vm0, %v2647_v54  ;;  %v33001_v51 = vpack.c.bf16 %v24512_v50, %v24511_v49  ;;  %v24562_v49 = vld [vmem:[%s40538_s4 + $0x298] sm:$0xff] }
 0x60b   :  { %32850 = vmatprep.subr.bf16.mxu1 %v35663_v52 }
 0x60d   :  { %28896 = vmatmul.mubr.msk.f32.vlgmr.msra.gmra.mrb[4].mxu1 %vm421_vm0, %v28883_v53  ;;  %v29094_v53 = vpop.f32.mrb[54].mxu0 }
 0x60e   :  { %32852 = vmatpush3.bf16.msra.mxu1 %v35663_v52  ;;  %28898 = vmatprep.mubr.msk.f32.mxu1 %vm421_vm0, %v2657_v56  ;;  %v3441_v54 = vpop.f32.mrb[55].mxu0 }
 0x60f   :  { %32854 = vmatprep.subr.bf16.mxu1 %v35671_v59 }
 0x611   :  { %28899 = vmatmul.mubr.msk.f32.gmra.mrb[6].mxu1 %vm421_vm0, %v28886_v55  ;;  %v29143_v55 = vpop.f32.mrb[56].mxu0 }
 0x612   :  { %32856 = vmatpush3.bf16.msra.mxu1 %v35671_v59  ;;  %28933 = vmatprep.mubr.f32.mxu1 %v24471_v8  ;;  %v3627_v56 = vpop.f32.mrb[57].mxu0  ;;  %v33041_v8 = vpack.c.bf16 %v24524_v5, %v24523_v4 }
 0x613   :  { %32858 = vmatprep.subr.bf16.mxu1 %v35679_v2  ;;  %v29146_v57 = vpop.f32.mrb[58].mxu0 }
 0x614   :  { %v3637_v58 = vpop.f32.mrb[59].mxu0 }
 0x615   :  { %v36590_v60 = vpop.f32.mrb[60].mxu0 }
 0x616   :  { %32860 = vmatpush3.bf16.msra.mxu1 %v35679_v2  ;;  %v36592_v61 = vpop.f32.mrb[61].mxu0 }
 0x617   :  { %32862 = vmatprep.subr.bf16.mxu1 %v35687_v9 }
 0x61a   :  { %32864 = vmatpush3.bf16.msra.mxu1 %v35687_v9 }
 0x61b   :  { %32866 = vmatprep.subr.bf16.mxu1 %v35695_v16 }
 0x61e   :  { %32868 = vmatpush3.bf16.msra.mxu1 %v35695_v16 }
 0x61f   :  { %32870 = vmatprep.subr.bf16.mxu1 %v35703_v23 }
 0x622   :  { %32872 = vmatpush3.bf16.msra.mxu1 %v35703_v23 }
 0x623   :  { %32874 = vmatprep.subr.bf16.mxu1 %v35711_v30 }
 0x626   :  { %32876 = vmatpush3.bf16.msra.mxu1 %v35711_v30 }
 0x627   :  { %32878 = vmatprep.subr.bf16.mxu1 %v35718_v34 }
 0x62a   :  { %32880 = vmatpush3.bf16.msra.mxu1 %v35718_v34 }
 0x62b   :  { %32882 = vmatprep.subr.bf16.mxu1 %v32881_v12 }
 0x62d   :  { %28934 = vmatmul.mubr.f32.vlgmr.msra.gmra.mrb[24].mxu1 %v24472_v15  ;;  %v24536_v15 = vld [vmem:[%s40538_s4 + $0x248] sm:$0xff] }
 0x62e   :  { %28936 = vmatprep.mubr.f32.mxu1 %v24473_v17  ;;  %32884 = vmatpush3.bf16.msra.mxu1 %v32881_v12  ;;  %v33045_v12 = vpack.c.bf16 %v24526_v11, %v24525_v10  ;;  %v33081_v17 = vpack.c.bf16 %v24536_v15, %v24535_v14  ;;  %v24605_v10 = vld [vmem:[%s40537_s3 + $0x310] sm:$0xff]  ;;  %v24606_v11 = vld [vmem:[%s40537_s3 + $0x318] sm:$0xff] }
 0x62f   :  { %32886 = vmatprep.subr.bf16.mxu1 %v32885_v18 }
 0x631   :  { %28937 = vmatmul.mubr.f32.gmra.mrb[26].mxu1 %v24474_v19  ;;  %v24538_v19 = vld [vmem:[%s40538_s4 + $0x258] sm:$0xff] }
 0x632   :  { %32888 = vmatpush3.bf16.msra.mxu1 %v32885_v18  ;;  %v24537_v18 = vld [vmem:[%s40538_s4 + $0x250] sm:$0xff] }
 0x633   :  { %32922 = vmatprep.subr.bf16.mxu1 %v32921_v22 }
 0x700   :  { %v28935_v33 = vpop.f32.mrb[24].mxu1 }
 0x701   :  { %v2843_v35 = vpop.f32.mrb[25].mxu1 }
 0x702   :  { %28947 = vmatprep.mubr.msk.f32.mxu1 %vm421_vm0, %v2843_v35 }
 0x703   :  { %28948 = vmatmul.mubr.msk.f32.vlgmr.msra.gmra.mrb[4].mxu1 %vm421_vm0, %v28935_v33 }
 0x704   :  { %32924 = vmatpush3.bf16.msra.mxu1 %v32921_v22  ;;  %v28938_v37 = vpop.f32.mrb[26].mxu1  ;;  %v33085_v22 = vpack.c.bf16 %v24538_v19, %v24537_v18 }
 0x705   :  { %v2853_v38 = vpop.f32.mrb[27].mxu1  ;;  %32926 = vmatprep.subr.bf16.mxu1 %v32925_v36 }
 0x706   :  { %28950 = vmatprep.mubr.msk.f32.mxu1 %vm421_vm0, %v2853_v38  ;;  %v24549_v38 = vld [vmem:[%s40538_s4 + $0x270] sm:$0xff] }
 0x707   :  { %28951 = vmatmul.mubr.msk.f32.gmra.mrb[6].mxu1 %vm421_vm0, %v28938_v37  ;;  %v24582_v37 = vld [vmem:[%s40537_s3 + $0x2d8] sm:$0xff] }
 0x708   :  { %32928 = vmatpush3.bf16.msra.mxu1 %v32925_v36  ;;  %28999 = vmatprep.mubr.msk.f32.mxu1 %vm421_vm0, %v3039_v25  ;;  %v24547_v25 = vld [vmem:[%s40538_s4 + $0x260] sm:$0xff]  ;;  %v24581_v36 = vld [vmem:[%s40537_s3 + $0x2d0] sm:$0xff] }
 0x709   :  { %32930 = vmatprep.subr.bf16.mxu1 %v35663_v52  ;;  %29404 = vmatprep.mubr.f32.mxu0 %v24581_v36 }
 0x70a   :  { %29405 = vmatmul.mubr.f32.gmra.mrb[70].mxu0 %v24582_v37 }
 0x70b   :  { %29000 = vmatmul.mubr.msk.f32.vlgmr.msra.gmra.mrb[4].mxu1 %vm421_vm0, %v28987_v24  ;;  %v24534_v24 = vld [vmem:[%s40537_s3 + $0x258] sm:$0xff] }
 0x70c   :  { %32932 = vmatpush3.bf16.msra.mxu1 %v35663_v52  ;;  %29002 = vmatprep.mubr.msk.f32.mxu1 %vm421_vm0, %v3049_v27 }
 0x70d   :  { %32934 = vmatprep.subr.bf16.mxu1 %v35671_v59 }
 0x70f   :  { %29003 = vmatmul.mubr.msk.f32.gmra.mrb[6].mxu1 %vm421_vm0, %v28990_v26  ;;  %v24548_v26 = vld [vmem:[%s40538_s4 + $0x268] sm:$0xff] }
 0x710   :  { %32936 = vmatpush3.bf16.msra.mxu1 %v35671_v59  ;;  %29037 = vmatprep.mubr.f32.mxu1 %v24495_v39  ;;  %v33121_v27 = vpack.c.bf16 %v24548_v26, %v24547_v25  ;;  %v24550_v39 = vld [vmem:[%s40538_s4 + $0x278] sm:$0xff] }
 0x711   :  { %32938 = vmatprep.subr.bf16.mxu1 %v35679_v2 }
 0x714   :  { %32940 = vmatpush3.bf16.msra.mxu1 %v35679_v2 }
 0x715   :  { %32942 = vmatprep.subr.bf16.mxu1 %v35687_v9 }
 0x718   :  { %32944 = vmatpush3.bf16.msra.mxu1 %v35687_v9 }
 0x719   :  { %32946 = vmatprep.subr.bf16.mxu1 %v35695_v16 }
 0x71c   :  { %32948 = vmatpush3.bf16.msra.mxu1 %v35695_v16 }
 0x71d   :  { %32950 = vmatprep.subr.bf16.mxu1 %v35703_v23 }
 0x720   :  { %32952 = vmatpush3.bf16.msra.mxu1 %v35703_v23 }
 0x721   :  { %32954 = vmatprep.subr.bf16.mxu1 %v35711_v30 }
 0x724   :  { %32956 = vmatpush3.bf16.msra.mxu1 %v35711_v30 }
 0x725   :  { %32958 = vmatprep.subr.bf16.mxu1 %v35718_v34 }
 0x728   :  { %32960 = vmatpush3.bf16.msra.mxu1 %v35718_v34 }
 0x729   :  { %32962 = vmatprep.subr.bf16.mxu1 %v32961_v42 }
 0x72b   :  { %29038 = vmatmul.mubr.f32.vlgmr.msra.gmra.mrb[28].mxu1 %v24496_v45 }
 0x72c   :  { %29040 = vmatprep.mubr.f32.mxu1 %v24497_v46  ;;  %32964 = vmatpush3.bf16.msra.mxu1 %v32961_v42  ;;  %v33125_v42 = vpack.c.bf16 %v24550_v39, %v24549_v38  ;;  %v36845_v39 = vld [vmem:[%s40540_s6] sm:$0xff] }
 0x72d   :  { %32966 = vmatprep.subr.bf16.mxu1 %v32965_v47 }
 0x72f   :  { %29041 = vmatmul.mubr.f32.gmra.mrb[30].mxu1 %v24498_v48  ;;  %v24561_v48 = vld [vmem:[%s40538_s4 + $0x290] sm:$0xff] }
 0x730   :  { %32968 = vmatpush3.bf16.msra.mxu1 %v32965_v47  ;;  %v33161_v47 = vpack.c.bf16 %v24560_v44, %v24559_v43  ;;  %v33165_v50 = vpack.c.bf16 %v24562_v49, %v24561_v48 }
 0x731   :  { %33002 = vmatprep.subr.bf16.mxu1 %v33001_v51 }
 0x7fe   :  { %v29039_v0 = vpop.f32.mrb[28].mxu1 }
 0x7ff   :  { %v3235_v1 = vpop.f32.mrb[29].mxu1 }
 0x800   :  { %29051 = vmatprep.mubr.msk.f32.mxu1 %vm421_vm0, %v3235_v1 }
 0x801   :  { %29052 = vmatmul.mubr.msk.f32.vlgmr.msra.gmra.mrb[4].mxu1 %vm421_vm0, %v29039_v0  ;;  %v24584_v0 = vld [vmem:[%s40538_s4 + $0x2c8] sm:$0xff] }
 0x802   :  { %33004 = vmatpush3.bf16.msra.mxu1 %v33001_v51  ;;  %v29042_v6 = vpop.f32.mrb[30].mxu1  ;;  %v24567_v51 = vld [vmem:[%s40537_s3 + $0x2a0] sm:$0xff]  ;;  %v33241_v1 = vpack.c.bf16 %v24584_v0, %v24583_v63  ;;  %v36931_v63 = vld [vmem:[%s40540_s6 + $0x38] sm:$0xff] }
 0x803   :  { %v3245_v7 = vpop.f32.mrb[31].mxu1  ;;  %33006 = vmatprep.subr.bf16.mxu1 %v33005_v3  ;;  %v36937_v0 = vld [vmem:[%s40540_s6 + $0x40] sm:$0xff] }
 0x804   :  { %29054 = vmatprep.mubr.msk.f32.mxu1 %vm421_vm0, %v3245_v7  ;;  %v24603_v7 = vld [vmem:[%s40537_s3 + $0x300] sm:$0xff] }
 0x805   :  { %29055 = vmatmul.mubr.msk.f32.gmra.mrb[6].mxu1 %vm421_vm0, %v29042_v6  ;;  %29505 = vmatprep.mubr.f32.mxu0 %v24603_v7  ;;  %v36985_v7 = vld [vmem:[%s40540_s6 + $0x70] sm:$0xff] }
 0x806   :  { %33008 = vmatpush3.bf16.msra.mxu1 %v33005_v3  ;;  %29103 = vmatprep.mubr.msk.f32.mxu1 %vm421_vm0, %v36528_v29 }
 0x807   :  { %33042 = vmatprep.subr.bf16.mxu1 %v33041_v8 }
 0x809   :  { %29104 = vmatmul.mubr.msk.f32.vlgmr.msra.gmra.mrb[4].mxu1 %vm421_vm0, %v36526_v28  ;;  %v29250_v28 = vpop.f32.mrb[62].mxu0 }
 0x80a   :  { %33044 = vmatpush3.bf16.msra.mxu1 %v33041_v8  ;;  %29106 = vmatprep.mubr.msk.f32.mxu1 %vm421_vm0, %v3441_v54  ;;  %v4029_v29 = vpop.f32.mrb[63].mxu0  ;;  %v24572_v54 = vld [vmem:[%s40538_s4 + $0x2a8] sm:$0xff] }
 0x80b   :  { %33046 = vmatprep.subr.bf16.mxu1 %v33045_v12  ;;  %v29299_v31 = vpop.f32.mrb[64].mxu0  ;;  %v24604_v8 = vld [vmem:[%s40537_s3 + $0x308] sm:$0xff] }
 0x80c   :  { %v4215_v32 = vpop.f32.mrb[65].mxu0  ;;  %29506 = vmatmul.mubr.f32.vlgmr.msra.gmra.mrb[72].mxu0 %v24604_v8  ;;  %v36995_v8 = vld [vmem:[%s40540_s6 + $0x78] sm:$0xff] }
 0x80d   :  { %29107 = vmatmul.mubr.msk.f32.gmra.mrb[6].mxu1 %vm421_vm0, %v29094_v53  ;;  %v29302_v33 = vpop.f32.mrb[66].mxu0  ;;  %v24571_v53 = vld [vmem:[%s40538_s4 + $0x2a0] sm:$0xff]  ;;  %29508 = vmatprep.mubr.f32.mxu0 %v24605_v10 }
 0x80e   :  { %33048 = vmatpush3.bf16.msra.mxu1 %v33045_v12  ;;  %29155 = vmatprep.mubr.msk.f32.mxu1 %vm421_vm0, %v3627_v56  ;;  %v4225_v35 = vpop.f32.mrb[67].mxu0  ;;  %v24573_v56 = vld [vmem:[%s40538_s4 + $0x2b0] sm:$0xff]  ;;  %v37001_v10 = vld [vmem:[%s40540_s6 + $0x80] sm:$0xff] }
 0x80f   :  { %33050 = vmatprep.subr.bf16.mxu1 %v35663_v52  ;;  %v29403_v3 = vpop.f32.mrb[68].mxu0  ;;  %v24585_v12 = vld [vmem:[%s40538_s4 + $0x2d0] sm:$0xff] }
 0x810   :  { %v4607_v4 = vpop.f32.mrb[69].mxu0  ;;  %29509 = vmatmul.mubr.f32.gmra.mrb[74].mxu0 %v24606_v11  ;;  %v37011_v11 = vld [vmem:[%s40540_s6 + $0x88] sm:$0xff] }
 0x811   :  { %29156 = vmatmul.mubr.msk.f32.vlgmr.msra.gmra.mrb[4].mxu1 %vm421_vm0, %v29143_v55  ;;  %v33201_v55 = vpack.c.bf16 %v24572_v54, %v24571_v53  ;;  %v29406_v5 = vpop.f32.mrb[70].mxu0  ;;  %29533 = vmatprep.mubr.msk.f32.mxu0 %vm421_vm0, %v36845_v39 }
 0x812   :  { %33052 = vmatpush3.bf16.msra.mxu1 %v35663_v52  ;;  %29158 = vmatprep.mubr.msk.f32.mxu1 %vm421_vm0, %v3637_v58  ;;  %v24568_v58 = vld [vmem:[%s40537_s3 + $0x2a8] sm:$0xff]  ;;  %v4617_v6 = vpop.f32.mrb[71].mxu0 }
 0x813   :  { %33054 = vmatprep.subr.bf16.mxu1 %v35671_v59 }
 0x815   :  { %29159 = vmatmul.mubr.msk.f32.gmra.mrb[6].mxu1 %vm421_vm0, %v29146_v57  ;;  %v24574_v57 = vld [vmem:[%s40538_s4 + $0x2b8] sm:$0xff] }
 0x816   :  { %33056 = vmatpush3.bf16.msra.mxu1 %v35671_v59  ;;  %29193 = vmatprep.mubr.f32.mxu1 %v24531_v13  ;;  %v24586_v13 = vld [vmem:[%s40538_s4 + $0x2d8] sm:$0xff] }
 0x817   :  { %33058 = vmatprep.subr.bf16.mxu1 %v35679_v2 }
 0x81a   :  { %33060 = vmatpush3.bf16.msra.mxu1 %v35679_v2 }
 0x81b   :  { %33062 = vmatprep.subr.bf16.mxu1 %v35687_v9 }
 0x81e   :  { %33064 = vmatpush3.bf16.msra.mxu1 %v35687_v9 }
 0x81f   :  { %33066 = vmatprep.subr.bf16.mxu1 %v35695_v16 }
 0x822   :  { %33068 = vmatpush3.bf16.msra.mxu1 %v35695_v16 }
 0x823   :  { %33070 = vmatprep.subr.bf16.mxu1 %v35703_v23 }
 0x826   :  { %33072 = vmatpush3.bf16.msra.mxu1 %v35703_v23 }
 0x827   :  { %33074 = vmatprep.subr.bf16.mxu1 %v35711_v30 }
 0x82a   :  { %33076 = vmatpush3.bf16.msra.mxu1 %v35711_v30 }
 0x82b   :  { %33078 = vmatprep.subr.bf16.mxu1 %v35718_v34 }
 0x82e   :  { %33080 = vmatpush3.bf16.msra.mxu1 %v35718_v34 }
 0x82f   :  { %33082 = vmatprep.subr.bf16.mxu1 %v33081_v17 }
 0x831   :  { %29194 = vmatmul.mubr.f32.vlgmr.msra.gmra.mrb[32].mxu1 %v24532_v20  ;;  %v24591_v20 = vld [vmem:[%s40537_s3 + $0x2e0] sm:$0xff] }
 0x832   :  { %29196 = vmatprep.mubr.f32.mxu1 %v24533_v21  ;;  %33084 = vmatpush3.bf16.msra.mxu1 %v33081_v17  ;;  %v33245_v17 = vpack.c.bf16 %v24586_v13, %v24585_v12  ;;  %v37017_v12 = vld [vmem:[%s40540_s6 + $0x90] sm:$0xff]  ;;  %v37027_v13 = vld [vmem:[%s40540_s6 + $0x98] sm:$0xff] }
 0x833   :  { %33086 = vmatprep.subr.bf16.mxu1 %v33085_v22 }
 0x835   :  { %29197 = vmatmul.mubr.f32.gmra.mrb[34].mxu1 %v24534_v24  ;;  %v24608_v24 = vld [vmem:[%s40538_s4 + $0x308] sm:$0xff] }
 0x836   :  { %33088 = vmatpush3.bf16.msra.mxu1 %v33085_v22  ;;  %v24594_v22 = vld [vmem:[%s40537_s3 + $0x2f8] sm:$0xff] }
 0x837   :  { %33122 = vmatprep.subr.bf16.mxu1 %v33121_v27 }
 0x8df   :  { %v29507_v26 = vpop.f32.mrb[72].mxu0 }
 0x904   :  { %v29195_v40 = vpop.f32.mrb[32].mxu1 }
 0x905   :  { %v3823_v41 = vpop.f32.mrb[33].mxu1 }
 0x906   :  { %29207 = vmatprep.mubr.msk.f32.mxu1 %vm421_vm0, %v3823_v41 }
 0x907   :  { %29208 = vmatmul.mubr.msk.f32.vlgmr.msra.gmra.mrb[4].mxu1 %vm421_vm0, %v29195_v40  ;;  %v24615_v40 = vld [vmem:[%s40539_s5] ss:$0 sm:$0xff] }
 0x908   :  { %33124 = vmatpush3.bf16.msra.mxu1 %v33121_v27  ;;  %v29198_v45 = vpop.f32.mrb[34].mxu1  ;;  %v4999_v27 = vpop.f32.mrb[73].mxu0 }
 0x909   :  { %v3833_v46 = vpop.f32.mrb[35].mxu1  ;;  %33126 = vmatprep.subr.bf16.mxu1 %v33125_v42 }
 0x90a   :  { %29210 = vmatprep.mubr.msk.f32.mxu1 %vm421_vm0, %v3833_v46 }
 0x90b   :  { %29211 = vmatmul.mubr.msk.f32.gmra.mrb[6].mxu1 %vm421_vm0, %v29198_v45 }
 0x90c   :  { %33128 = vmatpush3.bf16.msra.mxu1 %v33125_v42  ;;  %29259 = vmatprep.mubr.msk.f32.mxu1 %vm421_vm0, %v36592_v61  ;;  %v33205_v61 = vpack.c.bf16 %v24574_v57, %v24573_v56  ;;  %v36883_v56 = vld [vmem:[%s40540_s6 + $0x8] sm:$0xff]  ;;  %v36889_v57 = vld [vmem:[%s40540_s6 + $0x10] sm:$0xff] }
 0x90d   :  { %33162 = vmatprep.subr.bf16.mxu1 %v33161_v47 }
 0x90f   :  { %29260 = vmatmul.mubr.msk.f32.vlgmr.msra.gmra.mrb[4].mxu1 %vm421_vm0, %v36590_v60  ;;  %v24569_v60 = vld [vmem:[%s40537_s3 + $0x2b0] sm:$0xff] }
 0x910   :  { %33164 = vmatpush3.bf16.msra.mxu1 %v33161_v47  ;;  %29262 = vmatprep.mubr.msk.f32.mxu1 %vm421_vm0, %v4029_v29 }
 0x911   :  { %33166 = vmatprep.subr.bf16.mxu1 %v33165_v50 }
 0x913   :  { %29263 = vmatmul.mubr.msk.f32.gmra.mrb[6].mxu1 %vm421_vm0, %v29250_v28  ;;  %v29510_v28 = vpop.f32.mrb[74].mxu0 }
 0x914   :  { %33168 = vmatpush3.bf16.msra.mxu1 %v33165_v50  ;;  %29311 = vmatprep.mubr.msk.f32.mxu1 %vm421_vm0, %v4215_v32  ;;  %v5009_v29 = vpop.f32.mrb[75].mxu0  ;;  %v24610_v32 = vld [vmem:[%s40538_s4 + $0x318] sm:$0xff] }
 0x915   :  { %33170 = vmatprep.subr.bf16.mxu1 %v35663_v52 }
 0x917   :  { %29312 = vmatmul.mubr.msk.f32.vlgmr.msra.gmra.mrb[4].mxu1 %vm421_vm0, %v29299_v31  ;;  %v24609_v31 = vld [vmem:[%s40538_s4 + $0x310] sm:$0xff] }
 0x918   :  { %33172 = vmatpush3.bf16.msra.mxu1 %v35663_v52  ;;  %29314 = vmatprep.mubr.msk.f32.mxu1 %vm421_vm0, %v4225_v35  ;;  %v33325_v36 = vpack.c.bf16 %v24610_v32, %v24609_v31  ;;  %v5240_v31 = vld [vmem:[%s40541_s7] sm:$0xff]  ;;  %v5241_v32 = vld [vmem:[%s40541_s7 + $0x8] sm:$0xff] }
 0x919   :  { %33174 = vmatprep.subr.bf16.mxu1 %v35671_v59 }
 0x91b   :  { %29315 = vmatmul.mubr.msk.f32.gmra.mrb[6].mxu1 %vm421_vm0, %v29302_v33 }
 0x91c   :  { %33176 = vmatpush3.bf16.msra.mxu1 %v35671_v59  ;;  %29349 = vmatprep.mubr.f32.mxu1 %v24567_v51 }
 0x91d   :  { %33178 = vmatprep.subr.bf16.mxu1 %v35679_v2 }
 0x920   :  { %33180 = vmatpush3.bf16.msra.mxu1 %v35679_v2 }
 0x921   :  { %33182 = vmatprep.subr.bf16.mxu1 %v35687_v9 }
 0x924   :  { %33184 = vmatpush3.bf16.msra.mxu1 %v35687_v9 }
 0x925   :  { %33186 = vmatprep.subr.bf16.mxu1 %v35695_v16 }
 0x928   :  { %33188 = vmatpush3.bf16.msra.mxu1 %v35695_v16 }
 0x929   :  { %33190 = vmatprep.subr.bf16.mxu1 %v35703_v23 }
 0x92c   :  { %33192 = vmatpush3.bf16.msra.mxu1 %v35703_v23 }
 0x92d   :  { %33194 = vmatprep.subr.bf16.mxu1 %v35711_v30 }
 0x930   :  { %33196 = vmatpush3.bf16.msra.mxu1 %v35711_v30 }
 0x931   :  { %33198 = vmatprep.subr.bf16.mxu1 %v35718_v34 }
 0x934   :  { %33200 = vmatpush3.bf16.msra.mxu1 %v35718_v34 }
 0x935   :  { %33202 = vmatprep.subr.bf16.mxu1 %v33201_v55 }
 0x937   :  { %29350 = vmatmul.mubr.f32.vlgmr.msra.gmra.mrb[36].mxu1 %v24568_v58  ;;  %v36899_v58 = vld [vmem:[%s40540_s6 + $0x18] sm:$0xff] }
 0x938   :  { %29352 = vmatprep.mubr.f32.mxu1 %v24569_v60  ;;  %33204 = vmatpush3.bf16.msra.mxu1 %v33201_v55  ;;  %v36905_v60 = vld [vmem:[%s40540_s6 + $0x20] sm:$0xff] }
 0x939   :  { %33206 = vmatprep.subr.bf16.mxu1 %v33205_v61 }
 0x93b   :  { %29353 = vmatmul.mubr.f32.gmra.mrb[38].mxu1 %v24570_v62  ;;  %v36921_v62 = vld [vmem:[%s40540_s6 + $0x30] sm:$0xff] }
 0x93c   :  { %33208 = vmatpush3.bf16.msra.mxu1 %v33205_v61  ;;  %v36915_v61 = vld [vmem:[%s40540_s6 + $0x28] sm:$0xff] }
 0x93d   :  { %33242 = vmatprep.subr.bf16.mxu1 %v33241_v1 }
 0xa0a   :  { %v29351_v14 = vpop.f32.mrb[36].mxu1 }
 0xa0b   :  { %v4411_v15 = vpop.f32.mrb[37].mxu1 }
 0xa0c   :  { %29363 = vmatprep.mubr.msk.f32.mxu1 %vm421_vm0, %v4411_v15  ;;  %v37043_v15 = vld [vmem:[%s40540_s6 + $0xa8] sm:$0xff] }
 0xa0d   :  { %29364 = vmatmul.mubr.msk.f32.vlgmr.msra.gmra.mrb[4].mxu1 %vm421_vm0, %v29351_v14  ;;  %v37033_v14 = vld [vmem:[%s40540_s6 + $0xa0] sm:$0xff] }
 0xa0e   :  { %33244 = vmatpush3.bf16.msra.mxu1 %v33241_v1  ;;  %v29354_v18 = vpop.f32.mrb[38].mxu1  ;;  %v36947_v1 = vld [vmem:[%s40540_s6 + $0x48] sm:$0xff] }
 0xa0f   :  { %v4421_v19 = vpop.f32.mrb[39].mxu1  ;;  %33246 = vmatprep.subr.bf16.mxu1 %v33245_v17 }
 0xa10   :  { %29366 = vmatprep.mubr.msk.f32.mxu1 %vm421_vm0, %v4421_v19  ;;  %v37065_v19 = vld [vmem:[%s40540_s6 + $0xc0] sm:$0xff] }
 0xa11   :  { %29367 = vmatmul.mubr.msk.f32.gmra.mrb[6].mxu1 %vm421_vm0, %v29354_v18  ;;  %v37059_v18 = vld [vmem:[%s40540_s6 + $0xb8] sm:$0xff] }
 0xa12   :  { %33248 = vmatpush3.bf16.msra.mxu1 %v33245_v17  ;;  %29415 = vmatprep.mubr.msk.f32.mxu1 %vm421_vm0, %v4607_v4  ;;  %v36963_v4 = vld [vmem:[%s40540_s6 + $0x58] sm:$0xff]  ;;  %v37049_v17 = vld [vmem:[%s40540_s6 + $0xb0] sm:$0xff] }
 0xa13   :  { %33250 = vmatprep.subr.bf16.mxu1 %v35663_v52 }
 0xa15   :  { %29416 = vmatmul.mubr.msk.f32.vlgmr.msra.gmra.mrb[4].mxu1 %vm421_vm0, %v29403_v3  ;;  %v36953_v3 = vld [vmem:[%s40540_s6 + $0x50] sm:$0xff] }
 0xa16   :  { %33252 = vmatpush3.bf16.msra.mxu1 %v35663_v52  ;;  %29418 = vmatprep.mubr.msk.f32.mxu1 %vm421_vm0, %v4617_v6  ;;  %v24595_v52 = vld [vmem:[%s40538_s4 + $0x2e0] sm:$0xff]  ;;  %v36979_v6 = vld [vmem:[%s40540_s6 + $0x68] sm:$0xff] }
 0xa17   :  { %33254 = vmatprep.subr.bf16.mxu1 %v35671_v59 }
 0xa19   :  { %29419 = vmatmul.mubr.msk.f32.gmra.mrb[6].mxu1 %vm421_vm0, %v29406_v5  ;;  %v36969_v5 = vld [vmem:[%s40540_s6 + $0x60] sm:$0xff] }
 0xa1a   :  { %33256 = vmatpush3.bf16.msra.mxu1 %v35671_v59  ;;  %29453 = vmatprep.mubr.f32.mxu1 %v24591_v20  ;;  %v24596_v59 = vld [vmem:[%s40538_s4 + $0x2e8] sm:$0xff] }
 0xa1b   :  { %33258 = vmatprep.subr.bf16.mxu1 %v35679_v2  ;;  %v37075_v20 = vld [vmem:[%s40540_s6 + $0xc8] sm:$0xff] }
 0xa1e   :  { %33260 = vmatpush3.bf16.msra.mxu1 %v35679_v2  ;;  %v33281_v2 = vpack.c.bf16 %v24596_v59, %v24595_v52  ;;  %v37081_v52 = vld [vmem:[%s40540_s6 + $0xd0] sm:$0xff]  ;;  %v37091_v59 = vld [vmem:[%s40540_s6 + $0xd8] sm:$0xff] }
 0xa1f   :  { %33262 = vmatprep.subr.bf16.mxu1 %v35687_v9 }
 0xa22   :  { %33264 = vmatpush3.bf16.msra.mxu1 %v35687_v9  ;;  %v24597_v9 = vld [vmem:[%s40538_s4 + $0x2f0] sm:$0xff] }
 0xa23   :  { %33266 = vmatprep.subr.bf16.mxu1 %v35695_v16 }
 0xa26   :  { %33268 = vmatpush3.bf16.msra.mxu1 %v35695_v16  ;;  %v24598_v16 = vld [vmem:[%s40538_s4 + $0x2f8] sm:$0xff] }
 0xa27   :  { %33270 = vmatprep.subr.bf16.mxu1 %v35703_v23  ;;  %v33285_v21 = vpack.c.bf16 %v24598_v16, %v24597_v9  ;;  %v37107_v9 = vld [vmem:[%s40540_s6 + $0xe8] sm:$0xff]  ;;  %v37113_v16 = vld [vmem:[%s40540_s6 + $0xf0] sm:$0xff] }
 0xa2a   :  { %33272 = vmatpush3.bf16.msra.mxu1 %v35703_v23  ;;  %v24592_v23 = vld [vmem:[%s40537_s3 + $0x2e8] sm:$0xff] }
 0xa2b   :  { %33274 = vmatprep.subr.bf16.mxu1 %v35711_v30 }
 0xa2e   :  { %33276 = vmatpush3.bf16.msra.mxu1 %v35711_v30  ;;  %v24593_v30 = vld [vmem:[%s40537_s3 + $0x2f0] sm:$0xff] }
 0xa2f   :  { %33278 = vmatprep.subr.bf16.mxu1 %v35718_v34 }
 0xa32   :  { %33280 = vmatpush3.bf16.msra.mxu1 %v35718_v34  ;;  %v24607_v34 = vld [vmem:[%s40538_s4 + $0x300] sm:$0xff] }
 0xa33   :  { %33282 = vmatprep.subr.bf16.mxu1 %v33281_v2  ;;  %v33321_v25 = vpack.c.bf16 %v24608_v24, %v24607_v34  ;;  %v37153_v34 = vld [vmem:[%s40540_s6 + $0x118] sm:$0xff]  ;;  %v24628_v24 = vld [vmem:[%s40541_s7 + $0x20] sm:$0xff] }
 0xa35   :  { %29454 = vmatmul.mubr.f32.vlgmr.msra.gmra.mrb[40].mxu1 %v24592_v23  ;;  %v37123_v23 = vld [vmem:[%s40540_s6 + $0xf8] sm:$0xff] }
 0xa36   :  { %29456 = vmatprep.mubr.f32.mxu1 %v24593_v30  ;;  %33284 = vmatpush3.bf16.msra.mxu1 %v33281_v2  ;;  %v37097_v2 = vld [vmem:[%s40540_s6 + $0xe0] sm:$0xff] }
 0xa37   :  { %33286 = vmatprep.subr.bf16.mxu1 %v33285_v21  ;;  %v37129_v30 = vld [vmem:[%s40540_s6 + $0x100] sm:$0xff] }
 0xa39   :  { %29457 = vmatmul.mubr.f32.gmra.mrb[42].mxu1 %v24594_v22  ;;  %v37144_v22 = vld [vmem:[%s40540_s6 + $0x110] sm:$0xff] }
 0xa3a   :  { %33288 = vmatpush3.bf16.msra.mxu1 %v33285_v21  ;;  %v37139_v21 = vld [vmem:[%s40540_s6 + $0x108] sm:$0xff] }
 0xa3b   :  { %33322 = vmatprep.subr.bf16.mxu1 %v33321_v25 }
 0xb08   :  { %v29455_v33 = vpop.f32.mrb[40].mxu1 }
 0xb09   :  { %v4803_v35 = vpop.f32.mrb[41].mxu1 }
 0xb0a   :  { %29467 = vmatprep.mubr.msk.f32.mxu1 %vm421_vm0, %v4803_v35 }
 0xb0b   :  { %29468 = vmatmul.mubr.msk.f32.vlgmr.msra.gmra.mrb[4].mxu1 %vm421_vm0, %v29455_v33  ;;  %v33353_v33 = vpack.c.bf16 %v5241_v32, %v5240_v31 }
 0xb0c   :  { %v29458_v37 = vpop.f32.mrb[42].mxu1  ;;  %33324 = vmatpush3.bf16.msra.mxu1 %v33321_v25  ;;  %v24629_v25 = vld [vmem:[%s40541_s7 + $0x28] sm:$0xff] }
 0xb0d   :  { %v4813_v38 = vpop.f32.mrb[43].mxu1  ;;  %33326 = vmatprep.subr.bf16.mxu1 %v33325_v36 }
 0xb0e   :  { %29470 = vmatprep.mubr.msk.f32.mxu1 %vm421_vm0, %v4813_v38 }
 0xb0f   :  { %29471 = vmatmul.mubr.msk.f32.gmra.mrb[6].mxu1 %vm421_vm0, %v29458_v37 }
 0xb10   :  { %33328 = vmatpush3.bf16.msra.mxu1 %v33325_v36  ;;  %29519 = vmatprep.mubr.msk.f32.mxu1 %vm421_vm0, %v4999_v27  ;;  %v24630_v27 = vld [vmem:[%s40541_s7 + $0x30] sm:$0xff] }
 0xb13   :  { %29520 = vmatmul.mubr.msk.f32.vlgmr.msra.gmra.mrb[4].mxu1 %vm421_vm0, %v29507_v26  ;;  %v33345_v26 = vpack.c.bf16 %v24629_v25, %v24628_v24 }
 0xb14   :  { %29522 = vmatprep.mubr.msk.f32.mxu1 %vm421_vm0, %v5009_v29 }
 0xb15   :  { %33346 = vmatprep.subr.bf16.mxu1 %v33345_v26 }
 0xb16   :  { %33348 = vmatpush3.bf16.msra.mxu1 %v33345_v26 }
 0xb17   :  { %29523 = vmatmul.mubr.msk.f32.gmra.mrb[6].mxu1 %vm421_vm0, %v29510_v28  ;;  %v24631_v28 = vld [vmem:[%s40541_s7 + $0x38] sm:$0xff] }
 0xb18   :  { %v33349_v29 = vpack.c.bf16 %v24631_v28, %v24630_v27  ;;  %v24650_v27 = vld [vmem:[%s40541_s7 + $0x50] sm:$0xff]  ;;  %v24651_v28 = vld [vmem:[%s40541_s7 + $0x58] sm:$0xff] }
 0xb19   :  { %v33373_v31 = vpack.c.bf16 %v24651_v28, %v24650_v27  ;;  %v24682_v27 = vld [vmem:[%s40541_s7 + $0x90] sm:$0xff]  ;;  %v24683_v28 = vld [vmem:[%s40541_s7 + $0x98] sm:$0xff] }
 0xb1a   :  { %33350 = vmatprep.subr.bf16.mxu1 %v33349_v29 }
 0xb1b   :  { %33352 = vmatpush3.bf16.msra.mxu1 %v33349_v29 }
 0xb1c   :  { %33354 = vmatprep.subr.bf16.mxu1 %v33353_v33 }
 0xbe6   :  { %v29521_v41 = vpop.f32.mrb[4].mxu1 }
 0xbe7   :  { %v36852_v42 = vadd.f32 %v29521_v41, %v24615_v40  ;;  %v5101_v43 = vpop.f32.mrb[5].mxu1  ;;  %v5243_v41 = vld [vmem:[%s40541_s7 + $0x18] sm:$0xff] }
 0xbe8   :  { %v36854_v44 = vadd.f32 %v24615_v40, %v5101_v43 }
 0xbe9   :  { %v5136_v45 = vmax.f32 %v36852_v42, 0.0 }
 0xbea   :  { %v5135_v46 = vmax.f32 %v36854_v44, 0.0  ;;  %v29524_v47 = vpop.f32.mrb[6].mxu1 }
 0xbeb   :  { %v36858_v48 = vadd.f32 %v29524_v47, %v24615_v40  ;;  %v5111_v49 = vpop.f32.mrb[7].mxu1 }
 0xbec   :  { %v36864_v50 = vpack.c.bf16 %v5136_v45, %v5135_v46  ;;  %v36866_v51 = vadd.f32 %v24615_v40, %v5111_v49  ;;  %v5242_v40 = vld [vmem:[%s40541_s7 + $0x10] sm:$0xff] }
 0xbed   :  { %v5138_v53 = vmax.f32 %v36858_v48, 0.0  ;;  %v33357_v49 = vpack.c.bf16 %v5243_v41, %v5242_v40  ;;  %v24665_v40 = vld [vmem:[%s40541_s7 + $0x68] sm:$0xff]  ;;  %v37613_v48 = vld [vmem:[%s40540_s6 + $0x18] sm:$0xff] }
 0xbee   :  { %v5137_v54 = vmax.f32 %v36866_v51, 0.0  ;;  %33330 = vmatprep.subr.bf16.mxu0 %v36864_v50  ;;  %v37621_v51 = vld [vmem:[%s40540_s6 + $0x20] sm:$0xff] }
 0xbef   :  { %33332 = vmatpush3.bf16.msra.mxu0 %v36864_v50 }
 0xbf0   :  { %v36876_v55 = vpack.c.bf16 %v5138_v53, %v5137_v54 }
 0xbf2   :  { %33334 = vmatprep.subr.bf16.mxu0 %v36876_v55 }
 0xbf3   :  { %33336 = vmatpush3.bf16.msra.mxu0 %v36876_v55 }
 0xbf4   :  { %33338 = vmatprep.subr.bf16.mxu0 %v36864_v50 }
 0xbf6   :  { %29534 = vmatmul.mubr.msk.f32.vlgmr.msra.gmra.mrb[76].mxu0 %vm421_vm0, %v36883_v56 }
 0xbf7   :  { %33340 = vmatpush3.bf16.msra.mxu0 %v36864_v50  ;;  %29536 = vmatprep.mubr.msk.f32.mxu0 %vm421_vm0, %v36889_v57 }
 0xbf8   :  { %33342 = vmatprep.subr.bf16.mxu0 %v36876_v55 }
 0xbfa   :  { %29537 = vmatmul.mubr.msk.f32.gmra.mrb[78].mxu0 %vm421_vm0, %v36899_v58 }
 0xbfb   :  { %33344 = vmatpush3.bf16.msra.mxu0 %v36876_v55  ;;  %29547 = vmatprep.mubr.msk.f32.mxu0 %vm421_vm0, %v36905_v60 }
 0xbfc   :  { %33362 = vmatprep.subr.bf16.mxu0 %v36864_v50 }
 0xbfe   :  { %29548 = vmatmul.mubr.msk.f32.vlgmr.msra.gmra.mrb[80].mxu0 %vm421_vm0, %v36915_v61 }
 0xbff   :  { %33364 = vmatpush3.bf16.msra.mxu0 %v36864_v50  ;;  %29550 = vmatprep.mubr.msk.f32.mxu0 %vm421_vm0, %v36921_v62 }
 0xc00   :  { %33366 = vmatprep.subr.bf16.mxu0 %v36876_v55 }
 0xc02   :  { %29551 = vmatmul.mubr.msk.f32.gmra.mrb[82].mxu0 %vm421_vm0, %v36931_v63 }
 0xc03   :  { %33368 = vmatpush3.bf16.msra.mxu0 %v36876_v55  ;;  %29589 = vmatprep.mubr.msk.f32.mxu0 %vm421_vm0, %v36937_v0 }
 0xc04   :  { %33378 = vmatprep.subr.bf16.mxu0 %v36864_v50 }
 0xc06   :  { %29590 = vmatmul.mubr.msk.f32.vlgmr.msra.gmra.mrb[84].mxu0 %vm421_vm0, %v36947_v1 }
 0xc07   :  { %33380 = vmatpush3.bf16.msra.mxu0 %v36864_v50  ;;  %29592 = vmatprep.mubr.msk.f32.mxu0 %vm421_vm0, %v36953_v3 }
 0xc08   :  { %33382 = vmatprep.subr.bf16.mxu0 %v36876_v55 }
 0xc0a   :  { %29593 = vmatmul.mubr.msk.f32.gmra.mrb[86].mxu0 %vm421_vm0, %v36963_v4 }
 0xc0b   :  { %33384 = vmatpush3.bf16.msra.mxu0 %v36876_v55  ;;  %29617 = vmatprep.mubr.msk.f32.mxu0 %vm421_vm0, %v36969_v5 }
 0xc0c   :  { %33394 = vmatprep.subr.bf16.mxu0 %v36864_v50 }
 0xc0e   :  { %29618 = vmatmul.mubr.msk.f32.vlgmr.msra.gmra.mrb[88].mxu0 %vm421_vm0, %v36979_v6 }
 0xc0f   :  { %33396 = vmatpush3.bf16.msra.mxu0 %v36864_v50  ;;  %29620 = vmatprep.mubr.msk.f32.mxu0 %vm421_vm0, %v36985_v7 }
 0xc10   :  { %33398 = vmatprep.subr.bf16.mxu0 %v36876_v55 }
 0xc12   :  { %29621 = vmatmul.mubr.msk.f32.gmra.mrb[90].mxu0 %vm421_vm0, %v36995_v8 }
 0xc13   :  { %33400 = vmatpush3.bf16.msra.mxu0 %v36876_v55  ;;  %29645 = vmatprep.mubr.msk.f32.mxu0 %vm421_vm0, %v37001_v10 }
 0xc14   :  { %33410 = vmatprep.subr.bf16.mxu0 %v36864_v50 }
 0xc16   :  { %29646 = vmatmul.mubr.msk.f32.vlgmr.msra.gmra.mrb[92].mxu0 %vm421_vm0, %v37011_v11 }
 0xc17   :  { %33412 = vmatpush3.bf16.msra.mxu0 %v36864_v50  ;;  %29648 = vmatprep.mubr.msk.f32.mxu0 %vm421_vm0, %v37017_v12 }
 0xc18   :  { %33414 = vmatprep.subr.bf16.mxu0 %v36876_v55 }
 0xc1a   :  { %29649 = vmatmul.mubr.msk.f32.gmra.mrb[94].mxu0 %vm421_vm0, %v37027_v13 }
 0xc1b   :  { %33416 = vmatpush3.bf16.msra.mxu0 %v36876_v55  ;;  %29673 = vmatprep.mubr.msk.f32.mxu0 %vm421_vm0, %v37033_v14 }
 0xc1c   :  { %33426 = vmatprep.subr.bf16.mxu0 %v36864_v50 }
 0xc1e   :  { %29674 = vmatmul.mubr.msk.f32.vlgmr.msra.gmra.mrb[96].mxu0 %vm421_vm0, %v37043_v15 }
 0xc1f   :  { %33428 = vmatpush3.bf16.msra.mxu0 %v36864_v50  ;;  %29676 = vmatprep.mubr.msk.f32.mxu0 %vm421_vm0, %v37049_v17 }
 0xc20   :  { %33430 = vmatprep.subr.bf16.mxu0 %v36876_v55 }
 0xc22   :  { %29677 = vmatmul.mubr.msk.f32.gmra.mrb[98].mxu0 %vm421_vm0, %v37059_v18 }
 0xc23   :  { %33432 = vmatpush3.bf16.msra.mxu0 %v36876_v55  ;;  %29701 = vmatprep.mubr.msk.f32.mxu0 %vm421_vm0, %v37065_v19 }
 0xc24   :  { %33442 = vmatprep.subr.bf16.mxu0 %v36864_v50 }
 0xc26   :  { %29702 = vmatmul.mubr.msk.f32.vlgmr.msra.gmra.mrb[100].mxu0 %vm421_vm0, %v37075_v20 }
 0xc27   :  { %33444 = vmatpush3.bf16.msra.mxu0 %v36864_v50  ;;  %29704 = vmatprep.mubr.msk.f32.mxu0 %vm421_vm0, %v37081_v52 }
 0xc28   :  { %33446 = vmatprep.subr.bf16.mxu0 %v36876_v55 }
 0xc2a   :  { %29705 = vmatmul.mubr.msk.f32.gmra.mrb[102].mxu0 %vm421_vm0, %v37091_v59 }
 0xc2b   :  { %33448 = vmatpush3.bf16.msra.mxu0 %v36876_v55  ;;  %29729 = vmatprep.mubr.msk.f32.mxu0 %vm421_vm0, %v37097_v2 }
 0xc2c   :  { %33458 = vmatprep.subr.bf16.mxu0 %v36864_v50 }
 0xc2e   :  { %29730 = vmatmul.mubr.msk.f32.vlgmr.msra.gmra.mrb[104].mxu0 %vm421_vm0, %v37107_v9 }
 0xc2f   :  { %33460 = vmatpush3.bf16.msra.mxu0 %v36864_v50  ;;  %29732 = vmatprep.mubr.msk.f32.mxu0 %vm421_vm0, %v37113_v16  ;;  %v24648_v50 = vld [vmem:[%s40541_s7 + $0x40] sm:$0xff] }
 0xc30   :  { %33462 = vmatprep.subr.bf16.mxu0 %v36876_v55 }
 0xc32   :  { %29733 = vmatmul.mubr.msk.f32.gmra.mrb[106].mxu0 %vm421_vm0, %v37123_v23 }
 0xc33   :  { %33464 = vmatpush3.bf16.msra.mxu0 %v36876_v55  ;;  %29757 = vmatprep.mubr.msk.f32.mxu0 %vm421_vm0, %v37129_v30  ;;  %v24649_v55 = vld [vmem:[%s40541_s7 + $0x48] sm:$0xff] }
 0xc34   :  { %v33369_v26 = vpack.c.bf16 %v24649_v55, %v24648_v50  ;;  %v24680_v55 = vld [vmem:[%s40541_s7 + $0x80] sm:$0xff] }
 0xc36   :  { %29758 = vmatmul.mubr.msk.f32.vlgmr.msra.gmra.mrb[108].mxu0 %vm421_vm0, %v37139_v21 }
 0xc37   :  { %29760 = vmatprep.mubr.msk.f32.mxu0 %vm421_vm0, %v37144_v22 }
 0xc3a   :  { %29761 = vmatmul.mubr.msk.f32.gmra.mrb[110].mxu0 %vm421_vm0, %v37153_v34 }
 0xc3b   :  { %29785 = vmatprep.mubr.msk.f32.mxu0 %vm421_vm0, %v36845_v39 }
 0xcc9   :  { %v29535_v35 = vpop.f32.mrb[76].mxu0 }
 0xcca   :  { %v5221_v36 = vpop.f32.mrb[77].mxu0 }
 0xccd   :  { %v29538_v37 = vpop.f32.mrb[78].mxu0 }
 0xcce   :  { %v5231_v38 = vpop.f32.mrb[79].mxu0 }
 0xcd1   :  { %v29549_v43 = vpop.f32.mrb[80].mxu0 }
 0xcd2   :  { %v5327_v47 = vpop.f32.mrb[81].mxu0 }
 0xcd3   :  { %29561 = vmatprep.mubr.msk.f32.mxu1 %vm421_vm0, %v5327_v47  ;;  %v24666_v47 = vld [vmem:[%s40541_s7 + $0x70] sm:$0xff] }
 0xcd4   :  { %29562 = vmatmul.mubr.msk.f32.vlgmr.msra.gmra.mrb[44].mxu1 %vm421_vm0, %v29549_v43 }
 0xcd5   :  { %v29552_v24 = vpop.f32.mrb[82].mxu0  ;;  %33356 = vmatpush3.bf16.msra.mxu1 %v33353_v33  ;;  %v24664_v33 = vld [vmem:[%s40541_s7 + $0x60] sm:$0xff] }
 0xcd6   :  { %v5337_v25 = vpop.f32.mrb[83].mxu0  ;;  %33358 = vmatprep.subr.bf16.mxu1 %v33357_v49 }
 0xcd7   :  { %29564 = vmatprep.mubr.msk.f32.mxu1 %vm421_vm0, %v5337_v25 }
 0xcd8   :  { %29565 = vmatmul.mubr.msk.f32.gmra.mrb[46].mxu1 %vm421_vm0, %v29552_v24  ;;  %v24681_v24 = vld [vmem:[%s40541_s7 + $0x88] sm:$0xff] }
 0xcd9   :  { %33360 = vmatpush3.bf16.msra.mxu1 %v33357_v49  ;;  %29575 = vmatprep.mubr.msk.f32.mxu1 %vm421_vm0, %v5221_v36  ;;  %v29591_v29 = vpop.f32.mrb[84].mxu0  ;;  %v33385_v36 = vpack.c.bf16 %v24665_v40, %v24664_v33  ;;  %v24667_v49 = vld [vmem:[%s40541_s7 + $0x78] sm:$0xff]  ;;  %v33401_v25 = vpack.c.bf16 %v24681_v24, %v24680_v55  ;;  %v24696_v33 = vld [vmem:[%s40541_s7 + $0xa0] sm:$0xff]  ;;  %v24697_v40 = vld [vmem:[%s40541_s7 + $0xa8] sm:$0xff] }
 0xcda   :  { %33370 = vmatprep.subr.bf16.mxu1 %v33369_v26  ;;  %v5628_v32 = vpop.f32.mrb[85].mxu0  ;;  %v24712_v55 = vld [vmem:[%s40541_s7 + $0xc0] sm:$0xff]  ;;  %v24713_v24 = vld [vmem:[%s40541_s7 + $0xc8] sm:$0xff] }
 0xcdc   :  { %29576 = vmatmul.mubr.msk.f32.vlgmr.msra.gmra.mrb[44].mxu1 %vm421_vm0, %v29535_v35 }
 0xcdd   :  { %29578 = vmatprep.mubr.msk.f32.mxu1 %vm421_vm0, %v5231_v38  ;;  %33372 = vmatpush3.bf16.msra.mxu1 %v33369_v26  ;;  %v29594_v41 = vpop.f32.mrb[86].mxu0  ;;  %v33389_v38 = vpack.c.bf16 %v24667_v49, %v24666_v47  ;;  %v24698_v47 = vld [vmem:[%s40541_s7 + $0xb0] sm:$0xff]  ;;  %v24699_v49 = vld [vmem:[%s40541_s7 + $0xb8] sm:$0xff] }
 0xcde   :  { %33374 = vmatprep.subr.bf16.mxu1 %v33373_v31  ;;  %v5638_v43 = vpop.f32.mrb[87].mxu0 }
 0xce0   :  { %29579 = vmatmul.mubr.msk.f32.gmra.mrb[46].mxu1 %vm421_vm0, %v29538_v37 }
 0xce1   :  { %33376 = vmatpush3.bf16.msra.mxu1 %v33373_v31  ;;  %29603 = vmatprep.mubr.msk.f32.mxu1 %vm421_vm0, %v5628_v32  ;;  %v29619_v35 = vpop.f32.mrb[88].mxu0  ;;  %v33405_v31 = vpack.c.bf16 %v24683_v28, %v24682_v27  ;;  %v24714_v27 = vld [vmem:[%s40541_s7 + $0xd0] sm:$0xff]  ;;  %v24715_v28 = vld [vmem:[%s40541_s7 + $0xd8] sm:$0xff] }
 0xce2   :  { %33386 = vmatprep.subr.bf16.mxu1 %v33385_v36  ;;  %v5836_v50 = vpop.f32.mrb[89].mxu0 }
 0xce4   :  { %29604 = vmatmul.mubr.msk.f32.vlgmr.msra.gmra.mrb[44].mxu1 %vm421_vm0, %v29591_v29 }
 0xce5   :  { %33388 = vmatpush3.bf16.msra.mxu1 %v33385_v36  ;;  %29606 = vmatprep.mubr.msk.f32.mxu1 %vm421_vm0, %v5638_v43  ;;  %v29622_v37 = vpop.f32.mrb[90].mxu0  ;;  %v33417_v36 = vpack.c.bf16 %v24697_v40, %v24696_v33  ;;  %v24728_v33 = vld [vmem:[%s40541_s7 + $0xe0] sm:$0xff]  ;;  %v24729_v40 = vld [vmem:[%s40541_s7 + $0xe8] sm:$0xff] }
 0xce6   :  { %33390 = vmatprep.subr.bf16.mxu1 %v33389_v38  ;;  %v5846_v26 = vpop.f32.mrb[91].mxu0 }
 0xce8   :  { %29607 = vmatmul.mubr.msk.f32.gmra.mrb[46].mxu1 %vm421_vm0, %v29594_v41 }
 0xce9   :  { %33392 = vmatpush3.bf16.msra.mxu1 %v33389_v38  ;;  %29631 = vmatprep.mubr.msk.f32.mxu1 %vm421_vm0, %v5836_v50  ;;  %v29647_v29 = vpop.f32.mrb[92].mxu0  ;;  %v33421_v38 = vpack.c.bf16 %v24699_v49, %v24698_v47  ;;  %v24730_v47 = vld [vmem:[%s40541_s7 + $0xf0] sm:$0xff]  ;;  %v24731_v49 = vld [vmem:[%s40541_s7 + $0xf8] sm:$0xff] }
 0xcea   :  { %33402 = vmatprep.subr.bf16.mxu1 %v33401_v25  ;;  %v6044_v32 = vpop.f32.mrb[93].mxu0 }
 0xcec   :  { %29632 = vmatmul.mubr.msk.f32.vlgmr.msra.gmra.mrb[44].mxu1 %vm421_vm0, %v29619_v35 }
 0xced   :  { %33404 = vmatpush3.bf16.msra.mxu1 %v33401_v25  ;;  %29634 = vmatprep.mubr.msk.f32.mxu1 %vm421_vm0, %v5846_v26  ;;  %v29650_v41 = vpop.f32.mrb[94].mxu0  ;;  %v33433_v25 = vpack.c.bf16 %v24713_v24, %v24712_v55  ;;  %v24744_v55 = vld [vmem:[%s40541_s7 + $0x100] sm:$0xff]  ;;  %v24745_v24 = vld [vmem:[%s40541_s7 + $0x108] sm:$0xff] }
 0xcee   :  { %33406 = vmatprep.subr.bf16.mxu1 %v33405_v31  ;;  %v6054_v43 = vpop.f32.mrb[95].mxu0 }
 0xcf0   :  { %29635 = vmatmul.mubr.msk.f32.gmra.mrb[46].mxu1 %vm421_vm0, %v29622_v37 }
 0xcf1   :  { %33408 = vmatpush3.bf16.msra.mxu1 %v33405_v31  ;;  %29659 = vmatprep.mubr.msk.f32.mxu1 %vm421_vm0, %v6044_v32  ;;  %v29675_v35 = vpop.f32.mrb[96].mxu0  ;;  %v33437_v31 = vpack.c.bf16 %v24715_v28, %v24714_v27  ;;  %v24746_v27 = vld [vmem:[%s40541_s7 + $0x110] sm:$0xff]  ;;  %v24747_v28 = vld [vmem:[%s40541_s7 + $0x118] sm:$0xff] }
 0xcf2   :  { %33418 = vmatprep.subr.bf16.mxu1 %v33417_v36  ;;  %v6252_v50 = vpop.f32.mrb[97].mxu0 }
 0xcf4   :  { %29660 = vmatmul.mubr.msk.f32.vlgmr.msra.gmra.mrb[44].mxu1 %vm421_vm0, %v29647_v29 }
 0xcf5   :  { %33420 = vmatpush3.bf16.msra.mxu1 %v33417_v36  ;;  %29662 = vmatprep.mubr.msk.f32.mxu1 %vm421_vm0, %v6054_v43  ;;  %v29678_v37 = vpop.f32.mrb[98].mxu0  ;;  %v33449_v36 = vpack.c.bf16 %v24729_v40, %v24728_v33 }
 0xcf6   :  { %33422 = vmatprep.subr.bf16.mxu1 %v33421_v38  ;;  %v6262_v26 = vpop.f32.mrb[99].mxu0 }
 0xcf8   :  { %29663 = vmatmul.mubr.msk.f32.gmra.mrb[46].mxu1 %vm421_vm0, %v29650_v41 }
 0xcf9   :  { %33424 = vmatpush3.bf16.msra.mxu1 %v33421_v38  ;;  %29687 = vmatprep.mubr.msk.f32.mxu1 %vm421_vm0, %v6252_v50  ;;  %v29703_v29 = vpop.f32.mrb[100].mxu0  ;;  %v33453_v38 = vpack.c.bf16 %v24731_v49, %v24730_v47 }
 0xcfa   :  { %33434 = vmatprep.subr.bf16.mxu1 %v33433_v25  ;;  %v6460_v32 = vpop.f32.mrb[101].mxu0 }
 0xcfc   :  { %29688 = vmatmul.mubr.msk.f32.vlgmr.msra.gmra.mrb[44].mxu1 %vm421_vm0, %v29675_v35 }
 0xcfd   :  { %33436 = vmatpush3.bf16.msra.mxu1 %v33433_v25  ;;  %29690 = vmatprep.mubr.msk.f32.mxu1 %vm421_vm0, %v6262_v26  ;;  %v29706_v41 = vpop.f32.mrb[102].mxu0  ;;  %v33465_v25 = vpack.c.bf16 %v24745_v24, %v24744_v55 }
 0xcfe   :  { %33438 = vmatprep.subr.bf16.mxu1 %v33437_v31  ;;  %v6470_v43 = vpop.f32.mrb[103].mxu0 }
 0xd00   :  { %29691 = vmatmul.mubr.msk.f32.gmra.mrb[46].mxu1 %vm421_vm0, %v29678_v37 }
 0xd01   :  { %33440 = vmatpush3.bf16.msra.mxu1 %v33437_v31  ;;  %29715 = vmatprep.mubr.msk.f32.mxu1 %vm421_vm0, %v6460_v32  ;;  %v29731_v35 = vpop.f32.mrb[104].mxu0  ;;  %v33469_v31 = vpack.c.bf16 %v24747_v28, %v24746_v27 }
 0xd02   :  { %33450 = vmatprep.subr.bf16.mxu1 %v33449_v36  ;;  %v6668_v50 = vpop.f32.mrb[105].mxu0 }
 0xd04   :  { %29716 = vmatmul.mubr.msk.f32.vlgmr.msra.gmra.mrb[44].mxu1 %vm421_vm0, %v29703_v29 }
 0xd05   :  { %33452 = vmatpush3.bf16.msra.mxu1 %v33449_v36  ;;  %29718 = vmatprep.mubr.msk.f32.mxu1 %vm421_vm0, %v6470_v43  ;;  %v29734_v37 = vpop.f32.mrb[106].mxu0 }
 0xd06   :  { %33454 = vmatprep.subr.bf16.mxu1 %v33453_v38  ;;  %v6678_v26 = vpop.f32.mrb[107].mxu0 }
 0xd08   :  { %29719 = vmatmul.mubr.msk.f32.gmra.mrb[46].mxu1 %vm421_vm0, %v29706_v41  ;;  %v24752_v41 = vld [vmem:[%s40542_s8] ss:$0 sm:$0xff] }
 0xd09   :  { %33456 = vmatpush3.bf16.msra.mxu1 %v33453_v38  ;;  %29743 = vmatprep.mubr.msk.f32.mxu1 %vm421_vm0, %v6668_v50  ;;  %v29759_v29 = vpop.f32.mrb[108].mxu0 }
 0xd0a   :  { %33466 = vmatprep.subr.bf16.mxu1 %v33465_v25  ;;  %v6876_v32 = vpop.f32.mrb[109].mxu0 }
 0xd0c   :  { %29744 = vmatmul.mubr.msk.f32.vlgmr.msra.gmra.mrb[44].mxu1 %vm421_vm0, %v29731_v35 }
 0xd0d   :  { %33468 = vmatpush3.bf16.msra.mxu1 %v33465_v25  ;;  %29746 = vmatprep.mubr.msk.f32.mxu1 %vm421_vm0, %v6678_v26  ;;  %v29762_v33 = vpop.f32.mrb[110].mxu0 }
 0xd0e   :  { %33470 = vmatprep.subr.bf16.mxu1 %v33469_v31  ;;  %v6886_v40 = vpop.f32.mrb[111].mxu0 }
 0xd10   :  { %29747 = vmatmul.mubr.msk.f32.gmra.mrb[46].mxu1 %vm421_vm0, %v29734_v37 }
 0xd11   :  { %33472 = vmatpush3.bf16.msra.mxu1 %v33469_v31  ;;  %29771 = vmatprep.mubr.msk.f32.mxu1 %vm421_vm0, %v6876_v32 }
 0xd14   :  { %29772 = vmatmul.mubr.msk.f32.vlgmr.msra.gmra.mrb[44].mxu1 %vm421_vm0, %v29759_v29  ;;  %v24794_v29 = vld [vmem:[%s40541_s7 + $0x188] sm:$0xff] }
 0xd15   :  { %29774 = vmatprep.mubr.msk.f32.mxu1 %vm421_vm0, %v6886_v40  ;;  %v24795_v40 = vld [vmem:[%s40541_s7 + $0x190] sm:$0xff] }
 0xd18   :  { %29775 = vmatmul.mubr.msk.f32.gmra.mrb[46].mxu1 %vm421_vm0, %v29762_v33 }
 0xde7   :  { %v29773_v36 = vpop.f32.mrb[44].mxu1 }
 0xde8   :  { %v7009_v43 = vadd.f32 %v29773_v36, %v24752_v41  ;;  %v6978_v47 = vpop.f32.mrb[45].mxu1 }
 0xde9   :  { %v7008_v49 = vadd.f32 %v24752_v41, %v6978_v47 }
 0xdea   :  { %v7013_v35 = vmax.f32 %v7009_v43, 0.0 }
 0xdeb   :  { %v7012_v38 = vmax.f32 %v7008_v49, 0.0  ;;  %v29776_v50 = vpop.f32.mrb[46].mxu1  ;;  %v24805_v49 = vld [vmem:[%s40541_s7 + $0x1a0] sm:$0xff] }
 0xdec   :  { %v7011_v55 = vadd.f32 %v29776_v50, %v24752_v41  ;;  %v6988_v24 = vpop.f32.mrb[47].mxu1 }
 0xded   :  { %v37306_v37 = vpack.c.bf16 %v7013_v35, %v7012_v38  ;;  %v7010_v25 = vadd.f32 %v24752_v41, %v6988_v24  ;;  %v24796_v41 = vld [vmem:[%s40541_s7 + $0x198] sm:$0xff]  ;;  %v24806_v35 = vld [vmem:[%s40541_s7 + $0x1a8] sm:$0xff]  ;;  %v24807_v24 = vld [vmem:[%s40541_s7 + $0x1b0] sm:$0xff] }
 0xdee   :  { %v7015_v26 = vmax.f32 %v7011_v55, 0.0  ;;  %v33533_v43 = vpack.c.bf16 %v24796_v41, %v24795_v40  ;;  %v33545_v50 = vpack.c.bf16 %v24806_v35, %v24805_v49  ;;  %v24855_v41 = vld [vmem:[%s40541_s7 + $0x230] sm:$0xff] }
 0xdef   :  { %v7014_v27 = vmax.f32 %v7010_v25, 0.0  ;;  %33474 = vmatprep.subr.bf16.mxu0 %v37306_v37 }
 0xdf0   :  { %33476 = vmatpush3.bf16.msra.mxu0 %v37306_v37 }
 0xdf1   :  { %v37310_v28 = vpack.c.bf16 %v7015_v26, %v7014_v27 }
 0xdf3   :  { %33478 = vmatprep.subr.bf16.mxu0 %v37310_v28 }
 0xdf4   :  { %33480 = vmatpush3.bf16.msra.mxu0 %v37310_v28 }
 0xdf5   :  { %33482 = vmatprep.subr.bf16.mxu0 %v37306_v37 }
 0xdf7   :  { %29786 = vmatmul.mubr.msk.f32.vlgmr.msra.gmra.mrb[112].mxu0 %vm421_vm0, %v36883_v56  ;;  %v24765_v56 = vld [vmem:[%s40541_s7 + $0x140] sm:$0xff] }
 0xdf8   :  { %33484 = vmatpush3.bf16.msra.mxu0 %v37306_v37  ;;  %29788 = vmatprep.mubr.msk.f32.mxu0 %vm421_vm0, %v36889_v57  ;;  %v24766_v57 = vld [vmem:[%s40541_s7 + $0x148] sm:$0xff] }
 0xdf9   :  { %33486 = vmatprep.subr.bf16.mxu0 %v37310_v28 }
 0xdfb   :  { %29789 = vmatmul.mubr.msk.f32.gmra.mrb[114].mxu0 %vm421_vm0, %v36899_v58  ;;  %v33489_v58 = vpack.c.bf16 %v24766_v57, %v24765_v56  ;;  %v24818_v56 = vld [vmem:[%s40541_s7 + $0x1c8] sm:$0xff] }
 0xdfc   :  { %33488 = vmatpush3.bf16.msra.mxu0 %v37310_v28  ;;  %29799 = vmatprep.mubr.msk.f32.mxu0 %vm421_vm0, %v36905_v60  ;;  %v24767_v60 = vld [vmem:[%s40541_s7 + $0x150] sm:$0xff] }
 0xdfd   :  { %33506 = vmatprep.subr.bf16.mxu0 %v37306_v37  ;;  %33490 = vmatprep.subr.bf16.mxu1 %v33489_v58 }
 0xdfe   :  { %33492 = vmatpush3.bf16.msra.mxu1 %v33489_v58 }
 0xdff   :  { %29800 = vmatmul.mubr.msk.f32.vlgmr.msra.gmra.mrb[116].mxu0 %vm421_vm0, %v36915_v61  ;;  %v24768_v61 = vld [vmem:[%s40541_s7 + $0x158] sm:$0xff] }
 0xe00   :  { %33508 = vmatpush3.bf16.msra.mxu0 %v37306_v37  ;;  %29802 = vmatprep.mubr.msk.f32.mxu0 %vm421_vm0, %v36921_v62  ;;  %v24757_v62 = vld [vmem:[%s40541_s7 + $0x120] sm:$0xff] }
 0xe01   :  { %33510 = vmatprep.subr.bf16.mxu0 %v37310_v28 }
 0xe03   :  { %29803 = vmatmul.mubr.msk.f32.gmra.mrb[118].mxu0 %vm421_vm0, %v36931_v63  ;;  %v24758_v63 = vld [vmem:[%s40541_s7 + $0x128] sm:$0xff] }
 0xe04   :  { %33512 = vmatpush3.bf16.msra.mxu0 %v37310_v28  ;;  %29841 = vmatprep.mubr.msk.f32.mxu0 %vm421_vm0, %v36937_v0  ;;  %v33497_v0 = vpack.c.bf16 %v24758_v63, %v24757_v62 }
 0xe05   :  { %33522 = vmatprep.subr.bf16.mxu0 %v37306_v37 }
 0xe07   :  { %29842 = vmatmul.mubr.msk.f32.vlgmr.msra.gmra.mrb[120].mxu0 %vm421_vm0, %v36947_v1 }
 0xe08   :  { %33524 = vmatpush3.bf16.msra.mxu0 %v37306_v37  ;;  %29844 = vmatprep.mubr.msk.f32.mxu0 %vm421_vm0, %v36953_v3 }
 0xe09   :  { %33526 = vmatprep.subr.bf16.mxu0 %v37310_v28 }
 0xe0b   :  { %29845 = vmatmul.mubr.msk.f32.gmra.mrb[122].mxu0 %vm421_vm0, %v36963_v4 }
 0xe0c   :  { %33528 = vmatpush3.bf16.msra.mxu0 %v37310_v28  ;;  %29869 = vmatprep.mubr.msk.f32.mxu0 %vm421_vm0, %v36969_v5 }
 0xe0d   :  { %33538 = vmatprep.subr.bf16.mxu0 %v37306_v37 }
 0xe0f   :  { %29870 = vmatmul.mubr.msk.f32.vlgmr.msra.gmra.mrb[124].mxu0 %vm421_vm0, %v36979_v6  ;;  %v24759_v6 = vld [vmem:[%s40541_s7 + $0x130] sm:$0xff] }
 0xe10   :  { %33540 = vmatpush3.bf16.msra.mxu0 %v37306_v37  ;;  %29872 = vmatprep.mubr.msk.f32.mxu0 %vm421_vm0, %v36985_v7  ;;  %v24760_v7 = vld [vmem:[%s40541_s7 + $0x138] sm:$0xff] }
 0xe11   :  { %33542 = vmatprep.subr.bf16.mxu0 %v37310_v28 }
 0xe13   :  { %29873 = vmatmul.mubr.msk.f32.gmra.mrb[126].mxu0 %vm421_vm0, %v36995_v8 }
 0xe14   :  { %33544 = vmatpush3.bf16.msra.mxu0 %v37310_v28  ;;  %29897 = vmatprep.mubr.msk.f32.mxu0 %vm421_vm0, %v37001_v10 }
 0xe15   :  { %33554 = vmatprep.subr.bf16.mxu0 %v37306_v37 }
 0xe17   :  { %29898 = vmatmul.mubr.msk.f32.vlgmr.msra.gmra.mrb[128].mxu0 %vm421_vm0, %v37011_v11  ;;  %v33501_v11 = vpack.c.bf16 %v24760_v7, %v24759_v6  ;;  %v24831_v7 = vld [vmem:[%s40541_s7 + $0x1f0] sm:$0xff] }
 0xe18   :  { %33556 = vmatpush3.bf16.msra.mxu0 %v37306_v37  ;;  %29900 = vmatprep.mubr.msk.f32.mxu0 %vm421_vm0, %v37017_v12  ;;  %v24781_v12 = vld [vmem:[%s40541_s7 + $0x160] sm:$0xff] }
 0xe19   :  { %33558 = vmatprep.subr.bf16.mxu0 %v37310_v28 }
 0xe1b   :  { %29901 = vmatmul.mubr.msk.f32.gmra.mrb[130].mxu0 %vm421_vm0, %v37027_v13  ;;  %v24782_v13 = vld [vmem:[%s40541_s7 + $0x168] sm:$0xff] }
 0xe1c   :  { %33560 = vmatpush3.bf16.msra.mxu0 %v37310_v28  ;;  %29925 = vmatprep.mubr.msk.f32.mxu0 %vm421_vm0, %v37033_v14 }
 0xe1d   :  { %33570 = vmatprep.subr.bf16.mxu0 %v37306_v37 }
 0xe1f   :  { %29926 = vmatmul.mubr.msk.f32.vlgmr.msra.gmra.mrb[132].mxu0 %vm421_vm0, %v37043_v15 }
 0xe20   :  { %33572 = vmatpush3.bf16.msra.mxu0 %v37306_v37  ;;  %29928 = vmatprep.mubr.msk.f32.mxu0 %vm421_vm0, %v37049_v17  ;;  %v33513_v17 = vpack.c.bf16 %v24782_v13, %v24781_v12  ;;  %v24841_v13 = vld [vmem:[%s40541_s7 + $0x200] sm:$0xff] }
 0xe21   :  { %33574 = vmatprep.subr.bf16.mxu0 %v37310_v28 }
 0xe23   :  { %29929 = vmatmul.mubr.msk.f32.gmra.mrb[134].mxu0 %vm421_vm0, %v37059_v18  ;;  %v24783_v18 = vld [vmem:[%s40541_s7 + $0x170] sm:$0xff] }
 0xe24   :  { %33576 = vmatpush3.bf16.msra.mxu0 %v37310_v28  ;;  %29953 = vmatprep.mubr.msk.f32.mxu0 %vm421_vm0, %v37065_v19  ;;  %v24784_v19 = vld [vmem:[%s40541_s7 + $0x178] sm:$0xff] }
 0xe25   :  { %33586 = vmatprep.subr.bf16.mxu0 %v37306_v37 }
 0xe27   :  { %29954 = vmatmul.mubr.msk.f32.vlgmr.msra.gmra.mrb[136].mxu0 %vm421_vm0, %v37075_v20 }
 0xe28   :  { %33588 = vmatpush3.bf16.msra.mxu0 %v37306_v37  ;;  %29956 = vmatprep.mubr.msk.f32.mxu0 %vm421_vm0, %v37081_v52  ;;  %v33517_v52 = vpack.c.bf16 %v24784_v19, %v24783_v18  ;;  %v24843_v19 = vld [vmem:[%s40541_s7 + $0x210] sm:$0xff] }
 0xe29   :  { %33590 = vmatprep.subr.bf16.mxu0 %v37310_v28 }
 0xe2b   :  { %29957 = vmatmul.mubr.msk.f32.gmra.mrb[138].mxu0 %vm421_vm0, %v37091_v59 }
 0xe2c   :  { %33592 = vmatpush3.bf16.msra.mxu0 %v37310_v28  ;;  %29981 = vmatprep.mubr.msk.f32.mxu0 %vm421_vm0, %v37097_v2  ;;  %v24793_v2 = vld [vmem:[%s40541_s7 + $0x180] sm:$0xff] }
 0xe2d   :  { %33602 = vmatprep.subr.bf16.mxu0 %v37306_v37  ;;  %v33529_v32 = vpack.c.bf16 %v24794_v29, %v24793_v2  ;;  %v24853_v29 = vld [vmem:[%s40541_s7 + $0x220] sm:$0xff] }
 0xe2f   :  { %29982 = vmatmul.mubr.msk.f32.vlgmr.msra.gmra.mrb[140].mxu0 %vm421_vm0, %v37107_v9 }
 0xe30   :  { %33604 = vmatpush3.bf16.msra.mxu0 %v37306_v37  ;;  %29984 = vmatprep.mubr.msk.f32.mxu0 %vm421_vm0, %v37113_v16  ;;  %v24808_v37 = vld [vmem:[%s40541_s7 + $0x1b8] sm:$0xff] }
 0xe31   :  { %33606 = vmatprep.subr.bf16.mxu0 %v37310_v28  ;;  %v33549_v26 = vpack.c.bf16 %v24808_v37, %v24807_v24 }
 0xe33   :  { %29985 = vmatmul.mubr.msk.f32.gmra.mrb[142].mxu0 %vm421_vm0, %v37123_v23 }
 0xe34   :  { %33608 = vmatpush3.bf16.msra.mxu0 %v37310_v28  ;;  %30009 = vmatprep.mubr.msk.f32.mxu0 %vm421_vm0, %v37129_v30  ;;  %v24817_v28 = vld [vmem:[%s40541_s7 + $0x1c0] sm:$0xff] }
 0xe35   :  { %v33561_v58 = vpack.c.bf16 %v24818_v56, %v24817_v28 }
 0xe37   :  { %30010 = vmatmul.mubr.msk.f32.vlgmr.msra.gmra.mrb[144].mxu0 %vm421_vm0, %v37139_v21 }
 0xe38   :  { %30012 = vmatprep.mubr.msk.f32.mxu0 %vm421_vm0, %v37144_v22 }
 0xe3b   :  { %30013 = vmatmul.mubr.msk.f32.gmra.mrb[146].mxu0 %vm421_vm0, %v37153_v34 }
 0xe3c   :  { %30037 = vmatprep.mubr.msk.f32.mxu0 %vm421_vm0, %v36845_v39  ;;  %v33493_v39 = vpack.c.bf16 %v24768_v61, %v24767_v60  ;;  %v24819_v61 = vld [vmem:[%s40541_s7 + $0x1d0] sm:$0xff] }
 0xe3e   :  { %33494 = vmatprep.subr.bf16.mxu1 %v33493_v39 }
 0xe3f   :  { %33496 = vmatpush3.bf16.msra.mxu1 %v33493_v39  ;;  %v24820_v39 = vld [vmem:[%s40541_s7 + $0x1d8] sm:$0xff] }
 0xe40   :  { %33498 = vmatprep.subr.bf16.mxu1 %v33497_v0  ;;  %v33565_v63 = vpack.c.bf16 %v24820_v39, %v24819_v61 }
 0xeca   :  { %v29787_v1 = vpop.f32.mrb[112].mxu0 }
 0xecb   :  { %v7082_v3 = vpop.f32.mrb[113].mxu0 }
 0xece   :  { %v29790_v4 = vpop.f32.mrb[114].mxu0 }
 0xecf   :  { %v7092_v5 = vpop.f32.mrb[115].mxu0 }
 0xed2   :  { %v29801_v8 = vpop.f32.mrb[116].mxu0 }
 0xed3   :  { %v7172_v10 = vpop.f32.mrb[117].mxu0 }
 0xed4   :  { %29813 = vmatprep.mubr.msk.f32.mxu1 %vm421_vm0, %v7172_v10 }
 0xed5   :  { %29814 = vmatmul.mubr.msk.f32.vlgmr.msra.gmra.mrb[48].mxu1 %vm421_vm0, %v29801_v8  ;;  %v24832_v8 = vld [vmem:[%s40541_s7 + $0x1f8] sm:$0xff] }
 0xed6   :  { %v29804_v14 = vpop.f32.mrb[118].mxu0  ;;  %33500 = vmatpush3.bf16.msra.mxu1 %v33497_v0 }
 0xed7   :  { %v7182_v15 = vpop.f32.mrb[119].mxu0  ;;  %33502 = vmatprep.subr.bf16.mxu1 %v33501_v11 }
 0xed8   :  { %29816 = vmatprep.mubr.msk.f32.mxu1 %vm421_vm0, %v7182_v15 }
 0xed9   :  { %29817 = vmatmul.mubr.msk.f32.gmra.mrb[50].mxu1 %vm421_vm0, %v29804_v14  ;;  %v24842_v14 = vld [vmem:[%s40541_s7 + $0x208] sm:$0xff] }
 0xeda   :  { %33504 = vmatpush3.bf16.msra.mxu1 %v33501_v11  ;;  %29827 = vmatprep.mubr.msk.f32.mxu1 %vm421_vm0, %v7082_v3  ;;  %v29843_v20 = vpop.f32.mrb[120].mxu0  ;;  %v24830_v3 = vld [vmem:[%s40541_s7 + $0x1e8] sm:$0xff]  ;;  %v33581_v11 = vpack.c.bf16 %v24832_v8, %v24831_v7  ;;  %v37685_v7 = vld [vmem:[%s40540_s6 + $0x60] sm:$0xff] }
 0xedb   :  { %33514 = vmatprep.subr.bf16.mxu1 %v33513_v17  ;;  %v7456_v59 = vpop.f32.mrb[121].mxu0  ;;  %v37693_v8 = vld [vmem:[%s40540_s6 + $0x68] sm:$0xff] }
 0xedd   :  { %29828 = vmatmul.mubr.msk.f32.vlgmr.msra.gmra.mrb[48].mxu1 %vm421_vm0, %v29787_v1  ;;  %v24829_v1 = vld [vmem:[%s40541_s7 + $0x1e0] sm:$0xff] }
 0xede   :  { %29830 = vmatprep.mubr.msk.f32.mxu1 %vm421_vm0, %v7092_v5  ;;  %33516 = vmatpush3.bf16.msra.mxu1 %v33513_v17  ;;  %v29846_v31 = vpop.f32.mrb[122].mxu0  ;;  %v33577_v5 = vpack.c.bf16 %v24830_v3, %v24829_v1  ;;  %v33593_v17 = vpack.c.bf16 %v24842_v14, %v24841_v13  ;;  %v37645_v1 = vld [vmem:[%s40540_s6 + $0x38] sm:$0xff]  ;;  %v37653_v3 = vld [vmem:[%s40540_s6 + $0x40] sm:$0xff]  ;;  %v37725_v13 = vld [vmem:[%s40540_s6 + $0x88] sm:$0xff] }
 0xedf   :  { %33518 = vmatprep.subr.bf16.mxu1 %v33517_v52  ;;  %v7466_v33 = vpop.f32.mrb[123].mxu0  ;;  %v37733_v14 = vld [vmem:[%s40540_s6 + $0x90] sm:$0xff] }
 0xee1   :  { %29831 = vmatmul.mubr.msk.f32.gmra.mrb[50].mxu1 %vm421_vm0, %v29790_v4 }
 0xee2   :  { %33520 = vmatpush3.bf16.msra.mxu1 %v33517_v52  ;;  %29855 = vmatprep.mubr.msk.f32.mxu1 %vm421_vm0, %v7456_v59  ;;  %v29871_v36 = vpop.f32.mrb[124].mxu0 }
 0xee3   :  { %33530 = vmatprep.subr.bf16.mxu1 %v33529_v32  ;;  %v7647_v47 = vpop.f32.mrb[125].mxu0 }
 0xee5   :  { %29856 = vmatmul.mubr.msk.f32.vlgmr.msra.gmra.mrb[48].mxu1 %vm421_vm0, %v29843_v20  ;;  %v24844_v20 = vld [vmem:[%s40541_s7 + $0x218] sm:$0xff] }
 0xee6   :  { %33532 = vmatpush3.bf16.msra.mxu1 %v33529_v32  ;;  %29858 = vmatprep.mubr.msk.f32.mxu1 %vm421_vm0, %v7466_v33  ;;  %v29874_v38 = vpop.f32.mrb[126].mxu0  ;;  %v33597_v59 = vpack.c.bf16 %v24844_v20, %v24843_v19  ;;  %v37765_v19 = vld [vmem:[%s40540_s6 + $0xb0] sm:$0xff]  ;;  %v37773_v20 = vld [vmem:[%s40540_s6 + $0xb8] sm:$0xff] }
 0xee7   :  { %33534 = vmatprep.subr.bf16.mxu1 %v33533_v43  ;;  %v7657_v55 = vpop.f32.mrb[127].mxu0 }
 0xee9   :  { %29859 = vmatmul.mubr.msk.f32.gmra.mrb[50].mxu1 %vm421_vm0, %v29846_v31  ;;  %v24854_v31 = vld [vmem:[%s40541_s7 + $0x228] sm:$0xff] }
 0xeea   :  { %33536 = vmatpush3.bf16.msra.mxu1 %v33533_v43  ;;  %29883 = vmatprep.mubr.msk.f32.mxu1 %vm421_vm0, %v7647_v47  ;;  %v29899_v25 = vpop.f32.mrb[128].mxu0  ;;  %v33609_v33 = vpack.c.bf16 %v24854_v31, %v24853_v29  ;;  %v37805_v29 = vld [vmem:[%s40540_s6 + $0xd8] sm:$0xff]  ;;  %v37813_v31 = vld [vmem:[%s40540_s6 + $0xe0] sm:$0xff] }
 0xeeb   :  { %33546 = vmatprep.subr.bf16.mxu1 %v33545_v50  ;;  %v7838_v27 = vpop.f32.mrb[129].mxu0 }
 0xeed   :  { %29884 = vmatmul.mubr.msk.f32.vlgmr.msra.gmra.mrb[48].mxu1 %vm421_vm0, %v29871_v36  ;;  %v24856_v36 = vld [vmem:[%s40541_s7 + $0x238] sm:$0xff] }
 0xeee   :  { %33548 = vmatpush3.bf16.msra.mxu1 %v33545_v50  ;;  %29886 = vmatprep.mubr.msk.f32.mxu1 %vm421_vm0, %v7657_v55  ;;  %v29902_v57 = vpop.f32.mrb[130].mxu0  ;;  %v33613_v47 = vpack.c.bf16 %v24856_v36, %v24855_v41  ;;  %v24862_v50 = vld [vmem:[%s40542_s8 + $0x1] ss:$0 sm:$0xff] }
 0xeef   :  { %33550 = vmatprep.subr.bf16.mxu1 %v33549_v26  ;;  %v7848_v60 = vpop.f32.mrb[131].mxu0 }
 0xef1   :  { %29887 = vmatmul.mubr.msk.f32.gmra.mrb[50].mxu1 %vm421_vm0, %v29874_v38 }
 0xef2   :  { %33552 = vmatpush3.bf16.msra.mxu1 %v33549_v26  ;;  %29911 = vmatprep.mubr.msk.f32.mxu1 %vm421_vm0, %v7838_v27  ;;  %v29927_v62 = vpop.f32.mrb[132].mxu0 }
 0xef3   :  { %33562 = vmatprep.subr.bf16.mxu1 %v33561_v58  ;;  %v8029_v0 = vpop.f32.mrb[133].mxu0 }
 0xef5   :  { %29912 = vmatmul.mubr.msk.f32.vlgmr.msra.gmra.mrb[48].mxu1 %vm421_vm0, %v29899_v25 }
 0xef6   :  { %33564 = vmatpush3.bf16.msra.mxu1 %v33561_v58  ;;  %29914 = vmatprep.mubr.msk.f32.mxu1 %vm421_vm0, %v7848_v60  ;;  %v29930_v4 = vpop.f32.mrb[134].mxu0 }
 0xef7   :  { %33566 = vmatprep.subr.bf16.mxu1 %v33565_v63  ;;  %v8039_v6 = vpop.f32.mrb[135].mxu0 }
 0xef9   :  { %29915 = vmatmul.mubr.msk.f32.gmra.mrb[50].mxu1 %vm421_vm0, %v29902_v57 }
 0xefa   :  { %33568 = vmatpush3.bf16.msra.mxu1 %v33565_v63  ;;  %29939 = vmatprep.mubr.msk.f32.mxu1 %vm421_vm0, %v8029_v0  ;;  %v29955_v10 = vpop.f32.mrb[136].mxu0 }
 0xefb   :  { %33578 = vmatprep.subr.bf16.mxu1 %v33577_v5  ;;  %v8220_v12 = vpop.f32.mrb[137].mxu0 }
 0xefd   :  { %29940 = vmatmul.mubr.msk.f32.vlgmr.msra.gmra.mrb[48].mxu1 %vm421_vm0, %v29927_v62 }
 0xefe   :  { %33580 = vmatpush3.bf16.msra.mxu1 %v33577_v5  ;;  %29942 = vmatprep.mubr.msk.f32.mxu1 %vm421_vm0, %v8039_v6  ;;  %v29958_v15 = vpop.f32.mrb[138].mxu0  ;;  %v37669_v5 = vld [vmem:[%s40540_s6 + $0x50] sm:$0xff]  ;;  %v37677_v6 = vld [vmem:[%s40540_s6 + $0x58] sm:$0xff] }
 0xeff   :  { %33582 = vmatprep.subr.bf16.mxu1 %v33581_v11  ;;  %v8230_v18 = vpop.f32.mrb[139].mxu0 }
 0xf01   :  { %29943 = vmatmul.mubr.msk.f32.gmra.mrb[50].mxu1 %vm421_vm0, %v29930_v4  ;;  %v37661_v4 = vld [vmem:[%s40540_s6 + $0x48] sm:$0xff] }
 0xf02   :  { %33584 = vmatpush3.bf16.msra.mxu1 %v33581_v11  ;;  %29967 = vmatprep.mubr.msk.f32.mxu1 %vm421_vm0, %v8220_v12  ;;  %v29983_v52 = vpop.f32.mrb[140].mxu0  ;;  %v37709_v11 = vld [vmem:[%s40540_s6 + $0x78] sm:$0xff]  ;;  %v37717_v12 = vld [vmem:[%s40540_s6 + $0x80] sm:$0xff] }
 0xf03   :  { %33594 = vmatprep.subr.bf16.mxu1 %v33593_v17  ;;  %v8411_v2 = vpop.f32.mrb[141].mxu0 }
 0xf05   :  { %29968 = vmatmul.mubr.msk.f32.vlgmr.msra.gmra.mrb[48].mxu1 %vm421_vm0, %v29955_v10  ;;  %v37701_v10 = vld [vmem:[%s40540_s6 + $0x70] sm:$0xff] }
 0xf06   :  { %33596 = vmatpush3.bf16.msra.mxu1 %v33593_v17  ;;  %29970 = vmatprep.mubr.msk.f32.mxu1 %vm421_vm0, %v8230_v18  ;;  %v29986_v32 = vpop.f32.mrb[142].mxu0  ;;  %v37749_v17 = vld [vmem:[%s40540_s6 + $0xa0] sm:$0xff]  ;;  %v37757_v18 = vld [vmem:[%s40540_s6 + $0xa8] sm:$0xff] }
 0xf07   :  { %33598 = vmatprep.subr.bf16.mxu1 %v33597_v59  ;;  %v8421_v40 = vpop.f32.mrb[143].mxu0 }
 0xf09   :  { %29971 = vmatmul.mubr.msk.f32.gmra.mrb[50].mxu1 %vm421_vm0, %v29958_v15  ;;  %v37741_v15 = vld [vmem:[%s40540_s6 + $0x98] sm:$0xff] }
 0xf0a   :  { %33600 = vmatpush3.bf16.msra.mxu1 %v33597_v59  ;;  %29995 = vmatprep.mubr.msk.f32.mxu1 %vm421_vm0, %v8411_v2  ;;  %v30011_v43 = vpop.f32.mrb[144].mxu0  ;;  %v37789_v59 = vld [vmem:[%s40540_s6 + $0xc8] sm:$0xff]  ;;  %v37797_v2 = vld [vmem:[%s40540_s6 + $0xd0] sm:$0xff] }
 0xf0b   :  { %33610 = vmatprep.subr.bf16.mxu1 %v33609_v33  ;;  %v8602_v49 = vpop.f32.mrb[145].mxu0 }
 0xf0d   :  { %29996 = vmatmul.mubr.msk.f32.vlgmr.msra.gmra.mrb[48].mxu1 %vm421_vm0, %v29983_v52  ;;  %v37781_v52 = vld [vmem:[%s40540_s6 + $0xc0] sm:$0xff] }
 0xf0e   :  { %33612 = vmatpush3.bf16.msra.mxu1 %v33609_v33  ;;  %29998 = vmatprep.mubr.msk.f32.mxu1 %vm421_vm0, %v8421_v40  ;;  %v30014_v35 = vpop.f32.mrb[146].mxu0  ;;  %v24868_v33 = vld [vmem:[%s40541_s7 + $0x248] sm:$0xff] }
 0xf0f   :  { %33614 = vmatprep.subr.bf16.mxu1 %v33613_v47  ;;  %v8612_v38 = vpop.f32.mrb[147].mxu0 }
 0xf11   :  { %29999 = vmatmul.mubr.msk.f32.gmra.mrb[50].mxu1 %vm421_vm0, %v29986_v32  ;;  %v24867_v32 = vld [vmem:[%s40541_s7 + $0x240] sm:$0xff] }
 0xf12   :  { %33616 = vmatpush3.bf16.msra.mxu1 %v33613_v47  ;;  %30023 = vmatprep.mubr.msk.f32.mxu1 %vm421_vm0, %v8602_v49  ;;  %v33641_v40 = vpack.c.bf16 %v24868_v33, %v24867_v32  ;;  %v24869_v49 = vld [vmem:[%s40541_s7 + $0x250] sm:$0xff]  ;;  %v24915_v33 = vld [vmem:[%s40541_s7 + $0x2c0] sm:$0xff] }
 0xf15   :  { %30024 = vmatmul.mubr.msk.f32.vlgmr.msra.gmra.mrb[48].mxu1 %vm421_vm0, %v30011_v43 }
 0xf16   :  { %30026 = vmatprep.mubr.msk.f32.mxu1 %vm421_vm0, %v8612_v38 }
 0xf19   :  { %30027 = vmatmul.mubr.msk.f32.gmra.mrb[50].mxu1 %vm421_vm0, %v30014_v35  ;;  %v24870_v35 = vld [vmem:[%s40541_s7 + $0x258] sm:$0xff] }
 0xfe8   :  { %v30025_v55 = vpop.f32.mrb[48].mxu1 }
 0xfe9   :  { %v8736_v24 = vadd.f32 %v30025_v55, %v24862_v50  ;;  %v8704_v37 = vpop.f32.mrb[49].mxu1  ;;  %v33645_v55 = vpack.c.bf16 %v24870_v35, %v24869_v49  ;;  %v24918_v49 = vld [vmem:[%s40541_s7 + $0x2d8] sm:$0xff] }
 0xfea   :  { %v8735_v25 = vadd.f32 %v24862_v50, %v8704_v37  ;;  %v24892_v37 = vld [vmem:[%s40541_s7 + $0x288] sm:$0xff] }
 0xfeb   :  { %v8740_v26 = vmax.f32 %v8736_v24, 0.0  ;;  %v24891_v24 = vld [vmem:[%s40541_s7 + $0x280] sm:$0xff] }
 0xfec   :  { %v8739_v27 = vmax.f32 %v8735_v25, 0.0  ;;  %v30028_v28 = vpop.f32.mrb[50].mxu1 }
 0xfed   :  { %v37567_v56 = vadd.f32 %v8740_v26, %v5136_v45  ;;  %v8738_v57 = vadd.f32 %v30028_v28, %v24862_v50  ;;  %v8714_v58 = vpop.f32.mrb[51].mxu1  ;;  %v37597_v45 = vld [vmem:[%s40540_s6 + $0x8] sm:$0xff]  ;;  %v24893_v28 = vld [vmem:[%s40541_s7 + $0x290] sm:$0xff] }
 0xfee   :  { %v37571_v60 = vadd.f32 %v8739_v27, %v5135_v46  ;;  %v8737_v61 = vadd.f32 %v24862_v50, %v8714_v58  ;;  %v37605_v46 = vld [vmem:[%s40540_s6 + $0x10] sm:$0xff]  ;;  %v33657_v27 = vpack.c.bf16 %v24892_v37, %v24891_v24  ;;  %v24928_v24 = vld [vmem:[%s40541_s7 + $0x2e8] sm:$0xff] }
 0xfef   :  { %v8742_v39 = vmax.f32 %v8738_v57, 0.0  ;;  %v24894_v57 = vld [vmem:[%s40541_s7 + $0x298] sm:$0xff] }
 0xff0   :  { %v37575_v62 = vpack.c.bf16 %v37567_v56, %v37571_v60  ;;  %v8741_v63 = vmax.f32 %v8737_v61, 0.0  ;;  %v33661_v61 = vpack.c.bf16 %v24894_v57, %v24893_v28  ;;  %v24930_v28 = vld [vmem:[%s40541_s7 + $0x2f8] sm:$0xff] }
 0xff1   :  { %v37579_v0 = vadd.f32 %v8742_v39, %v5138_v53  ;;  %v37629_v53 = vld [vmem:[%s40540_s6 + $0x28] sm:$0xff] }
 0xff2   :  { %v37583_v42 = vadd.f32 %v8741_v63, %v5137_v54  ;;  %33618 = vmatprep.subr.bf16.mxu0 %v37575_v62  ;;  %v37637_v54 = vld [vmem:[%s40540_s6 + $0x30] sm:$0xff]  ;;  %v24904_v63 = vld [vmem:[%s40541_s7 + $0x2a8] sm:$0xff] }
 0xff3   :  { %33620 = vmatpush3.bf16.msra.mxu0 %v37575_v62 }
 0xff4   :  { %v37589_v44 = vpack.c.bf16 %v37579_v0, %v37583_v42 }
 0xff6   :  { %33622 = vmatprep.subr.bf16.mxu0 %v37589_v44 }
 0xff7   :  { %33624 = vmatpush3.bf16.msra.mxu0 %v37589_v44 }
 0xff8   :  { %33626 = vmatprep.subr.bf16.mxu0 %v37575_v62 }
 0xffa   :  { %30038 = vmatmul.mubr.msk.f32.vlgmr.msra.gmra.mrb[148].mxu0 %vm421_vm0, %v37597_v45 }
 0xffb   :  { %33628 = vmatpush3.bf16.msra.mxu0 %v37575_v62  ;;  %30040 = vmatprep.mubr.msk.f32.mxu0 %vm421_vm0, %v37605_v46 }
 0xffc   :  { %33630 = vmatprep.subr.bf16.mxu0 %v37589_v44 }
 0xffe   :  { %30041 = vmatmul.mubr.msk.f32.gmra.mrb[150].mxu0 %vm421_vm0, %v37613_v48 }
 0xfff   :  { %33632 = vmatpush3.bf16.msra.mxu0 %v37589_v44  ;;  %30051 = vmatprep.mubr.msk.f32.mxu0 %vm421_vm0, %v37621_v51 }
0x1000   :  { %33650 = vmatprep.subr.bf16.mxu0 %v37575_v62 }
0x1002   :  { %30052 = vmatmul.mubr.msk.f32.vlgmr.msra.gmra.mrb[152].mxu0 %vm421_vm0, %v37629_v53 }
0x1003   :  { %33652 = vmatpush3.bf16.msra.mxu0 %v37575_v62  ;;  %30054 = vmatprep.mubr.msk.f32.mxu0 %vm421_vm0, %v37637_v54 }
0x1004   :  { %33654 = vmatprep.subr.bf16.mxu0 %v37589_v44 }
0x1006   :  { %30055 = vmatmul.mubr.msk.f32.gmra.mrb[154].mxu0 %vm421_vm0, %v37645_v1 }
0x1007   :  { %33656 = vmatpush3.bf16.msra.mxu0 %v37589_v44  ;;  %30093 = vmatprep.mubr.msk.f32.mxu0 %vm421_vm0, %v37653_v3 }
0x1008   :  { %33666 = vmatprep.subr.bf16.mxu0 %v37575_v62 }
0x100a   :  { %30094 = vmatmul.mubr.msk.f32.vlgmr.msra.gmra.mrb[156].mxu0 %vm421_vm0, %v37661_v4 }
0x100b   :  { %33668 = vmatpush3.bf16.msra.mxu0 %v37575_v62  ;;  %30096 = vmatprep.mubr.msk.f32.mxu0 %vm421_vm0, %v37669_v5 }
0x100c   :  { %33670 = vmatprep.subr.bf16.mxu0 %v37589_v44 }
0x100e   :  { %30097 = vmatmul.mubr.msk.f32.gmra.mrb[158].mxu0 %vm421_vm0, %v37677_v6 }
0x100f   :  { %33672 = vmatpush3.bf16.msra.mxu0 %v37589_v44  ;;  %30121 = vmatprep.mubr.msk.f32.mxu0 %vm421_vm0, %v37685_v7 }
0x1010   :  { %33682 = vmatprep.subr.bf16.mxu0 %v37575_v62 }
0x1012   :  { %30122 = vmatmul.mubr.msk.f32.vlgmr.msra.gmra.mrb[160].mxu0 %vm421_vm0, %v37693_v8 }
0x1013   :  { %33684 = vmatpush3.bf16.msra.mxu0 %v37575_v62  ;;  %30124 = vmatprep.mubr.msk.f32.mxu0 %vm421_vm0, %v37701_v10 }
0x1014   :  { %33686 = vmatprep.subr.bf16.mxu0 %v37589_v44 }
0x1016   :  { %30125 = vmatmul.mubr.msk.f32.gmra.mrb[162].mxu0 %vm421_vm0, %v37709_v11 }
0x1017   :  { %33688 = vmatpush3.bf16.msra.mxu0 %v37589_v44  ;;  %30149 = vmatprep.mubr.msk.f32.mxu0 %vm421_vm0, %v37717_v12 }
0x1018   :  { %33698 = vmatprep.subr.bf16.mxu0 %v37575_v62 }
0x101a   :  { %30150 = vmatmul.mubr.msk.f32.vlgmr.msra.gmra.mrb[164].mxu0 %vm421_vm0, %v37725_v13 }
0x101b   :  { %33700 = vmatpush3.bf16.msra.mxu0 %v37575_v62  ;;  %30152 = vmatprep.mubr.msk.f32.mxu0 %vm421_vm0, %v37733_v14 }
0x101c   :  { %33702 = vmatprep.subr.bf16.mxu0 %v37589_v44 }
0x101e   :  { %30153 = vmatmul.mubr.msk.f32.gmra.mrb[166].mxu0 %vm421_vm0, %v37741_v15 }
0x101f   :  { %33704 = vmatpush3.bf16.msra.mxu0 %v37589_v44  ;;  %30177 = vmatprep.mubr.msk.f32.mxu0 %vm421_vm0, %v37749_v17 }
0x1020   :  { %33714 = vmatprep.subr.bf16.mxu0 %v37575_v62 }
0x1022   :  { %30178 = vmatmul.mubr.msk.f32.vlgmr.msra.gmra.mrb[168].mxu0 %vm421_vm0, %v37757_v18 }
0x1023   :  { %33716 = vmatpush3.bf16.msra.mxu0 %v37575_v62  ;;  %30180 = vmatprep.mubr.msk.f32.mxu0 %vm421_vm0, %v37765_v19 }
0x1024   :  { %33718 = vmatprep.subr.bf16.mxu0 %v37589_v44 }
0x1026   :  { %30181 = vmatmul.mubr.msk.f32.gmra.mrb[170].mxu0 %vm421_vm0, %v37773_v20 }
0x1027   :  { %33720 = vmatpush3.bf16.msra.mxu0 %v37589_v44  ;;  %30205 = vmatprep.mubr.msk.f32.mxu0 %vm421_vm0, %v37781_v52 }
0x1028   :  { %33730 = vmatprep.subr.bf16.mxu0 %v37575_v62 }
0x102a   :  { %30206 = vmatmul.mubr.msk.f32.vlgmr.msra.gmra.mrb[172].mxu0 %vm421_vm0, %v37789_v59 }
0x102b   :  { %33732 = vmatpush3.bf16.msra.mxu0 %v37575_v62  ;;  %30208 = vmatprep.mubr.msk.f32.mxu0 %vm421_vm0, %v37797_v2 }
0x102c   :  { %33734 = vmatprep.subr.bf16.mxu0 %v37589_v44 }
0x102e   :  { %30209 = vmatmul.mubr.msk.f32.gmra.mrb[174].mxu0 %vm421_vm0, %v37805_v29 }
0x102f   :  { %33736 = vmatpush3.bf16.msra.mxu0 %v37589_v44  ;;  %30233 = vmatprep.mubr.msk.f32.mxu0 %vm421_vm0, %v37813_v31 }
0x1030   :  { %33746 = vmatprep.subr.bf16.mxu0 %v37575_v62 }
0x1032   :  { %30234 = vmatmul.mubr.msk.f32.vlgmr.msra.gmra.mrb[176].mxu0 %vm421_vm0, %v37107_v9  ;;  %v37838_v9 = vld [vmem:[%s40540_s6] sm:$0xff] }
0x1033   :  { %33748 = vmatpush3.bf16.msra.mxu0 %v37575_v62  ;;  %30236 = vmatprep.mubr.msk.f32.mxu0 %vm421_vm0, %v37113_v16  ;;  %v24875_v16 = vld [vmem:[%s40541_s7 + $0x260] sm:$0xff] }
0x1034   :  { %33750 = vmatprep.subr.bf16.mxu0 %v37589_v44  ;;  %v24903_v62 = vld [vmem:[%s40541_s7 + $0x2a0] sm:$0xff] }
0x1036   :  { %30237 = vmatmul.mubr.msk.f32.gmra.mrb[178].mxu0 %vm421_vm0, %v37123_v23  ;;  %v24876_v23 = vld [vmem:[%s40541_s7 + $0x268] sm:$0xff] }
0x1037   :  { %33752 = vmatpush3.bf16.msra.mxu0 %v37589_v44  ;;  %30261 = vmatprep.mubr.msk.f32.mxu0 %vm421_vm0, %v37129_v30  ;;  %v33633_v30 = vpack.c.bf16 %v24876_v23, %v24875_v16  ;;  %v33673_v16 = vpack.c.bf16 %v24904_v63, %v24903_v62  ;;  %v24940_v62 = vld [vmem:[%s40541_s7 + $0x308] sm:$0xff] }
0x1039   :  { %33634 = vmatprep.subr.bf16.mxu1 %v33633_v30 }
0x103a   :  { %30262 = vmatmul.mubr.msk.f32.vlgmr.msra.gmra.mrb[180].mxu0 %vm421_vm0, %v37139_v21  ;;  %33636 = vmatpush3.bf16.msra.mxu1 %v33633_v30  ;;  %v24877_v21 = vld [vmem:[%s40541_s7 + $0x270] sm:$0xff] }
0x103b   :  { %30264 = vmatprep.mubr.msk.f32.mxu0 %vm421_vm0, %v37144_v22  ;;  %v24878_v22 = vld [vmem:[%s40541_s7 + $0x278] sm:$0xff]  ;;  %v24905_v30 = vld [vmem:[%s40541_s7 + $0x2b0] sm:$0xff] }
0x103e   :  { %30265 = vmatmul.mubr.msk.f32.gmra.mrb[182].mxu0 %vm421_vm0, %v37153_v34  ;;  %v33637_v34 = vpack.c.bf16 %v24878_v22, %v24877_v21  ;;  %v24906_v21 = vld [vmem:[%s40541_s7 + $0x2b8] sm:$0xff] }
0x103f   :  { %30289 = vmatprep.mubr.msk.f32.mxu0 %vm421_vm0, %v37838_v9 }
0x1040   :  { %33638 = vmatprep.subr.bf16.mxu1 %v33637_v34 }
0x1041   :  { %33640 = vmatpush3.bf16.msra.mxu1 %v33637_v34  ;;  %v33677_v34 = vpack.c.bf16 %v24906_v21, %v24905_v30  ;;  %v24942_v30 = vld [vmem:[%s40541_s7 + $0x318] sm:$0xff] }
0x1042   :  { %33642 = vmatprep.subr.bf16.mxu1 %v33641_v40 }
0x10cd   :  { %v30039_v41 = vpop.f32.mrb[148].mxu0 }
0x10ce   :  { %v8813_v36 = vpop.f32.mrb[149].mxu0 }
0x10d1   :  { %v30042_v43 = vpop.f32.mrb[150].mxu0 }
0x10d2   :  { %v8823_v47 = vpop.f32.mrb[151].mxu0 }
0x10d5   :  { %v30053_v38 = vpop.f32.mrb[152].mxu0 }
0x10d6   :  { %v8903_v50 = vpop.f32.mrb[153].mxu0 }
0x10d7   :  { %30065 = vmatprep.mubr.msk.f32.mxu1 %vm421_vm0, %v8903_v50 }
0x10d8   :  { %30066 = vmatmul.mubr.msk.f32.vlgmr.msra.gmra.mrb[52].mxu1 %vm421_vm0, %v30053_v38 }
0x10d9   :  { %v30056_v25 = vpop.f32.mrb[154].mxu0  ;;  %33644 = vmatpush3.bf16.msra.mxu1 %v33641_v40  ;;  %v24916_v40 = vld [vmem:[%s40541_s7 + $0x2c8] sm:$0xff] }
0x10da   :  { %v8913_v26 = vpop.f32.mrb[155].mxu0  ;;  %33646 = vmatprep.subr.bf16.mxu1 %v33645_v55 }
0x10db   :  { %30068 = vmatprep.mubr.msk.f32.mxu1 %vm421_vm0, %v8913_v26 }
0x10dc   :  { %30069 = vmatmul.mubr.msk.f32.gmra.mrb[54].mxu1 %vm421_vm0, %v30056_v25 }
0x10dd   :  { %33648 = vmatpush3.bf16.msra.mxu1 %v33645_v55  ;;  %30079 = vmatprep.mubr.msk.f32.mxu1 %vm421_vm0, %v8813_v36  ;;  %v30095_v58 = vpop.f32.mrb[156].mxu0  ;;  %v33689_v36 = vpack.c.bf16 %v24916_v40, %v24915_v33  ;;  %v24927_v55 = vld [vmem:[%s40541_s7 + $0x2e0] sm:$0xff]  ;;  %v24952_v33 = vld [vmem:[%s40541_s7 + $0x328] sm:$0xff] }
0x10de   :  { %33658 = vmatprep.subr.bf16.mxu1 %v33657_v27  ;;  %v9187_v39 = vpop.f32.mrb[157].mxu0  ;;  %v33705_v25 = vpack.c.bf16 %v24928_v24, %v24927_v55  ;;  %v24964_v55 = vld [vmem:[%s40541_s7 + $0x348] sm:$0xff] }
0x10e0   :  { %30080 = vmatmul.mubr.msk.f32.vlgmr.msra.gmra.mrb[52].mxu1 %vm421_vm0, %v30039_v41 }
0x10e1   :  { %30082 = vmatprep.mubr.msk.f32.mxu1 %vm421_vm0, %v8823_v47  ;;  %33660 = vmatpush3.bf16.msra.mxu1 %v33657_v27  ;;  %v30098_v44 = vpop.f32.mrb[158].mxu0  ;;  %v24917_v47 = vld [vmem:[%s40541_s7 + $0x2d0] sm:$0xff] }
0x10e2   :  { %33662 = vmatprep.subr.bf16.mxu1 %v33661_v61  ;;  %v9197_v23 = vpop.f32.mrb[159].mxu0  ;;  %v33693_v38 = vpack.c.bf16 %v24918_v49, %v24917_v47  ;;  %v24929_v27 = vld [vmem:[%s40541_s7 + $0x2f0] sm:$0xff]  ;;  %v24954_v47 = vld [vmem:[%s40541_s7 + $0x338] sm:$0xff] }
0x10e4   :  { %30083 = vmatmul.mubr.msk.f32.gmra.mrb[54].mxu1 %vm421_vm0, %v30042_v43 }
0x10e5   :  { %33664 = vmatpush3.bf16.msra.mxu1 %v33661_v61  ;;  %30107 = vmatprep.mubr.msk.f32.mxu1 %vm421_vm0, %v9187_v39  ;;  %v30123_v22 = vpop.f32.mrb[160].mxu0  ;;  %v24939_v39 = vld [vmem:[%s40541_s7 + $0x300] sm:$0xff] }
0x10e6   :  { %33674 = vmatprep.subr.bf16.mxu1 %v33673_v16  ;;  %v9378_v32 = vpop.f32.mrb[161].mxu0 }
0x10e8   :  { %30108 = vmatmul.mubr.msk.f32.vlgmr.msra.gmra.mrb[52].mxu1 %vm421_vm0, %v30095_v58  ;;  %v33709_v58 = vpack.c.bf16 %v24930_v28, %v24929_v27  ;;  %v24966_v27 = vld [vmem:[%s40541_s7 + $0x358] sm:$0xff] }
0x10e9   :  { %33676 = vmatpush3.bf16.msra.mxu1 %v33673_v16  ;;  %30110 = vmatprep.mubr.msk.f32.mxu1 %vm421_vm0, %v9197_v23  ;;  %v30126_v41 = vpop.f32.mrb[162].mxu0  ;;  %v24941_v23 = vld [vmem:[%s40541_s7 + $0x310] sm:$0xff] }
0x10ea   :  { %33678 = vmatprep.subr.bf16.mxu1 %v33677_v34  ;;  %v9388_v43 = vpop.f32.mrb[163].mxu0 }
0x10ec   :  { %30111 = vmatmul.mubr.msk.f32.gmra.mrb[54].mxu1 %vm421_vm0, %v30098_v44  ;;  %v33721_v44 = vpack.c.bf16 %v24940_v62, %v24939_v39  ;;  %v24972_v62 = vld [vmem:[%s40542_s8 + $0x2] ss:$0 sm:$0xff] }
0x10ed   :  { %33680 = vmatpush3.bf16.msra.mxu1 %v33677_v34  ;;  %30135 = vmatprep.mubr.msk.f32.mxu1 %vm421_vm0, %v9378_v32  ;;  %v30151_v35 = vpop.f32.mrb[164].mxu0  ;;  %v24951_v32 = vld [vmem:[%s40541_s7 + $0x320] sm:$0xff] }
0x10ee   :  { %33690 = vmatprep.subr.bf16.mxu1 %v33689_v36  ;;  %v9569_v50 = vpop.f32.mrb[165].mxu0 }
0x10f0   :  { %30136 = vmatmul.mubr.msk.f32.vlgmr.msra.gmra.mrb[52].mxu1 %vm421_vm0, %v30123_v22  ;;  %v33725_v22 = vpack.c.bf16 %v24942_v30, %v24941_v23 }
0x10f1   :  { %33692 = vmatpush3.bf16.msra.mxu1 %v33689_v36  ;;  %30138 = vmatprep.mubr.msk.f32.mxu1 %vm421_vm0, %v9388_v43  ;;  %v30154_v37 = vpop.f32.mrb[166].mxu0  ;;  %v24953_v43 = vld [vmem:[%s40541_s7 + $0x330] sm:$0xff] }
0x10f2   :  { %33694 = vmatprep.subr.bf16.mxu1 %v33693_v38  ;;  %v9579_v26 = vpop.f32.mrb[167].mxu0 }
0x10f4   :  { %30139 = vmatmul.mubr.msk.f32.gmra.mrb[54].mxu1 %vm421_vm0, %v30126_v41  ;;  %v33737_v41 = vpack.c.bf16 %v24952_v33, %v24951_v32 }
0x10f5   :  { %33696 = vmatpush3.bf16.msra.mxu1 %v33693_v38  ;;  %30163 = vmatprep.mubr.msk.f32.mxu1 %vm421_vm0, %v9569_v50  ;;  %v30179_v57 = vpop.f32.mrb[168].mxu0  ;;  %v24963_v50 = vld [vmem:[%s40541_s7 + $0x340] sm:$0xff] }
0x10f6   :  { %33706 = vmatprep.subr.bf16.mxu1 %v33705_v25  ;;  %v9760_v61 = vpop.f32.mrb[169].mxu0 }
0x10f8   :  { %30164 = vmatmul.mubr.msk.f32.vlgmr.msra.gmra.mrb[52].mxu1 %vm421_vm0, %v30151_v35  ;;  %v33741_v35 = vpack.c.bf16 %v24954_v47, %v24953_v43  ;;  %v38085_v47 = vld [vmem:[%s40540_s6 + $0xe8] sm:$0xff] }
0x10f9   :  { %33708 = vmatpush3.bf16.msra.mxu1 %v33705_v25  ;;  %30166 = vmatprep.mubr.msk.f32.mxu1 %vm421_vm0, %v9579_v26  ;;  %v30182_v63 = vpop.f32.mrb[170].mxu0  ;;  %v24965_v26 = vld [vmem:[%s40541_s7 + $0x350] sm:$0xff] }
0x10fa   :  { %33710 = vmatprep.subr.bf16.mxu1 %v33709_v58  ;;  %v9770_v16 = vpop.f32.mrb[171].mxu0 }
0x10fc   :  { %30167 = vmatmul.mubr.msk.f32.gmra.mrb[54].mxu1 %vm421_vm0, %v30154_v37  ;;  %v33753_v37 = vpack.c.bf16 %v24964_v55, %v24963_v50  ;;  %v38116_v50 = vld [vmem:[%s40540_s6 + $0x108] sm:$0xff]  ;;  %v38123_v55 = vld [vmem:[%s40540_s6 + $0x110] sm:$0xff] }
0x10fd   :  { %33712 = vmatpush3.bf16.msra.mxu1 %v33709_v58  ;;  %30191 = vmatprep.mubr.msk.f32.mxu1 %vm421_vm0, %v9760_v61  ;;  %v30207_v21 = vpop.f32.mrb[172].mxu0 }
0x10fe   :  { %33722 = vmatprep.subr.bf16.mxu1 %v33721_v44  ;;  %v9951_v34 = vpop.f32.mrb[173].mxu0 }
0x1100   :  { %30192 = vmatmul.mubr.msk.f32.vlgmr.msra.gmra.mrb[52].mxu1 %vm421_vm0, %v30179_v57  ;;  %v33757_v57 = vpack.c.bf16 %v24966_v27, %v24965_v26  ;;  %v24987_v27 = vld [vmem:[%s40541_s7 + $0x390] sm:$0xff] }
0x1101   :  { %33724 = vmatpush3.bf16.msra.mxu1 %v33721_v44  ;;  %30194 = vmatprep.mubr.msk.f32.mxu1 %vm421_vm0, %v9770_v16  ;;  %v30210_v40 = vpop.f32.mrb[174].mxu0 }
0x1102   :  { %33726 = vmatprep.subr.bf16.mxu1 %v33725_v22  ;;  %v9961_v36 = vpop.f32.mrb[175].mxu0 }
0x1104   :  { %30195 = vmatmul.mubr.msk.f32.gmra.mrb[54].mxu1 %vm421_vm0, %v30182_v63 }
0x1105   :  { %33728 = vmatpush3.bf16.msra.mxu1 %v33725_v22  ;;  %30219 = vmatprep.mubr.msk.f32.mxu1 %vm421_vm0, %v9951_v34  ;;  %v30235_v49 = vpop.f32.mrb[176].mxu0 }
0x1106   :  { %33738 = vmatprep.subr.bf16.mxu1 %v33737_v41  ;;  %v10142_v38 = vpop.f32.mrb[177].mxu0 }
0x1108   :  { %30220 = vmatmul.mubr.msk.f32.vlgmr.msra.gmra.mrb[52].mxu1 %vm421_vm0, %v30207_v21 }
0x1109   :  { %33740 = vmatpush3.bf16.msra.mxu1 %v33737_v41  ;;  %30222 = vmatprep.mubr.msk.f32.mxu1 %vm421_vm0, %v9961_v36  ;;  %v30238_v24 = vpop.f32.mrb[178].mxu0 }
0x110a   :  { %33742 = vmatprep.subr.bf16.mxu1 %v33741_v35  ;;  %v10152_v25 = vpop.f32.mrb[179].mxu0 }
0x110c   :  { %30223 = vmatmul.mubr.msk.f32.gmra.mrb[54].mxu1 %vm421_vm0, %v30210_v40 }
0x110d   :  { %33744 = vmatpush3.bf16.msra.mxu1 %v33741_v35  ;;  %30247 = vmatprep.mubr.msk.f32.mxu1 %vm421_vm0, %v10142_v38  ;;  %v30263_v28 = vpop.f32.mrb[180].mxu0  ;;  %v38101_v35 = vld [vmem:[%s40540_s6 + $0xf8] sm:$0xff]  ;;  %v38109_v38 = vld [vmem:[%s40540_s6 + $0x100] sm:$0xff] }
0x110e   :  { %33754 = vmatprep.subr.bf16.mxu1 %v33753_v37  ;;  %v10333_v58 = vpop.f32.mrb[181].mxu0 }
0x1110   :  { %30248 = vmatmul.mubr.msk.f32.vlgmr.msra.gmra.mrb[52].mxu1 %vm421_vm0, %v30235_v49  ;;  %v38093_v49 = vld [vmem:[%s40540_s6 + $0xf0] sm:$0xff] }
0x1111   :  { %33756 = vmatpush3.bf16.msra.mxu1 %v33753_v37  ;;  %30250 = vmatprep.mubr.msk.f32.mxu1 %vm421_vm0, %v10152_v25  ;;  %v30266_v61 = vpop.f32.mrb[182].mxu0  ;;  %v24985_v37 = vld [vmem:[%s40541_s7 + $0x380] sm:$0xff]  ;;  %v24986_v25 = vld [vmem:[%s40541_s7 + $0x388] sm:$0xff] }
0x1112   :  { %33758 = vmatprep.subr.bf16.mxu1 %v33757_v57  ;;  %v10343_v39 = vpop.f32.mrb[183].mxu0  ;;  %v33777_v26 = vpack.c.bf16 %v24986_v25, %v24985_v37  ;;  %v25004_v37 = vld [vmem:[%s40541_s7 + $0x3b8] sm:$0xff] }
0x1114   :  { %30251 = vmatmul.mubr.msk.f32.gmra.mrb[54].mxu1 %vm421_vm0, %v30238_v24  ;;  %v38130_v24 = vld [vmem:[%s40540_s6 + $0x118] sm:$0xff] }
0x1115   :  { %33760 = vmatpush3.bf16.msra.mxu1 %v33757_v57  ;;  %30275 = vmatprep.mubr.msk.f32.mxu1 %vm421_vm0, %v10333_v58  ;;  %v24977_v58 = vld [vmem:[%s40541_s7 + $0x360] sm:$0xff] }
0x1116   :  { %33778 = vmatprep.subr.bf16.mxu1 %v33777_v26 }
0x1118   :  { %30276 = vmatmul.mubr.msk.f32.vlgmr.msra.gmra.mrb[52].mxu1 %vm421_vm0, %v30263_v28  ;;  %v24988_v28 = vld [vmem:[%s40541_s7 + $0x398] sm:$0xff] }
0x1119   :  { %30278 = vmatprep.mubr.msk.f32.mxu1 %vm421_vm0, %v10343_v39  ;;  %33780 = vmatpush3.bf16.msra.mxu1 %v33777_v26  ;;  %v33781_v57 = vpack.c.bf16 %v24988_v28, %v24987_v27  ;;  %v25013_v28 = vld [vmem:[%s40541_s7 + $0x3c0] sm:$0xff] }
0x111b   :  { %33782 = vmatprep.subr.bf16.mxu1 %v33781_v57 }
0x111c   :  { %30279 = vmatmul.mubr.msk.f32.gmra.mrb[54].mxu1 %vm421_vm0, %v30266_v61  ;;  %v24978_v61 = vld [vmem:[%s40541_s7 + $0x368] sm:$0xff] }
0x111d   :  { %33784 = vmatpush3.bf16.msra.mxu1 %v33781_v57  ;;  %v33785_v39 = vpack.c.bf16 %v24978_v61, %v24977_v58  ;;  %v25014_v57 = vld [vmem:[%s40541_s7 + $0x3c8] sm:$0xff] }
0x111e   :  { %v33817_v61 = vpack.c.bf16 %v25014_v57, %v25013_v28  ;;  %v25039_v57 = vld [vmem:[%s40541_s7 + $0x410] sm:$0xff] }
0x111f   :  { %33786 = vmatprep.subr.bf16.mxu1 %v33785_v39 }
0x11eb   :  { %v30277_v63 = vpop.f32.mrb[52].mxu1 }
0x11ec   :  { %v10467_v44 = vadd.f32 %v30277_v63, %v24972_v62  ;;  %v10435_v16 = vpop.f32.mrb[53].mxu1 }
0x11ed   :  { %v10466_v23 = vadd.f32 %v24972_v62, %v10435_v16 }
0x11ee   :  { %v10471_v30 = vmax.f32 %v10467_v44, 0.0 }
0x11ef   :  { %v10470_v21 = vmax.f32 %v10466_v23, 0.0  ;;  %v30280_v22 = vpop.f32.mrb[54].mxu1  ;;  %v24979_v23 = vld [vmem:[%s40541_s7 + $0x370] sm:$0xff] }
0x11f0   :  { %v10469_v34 = vadd.f32 %v30280_v22, %v24972_v62  ;;  %v10445_v32 = vpop.f32.mrb[55].mxu1 }
0x11f1   :  { %v37989_v33 = vpack.c.bf16 %v10471_v30, %v10470_v21  ;;  %v10468_v40 = vadd.f32 %v24972_v62, %v10445_v32  ;;  %v24980_v30 = vld [vmem:[%s40541_s7 + $0x378] sm:$0xff]  ;;  %v25001_v32 = vld [vmem:[%s40541_s7 + $0x3a0] sm:$0xff] }
0x11f2   :  { %v10473_v41 = vmax.f32 %v10469_v34, 0.0  ;;  %v33789_v34 = vpack.c.bf16 %v24980_v30, %v24979_v23  ;;  %v25016_v23 = vld [vmem:[%s40541_s7 + $0x3d8] sm:$0xff] }
0x11f3   :  { %v10472_v36 = vmax.f32 %v10468_v40, 0.0  ;;  %33762 = vmatprep.subr.bf16.mxu0 %v37989_v33 }
0x11f4   :  { %33764 = vmatpush3.bf16.msra.mxu0 %v37989_v33 }
0x11f5   :  { %v37993_v43 = vpack.c.bf16 %v10473_v41, %v10472_v36 }
0x11f7   :  { %33766 = vmatprep.subr.bf16.mxu0 %v37993_v43 }
0x11f8   :  { %33768 = vmatpush3.bf16.msra.mxu0 %v37993_v43 }
0x11f9   :  { %33770 = vmatprep.subr.bf16.mxu0 %v37989_v33 }
0x11fb   :  { %30290 = vmatmul.mubr.msk.f32.vlgmr.msra.gmra.mrb[184].mxu0 %vm421_vm0, %v37597_v45 }
0x11fc   :  { %33772 = vmatpush3.bf16.msra.mxu0 %v37989_v33  ;;  %30292 = vmatprep.mubr.msk.f32.mxu0 %vm421_vm0, %v37605_v46 }
0x11fd   :  { %33774 = vmatprep.subr.bf16.mxu0 %v37993_v43 }
0x11ff   :  { %30293 = vmatmul.mubr.msk.f32.gmra.mrb[186].mxu0 %vm421_vm0, %v37613_v48 }
0x1200   :  { %33776 = vmatpush3.bf16.msra.mxu0 %v37993_v43  ;;  %30303 = vmatprep.mubr.msk.f32.mxu0 %vm421_vm0, %v37621_v51 }
0x1201   :  { %33794 = vmatprep.subr.bf16.mxu0 %v37989_v33 }
0x1203   :  { %30304 = vmatmul.mubr.msk.f32.vlgmr.msra.gmra.mrb[188].mxu0 %vm421_vm0, %v37629_v53 }
0x1204   :  { %33796 = vmatpush3.bf16.msra.mxu0 %v37989_v33  ;;  %30306 = vmatprep.mubr.msk.f32.mxu0 %vm421_vm0, %v37637_v54 }
0x1205   :  { %33798 = vmatprep.subr.bf16.mxu0 %v37993_v43 }
0x1207   :  { %30307 = vmatmul.mubr.msk.f32.gmra.mrb[190].mxu0 %vm421_vm0, %v37645_v1 }
0x1208   :  { %33800 = vmatpush3.bf16.msra.mxu0 %v37993_v43  ;;  %30345 = vmatprep.mubr.msk.f32.mxu0 %vm421_vm0, %v37653_v3 }
0x1209   :  { %33810 = vmatprep.subr.bf16.mxu0 %v37989_v33 }
0x120b   :  { %30346 = vmatmul.mubr.msk.f32.vlgmr.msra.gmra.mrb[192].mxu0 %vm421_vm0, %v37661_v4 }
0x120c   :  { %33812 = vmatpush3.bf16.msra.mxu0 %v37989_v33  ;;  %30348 = vmatprep.mubr.msk.f32.mxu0 %vm421_vm0, %v37669_v5 }
0x120d   :  { %33814 = vmatprep.subr.bf16.mxu0 %v37993_v43 }
0x120f   :  { %30349 = vmatmul.mubr.msk.f32.gmra.mrb[194].mxu0 %vm421_vm0, %v37677_v6 }
0x1210   :  { %33816 = vmatpush3.bf16.msra.mxu0 %v37993_v43  ;;  %30373 = vmatprep.mubr.msk.f32.mxu0 %vm421_vm0, %v37685_v7 }
0x1211   :  { %33826 = vmatprep.subr.bf16.mxu0 %v37989_v33 }
0x1213   :  { %30374 = vmatmul.mubr.msk.f32.vlgmr.msra.gmra.mrb[196].mxu0 %vm421_vm0, %v37693_v8 }
0x1214   :  { %33828 = vmatpush3.bf16.msra.mxu0 %v37989_v33  ;;  %30376 = vmatprep.mubr.msk.f32.mxu0 %vm421_vm0, %v37701_v10 }
0x1215   :  { %33830 = vmatprep.subr.bf16.mxu0 %v37993_v43 }
0x1217   :  { %30377 = vmatmul.mubr.msk.f32.gmra.mrb[198].mxu0 %vm421_vm0, %v37709_v11 }
0x1218   :  { %33832 = vmatpush3.bf16.msra.mxu0 %v37993_v43  ;;  %30401 = vmatprep.mubr.msk.f32.mxu0 %vm421_vm0, %v37717_v12 }
0x1219   :  { %33842 = vmatprep.subr.bf16.mxu0 %v37989_v33 }
0x121b   :  { %30402 = vmatmul.mubr.msk.f32.vlgmr.msra.gmra.mrb[200].mxu0 %vm421_vm0, %v37725_v13 }
0x121c   :  { %33844 = vmatpush3.bf16.msra.mxu0 %v37989_v33  ;;  %30404 = vmatprep.mubr.msk.f32.mxu0 %vm421_vm0, %v37733_v14 }
0x121d   :  { %33846 = vmatprep.subr.bf16.mxu0 %v37993_v43 }
0x121f   :  { %30405 = vmatmul.mubr.msk.f32.gmra.mrb[202].mxu0 %vm421_vm0, %v37741_v15 }
0x1220   :  { %33848 = vmatpush3.bf16.msra.mxu0 %v37993_v43  ;;  %30429 = vmatprep.mubr.msk.f32.mxu0 %vm421_vm0, %v37749_v17 }
0x1221   :  { %33858 = vmatprep.subr.bf16.mxu0 %v37989_v33 }
0x1223   :  { %30430 = vmatmul.mubr.msk.f32.vlgmr.msra.gmra.mrb[204].mxu0 %vm421_vm0, %v37757_v18 }
0x1224   :  { %33860 = vmatpush3.bf16.msra.mxu0 %v37989_v33  ;;  %30432 = vmatprep.mubr.msk.f32.mxu0 %vm421_vm0, %v37765_v19 }
0x1225   :  { %33862 = vmatprep.subr.bf16.mxu0 %v37993_v43 }
0x1227   :  { %30433 = vmatmul.mubr.msk.f32.gmra.mrb[206].mxu0 %vm421_vm0, %v37773_v20 }
0x1228   :  { %33864 = vmatpush3.bf16.msra.mxu0 %v37993_v43  ;;  %30457 = vmatprep.mubr.msk.f32.mxu0 %vm421_vm0, %v37781_v52 }
0x1229   :  { %33874 = vmatprep.subr.bf16.mxu0 %v37989_v33 }
0x122b   :  { %30458 = vmatmul.mubr.msk.f32.vlgmr.msra.gmra.mrb[208].mxu0 %vm421_vm0, %v37789_v59 }
0x122c   :  { %33876 = vmatpush3.bf16.msra.mxu0 %v37989_v33  ;;  %30460 = vmatprep.mubr.msk.f32.mxu0 %vm421_vm0, %v37797_v2 }
0x122d   :  { %33878 = vmatprep.subr.bf16.mxu0 %v37993_v43 }
0x122f   :  { %30461 = vmatmul.mubr.msk.f32.gmra.mrb[210].mxu0 %vm421_vm0, %v37805_v29 }
0x1230   :  { %33880 = vmatpush3.bf16.msra.mxu0 %v37993_v43  ;;  %30485 = vmatprep.mubr.msk.f32.mxu0 %vm421_vm0, %v37813_v31 }
0x1231   :  { %33890 = vmatprep.subr.bf16.mxu0 %v37989_v33 }
0x1233   :  { %30486 = vmatmul.mubr.msk.f32.vlgmr.msra.gmra.mrb[212].mxu0 %vm421_vm0, %v38085_v47 }
0x1234   :  { %33892 = vmatpush3.bf16.msra.mxu0 %v37989_v33  ;;  %30488 = vmatprep.mubr.msk.f32.mxu0 %vm421_vm0, %v38093_v49  ;;  %v25002_v33 = vld [vmem:[%s40541_s7 + $0x3a8] sm:$0xff] }
0x1235   :  { %33894 = vmatprep.subr.bf16.mxu0 %v37993_v43  ;;  %v33801_v36 = vpack.c.bf16 %v25002_v33, %v25001_v32  ;;  %v25027_v33 = vld [vmem:[%s40541_s7 + $0x3f0] sm:$0xff] }
0x1237   :  { %30489 = vmatmul.mubr.msk.f32.gmra.mrb[214].mxu0 %vm421_vm0, %v38101_v35 }
0x1238   :  { %33896 = vmatpush3.bf16.msra.mxu0 %v37993_v43  ;;  %30513 = vmatprep.mubr.msk.f32.mxu0 %vm421_vm0, %v38109_v38  ;;  %v25003_v43 = vld [vmem:[%s40541_s7 + $0x3b0] sm:$0xff] }
0x1239   :  { %v33805_v26 = vpack.c.bf16 %v25004_v37, %v25003_v43  ;;  %v25037_v37 = vld [vmem:[%s40541_s7 + $0x400] sm:$0xff] }
0x123b   :  { %30514 = vmatmul.mubr.msk.f32.vlgmr.msra.gmra.mrb[216].mxu0 %vm421_vm0, %v38116_v50 }
0x123c   :  { %30516 = vmatprep.mubr.msk.f32.mxu0 %vm421_vm0, %v38123_v55 }
0x123f   :  { %30517 = vmatmul.mubr.msk.f32.gmra.mrb[218].mxu0 %vm421_vm0, %v38130_v24 }
0x1240   :  { %30541 = vmatprep.mubr.msk.f32.mxu0 %vm421_vm0, %v37838_v9 }
0x12ce   :  { %v30291_v62 = vpop.f32.mrb[184].mxu0 }
0x12cf   :  { %v10540_v63 = vpop.f32.mrb[185].mxu0 }
0x12d2   :  { %v30294_v44 = vpop.f32.mrb[186].mxu0 }
0x12d3   :  { %v10550_v16 = vpop.f32.mrb[187].mxu0 }
0x12d6   :  { %v30305_v21 = vpop.f32.mrb[188].mxu0 }
0x12d7   :  { %v10630_v22 = vpop.f32.mrb[189].mxu0 }
0x12d8   :  { %30317 = vmatprep.mubr.msk.f32.mxu1 %vm421_vm0, %v10630_v22  ;;  %v25026_v22 = vld [vmem:[%s40541_s7 + $0x3e8] sm:$0xff] }
0x12d9   :  { %30318 = vmatmul.mubr.msk.f32.vlgmr.msra.gmra.mrb[56].mxu1 %vm421_vm0, %v30305_v21  ;;  %v25025_v21 = vld [vmem:[%s40541_s7 + $0x3e0] sm:$0xff] }
0x12da   :  { %v30308_v40 = vpop.f32.mrb[190].mxu0  ;;  %33788 = vmatpush3.bf16.msra.mxu1 %v33785_v39 }
0x12db   :  { %v10640_v41 = vpop.f32.mrb[191].mxu0  ;;  %33790 = vmatprep.subr.bf16.mxu1 %v33789_v34 }
0x12dc   :  { %30320 = vmatprep.mubr.msk.f32.mxu1 %vm421_vm0, %v10640_v41 }
0x12dd   :  { %30321 = vmatmul.mubr.msk.f32.gmra.mrb[58].mxu1 %vm421_vm0, %v30308_v40  ;;  %v25028_v40 = vld [vmem:[%s40541_s7 + $0x3f8] sm:$0xff] }
0x12de   :  { %33792 = vmatpush3.bf16.msra.mxu1 %v33789_v34  ;;  %30331 = vmatprep.mubr.msk.f32.mxu1 %vm421_vm0, %v10540_v63  ;;  %v30347_v25 = vpop.f32.mrb[192].mxu0  ;;  %v25015_v63 = vld [vmem:[%s40541_s7 + $0x3d0] sm:$0xff]  ;;  %v33833_v34 = vpack.c.bf16 %v25026_v22, %v25025_v21 }
0x12df   :  { %33802 = vmatprep.subr.bf16.mxu1 %v33801_v36  ;;  %v10914_v27 = vpop.f32.mrb[193].mxu0  ;;  %v25051_v22 = vld [vmem:[%s40541_s7 + $0x430] sm:$0xff] }
0x12e1   :  { %30332 = vmatmul.mubr.msk.f32.vlgmr.msra.gmra.mrb[56].mxu1 %vm421_vm0, %v30291_v62 }
0x12e2   :  { %30334 = vmatprep.mubr.msk.f32.mxu1 %vm421_vm0, %v10550_v16  ;;  %33804 = vmatpush3.bf16.msra.mxu1 %v33801_v36  ;;  %v30350_v58 = vpop.f32.mrb[194].mxu0  ;;  %v33821_v16 = vpack.c.bf16 %v25016_v23, %v25015_v63  ;;  %v33837_v36 = vpack.c.bf16 %v25028_v40, %v25027_v33  ;;  %v25049_v23 = vld [vmem:[%s40541_s7 + $0x420] sm:$0xff] }
0x12e3   :  { %33806 = vmatprep.subr.bf16.mxu1 %v33805_v26  ;;  %v10924_v39 = vpop.f32.mrb[195].mxu0  ;;  %v25061_v40 = vld [vmem:[%s40541_s7 + $0x440] sm:$0xff] }
0x12e5   :  { %30335 = vmatmul.mubr.msk.f32.gmra.mrb[58].mxu1 %vm421_vm0, %v30294_v44 }
0x12e6   :  { %33808 = vmatpush3.bf16.msra.mxu1 %v33805_v26  ;;  %30359 = vmatprep.mubr.msk.f32.mxu1 %vm421_vm0, %v10914_v27  ;;  %v30375_v62 = vpop.f32.mrb[196].mxu0 }
0x12e7   :  { %33818 = vmatprep.subr.bf16.mxu1 %v33817_v61  ;;  %v11105_v30 = vpop.f32.mrb[197].mxu0 }
0x12e9   :  { %30360 = vmatmul.mubr.msk.f32.vlgmr.msra.gmra.mrb[56].mxu1 %vm421_vm0, %v30347_v25  ;;  %v25038_v25 = vld [vmem:[%s40541_s7 + $0x408] sm:$0xff] }
0x12ea   :  { %33820 = vmatpush3.bf16.msra.mxu1 %v33817_v61  ;;  %30362 = vmatprep.mubr.msk.f32.mxu1 %vm421_vm0, %v10924_v39  ;;  %v30378_v44 = vpop.f32.mrb[198].mxu0  ;;  %v33849_v27 = vpack.c.bf16 %v25038_v25, %v25037_v37  ;;  %v25063_v25 = vld [vmem:[%s40541_s7 + $0x450] sm:$0xff] }
0x12eb   :  { %33822 = vmatprep.subr.bf16.mxu1 %v33821_v16  ;;  %v11115_v32 = vpop.f32.mrb[199].mxu0 }
0x12ed   :  { %30363 = vmatmul.mubr.msk.f32.gmra.mrb[58].mxu1 %vm421_vm0, %v30350_v58  ;;  %v25040_v58 = vld [vmem:[%s40541_s7 + $0x418] sm:$0xff] }
0x12ee   :  { %33824 = vmatpush3.bf16.msra.mxu1 %v33821_v16  ;;  %30387 = vmatprep.mubr.msk.f32.mxu1 %vm421_vm0, %v11105_v30  ;;  %v30403_v41 = vpop.f32.mrb[200].mxu0  ;;  %v33853_v39 = vpack.c.bf16 %v25040_v58, %v25039_v57  ;;  %v25073_v58 = vld [vmem:[%s40541_s7 + $0x460] sm:$0xff] }
0x12ef   :  { %33834 = vmatprep.subr.bf16.mxu1 %v33833_v34  ;;  %v11296_v43 = vpop.f32.mrb[201].mxu0 }
0x12f1   :  { %30388 = vmatmul.mubr.msk.f32.vlgmr.msra.gmra.mrb[56].mxu1 %vm421_vm0, %v30375_v62  ;;  %v25050_v62 = vld [vmem:[%s40541_s7 + $0x428] sm:$0xff] }
0x12f2   :  { %33836 = vmatpush3.bf16.msra.mxu1 %v33833_v34  ;;  %30390 = vmatprep.mubr.msk.f32.mxu1 %vm421_vm0, %v11115_v32  ;;  %v30406_v26 = vpop.f32.mrb[202].mxu0  ;;  %v33865_v30 = vpack.c.bf16 %v25050_v62, %v25049_v23  ;;  %v25075_v62 = vld [vmem:[%s40541_s7 + $0x470] sm:$0xff] }
0x12f3   :  { %33838 = vmatprep.subr.bf16.mxu1 %v33837_v36  ;;  %v11306_v28 = vpop.f32.mrb[203].mxu0 }
0x12f5   :  { %30391 = vmatmul.mubr.msk.f32.gmra.mrb[58].mxu1 %vm421_vm0, %v30378_v44  ;;  %v25052_v44 = vld [vmem:[%s40541_s7 + $0x438] sm:$0xff] }
0x12f6   :  { %33840 = vmatpush3.bf16.msra.mxu1 %v33837_v36  ;;  %30415 = vmatprep.mubr.msk.f32.mxu1 %vm421_vm0, %v11296_v43  ;;  %v30431_v61 = vpop.f32.mrb[204].mxu0  ;;  %v33869_v32 = vpack.c.bf16 %v25052_v44, %v25051_v22 }
0x12f7   :  { %33850 = vmatprep.subr.bf16.mxu1 %v33849_v27  ;;  %v11487_v63 = vpop.f32.mrb[205].mxu0 }
0x12f9   :  { %30416 = vmatmul.mubr.msk.f32.vlgmr.msra.gmra.mrb[56].mxu1 %vm421_vm0, %v30403_v41  ;;  %v25062_v41 = vld [vmem:[%s40541_s7 + $0x448] sm:$0xff] }
0x12fa   :  { %33852 = vmatpush3.bf16.msra.mxu1 %v33849_v27  ;;  %30418 = vmatprep.mubr.msk.f32.mxu1 %vm421_vm0, %v11306_v28  ;;  %v30434_v16 = vpop.f32.mrb[206].mxu0  ;;  %v33881_v43 = vpack.c.bf16 %v25062_v41, %v25061_v40 }
0x12fb   :  { %33854 = vmatprep.subr.bf16.mxu1 %v33853_v39  ;;  %v11497_v21 = vpop.f32.mrb[207].mxu0 }
0x12fd   :  { %30419 = vmatmul.mubr.msk.f32.gmra.mrb[58].mxu1 %vm421_vm0, %v30406_v26  ;;  %v25064_v26 = vld [vmem:[%s40541_s7 + $0x458] sm:$0xff] }
0x12fe   :  { %33856 = vmatpush3.bf16.msra.mxu1 %v33853_v39  ;;  %30443 = vmatprep.mubr.msk.f32.mxu1 %vm421_vm0, %v11487_v63  ;;  %v30459_v34 = vpop.f32.mrb[208].mxu0  ;;  %v33885_v28 = vpack.c.bf16 %v25064_v26, %v25063_v25 }
0x12ff   :  { %33866 = vmatprep.subr.bf16.mxu1 %v33865_v30  ;;  %v11678_v33 = vpop.f32.mrb[209].mxu0 }
0x1301   :  { %30444 = vmatmul.mubr.msk.f32.vlgmr.msra.gmra.mrb[56].mxu1 %vm421_vm0, %v30431_v61  ;;  %v25074_v61 = vld [vmem:[%s40541_s7 + $0x468] sm:$0xff] }
0x1302   :  { %33868 = vmatpush3.bf16.msra.mxu1 %v33865_v30  ;;  %30446 = vmatprep.mubr.msk.f32.mxu1 %vm421_vm0, %v11497_v21  ;;  %v30462_v36 = vpop.f32.mrb[210].mxu0  ;;  %v33897_v63 = vpack.c.bf16 %v25074_v61, %v25073_v58 }
0x1303   :  { %33870 = vmatprep.subr.bf16.mxu1 %v33869_v32  ;;  %v11688_v37 = vpop.f32.mrb[211].mxu0 }
0x1305   :  { %30447 = vmatmul.mubr.msk.f32.gmra.mrb[58].mxu1 %vm421_vm0, %v30434_v16  ;;  %v25076_v16 = vld [vmem:[%s40541_s7 + $0x478] sm:$0xff] }
0x1306   :  { %33872 = vmatpush3.bf16.msra.mxu1 %v33869_v32  ;;  %30471 = vmatprep.mubr.msk.f32.mxu1 %vm421_vm0, %v11678_v33  ;;  %v30487_v27 = vpop.f32.mrb[212].mxu0  ;;  %v33901_v21 = vpack.c.bf16 %v25076_v16, %v25075_v62  ;;  %v25082_v32 = vld [vmem:[%s40542_s8 + $0x3] ss:$0 sm:$0xff] }
0x1307   :  { %33882 = vmatprep.subr.bf16.mxu1 %v33881_v43  ;;  %v11869_v57 = vpop.f32.mrb[213].mxu0 }
0x1309   :  { %30472 = vmatmul.mubr.msk.f32.vlgmr.msra.gmra.mrb[56].mxu1 %vm421_vm0, %v30459_v34 }
0x130a   :  { %33884 = vmatpush3.bf16.msra.mxu1 %v33881_v43  ;;  %30474 = vmatprep.mubr.msk.f32.mxu1 %vm421_vm0, %v11688_v37  ;;  %v30490_v39 = vpop.f32.mrb[214].mxu0 }
0x130b   :  { %33886 = vmatprep.subr.bf16.mxu1 %v33885_v28  ;;  %v11879_v23 = vpop.f32.mrb[215].mxu0 }
0x130d   :  { %30475 = vmatmul.mubr.msk.f32.gmra.mrb[58].mxu1 %vm421_vm0, %v30462_v36 }
0x130e   :  { %33888 = vmatpush3.bf16.msra.mxu1 %v33885_v28  ;;  %30499 = vmatprep.mubr.msk.f32.mxu1 %vm421_vm0, %v11869_v57  ;;  %v30515_v30 = vpop.f32.mrb[216].mxu0 }
0x130f   :  { %33898 = vmatprep.subr.bf16.mxu1 %v33897_v63  ;;  %v12060_v22 = vpop.f32.mrb[217].mxu0 }
0x1311   :  { %30500 = vmatmul.mubr.msk.f32.vlgmr.msra.gmra.mrb[56].mxu1 %vm421_vm0, %v30487_v27 }
0x1312   :  { %33900 = vmatpush3.bf16.msra.mxu1 %v33897_v63  ;;  %30502 = vmatprep.mubr.msk.f32.mxu1 %vm421_vm0, %v11879_v23  ;;  %v30518_v44 = vpop.f32.mrb[218].mxu0 }
0x1313   :  { %33902 = vmatprep.subr.bf16.mxu1 %v33901_v21  ;;  %v12070_v34 = vpop.f32.mrb[219].mxu0 }
0x1315   :  { %30503 = vmatmul.mubr.msk.f32.gmra.mrb[58].mxu1 %vm421_vm0, %v30490_v39 }
0x1316   :  { %33904 = vmatpush3.bf16.msra.mxu1 %v33901_v21  ;;  %30527 = vmatprep.mubr.msk.f32.mxu1 %vm421_vm0, %v12060_v22  ;;  %v25126_v21 = vld [vmem:[%s40541_s7 + $0x4f8] sm:$0xff] }
0x1319   :  { %30528 = vmatmul.mubr.msk.f32.vlgmr.msra.gmra.mrb[56].mxu1 %vm421_vm0, %v30515_v30  ;;  %v25125_v30 = vld [vmem:[%s40541_s7 + $0x4f0] sm:$0xff] }
0x131a   :  { %30530 = vmatprep.mubr.msk.f32.mxu1 %vm421_vm0, %v12070_v34 }
0x131d   :  { %30531 = vmatmul.mubr.msk.f32.gmra.mrb[58].mxu1 %vm421_vm0, %v30518_v44  ;;  %v33965_v44 = vpack.c.bf16 %v25126_v21, %v25125_v30 }
0x13ec   :  { %v30529_v33 = vpop.f32.mrb[56].mxu1 }
0x13ed   :  { %v12194_v40 = vadd.f32 %v30529_v33, %v25082_v32  ;;  %v12162_v41 = vpop.f32.mrb[57].mxu1  ;;  %v25136_v33 = vld [vmem:[%s40541_s7 + $0x508] sm:$0xff] }
0x13ee   :  { %v12193_v36 = vadd.f32 %v25082_v32, %v12162_v41 }
0x13ef   :  { %v12198_v43 = vmax.f32 %v12194_v40, 0.0 }
0x13f0   :  { %v12197_v37 = vmax.f32 %v12193_v36, 0.0  ;;  %v30532_v25 = vpop.f32.mrb[58].mxu1 }
0x13f1   :  { %v38284_v26 = vadd.f32 %v12198_v43, %v37567_v56  ;;  %v12196_v27 = vadd.f32 %v30532_v25, %v25082_v32  ;;  %v12172_v28 = vpop.f32.mrb[59].mxu1  ;;  %v25137_v43 = vld [vmem:[%s40541_s7 + $0x510] sm:$0xff] }
0x13f2   :  { %v38287_v57 = vadd.f32 %v12197_v37, %v37571_v60  ;;  %v12195_v58 = vadd.f32 %v25082_v32, %v12172_v28  ;;  %v25095_v60 = vld [vmem:[%s40541_s7 + $0x4a0] sm:$0xff]  ;;  %v25138_v37 = vld [vmem:[%s40541_s7 + $0x518] sm:$0xff] }
0x13f3   :  { %v12200_v61 = vmax.f32 %v12196_v27, 0.0  ;;  %v25135_v32 = vld [vmem:[%s40541_s7 + $0x500] sm:$0xff]  ;;  %v33981_v27 = vpack.c.bf16 %v25138_v37, %v25137_v43 }
0x13f4   :  { %v38291_v39 = vpack.c.bf16 %v38284_v26, %v38287_v57  ;;  %v12199_v63 = vmax.f32 %v12195_v58, 0.0  ;;  %v33977_v41 = vpack.c.bf16 %v25136_v33, %v25135_v32  ;;  %v25147_v58 = vld [vmem:[%s40541_s7 + $0x520] sm:$0xff] }
0x13f5   :  { %v38294_v23 = vadd.f32 %v12200_v61, %v37579_v0  ;;  %v25096_v0 = vld [vmem:[%s40541_s7 + $0x4a8] sm:$0xff] }
0x13f6   :  { %v38297_v62 = vadd.f32 %v12199_v63, %v37583_v42  ;;  %33906 = vmatprep.subr.bf16.mxu0 %v38291_v39  ;;  %v33921_v42 = vpack.c.bf16 %v25096_v0, %v25095_v60  ;;  %v25148_v61 = vld [vmem:[%s40541_s7 + $0x528] sm:$0xff]  ;;  %v25149_v60 = vld [vmem:[%s40541_s7 + $0x530] sm:$0xff]  ;;  %v25150_v0 = vld [vmem:[%s40541_s7 + $0x538] sm:$0xff] }
0x13f7   :  { %33908 = vmatpush3.bf16.msra.mxu0 %v38291_v39  ;;  %v33993_v63 = vpack.c.bf16 %v25148_v61, %v25147_v58 }
0x13f8   :  { %v38303_v56 = vpack.c.bf16 %v38294_v23, %v38297_v62  ;;  %33922 = vmatprep.subr.bf16.mxu1 %v33921_v42 }
0x13f9   :  { %33924 = vmatpush3.bf16.msra.mxu1 %v33921_v42 }
0x13fa   :  { %33910 = vmatprep.subr.bf16.mxu0 %v38303_v56 }
0x13fb   :  { %33912 = vmatpush3.bf16.msra.mxu0 %v38303_v56 }
0x13fc   :  { %33914 = vmatprep.subr.bf16.mxu0 %v38291_v39 }
0x13fe   :  { %30542 = vmatmul.mubr.msk.f32.vlgmr.msra.gmra.mrb[220].mxu0 %vm421_vm0, %v37597_v45  ;;  %v25097_v45 = vld [vmem:[%s40541_s7 + $0x4b0] sm:$0xff] }
0x13ff   :  { %33916 = vmatpush3.bf16.msra.mxu0 %v38291_v39  ;;  %30544 = vmatprep.mubr.msk.f32.mxu0 %vm421_vm0, %v37605_v46  ;;  %v25098_v46 = vld [vmem:[%s40541_s7 + $0x4b8] sm:$0xff] }
0x1400   :  { %33918 = vmatprep.subr.bf16.mxu0 %v38303_v56 }
0x1402   :  { %30545 = vmatmul.mubr.msk.f32.gmra.mrb[222].mxu0 %vm421_vm0, %v37613_v48  ;;  %v33925_v48 = vpack.c.bf16 %v25098_v46, %v25097_v45  ;;  %v33997_v45 = vpack.c.bf16 %v25150_v0, %v25149_v60  ;;  %v38578_v60 = vld [vmem:[%s40540_s6 + $0x10] sm:$0xff]  ;;  %v38586_v0 = vld [vmem:[%s40540_s6 + $0x18] sm:$0xff] }
0x1403   :  { %33920 = vmatpush3.bf16.msra.mxu0 %v38303_v56  ;;  %30555 = vmatprep.mubr.msk.f32.mxu0 %vm421_vm0, %v37621_v51  ;;  %v25087_v51 = vld [vmem:[%s40541_s7 + $0x480] sm:$0xff] }
0x1404   :  { %33938 = vmatprep.subr.bf16.mxu0 %v38291_v39  ;;  %33926 = vmatprep.subr.bf16.mxu1 %v33925_v48 }
0x1405   :  { %33928 = vmatpush3.bf16.msra.mxu1 %v33925_v48  ;;  %v25159_v48 = vld [vmem:[%s40541_s7 + $0x540] sm:$0xff] }
0x1406   :  { %30556 = vmatmul.mubr.msk.f32.vlgmr.msra.gmra.mrb[224].mxu0 %vm421_vm0, %v37629_v53  ;;  %v25088_v53 = vld [vmem:[%s40541_s7 + $0x488] sm:$0xff] }
0x1407   :  { %33940 = vmatpush3.bf16.msra.mxu0 %v38291_v39  ;;  %30558 = vmatprep.mubr.msk.f32.mxu0 %vm421_vm0, %v37637_v54  ;;  %v33929_v54 = vpack.c.bf16 %v25088_v53, %v25087_v51  ;;  %v25160_v51 = vld [vmem:[%s40541_s7 + $0x548] sm:$0xff] }
0x1408   :  { %33942 = vmatprep.subr.bf16.mxu0 %v38303_v56 }
0x1409   :  { %33930 = vmatprep.subr.bf16.mxu1 %v33929_v54 }
0x140a   :  { %30559 = vmatmul.mubr.msk.f32.gmra.mrb[226].mxu0 %vm421_vm0, %v37645_v1 }
0x140b   :  { %33944 = vmatpush3.bf16.msra.mxu0 %v38303_v56  ;;  %30597 = vmatprep.mubr.msk.f32.mxu0 %vm421_vm0, %v37653_v3 }
0x140c   :  { %33954 = vmatprep.subr.bf16.mxu0 %v38291_v39 }
0x140e   :  { %30598 = vmatmul.mubr.msk.f32.vlgmr.msra.gmra.mrb[228].mxu0 %vm421_vm0, %v37661_v4 }
0x140f   :  { %33956 = vmatpush3.bf16.msra.mxu0 %v38291_v39  ;;  %30600 = vmatprep.mubr.msk.f32.mxu0 %vm421_vm0, %v37669_v5 }
0x1410   :  { %33958 = vmatprep.subr.bf16.mxu0 %v38303_v56 }
0x1412   :  { %30601 = vmatmul.mubr.msk.f32.gmra.mrb[230].mxu0 %vm421_vm0, %v37677_v6  ;;  %v25089_v6 = vld [vmem:[%s40541_s7 + $0x490] sm:$0xff] }
0x1413   :  { %33960 = vmatpush3.bf16.msra.mxu0 %v38303_v56  ;;  %30625 = vmatprep.mubr.msk.f32.mxu0 %vm421_vm0, %v37685_v7  ;;  %v25090_v7 = vld [vmem:[%s40541_s7 + $0x498] sm:$0xff] }
0x1414   :  { %33970 = vmatprep.subr.bf16.mxu0 %v38291_v39 }
0x1416   :  { %30626 = vmatmul.mubr.msk.f32.vlgmr.msra.gmra.mrb[232].mxu0 %vm421_vm0, %v37693_v8 }
0x1417   :  { %33972 = vmatpush3.bf16.msra.mxu0 %v38291_v39  ;;  %30628 = vmatprep.mubr.msk.f32.mxu0 %vm421_vm0, %v37701_v10 }
0x1418   :  { %33974 = vmatprep.subr.bf16.mxu0 %v38303_v56 }
0x141a   :  { %30629 = vmatmul.mubr.msk.f32.gmra.mrb[234].mxu0 %vm421_vm0, %v37709_v11  ;;  %v33933_v11 = vpack.c.bf16 %v25090_v7, %v25089_v6 }
0x141b   :  { %33976 = vmatpush3.bf16.msra.mxu0 %v38303_v56  ;;  %30653 = vmatprep.mubr.msk.f32.mxu0 %vm421_vm0, %v37717_v12  ;;  %v25111_v12 = vld [vmem:[%s40541_s7 + $0x4c0] sm:$0xff] }
0x141c   :  { %33986 = vmatprep.subr.bf16.mxu0 %v38291_v39 }
0x141e   :  { %30654 = vmatmul.mubr.msk.f32.vlgmr.msra.gmra.mrb[236].mxu0 %vm421_vm0, %v37725_v13  ;;  %v25112_v13 = vld [vmem:[%s40541_s7 + $0x4c8] sm:$0xff] }
0x141f   :  { %33988 = vmatpush3.bf16.msra.mxu0 %v38291_v39  ;;  %30656 = vmatprep.mubr.msk.f32.mxu0 %vm421_vm0, %v37733_v14 }
0x1420   :  { %33990 = vmatprep.subr.bf16.mxu0 %v38303_v56 }
0x1422   :  { %30657 = vmatmul.mubr.msk.f32.gmra.mrb[238].mxu0 %vm421_vm0, %v37741_v15 }
0x1423   :  { %33992 = vmatpush3.bf16.msra.mxu0 %v38303_v56  ;;  %30681 = vmatprep.mubr.msk.f32.mxu0 %vm421_vm0, %v37749_v17  ;;  %v33945_v17 = vpack.c.bf16 %v25112_v13, %v25111_v12 }
0x1424   :  { %34002 = vmatprep.subr.bf16.mxu0 %v38291_v39 }
0x1426   :  { %30682 = vmatmul.mubr.msk.f32.vlgmr.msra.gmra.mrb[240].mxu0 %vm421_vm0, %v37757_v18  ;;  %v25113_v18 = vld [vmem:[%s40541_s7 + $0x4d0] sm:$0xff] }
0x1427   :  { %34004 = vmatpush3.bf16.msra.mxu0 %v38291_v39  ;;  %30684 = vmatprep.mubr.msk.f32.mxu0 %vm421_vm0, %v37765_v19  ;;  %v25114_v19 = vld [vmem:[%s40541_s7 + $0x4d8] sm:$0xff] }
0x1428   :  { %34006 = vmatprep.subr.bf16.mxu0 %v38303_v56 }
0x142a   :  { %30685 = vmatmul.mubr.msk.f32.gmra.mrb[242].mxu0 %vm421_vm0, %v37773_v20 }
0x142b   :  { %34008 = vmatpush3.bf16.msra.mxu0 %v38303_v56  ;;  %30709 = vmatprep.mubr.msk.f32.mxu0 %vm421_vm0, %v37781_v52  ;;  %v33949_v52 = vpack.c.bf16 %v25114_v19, %v25113_v18 }
0x142c   :  { %34018 = vmatprep.subr.bf16.mxu0 %v38291_v39 }
0x142e   :  { %30710 = vmatmul.mubr.msk.f32.vlgmr.msra.gmra.mrb[244].mxu0 %vm421_vm0, %v37789_v59 }
0x142f   :  { %34020 = vmatpush3.bf16.msra.mxu0 %v38291_v39  ;;  %30712 = vmatprep.mubr.msk.f32.mxu0 %vm421_vm0, %v37797_v2  ;;  %v25123_v2 = vld [vmem:[%s40541_s7 + $0x4e0] sm:$0xff] }
0x1430   :  { %34022 = vmatprep.subr.bf16.mxu0 %v38303_v56 }
0x1432   :  { %30713 = vmatmul.mubr.msk.f32.gmra.mrb[246].mxu0 %vm421_vm0, %v37805_v29  ;;  %v25124_v29 = vld [vmem:[%s40541_s7 + $0x4e8] sm:$0xff] }
0x1433   :  { %34024 = vmatpush3.bf16.msra.mxu0 %v38303_v56  ;;  %30737 = vmatprep.mubr.msk.f32.mxu0 %vm421_vm0, %v37813_v31 }
0x1434   :  { %34034 = vmatprep.subr.bf16.mxu0 %v38291_v39 }
0x1436   :  { %30738 = vmatmul.mubr.msk.f32.vlgmr.msra.gmra.mrb[248].mxu0 %vm421_vm0, %v38085_v47 }
0x1437   :  { %34036 = vmatpush3.bf16.msra.mxu0 %v38291_v39  ;;  %30740 = vmatprep.mubr.msk.f32.mxu0 %vm421_vm0, %v38093_v49 }
0x1438   :  { %34038 = vmatprep.subr.bf16.mxu0 %v38303_v56 }
0x143a   :  { %30741 = vmatmul.mubr.msk.f32.gmra.mrb[250].mxu0 %vm421_vm0, %v38101_v35 }
0x143b   :  { %34040 = vmatpush3.bf16.msra.mxu0 %v38303_v56  ;;  %30765 = vmatprep.mubr.msk.f32.mxu0 %vm421_vm0, %v38109_v38 }
0x143e   :  { %30766 = vmatmul.mubr.msk.f32.vlgmr.msra.gmra.mrb[252].mxu0 %vm421_vm0, %v38116_v50 }
0x143f   :  { %30768 = vmatprep.mubr.msk.f32.mxu0 %vm421_vm0, %v38123_v55 }
0x1442   :  { %30769 = vmatmul.mubr.msk.f32.gmra.mrb[254].mxu0 %vm421_vm0, %v38130_v24 }
0x1443   :  { %30793 = vmatprep.mubr.msk.f32.mxu0 %vm421_vm0, %v37838_v9  ;;  %v33961_v9 = vpack.c.bf16 %v25124_v29, %v25123_v2 }
0x14d1   :  { %v30543_v1 = vpop.f32.mrb[220].mxu0 }
0x14d2   :  { %v12271_v3 = vpop.f32.mrb[221].mxu0 }
0x14d5   :  { %v30546_v4 = vpop.f32.mrb[222].mxu0 }
0x14d6   :  { %v12281_v5 = vpop.f32.mrb[223].mxu0 }
0x14d9   :  { %v30557_v8 = vpop.f32.mrb[224].mxu0 }
0x14da   :  { %v12361_v10 = vpop.f32.mrb[225].mxu0 }
0x14db   :  { %30569 = vmatprep.mubr.msk.f32.mxu1 %vm421_vm0, %v12361_v10  ;;  %v25172_v10 = vld [vmem:[%s40541_s7 + $0x568] sm:$0xff] }
0x14dc   :  { %30570 = vmatmul.mubr.msk.f32.vlgmr.msra.gmra.mrb[60].mxu1 %vm421_vm0, %v30557_v8  ;;  %v25171_v8 = vld [vmem:[%s40541_s7 + $0x560] sm:$0xff] }
0x14dd   :  { %v30560_v14 = vpop.f32.mrb[226].mxu0  ;;  %33932 = vmatpush3.bf16.msra.mxu1 %v33929_v54  ;;  %v34009_v54 = vpack.c.bf16 %v25160_v51, %v25159_v48  ;;  %v34025_v12 = vpack.c.bf16 %v25172_v10, %v25171_v8  ;;  %v38618_v48 = vld [vmem:[%s40540_s6 + $0x38] sm:$0xff]  ;;  %v38626_v51 = vld [vmem:[%s40540_s6 + $0x40] sm:$0xff]  ;;  %v38698_v8 = vld [vmem:[%s40540_s6 + $0x88] sm:$0xff] }
0x14de   :  { %v12371_v15 = vpop.f32.mrb[227].mxu0  ;;  %33934 = vmatprep.subr.bf16.mxu1 %v33933_v11  ;;  %v38706_v10 = vld [vmem:[%s40540_s6 + $0x90] sm:$0xff] }
0x14df   :  { %30572 = vmatprep.mubr.msk.f32.mxu1 %vm421_vm0, %v12371_v15  ;;  %v25174_v15 = vld [vmem:[%s40541_s7 + $0x578] sm:$0xff] }
0x14e0   :  { %30573 = vmatmul.mubr.msk.f32.gmra.mrb[62].mxu1 %vm421_vm0, %v30560_v14  ;;  %v25173_v14 = vld [vmem:[%s40541_s7 + $0x570] sm:$0xff] }
0x14e1   :  { %33936 = vmatpush3.bf16.msra.mxu1 %v33933_v11  ;;  %30583 = vmatprep.mubr.msk.f32.mxu1 %vm421_vm0, %v12271_v3  ;;  %v30599_v20 = vpop.f32.mrb[228].mxu0  ;;  %v25161_v3 = vld [vmem:[%s40541_s7 + $0x550] sm:$0xff]  ;;  %v34029_v18 = vpack.c.bf16 %v25174_v15, %v25173_v14  ;;  %v38746_v15 = vld [vmem:[%s40540_s6 + $0xb8] sm:$0xff] }
0x14e2   :  { %33946 = vmatprep.subr.bf16.mxu1 %v33945_v17  ;;  %v12645_v59 = vpop.f32.mrb[229].mxu0  ;;  %v38738_v14 = vld [vmem:[%s40540_s6 + $0xb0] sm:$0xff] }
0x14e4   :  { %30584 = vmatmul.mubr.msk.f32.vlgmr.msra.gmra.mrb[60].mxu1 %vm421_vm0, %v30543_v1 }
0x14e5   :  { %30586 = vmatprep.mubr.msk.f32.mxu1 %vm421_vm0, %v12281_v5  ;;  %33948 = vmatpush3.bf16.msra.mxu1 %v33945_v17  ;;  %v30602_v31 = vpop.f32.mrb[230].mxu0 }
0x14e6   :  { %33950 = vmatprep.subr.bf16.mxu1 %v33949_v52  ;;  %v12655_v16 = vpop.f32.mrb[231].mxu0 }
0x14e8   :  { %30587 = vmatmul.mubr.msk.f32.gmra.mrb[62].mxu1 %vm421_vm0, %v30546_v4  ;;  %v25162_v4 = vld [vmem:[%s40541_s7 + $0x558] sm:$0xff] }
0x14e9   :  { %33952 = vmatpush3.bf16.msra.mxu1 %v33949_v52  ;;  %30611 = vmatprep.mubr.msk.f32.mxu1 %vm421_vm0, %v12645_v59  ;;  %v30627_v22 = vpop.f32.mrb[232].mxu0  ;;  %v34013_v6 = vpack.c.bf16 %v25162_v4, %v25161_v3  ;;  %v25184_v52 = vld [vmem:[%s40541_s7 + $0x588] sm:$0xff]  ;;  %v38658_v3 = vld [vmem:[%s40540_s6 + $0x60] sm:$0xff] }
0x14ea   :  { %33962 = vmatprep.subr.bf16.mxu1 %v33961_v9  ;;  %v12836_v34 = vpop.f32.mrb[233].mxu0  ;;  %v38666_v4 = vld [vmem:[%s40540_s6 + $0x68] sm:$0xff] }
0x14ec   :  { %30612 = vmatmul.mubr.msk.f32.vlgmr.msra.gmra.mrb[60].mxu1 %vm421_vm0, %v30599_v20  ;;  %v25183_v20 = vld [vmem:[%s40541_s7 + $0x580] sm:$0xff] }
0x14ed   :  { %33964 = vmatpush3.bf16.msra.mxu1 %v33961_v9  ;;  %30614 = vmatprep.mubr.msk.f32.mxu1 %vm421_vm0, %v12655_v16  ;;  %v30630_v40 = vpop.f32.mrb[234].mxu0  ;;  %v34041_v2 = vpack.c.bf16 %v25184_v52, %v25183_v20  ;;  %v25186_v9 = vld [vmem:[%s40541_s7 + $0x598] sm:$0xff]  ;;  %v38786_v52 = vld [vmem:[%s40540_s6 + $0xe0] sm:$0xff] }
0x14ee   :  { %33966 = vmatprep.subr.bf16.mxu1 %v33965_v44  ;;  %v12846_v36 = vpop.f32.mrb[235].mxu0  ;;  %v38778_v20 = vld [vmem:[%s40540_s6 + $0xd8] sm:$0xff] }
0x14f0   :  { %30615 = vmatmul.mubr.msk.f32.gmra.mrb[62].mxu1 %vm421_vm0, %v30602_v31  ;;  %v25185_v31 = vld [vmem:[%s40541_s7 + $0x590] sm:$0xff] }
0x14f1   :  { %33968 = vmatpush3.bf16.msra.mxu1 %v33965_v44  ;;  %30639 = vmatprep.mubr.msk.f32.mxu1 %vm421_vm0, %v12836_v34  ;;  %v30655_v25 = vpop.f32.mrb[236].mxu0  ;;  %v34045_v30 = vpack.c.bf16 %v25186_v9, %v25185_v31  ;;  %v25192_v34 = vld [vmem:[%s40542_s8 + $0x4] ss:$0 sm:$0xff] }
0x14f2   :  { %33978 = vmatprep.subr.bf16.mxu1 %v33977_v41  ;;  %v13027_v28 = vpop.f32.mrb[237].mxu0 }
0x14f4   :  { %30640 = vmatmul.mubr.msk.f32.vlgmr.msra.gmra.mrb[60].mxu1 %vm421_vm0, %v30627_v22 }
0x14f5   :  { %33980 = vmatpush3.bf16.msra.mxu1 %v33977_v41  ;;  %30642 = vmatprep.mubr.msk.f32.mxu1 %vm421_vm0, %v12846_v36  ;;  %v30658_v39 = vpop.f32.mrb[238].mxu0 }
0x14f6   :  { %33982 = vmatprep.subr.bf16.mxu1 %v33981_v27  ;;  %v13037_v56 = vpop.f32.mrb[239].mxu0 }
0x14f8   :  { %30643 = vmatmul.mubr.msk.f32.gmra.mrb[62].mxu1 %vm421_vm0, %v30630_v40 }
0x14f9   :  { %33984 = vmatpush3.bf16.msra.mxu1 %v33981_v27  ;;  %30667 = vmatprep.mubr.msk.f32.mxu1 %vm421_vm0, %v13027_v28  ;;  %v30683_v42 = vpop.f32.mrb[240].mxu0 }
0x14fa   :  { %33994 = vmatprep.subr.bf16.mxu1 %v33993_v63  ;;  %v13218_v46 = vpop.f32.mrb[241].mxu0 }
0x14fc   :  { %30668 = vmatmul.mubr.msk.f32.vlgmr.msra.gmra.mrb[60].mxu1 %vm421_vm0, %v30655_v25 }
0x14fd   :  { %33996 = vmatpush3.bf16.msra.mxu1 %v33993_v63  ;;  %30670 = vmatprep.mubr.msk.f32.mxu1 %vm421_vm0, %v13037_v56  ;;  %v30686_v53 = vpop.f32.mrb[242].mxu0  ;;  %v38570_v56 = vld [vmem:[%s40540_s6 + $0x8] sm:$0xff] }
0x14fe   :  { %33998 = vmatprep.subr.bf16.mxu1 %v33997_v45  ;;  %v13228_v1 = vpop.f32.mrb[243].mxu0 }
0x1500   :  { %30671 = vmatmul.mubr.msk.f32.gmra.mrb[62].mxu1 %vm421_vm0, %v30658_v39 }
0x1501   :  { %34000 = vmatpush3.bf16.msra.mxu1 %v33997_v45  ;;  %30695 = vmatprep.mubr.msk.f32.mxu1 %vm421_vm0, %v13218_v46  ;;  %v30711_v5 = vpop.f32.mrb[244].mxu0  ;;  %v38602_v45 = vld [vmem:[%s40540_s6 + $0x28] sm:$0xff]  ;;  %v38610_v46 = vld [vmem:[%s40540_s6 + $0x30] sm:$0xff] }
0x1502   :  { %34010 = vmatprep.subr.bf16.mxu1 %v34009_v54  ;;  %v13409_v7 = vpop.f32.mrb[245].mxu0 }
0x1504   :  { %30696 = vmatmul.mubr.msk.f32.vlgmr.msra.gmra.mrb[60].mxu1 %vm421_vm0, %v30683_v42  ;;  %v38594_v42 = vld [vmem:[%s40540_s6 + $0x20] sm:$0xff] }
0x1505   :  { %34012 = vmatpush3.bf16.msra.mxu1 %v34009_v54  ;;  %30698 = vmatprep.mubr.msk.f32.mxu1 %vm421_vm0, %v13228_v1  ;;  %v30714_v11 = vpop.f32.mrb[246].mxu0  ;;  %v38642_v54 = vld [vmem:[%s40540_s6 + $0x50] sm:$0xff]  ;;  %v38650_v1 = vld [vmem:[%s40540_s6 + $0x58] sm:$0xff] }
0x1506   :  { %34014 = vmatprep.subr.bf16.mxu1 %v34013_v6  ;;  %v13419_v13 = vpop.f32.mrb[247].mxu0 }
0x1508   :  { %30699 = vmatmul.mubr.msk.f32.gmra.mrb[62].mxu1 %vm421_vm0, %v30686_v53  ;;  %v38634_v53 = vld [vmem:[%s40540_s6 + $0x48] sm:$0xff] }
0x1509   :  { %34016 = vmatpush3.bf16.msra.mxu1 %v34013_v6  ;;  %30723 = vmatprep.mubr.msk.f32.mxu1 %vm421_vm0, %v13409_v7  ;;  %v30739_v17 = vpop.f32.mrb[248].mxu0  ;;  %v38682_v6 = vld [vmem:[%s40540_s6 + $0x78] sm:$0xff]  ;;  %v38690_v7 = vld [vmem:[%s40540_s6 + $0x80] sm:$0xff] }
0x150a   :  { %34026 = vmatprep.subr.bf16.mxu1 %v34025_v12  ;;  %v13600_v19 = vpop.f32.mrb[249].mxu0 }
0x150c   :  { %30724 = vmatmul.mubr.msk.f32.vlgmr.msra.gmra.mrb[60].mxu1 %vm421_vm0, %v30711_v5  ;;  %v38674_v5 = vld [vmem:[%s40540_s6 + $0x70] sm:$0xff] }
0x150d   :  { %34028 = vmatpush3.bf16.msra.mxu1 %v34025_v12  ;;  %30726 = vmatprep.mubr.msk.f32.mxu1 %vm421_vm0, %v13419_v13  ;;  %v30742_v59 = vpop.f32.mrb[250].mxu0  ;;  %v38722_v12 = vld [vmem:[%s40540_s6 + $0xa0] sm:$0xff]  ;;  %v38730_v13 = vld [vmem:[%s40540_s6 + $0xa8] sm:$0xff] }
0x150e   :  { %34030 = vmatprep.subr.bf16.mxu1 %v34029_v18  ;;  %v13610_v29 = vpop.f32.mrb[251].mxu0 }
0x1510   :  { %30727 = vmatmul.mubr.msk.f32.gmra.mrb[62].mxu1 %vm421_vm0, %v30714_v11  ;;  %v38714_v11 = vld [vmem:[%s40540_s6 + $0x98] sm:$0xff] }
0x1511   :  { %34032 = vmatpush3.bf16.msra.mxu1 %v34029_v18  ;;  %30751 = vmatprep.mubr.msk.f32.mxu1 %vm421_vm0, %v13600_v19  ;;  %v30767_v16 = vpop.f32.mrb[252].mxu0  ;;  %v38762_v18 = vld [vmem:[%s40540_s6 + $0xc8] sm:$0xff]  ;;  %v38770_v19 = vld [vmem:[%s40540_s6 + $0xd0] sm:$0xff] }
0x1512   :  { %34042 = vmatprep.subr.bf16.mxu1 %v34041_v2  ;;  %v13791_v21 = vpop.f32.mrb[253].mxu0 }
0x1514   :  { %30752 = vmatmul.mubr.msk.f32.vlgmr.msra.gmra.mrb[60].mxu1 %vm421_vm0, %v30739_v17  ;;  %v38754_v17 = vld [vmem:[%s40540_s6 + $0xc0] sm:$0xff] }
0x1515   :  { %34044 = vmatpush3.bf16.msra.mxu1 %v34041_v2  ;;  %30754 = vmatprep.mubr.msk.f32.mxu1 %vm421_vm0, %v13610_v29  ;;  %v30770_v22 = vpop.f32.mrb[254].mxu0  ;;  %v25198_v2 = vld [vmem:[%s40541_s7 + $0x5a8] sm:$0xff] }
0x1516   :  { %34046 = vmatprep.subr.bf16.mxu1 %v34045_v30  ;;  %v13801_v44 = vpop.f32.mrb[255].mxu0 }
0x1518   :  { %30755 = vmatmul.mubr.msk.f32.gmra.mrb[62].mxu1 %vm421_vm0, %v30742_v59  ;;  %v25197_v59 = vld [vmem:[%s40541_s7 + $0x5a0] sm:$0xff] }
0x1519   :  { %34048 = vmatpush3.bf16.msra.mxu1 %v34045_v30  ;;  %30779 = vmatprep.mubr.msk.f32.mxu1 %vm421_vm0, %v13791_v21  ;;  %v34073_v29 = vpack.c.bf16 %v25198_v2, %v25197_v59  ;;  %v25199_v21 = vld [vmem:[%s40541_s7 + $0x5b0] sm:$0xff]  ;;  %v25245_v2 = vld [vmem:[%s40541_s7 + $0x620] sm:$0xff] }
0x151c   :  { %30780 = vmatmul.mubr.msk.f32.vlgmr.msra.gmra.mrb[60].mxu1 %vm421_vm0, %v30767_v16 }
0x151d   :  { %30782 = vmatprep.mubr.msk.f32.mxu1 %vm421_vm0, %v13801_v44 }
0x1520   :  { %30783 = vmatmul.mubr.msk.f32.gmra.mrb[62].mxu1 %vm421_vm0, %v30770_v22  ;;  %v25200_v22 = vld [vmem:[%s40541_s7 + $0x5b8] sm:$0xff] }
0x15ef   :  { %v30781_v32 = vpop.f32.mrb[60].mxu1 }
0x15f0   :  { %v13925_v33 = vadd.f32 %v30781_v32, %v25192_v34  ;;  %v13893_v40 = vpop.f32.mrb[61].mxu1  ;;  %v34077_v32 = vpack.c.bf16 %v25200_v22, %v25199_v21  ;;  %v25248_v21 = vld [vmem:[%s40541_s7 + $0x638] sm:$0xff] }
0x15f1   :  { %v13924_v41 = vadd.f32 %v25192_v34, %v13893_v40  ;;  %v25222_v40 = vld [vmem:[%s40541_s7 + $0x5e8] sm:$0xff] }
0x15f2   :  { %v13929_v36 = vmax.f32 %v13925_v33, 0.0  ;;  %v25221_v33 = vld [vmem:[%s40541_s7 + $0x5e0] sm:$0xff] }
0x15f3   :  { %v13928_v43 = vmax.f32 %v13924_v41, 0.0  ;;  %v30784_v37 = vpop.f32.mrb[62].mxu1 }
0x15f4   :  { %v13927_v25 = vadd.f32 %v30784_v37, %v25192_v34  ;;  %v13903_v27 = vpop.f32.mrb[63].mxu1  ;;  %v25223_v37 = vld [vmem:[%s40541_s7 + $0x5f0] sm:$0xff] }
0x15f5   :  { %v38558_v28 = vpack.c.bf16 %v13929_v36, %v13928_v43  ;;  %v13926_v58 = vadd.f32 %v25192_v34, %v13903_v27  ;;  %v34089_v43 = vpack.c.bf16 %v25222_v40, %v25221_v33  ;;  %v25258_v33 = vld [vmem:[%s40541_s7 + $0x648] sm:$0xff] }
0x15f6   :  { %v13931_v61 = vmax.f32 %v13927_v25, 0.0  ;;  %v25224_v25 = vld [vmem:[%s40541_s7 + $0x5f8] sm:$0xff] }
0x15f7   :  { %v13930_v39 = vmax.f32 %v13926_v58, 0.0  ;;  %34050 = vmatprep.subr.bf16.mxu0 %v38558_v28 }
0x15f8   :  { %34052 = vmatpush3.bf16.msra.mxu0 %v38558_v28 }
0x15f9   :  { %v38562_v63 = vpack.c.bf16 %v13931_v61, %v13930_v39  ;;  %v25233_v61 = vld [vmem:[%s40541_s7 + $0x600] sm:$0xff]  ;;  %v25234_v39 = vld [vmem:[%s40541_s7 + $0x608] sm:$0xff] }
0x15fb   :  { %34054 = vmatprep.subr.bf16.mxu0 %v38562_v63 }
0x15fc   :  { %34056 = vmatpush3.bf16.msra.mxu0 %v38562_v63 }
0x15fd   :  { %34058 = vmatprep.subr.bf16.mxu0 %v38558_v28 }
0x15ff   :  { %30794 = vmatmul.mubr.msk.f32.vlgmr.msra.gmra.mrb[0].mxu0 %vm421_vm0, %v38570_v56 }
0x1600   :  { %34060 = vmatpush3.bf16.msra.mxu0 %v38558_v28  ;;  %30796 = vmatprep.mubr.msk.f32.mxu0 %vm421_vm0, %v38578_v60 }
0x1601   :  { %34062 = vmatprep.subr.bf16.mxu0 %v38562_v63 }
0x1603   :  { %30797 = vmatmul.mubr.msk.f32.gmra.mrb[2].mxu0 %vm421_vm0, %v38586_v0 }
0x1604   :  { %34064 = vmatpush3.bf16.msra.mxu0 %v38562_v63  ;;  %30807 = vmatprep.mubr.msk.f32.mxu0 %vm421_vm0, %v38594_v42 }
0x1605   :  { %34082 = vmatprep.subr.bf16.mxu0 %v38558_v28 }
0x1607   :  { %30808 = vmatmul.mubr.msk.f32.vlgmr.msra.gmra.mrb[4].mxu0 %vm421_vm0, %v38602_v45 }
0x1608   :  { %34084 = vmatpush3.bf16.msra.mxu0 %v38558_v28  ;;  %30810 = vmatprep.mubr.msk.f32.mxu0 %vm421_vm0, %v38610_v46 }
0x1609   :  { %34086 = vmatprep.subr.bf16.mxu0 %v38562_v63 }
0x160b   :  { %30811 = vmatmul.mubr.msk.f32.gmra.mrb[6].mxu0 %vm421_vm0, %v38618_v48 }
0x160c   :  { %34088 = vmatpush3.bf16.msra.mxu0 %v38562_v63  ;;  %30849 = vmatprep.mubr.msk.f32.mxu0 %vm421_vm0, %v38626_v51 }
0x160d   :  { %34098 = vmatprep.subr.bf16.mxu0 %v38558_v28 }
0x160f   :  { %30850 = vmatmul.mubr.msk.f32.vlgmr.msra.gmra.mrb[8].mxu0 %vm421_vm0, %v38634_v53 }
0x1610   :  { %34100 = vmatpush3.bf16.msra.mxu0 %v38558_v28  ;;  %30852 = vmatprep.mubr.msk.f32.mxu0 %vm421_vm0, %v38642_v54 }
0x1611   :  { %34102 = vmatprep.subr.bf16.mxu0 %v38562_v63 }
0x1613   :  { %30853 = vmatmul.mubr.msk.f32.gmra.mrb[10].mxu0 %vm421_vm0, %v38650_v1 }
0x1614   :  { %34104 = vmatpush3.bf16.msra.mxu0 %v38562_v63  ;;  %30877 = vmatprep.mubr.msk.f32.mxu0 %vm421_vm0, %v38658_v3 }
0x1615   :  { %34114 = vmatprep.subr.bf16.mxu0 %v38558_v28 }
0x1617   :  { %30878 = vmatmul.mubr.msk.f32.vlgmr.msra.gmra.mrb[12].mxu0 %vm421_vm0, %v38666_v4 }
0x1618   :  { %34116 = vmatpush3.bf16.msra.mxu0 %v38558_v28  ;;  %30880 = vmatprep.mubr.msk.f32.mxu0 %vm421_vm0, %v38674_v5 }
0x1619   :  { %34118 = vmatprep.subr.bf16.mxu0 %v38562_v63 }
0x161b   :  { %30881 = vmatmul.mubr.msk.f32.gmra.mrb[14].mxu0 %vm421_vm0, %v38682_v6 }
0x161c   :  { %34120 = vmatpush3.bf16.msra.mxu0 %v38562_v63  ;;  %30905 = vmatprep.mubr.msk.f32.mxu0 %vm421_vm0, %v38690_v7 }
0x161d   :  { %34130 = vmatprep.subr.bf16.mxu0 %v38558_v28 }
0x161f   :  { %30906 = vmatmul.mubr.msk.f32.vlgmr.msra.gmra.mrb[16].mxu0 %vm421_vm0, %v38698_v8 }
0x1620   :  { %34132 = vmatpush3.bf16.msra.mxu0 %v38558_v28  ;;  %30908 = vmatprep.mubr.msk.f32.mxu0 %vm421_vm0, %v38706_v10 }
0x1621   :  { %34134 = vmatprep.subr.bf16.mxu0 %v38562_v63 }
0x1623   :  { %30909 = vmatmul.mubr.msk.f32.gmra.mrb[18].mxu0 %vm421_vm0, %v38714_v11 }
0x1624   :  { %34136 = vmatpush3.bf16.msra.mxu0 %v38562_v63  ;;  %30933 = vmatprep.mubr.msk.f32.mxu0 %vm421_vm0, %v38722_v12 }
0x1625   :  { %34146 = vmatprep.subr.bf16.mxu0 %v38558_v28 }
0x1627   :  { %30934 = vmatmul.mubr.msk.f32.vlgmr.msra.gmra.mrb[20].mxu0 %vm421_vm0, %v38730_v13 }
0x1628   :  { %34148 = vmatpush3.bf16.msra.mxu0 %v38558_v28  ;;  %30936 = vmatprep.mubr.msk.f32.mxu0 %vm421_vm0, %v38738_v14 }
0x1629   :  { %34150 = vmatprep.subr.bf16.mxu0 %v38562_v63 }
0x162b   :  { %30937 = vmatmul.mubr.msk.f32.gmra.mrb[22].mxu0 %vm421_vm0, %v38746_v15 }
0x162c   :  { %34152 = vmatpush3.bf16.msra.mxu0 %v38562_v63  ;;  %30961 = vmatprep.mubr.msk.f32.mxu0 %vm421_vm0, %v38754_v17 }
0x162d   :  { %34162 = vmatprep.subr.bf16.mxu0 %v38558_v28 }
0x162f   :  { %30962 = vmatmul.mubr.msk.f32.vlgmr.msra.gmra.mrb[24].mxu0 %vm421_vm0, %v38762_v18 }
0x1630   :  { %34164 = vmatpush3.bf16.msra.mxu0 %v38558_v28  ;;  %30964 = vmatprep.mubr.msk.f32.mxu0 %vm421_vm0, %v38770_v19 }
0x1631   :  { %34166 = vmatprep.subr.bf16.mxu0 %v38562_v63 }
0x1633   :  { %30965 = vmatmul.mubr.msk.f32.gmra.mrb[26].mxu0 %vm421_vm0, %v38778_v20 }
0x1634   :  { %34168 = vmatpush3.bf16.msra.mxu0 %v38562_v63  ;;  %30989 = vmatprep.mubr.msk.f32.mxu0 %vm421_vm0, %v38786_v52 }
0x1635   :  { %34178 = vmatprep.subr.bf16.mxu0 %v38558_v28 }
0x1637   :  { %30990 = vmatmul.mubr.msk.f32.vlgmr.msra.gmra.mrb[28].mxu0 %vm421_vm0, %v38085_v47  ;;  %v38811_v47 = vld [vmem:[%s40540_s6] sm:$0xff] }
0x1638   :  { %34180 = vmatpush3.bf16.msra.mxu0 %v38558_v28  ;;  %30992 = vmatprep.mubr.msk.f32.mxu0 %vm421_vm0, %v38093_v49  ;;  %v25205_v49 = vld [vmem:[%s40541_s7 + $0x5c0] sm:$0xff]  ;;  %v34093_v28 = vpack.c.bf16 %v25224_v25, %v25223_v37  ;;  %v25260_v37 = vld [vmem:[%s40541_s7 + $0x658] sm:$0xff] }
0x1639   :  { %34182 = vmatprep.subr.bf16.mxu0 %v38562_v63 }
0x163b   :  { %30993 = vmatmul.mubr.msk.f32.gmra.mrb[30].mxu0 %vm421_vm0, %v38101_v35  ;;  %v25206_v35 = vld [vmem:[%s40541_s7 + $0x5c8] sm:$0xff] }
0x163c   :  { %34184 = vmatpush3.bf16.msra.mxu0 %v38562_v63  ;;  %31017 = vmatprep.mubr.msk.f32.mxu0 %vm421_vm0, %v38109_v38  ;;  %v34065_v38 = vpack.c.bf16 %v25206_v35, %v25205_v49  ;;  %v34105_v49 = vpack.c.bf16 %v25234_v39, %v25233_v61  ;;  %v25270_v61 = vld [vmem:[%s40541_s7 + $0x668] sm:$0xff] }
0x163e   :  { %34066 = vmatprep.subr.bf16.mxu1 %v34065_v38 }
0x163f   :  { %31018 = vmatmul.mubr.msk.f32.vlgmr.msra.gmra.mrb[32].mxu0 %vm421_vm0, %v38116_v50  ;;  %34068 = vmatpush3.bf16.msra.mxu1 %v34065_v38  ;;  %v25207_v50 = vld [vmem:[%s40541_s7 + $0x5d0] sm:$0xff] }
0x1640   :  { %31020 = vmatprep.mubr.msk.f32.mxu0 %vm421_vm0, %v38123_v55  ;;  %v25208_v55 = vld [vmem:[%s40541_s7 + $0x5d8] sm:$0xff]  ;;  %v25235_v38 = vld [vmem:[%s40541_s7 + $0x610] sm:$0xff] }
0x1643   :  { %31021 = vmatmul.mubr.msk.f32.gmra.mrb[34].mxu0 %vm421_vm0, %v38130_v24  ;;  %v34069_v24 = vpack.c.bf16 %v25208_v55, %v25207_v50  ;;  %v25236_v50 = vld [vmem:[%s40541_s7 + $0x618] sm:$0xff] }
0x1644   :  { %31045 = vmatprep.mubr.msk.f32.mxu0 %vm421_vm0, %v38811_v47 }
0x1645   :  { %34070 = vmatprep.subr.bf16.mxu1 %v34069_v24 }
0x1646   :  { %34072 = vmatpush3.bf16.msra.mxu1 %v34069_v24  ;;  %v34109_v24 = vpack.c.bf16 %v25236_v50, %v25235_v38  ;;  %v25272_v38 = vld [vmem:[%s40541_s7 + $0x678] sm:$0xff] }
0x1647   :  { %34074 = vmatprep.subr.bf16.mxu1 %v34073_v29 }
0x16d2   :  { %v30795_v31 = vpop.f32.mrb[0].mxu0 }
0x16d3   :  { %v13998_v9 = vpop.f32.mrb[1].mxu0 }
0x16d6   :  { %v30798_v16 = vpop.f32.mrb[2].mxu0 }
0x16d7   :  { %v14008_v30 = vpop.f32.mrb[3].mxu0 }
0x16da   :  { %v30809_v44 = vpop.f32.mrb[4].mxu0 }
0x16db   :  { %v14088_v34 = vpop.f32.mrb[5].mxu0 }
0x16dc   :  { %30821 = vmatprep.mubr.msk.f32.mxu1 %vm421_vm0, %v14088_v34 }
0x16dd   :  { %30822 = vmatmul.mubr.msk.f32.vlgmr.msra.gmra.mrb[64].mxu1 %vm421_vm0, %v30809_v44 }
0x16de   :  { %v30812_v41 = vpop.f32.mrb[6].mxu0  ;;  %34076 = vmatpush3.bf16.msra.mxu1 %v34073_v29  ;;  %v25246_v29 = vld [vmem:[%s40541_s7 + $0x628] sm:$0xff] }
0x16df   :  { %v14098_v36 = vpop.f32.mrb[7].mxu0  ;;  %34078 = vmatprep.subr.bf16.mxu1 %v34077_v32 }
0x16e0   :  { %30824 = vmatprep.mubr.msk.f32.mxu1 %vm421_vm0, %v14098_v36 }
0x16e1   :  { %30825 = vmatmul.mubr.msk.f32.gmra.mrb[66].mxu1 %vm421_vm0, %v30812_v41 }
0x16e2   :  { %34080 = vmatpush3.bf16.msra.mxu1 %v34077_v32  ;;  %30835 = vmatprep.mubr.msk.f32.mxu1 %vm421_vm0, %v13998_v9  ;;  %v30851_v27 = vpop.f32.mrb[8].mxu0  ;;  %v34121_v9 = vpack.c.bf16 %v25246_v29, %v25245_v2  ;;  %v25257_v32 = vld [vmem:[%s40541_s7 + $0x640] sm:$0xff]  ;;  %v25282_v2 = vld [vmem:[%s40541_s7 + $0x688] sm:$0xff] }
0x16e3   :  { %34090 = vmatprep.subr.bf16.mxu1 %v34089_v43  ;;  %v14372_v58 = vpop.f32.mrb[9].mxu0  ;;  %v34137_v41 = vpack.c.bf16 %v25258_v33, %v25257_v32  ;;  %v25294_v32 = vld [vmem:[%s40541_s7 + $0x6a8] sm:$0xff] }
0x16e5   :  { %30836 = vmatmul.mubr.msk.f32.vlgmr.msra.gmra.mrb[64].mxu1 %vm421_vm0, %v30795_v31 }
0x16e6   :  { %30838 = vmatprep.mubr.msk.f32.mxu1 %vm421_vm0, %v14008_v30  ;;  %34092 = vmatpush3.bf16.msra.mxu1 %v34089_v43  ;;  %v30854_v63 = vpop.f32.mrb[10].mxu0  ;;  %v25247_v30 = vld [vmem:[%s40541_s7 + $0x630] sm:$0xff] }
0x16e7   :  { %34094 = vmatprep.subr.bf16.mxu1 %v34093_v28  ;;  %v14382_v35 = vpop.f32.mrb[11].mxu0  ;;  %v34125_v44 = vpack.c.bf16 %v25248_v21, %v25247_v30  ;;  %v25259_v43 = vld [vmem:[%s40541_s7 + $0x650] sm:$0xff]  ;;  %v25284_v30 = vld [vmem:[%s40541_s7 + $0x698] sm:$0xff] }
0x16e9   :  { %30839 = vmatmul.mubr.msk.f32.gmra.mrb[66].mxu1 %vm421_vm0, %v30798_v16 }
0x16ea   :  { %34096 = vmatpush3.bf16.msra.mxu1 %v34093_v28  ;;  %30863 = vmatprep.mubr.msk.f32.mxu1 %vm421_vm0, %v14372_v58  ;;  %v30879_v55 = vpop.f32.mrb[12].mxu0  ;;  %v25269_v58 = vld [vmem:[%s40541_s7 + $0x660] sm:$0xff] }
0x16eb   :  { %34106 = vmatprep.subr.bf16.mxu1 %v34105_v49  ;;  %v14563_v59 = vpop.f32.mrb[13].mxu0 }
0x16ed   :  { %30864 = vmatmul.mubr.msk.f32.vlgmr.msra.gmra.mrb[64].mxu1 %vm421_vm0, %v30851_v27  ;;  %v34141_v27 = vpack.c.bf16 %v25260_v37, %v25259_v43  ;;  %v25296_v43 = vld [vmem:[%s40541_s7 + $0x6b8] sm:$0xff] }
0x16ee   :  { %34108 = vmatpush3.bf16.msra.mxu1 %v34105_v49  ;;  %30866 = vmatprep.mubr.msk.f32.mxu1 %vm421_vm0, %v14382_v35  ;;  %v30882_v31 = vpop.f32.mrb[14].mxu0  ;;  %v25271_v35 = vld [vmem:[%s40541_s7 + $0x670] sm:$0xff] }
0x16ef   :  { %34110 = vmatprep.subr.bf16.mxu1 %v34109_v24  ;;  %v14573_v16 = vpop.f32.mrb[15].mxu0 }
0x16f1   :  { %30867 = vmatmul.mubr.msk.f32.gmra.mrb[66].mxu1 %vm421_vm0, %v30854_v63  ;;  %v34153_v63 = vpack.c.bf16 %v25270_v61, %v25269_v58  ;;  %v25302_v61 = vld [vmem:[%s40542_s8 + $0x5] ss:$0 sm:$0xff] }
0x16f2   :  { %34112 = vmatpush3.bf16.msra.mxu1 %v34109_v24  ;;  %30891 = vmatprep.mubr.msk.f32.mxu1 %vm421_vm0, %v14563_v59  ;;  %v30907_v22 = vpop.f32.mrb[16].mxu0  ;;  %v25281_v59 = vld [vmem:[%s40541_s7 + $0x680] sm:$0xff] }
0x16f3   :  { %34122 = vmatprep.subr.bf16.mxu1 %v34121_v9  ;;  %v14754_v34 = vpop.f32.mrb[17].mxu0 }
0x16f5   :  { %30892 = vmatmul.mubr.msk.f32.vlgmr.msra.gmra.mrb[64].mxu1 %vm421_vm0, %v30879_v55  ;;  %v34157_v55 = vpack.c.bf16 %v25272_v38, %v25271_v35 }
0x16f6   :  { %34124 = vmatpush3.bf16.msra.mxu1 %v34121_v9  ;;  %30894 = vmatprep.mubr.msk.f32.mxu1 %vm421_vm0, %v14573_v16  ;;  %v30910_v40 = vpop.f32.mrb[18].mxu0  ;;  %v25283_v16 = vld [vmem:[%s40541_s7 + $0x690] sm:$0xff] }
0x16f7   :  { %34126 = vmatprep.subr.bf16.mxu1 %v34125_v44  ;;  %v14764_v36 = vpop.f32.mrb[19].mxu0 }
0x16f9   :  { %30895 = vmatmul.mubr.msk.f32.gmra.mrb[66].mxu1 %vm421_vm0, %v30882_v31  ;;  %v34169_v31 = vpack.c.bf16 %v25282_v2, %v25281_v59 }
0x16fa   :  { %34128 = vmatpush3.bf16.msra.mxu1 %v34125_v44  ;;  %30919 = vmatprep.mubr.msk.f32.mxu1 %vm421_vm0, %v14754_v34  ;;  %v30935_v25 = vpop.f32.mrb[20].mxu0  ;;  %v25293_v34 = vld [vmem:[%s40541_s7 + $0x6a0] sm:$0xff] }
0x16fb   :  { %34138 = vmatprep.subr.bf16.mxu1 %v34137_v41  ;;  %v14945_v28 = vpop.f32.mrb[21].mxu0 }
0x16fd   :  { %30920 = vmatmul.mubr.msk.f32.vlgmr.msra.gmra.mrb[64].mxu1 %vm421_vm0, %v30907_v22  ;;  %v34173_v22 = vpack.c.bf16 %v25284_v30, %v25283_v16 }
0x16fe   :  { %34140 = vmatpush3.bf16.msra.mxu1 %v34137_v41  ;;  %30922 = vmatprep.mubr.msk.f32.mxu1 %vm421_vm0, %v14764_v36  ;;  %v30938_v39 = vpop.f32.mrb[22].mxu0  ;;  %v25295_v36 = vld [vmem:[%s40541_s7 + $0x6b0] sm:$0xff] }
0x16ff   :  { %34142 = vmatprep.subr.bf16.mxu1 %v34141_v27  ;;  %v14955_v49 = vpop.f32.mrb[23].mxu0 }
0x1701   :  { %30923 = vmatmul.mubr.msk.f32.gmra.mrb[66].mxu1 %vm421_vm0, %v30910_v40  ;;  %v34185_v40 = vpack.c.bf16 %v25294_v32, %v25293_v34  ;;  %v39105_v34 = vld [vmem:[%s40540_s6 + $0x108] sm:$0xff]  ;;  %v39112_v32 = vld [vmem:[%s40540_s6 + $0x110] sm:$0xff] }
0x1702   :  { %34144 = vmatpush3.bf16.msra.mxu1 %v34141_v27  ;;  %30947 = vmatprep.mubr.msk.f32.mxu1 %vm421_vm0, %v14945_v28  ;;  %v30963_v50 = vpop.f32.mrb[24].mxu0 }
0x1703   :  { %34154 = vmatprep.subr.bf16.mxu1 %v34153_v63  ;;  %v15136_v24 = vpop.f32.mrb[25].mxu0 }
0x1705   :  { %30948 = vmatmul.mubr.msk.f32.vlgmr.msra.gmra.mrb[64].mxu1 %vm421_vm0, %v30935_v25  ;;  %v34189_v25 = vpack.c.bf16 %v25296_v43, %v25295_v36  ;;  %v25317_v43 = vld [vmem:[%s40541_s7 + $0x6f0] sm:$0xff] }
0x1706   :  { %34156 = vmatpush3.bf16.msra.mxu1 %v34153_v63  ;;  %30950 = vmatprep.mubr.msk.f32.mxu1 %vm421_vm0, %v14955_v49  ;;  %v30966_v29 = vpop.f32.mrb[26].mxu0 }
0x1707   :  { %34158 = vmatprep.subr.bf16.mxu1 %v34157_v55  ;;  %v15146_v9 = vpop.f32.mrb[27].mxu0 }
0x1709   :  { %30951 = vmatmul.mubr.msk.f32.gmra.mrb[66].mxu1 %vm421_vm0, %v30938_v39 }
0x170a   :  { %34160 = vmatpush3.bf16.msra.mxu1 %v34157_v55  ;;  %30975 = vmatprep.mubr.msk.f32.mxu1 %vm421_vm0, %v15136_v24  ;;  %v30991_v21 = vpop.f32.mrb[28].mxu0 }
0x170b   :  { %34170 = vmatprep.subr.bf16.mxu1 %v34169_v31  ;;  %v15327_v44 = vpop.f32.mrb[29].mxu0 }
0x170d   :  { %30976 = vmatmul.mubr.msk.f32.vlgmr.msra.gmra.mrb[64].mxu1 %vm421_vm0, %v30963_v50 }
0x170e   :  { %34172 = vmatpush3.bf16.msra.mxu1 %v34169_v31  ;;  %30978 = vmatprep.mubr.msk.f32.mxu1 %vm421_vm0, %v15146_v9  ;;  %v30994_v33 = vpop.f32.mrb[30].mxu0 }
0x170f   :  { %34174 = vmatprep.subr.bf16.mxu1 %v34173_v22  ;;  %v15337_v41 = vpop.f32.mrb[31].mxu0 }
0x1711   :  { %30979 = vmatmul.mubr.msk.f32.gmra.mrb[66].mxu1 %vm421_vm0, %v30966_v29 }
0x1712   :  { %34176 = vmatpush3.bf16.msra.mxu1 %v34173_v22  ;;  %31003 = vmatprep.mubr.msk.f32.mxu1 %vm421_vm0, %v15327_v44  ;;  %v31019_v37 = vpop.f32.mrb[32].mxu0  ;;  %v39098_v44 = vld [vmem:[%s40540_s6 + $0x100] sm:$0xff] }
0x1713   :  { %34186 = vmatprep.subr.bf16.mxu1 %v34185_v40  ;;  %v15518_v27 = vpop.f32.mrb[33].mxu0 }
0x1715   :  { %31004 = vmatmul.mubr.msk.f32.vlgmr.msra.gmra.mrb[64].mxu1 %vm421_vm0, %v30991_v21 }
0x1716   :  { %34188 = vmatpush3.bf16.msra.mxu1 %v34185_v40  ;;  %31006 = vmatprep.mubr.msk.f32.mxu1 %vm421_vm0, %v15337_v41  ;;  %v31022_v28 = vpop.f32.mrb[34].mxu0  ;;  %v25315_v40 = vld [vmem:[%s40541_s7 + $0x6e0] sm:$0xff]  ;;  %v25316_v41 = vld [vmem:[%s40541_s7 + $0x6e8] sm:$0xff] }
0x1717   :  { %34190 = vmatprep.subr.bf16.mxu1 %v34189_v25  ;;  %v15528_v58 = vpop.f32.mrb[35].mxu0  ;;  %v34209_v36 = vpack.c.bf16 %v25316_v41, %v25315_v40  ;;  %v25334_v40 = vld [vmem:[%s40541_s7 + $0x718] sm:$0xff] }
0x1719   :  { %31007 = vmatmul.mubr.msk.f32.gmra.mrb[66].mxu1 %vm421_vm0, %v30994_v33  ;;  %v39119_v33 = vld [vmem:[%s40540_s6 + $0x118] sm:$0xff] }
0x171a   :  { %34192 = vmatpush3.bf16.msra.mxu1 %v34189_v25  ;;  %31031 = vmatprep.mubr.msk.f32.mxu1 %vm421_vm0, %v15518_v27  ;;  %v25307_v27 = vld [vmem:[%s40541_s7 + $0x6c0] sm:$0xff] }
0x171b   :  { %34210 = vmatprep.subr.bf16.mxu1 %v34209_v36 }
0x171d   :  { %31032 = vmatmul.mubr.msk.f32.vlgmr.msra.gmra.mrb[64].mxu1 %vm421_vm0, %v31019_v37  ;;  %v25318_v37 = vld [vmem:[%s40541_s7 + $0x6f8] sm:$0xff] }
0x171e   :  { %31034 = vmatprep.mubr.msk.f32.mxu1 %vm421_vm0, %v15528_v58  ;;  %34212 = vmatpush3.bf16.msra.mxu1 %v34209_v36  ;;  %v34213_v25 = vpack.c.bf16 %v25318_v37, %v25317_v43  ;;  %v25343_v37 = vld [vmem:[%s40541_s7 + $0x720] sm:$0xff] }
0x1720   :  { %34214 = vmatprep.subr.bf16.mxu1 %v34213_v25 }
0x1721   :  { %31035 = vmatmul.mubr.msk.f32.gmra.mrb[66].mxu1 %vm421_vm0, %v31022_v28  ;;  %v25308_v28 = vld [vmem:[%s40541_s7 + $0x6c8] sm:$0xff] }
0x1722   :  { %34216 = vmatpush3.bf16.msra.mxu1 %v34213_v25  ;;  %v34217_v58 = vpack.c.bf16 %v25308_v28, %v25307_v27  ;;  %v25344_v25 = vld [vmem:[%s40541_s7 + $0x728] sm:$0xff] }
0x1723   :  { %v34249_v28 = vpack.c.bf16 %v25344_v25, %v25343_v37  ;;  %v25369_v25 = vld [vmem:[%s40541_s7 + $0x770] sm:$0xff] }
0x1724   :  { %34218 = vmatprep.subr.bf16.mxu1 %v34217_v58 }
0x17f0   :  { %v31033_v39 = vpop.f32.mrb[64].mxu1 }
0x17f1   :  { %v15652_v63 = vadd.f32 %v31033_v39, %v25302_v61  ;;  %v15620_v49 = vpop.f32.mrb[65].mxu1 }
0x17f2   :  { %v15651_v35 = vadd.f32 %v25302_v61, %v15620_v49 }
0x17f3   :  { %v15656_v38 = vmax.f32 %v15652_v63, 0.0 }
0x17f4   :  { %v15655_v50 = vmax.f32 %v15651_v35, 0.0  ;;  %v31036_v55 = vpop.f32.mrb[66].mxu1  ;;  %v25309_v35 = vld [vmem:[%s40541_s7 + $0x6d0] sm:$0xff] }
0x17f5   :  { %v38963_v24 = vadd.f32 %v15656_v38, %v38284_v26  ;;  %v15654_v59 = vadd.f32 %v31036_v55, %v25302_v61  ;;  %v15630_v2 = vpop.f32.mrb[67].mxu1  ;;  %v25310_v38 = vld [vmem:[%s40541_s7 + $0x6d8] sm:$0xff] }
0x17f6   :  { %v38966_v29 = vadd.f32 %v15655_v50, %v38287_v57  ;;  %v15653_v31 = vadd.f32 %v25302_v61, %v15630_v2  ;;  %v39074_v57 = vld [vmem:[%s40540_s6 + $0xe8] sm:$0xff]  ;;  %v25331_v2 = vld [vmem:[%s40541_s7 + $0x700] sm:$0xff] }
0x17f7   :  { %v15658_v9 = vmax.f32 %v15654_v59, 0.0  ;;  %v34221_v59 = vpack.c.bf16 %v25310_v38, %v25309_v35  ;;  %v25346_v35 = vld [vmem:[%s40541_s7 + $0x738] sm:$0xff] }
0x17f8   :  { %v38970_v16 = vpack.c.bf16 %v38963_v24, %v38966_v29  ;;  %v15657_v30 = vmax.f32 %v15653_v31, 0.0  ;;  %v25332_v31 = vld [vmem:[%s40541_s7 + $0x708] sm:$0xff] }
0x17f9   :  { %v38973_v21 = vadd.f32 %v15658_v9, %v38294_v23  ;;  %v39082_v23 = vld [vmem:[%s40540_s6 + $0xf0] sm:$0xff] }
0x17fa   :  { %v38976_v22 = vadd.f32 %v15657_v30, %v38297_v62  ;;  %34194 = vmatprep.subr.bf16.mxu0 %v38970_v16  ;;  %v39090_v62 = vld [vmem:[%s40540_s6 + $0xf8] sm:$0xff]  ;;  %v34233_v30 = vpack.c.bf16 %v25332_v31, %v25331_v2  ;;  %v25357_v31 = vld [vmem:[%s40541_s7 + $0x750] sm:$0xff] }
0x17fb   :  { %34196 = vmatpush3.bf16.msra.mxu0 %v38970_v16 }
0x17fc   :  { %v38982_v26 = vpack.c.bf16 %v38973_v21, %v38976_v22 }
0x17fe   :  { %34198 = vmatprep.subr.bf16.mxu0 %v38982_v26 }
0x17ff   :  { %34200 = vmatpush3.bf16.msra.mxu0 %v38982_v26 }
0x1800   :  { %34202 = vmatprep.subr.bf16.mxu0 %v38970_v16 }
0x1802   :  { %31046 = vmatmul.mubr.msk.f32.vlgmr.msra.gmra.mrb[36].mxu0 %vm421_vm0, %v38570_v56 }
0x1803   :  { %34204 = vmatpush3.bf16.msra.mxu0 %v38970_v16  ;;  %31048 = vmatprep.mubr.msk.f32.mxu0 %vm421_vm0, %v38578_v60 }
0x1804   :  { %34206 = vmatprep.subr.bf16.mxu0 %v38982_v26 }
0x1806   :  { %31049 = vmatmul.mubr.msk.f32.gmra.mrb[38].mxu0 %vm421_vm0, %v38586_v0 }
0x1807   :  { %34208 = vmatpush3.bf16.msra.mxu0 %v38982_v26  ;;  %31059 = vmatprep.mubr.msk.f32.mxu0 %vm421_vm0, %v38594_v42 }
0x1808   :  { %34226 = vmatprep.subr.bf16.mxu0 %v38970_v16 }
0x180a   :  { %31060 = vmatmul.mubr.msk.f32.vlgmr.msra.gmra.mrb[40].mxu0 %vm421_vm0, %v38602_v45 }
0x180b   :  { %34228 = vmatpush3.bf16.msra.mxu0 %v38970_v16  ;;  %31062 = vmatprep.mubr.msk.f32.mxu0 %vm421_vm0, %v38610_v46 }
0x180c   :  { %34230 = vmatprep.subr.bf16.mxu0 %v38982_v26 }
0x180e   :  { %31063 = vmatmul.mubr.msk.f32.gmra.mrb[42].mxu0 %vm421_vm0, %v38618_v48 }
0x180f   :  { %34232 = vmatpush3.bf16.msra.mxu0 %v38982_v26  ;;  %31101 = vmatprep.mubr.msk.f32.mxu0 %vm421_vm0, %v38626_v51 }
0x1810   :  { %34242 = vmatprep.subr.bf16.mxu0 %v38970_v16 }
0x1812   :  { %31102 = vmatmul.mubr.msk.f32.vlgmr.msra.gmra.mrb[44].mxu0 %vm421_vm0, %v38634_v53 }
0x1813   :  { %34244 = vmatpush3.bf16.msra.mxu0 %v38970_v16  ;;  %31104 = vmatprep.mubr.msk.f32.mxu0 %vm421_vm0, %v38642_v54 }
0x1814   :  { %34246 = vmatprep.subr.bf16.mxu0 %v38982_v26 }
0x1816   :  { %31105 = vmatmul.mubr.msk.f32.gmra.mrb[46].mxu0 %vm421_vm0, %v38650_v1 }
0x1817   :  { %34248 = vmatpush3.bf16.msra.mxu0 %v38982_v26  ;;  %31129 = vmatprep.mubr.msk.f32.mxu0 %vm421_vm0, %v38658_v3 }
0x1818   :  { %34258 = vmatprep.subr.bf16.mxu0 %v38970_v16 }
0x181a   :  { %31130 = vmatmul.mubr.msk.f32.vlgmr.msra.gmra.mrb[48].mxu0 %vm421_vm0, %v38666_v4 }
0x181b   :  { %34260 = vmatpush3.bf16.msra.mxu0 %v38970_v16  ;;  %31132 = vmatprep.mubr.msk.f32.mxu0 %vm421_vm0, %v38674_v5 }
0x181c   :  { %34262 = vmatprep.subr.bf16.mxu0 %v38982_v26 }
0x181e   :  { %31133 = vmatmul.mubr.msk.f32.gmra.mrb[50].mxu0 %vm421_vm0, %v38682_v6 }
0x181f   :  { %34264 = vmatpush3.bf16.msra.mxu0 %v38982_v26  ;;  %31157 = vmatprep.mubr.msk.f32.mxu0 %vm421_vm0, %v38690_v7 }
0x1820   :  { %34274 = vmatprep.subr.bf16.mxu0 %v38970_v16 }
0x1822   :  { %31158 = vmatmul.mubr.msk.f32.vlgmr.msra.gmra.mrb[52].mxu0 %vm421_vm0, %v38698_v8 }
0x1823   :  { %34276 = vmatpush3.bf16.msra.mxu0 %v38970_v16  ;;  %31160 = vmatprep.mubr.msk.f32.mxu0 %vm421_vm0, %v38706_v10 }
0x1824   :  { %34278 = vmatprep.subr.bf16.mxu0 %v38982_v26 }
0x1826   :  { %31161 = vmatmul.mubr.msk.f32.gmra.mrb[54].mxu0 %vm421_vm0, %v38714_v11 }
0x1827   :  { %34280 = vmatpush3.bf16.msra.mxu0 %v38982_v26  ;;  %31185 = vmatprep.mubr.msk.f32.mxu0 %vm421_vm0, %v38722_v12 }
0x1828   :  { %34290 = vmatprep.subr.bf16.mxu0 %v38970_v16 }
0x182a   :  { %31186 = vmatmul.mubr.msk.f32.vlgmr.msra.gmra.mrb[56].mxu0 %vm421_vm0, %v38730_v13 }
0x182b   :  { %34292 = vmatpush3.bf16.msra.mxu0 %v38970_v16  ;;  %31188 = vmatprep.mubr.msk.f32.mxu0 %vm421_vm0, %v38738_v14 }
0x182c   :  { %34294 = vmatprep.subr.bf16.mxu0 %v38982_v26 }
0x182e   :  { %31189 = vmatmul.mubr.msk.f32.gmra.mrb[58].mxu0 %vm421_vm0, %v38746_v15 }
0x182f   :  { %34296 = vmatpush3.bf16.msra.mxu0 %v38982_v26  ;;  %31213 = vmatprep.mubr.msk.f32.mxu0 %vm421_vm0, %v38754_v17 }
0x1830   :  { %34306 = vmatprep.subr.bf16.mxu0 %v38970_v16 }
0x1832   :  { %31214 = vmatmul.mubr.msk.f32.vlgmr.msra.gmra.mrb[60].mxu0 %vm421_vm0, %v38762_v18 }
0x1833   :  { %34308 = vmatpush3.bf16.msra.mxu0 %v38970_v16  ;;  %31216 = vmatprep.mubr.msk.f32.mxu0 %vm421_vm0, %v38770_v19 }
0x1834   :  { %34310 = vmatprep.subr.bf16.mxu0 %v38982_v26 }
0x1836   :  { %31217 = vmatmul.mubr.msk.f32.gmra.mrb[62].mxu0 %vm421_vm0, %v38778_v20 }
0x1837   :  { %34312 = vmatpush3.bf16.msra.mxu0 %v38982_v26  ;;  %31241 = vmatprep.mubr.msk.f32.mxu0 %vm421_vm0, %v38786_v52 }
0x1838   :  { %34322 = vmatprep.subr.bf16.mxu0 %v38970_v16 }
0x183a   :  { %31242 = vmatmul.mubr.msk.f32.vlgmr.msra.gmra.mrb[64].mxu0 %vm421_vm0, %v39074_v57 }
0x183b   :  { %34324 = vmatpush3.bf16.msra.mxu0 %v38970_v16  ;;  %31244 = vmatprep.mubr.msk.f32.mxu0 %vm421_vm0, %v39082_v23 }
0x183c   :  { %34326 = vmatprep.subr.bf16.mxu0 %v38982_v26 }
0x183e   :  { %31245 = vmatmul.mubr.msk.f32.gmra.mrb[66].mxu0 %vm421_vm0, %v39090_v62 }
0x183f   :  { %34328 = vmatpush3.bf16.msra.mxu0 %v38982_v26  ;;  %31269 = vmatprep.mubr.msk.f32.mxu0 %vm421_vm0, %v39098_v44  ;;  %v25333_v26 = vld [vmem:[%s40541_s7 + $0x710] sm:$0xff] }
0x1840   :  { %v34237_v36 = vpack.c.bf16 %v25334_v40, %v25333_v26  ;;  %v25367_v40 = vld [vmem:[%s40541_s7 + $0x760] sm:$0xff] }
0x1842   :  { %31270 = vmatmul.mubr.msk.f32.vlgmr.msra.gmra.mrb[68].mxu0 %vm421_vm0, %v39105_v34 }
0x1843   :  { %31272 = vmatprep.mubr.msk.f32.mxu0 %vm421_vm0, %v39112_v32 }
0x1846   :  { %31273 = vmatmul.mubr.msk.f32.gmra.mrb[70].mxu0 %vm421_vm0, %v39119_v33 }
0x1847   :  { %31297 = vmatprep.mubr.msk.f32.mxu0 %vm421_vm0, %v38811_v47 }
0x18d5   :  { %v31047_v61 = vpop.f32.mrb[36].mxu0 }
0x18d6   :  { %v15729_v39 = vpop.f32.mrb[37].mxu0 }
0x18d9   :  { %v31050_v63 = vpop.f32.mrb[38].mxu0 }
0x18da   :  { %v15739_v49 = vpop.f32.mrb[39].mxu0 }
0x18dd   :  { %v31061_v50 = vpop.f32.mrb[40].mxu0 }
0x18de   :  { %v15819_v55 = vpop.f32.mrb[41].mxu0 }
0x18df   :  { %31073 = vmatprep.mubr.msk.f32.mxu1 %vm421_vm0, %v15819_v55  ;;  %v25356_v55 = vld [vmem:[%s40541_s7 + $0x748] sm:$0xff] }
0x18e0   :  { %31074 = vmatmul.mubr.msk.f32.vlgmr.msra.gmra.mrb[68].mxu1 %vm421_vm0, %v31061_v50  ;;  %v25355_v50 = vld [vmem:[%s40541_s7 + $0x740] sm:$0xff] }
0x18e1   :  { %v31064_v9 = vpop.f32.mrb[42].mxu0  ;;  %34220 = vmatpush3.bf16.msra.mxu1 %v34217_v58 }
0x18e2   :  { %v15829_v16 = vpop.f32.mrb[43].mxu0  ;;  %34222 = vmatprep.subr.bf16.mxu1 %v34221_v59 }
0x18e3   :  { %31076 = vmatprep.mubr.msk.f32.mxu1 %vm421_vm0, %v15829_v16 }
0x18e4   :  { %31077 = vmatmul.mubr.msk.f32.gmra.mrb[70].mxu1 %vm421_vm0, %v31064_v9  ;;  %v25358_v9 = vld [vmem:[%s40541_s7 + $0x758] sm:$0xff] }
0x18e5   :  { %34224 = vmatpush3.bf16.msra.mxu1 %v34221_v59  ;;  %31087 = vmatprep.mubr.msk.f32.mxu1 %vm421_vm0, %v15729_v39  ;;  %v31103_v41 = vpop.f32.mrb[44].mxu0  ;;  %v25345_v39 = vld [vmem:[%s40541_s7 + $0x730] sm:$0xff]  ;;  %v34265_v59 = vpack.c.bf16 %v25356_v55, %v25355_v50 }
0x18e6   :  { %34234 = vmatprep.subr.bf16.mxu1 %v34233_v30  ;;  %v16103_v43 = vpop.f32.mrb[45].mxu0  ;;  %v25381_v55 = vld [vmem:[%s40541_s7 + $0x790] sm:$0xff] }
0x18e8   :  { %31088 = vmatmul.mubr.msk.f32.vlgmr.msra.gmra.mrb[68].mxu1 %vm421_vm0, %v31047_v61 }
0x18e9   :  { %31090 = vmatprep.mubr.msk.f32.mxu1 %vm421_vm0, %v15739_v49  ;;  %34236 = vmatpush3.bf16.msra.mxu1 %v34233_v30  ;;  %v31106_v27 = vpop.f32.mrb[46].mxu0  ;;  %v34253_v49 = vpack.c.bf16 %v25346_v35, %v25345_v39  ;;  %v34269_v30 = vpack.c.bf16 %v25358_v9, %v25357_v31  ;;  %v25379_v35 = vld [vmem:[%s40541_s7 + $0x780] sm:$0xff] }
0x18ea   :  { %34238 = vmatprep.subr.bf16.mxu1 %v34237_v36  ;;  %v16113_v58 = vpop.f32.mrb[47].mxu0  ;;  %v25391_v9 = vld [vmem:[%s40541_s7 + $0x7a0] sm:$0xff] }
0x18ec   :  { %31091 = vmatmul.mubr.msk.f32.gmra.mrb[70].mxu1 %vm421_vm0, %v31050_v63 }
0x18ed   :  { %34240 = vmatpush3.bf16.msra.mxu1 %v34237_v36  ;;  %31115 = vmatprep.mubr.msk.f32.mxu1 %vm421_vm0, %v16103_v43  ;;  %v31131_v61 = vpop.f32.mrb[48].mxu0 }
0x18ee   :  { %34250 = vmatprep.subr.bf16.mxu1 %v34249_v28  ;;  %v16294_v38 = vpop.f32.mrb[49].mxu0 }
0x18f0   :  { %31116 = vmatmul.mubr.msk.f32.vlgmr.msra.gmra.mrb[68].mxu1 %vm421_vm0, %v31103_v41  ;;  %v25368_v41 = vld [vmem:[%s40541_s7 + $0x768] sm:$0xff] }
0x18f1   :  { %34252 = vmatpush3.bf16.msra.mxu1 %v34249_v28  ;;  %31118 = vmatprep.mubr.msk.f32.mxu1 %vm421_vm0, %v16113_v58  ;;  %v31134_v63 = vpop.f32.mrb[50].mxu0  ;;  %v34281_v43 = vpack.c.bf16 %v25368_v41, %v25367_v40  ;;  %v25393_v41 = vld [vmem:[%s40541_s7 + $0x7b0] sm:$0xff] }
0x18f2   :  { %34254 = vmatprep.subr.bf16.mxu1 %v34253_v49  ;;  %v16304_v2 = vpop.f32.mrb[51].mxu0 }
0x18f4   :  { %31119 = vmatmul.mubr.msk.f32.gmra.mrb[70].mxu1 %vm421_vm0, %v31106_v27  ;;  %v25370_v27 = vld [vmem:[%s40541_s7 + $0x778] sm:$0xff] }
0x18f5   :  { %34256 = vmatpush3.bf16.msra.mxu1 %v34253_v49  ;;  %31143 = vmatprep.mubr.msk.f32.mxu1 %vm421_vm0, %v16294_v38  ;;  %v31159_v16 = vpop.f32.mrb[52].mxu0  ;;  %v34285_v58 = vpack.c.bf16 %v25370_v27, %v25369_v25  ;;  %v25403_v27 = vld [vmem:[%s40541_s7 + $0x7c0] sm:$0xff] }
0x18f6   :  { %34266 = vmatprep.subr.bf16.mxu1 %v34265_v59  ;;  %v16485_v26 = vpop.f32.mrb[53].mxu0 }
0x18f8   :  { %31144 = vmatmul.mubr.msk.f32.vlgmr.msra.gmra.mrb[68].mxu1 %vm421_vm0, %v31131_v61  ;;  %v25380_v61 = vld [vmem:[%s40541_s7 + $0x788] sm:$0xff] }
0x18f9   :  { %34268 = vmatpush3.bf16.msra.mxu1 %v34265_v59  ;;  %31146 = vmatprep.mubr.msk.f32.mxu1 %vm421_vm0, %v16304_v2  ;;  %v31162_v36 = vpop.f32.mrb[54].mxu0  ;;  %v34297_v38 = vpack.c.bf16 %v25380_v61, %v25379_v35  ;;  %v25405_v61 = vld [vmem:[%s40541_s7 + $0x7d0] sm:$0xff] }
0x18fa   :  { %34270 = vmatprep.subr.bf16.mxu1 %v34269_v30  ;;  %v16495_v37 = vpop.f32.mrb[55].mxu0 }
0x18fc   :  { %31147 = vmatmul.mubr.msk.f32.gmra.mrb[70].mxu1 %vm421_vm0, %v31134_v63  ;;  %v25382_v63 = vld [vmem:[%s40541_s7 + $0x798] sm:$0xff] }
0x18fd   :  { %34272 = vmatpush3.bf16.msra.mxu1 %v34269_v30  ;;  %31171 = vmatprep.mubr.msk.f32.mxu1 %vm421_vm0, %v16485_v26  ;;  %v31187_v28 = vpop.f32.mrb[56].mxu0  ;;  %v34301_v2 = vpack.c.bf16 %v25382_v63, %v25381_v55 }
0x18fe   :  { %34282 = vmatprep.subr.bf16.mxu1 %v34281_v43  ;;  %v16676_v39 = vpop.f32.mrb[57].mxu0 }
0x1900   :  { %31172 = vmatmul.mubr.msk.f32.vlgmr.msra.gmra.mrb[68].mxu1 %vm421_vm0, %v31159_v16  ;;  %v25392_v16 = vld [vmem:[%s40541_s7 + $0x7a8] sm:$0xff] }
0x1901   :  { %34284 = vmatpush3.bf16.msra.mxu1 %v34281_v43  ;;  %31174 = vmatprep.mubr.msk.f32.mxu1 %vm421_vm0, %v16495_v37  ;;  %v31190_v49 = vpop.f32.mrb[58].mxu0  ;;  %v34313_v26 = vpack.c.bf16 %v25392_v16, %v25391_v9 }
0x1902   :  { %34286 = vmatprep.subr.bf16.mxu1 %v34285_v58  ;;  %v16686_v50 = vpop.f32.mrb[59].mxu0 }
0x1904   :  { %31175 = vmatmul.mubr.msk.f32.gmra.mrb[70].mxu1 %vm421_vm0, %v31162_v36  ;;  %v25394_v36 = vld [vmem:[%s40541_s7 + $0x7b8] sm:$0xff] }
0x1905   :  { %34288 = vmatpush3.bf16.msra.mxu1 %v34285_v58  ;;  %31199 = vmatprep.mubr.msk.f32.mxu1 %vm421_vm0, %v16676_v39  ;;  %v31215_v59 = vpop.f32.mrb[60].mxu0  ;;  %v34317_v37 = vpack.c.bf16 %v25394_v36, %v25393_v41 }
0x1906   :  { %34298 = vmatprep.subr.bf16.mxu1 %v34297_v38  ;;  %v16867_v31 = vpop.f32.mrb[61].mxu0 }
0x1908   :  { %31200 = vmatmul.mubr.msk.f32.vlgmr.msra.gmra.mrb[68].mxu1 %vm421_vm0, %v31187_v28  ;;  %v25404_v28 = vld [vmem:[%s40541_s7 + $0x7c8] sm:$0xff] }
0x1909   :  { %34300 = vmatpush3.bf16.msra.mxu1 %v34297_v38  ;;  %31202 = vmatprep.mubr.msk.f32.mxu1 %vm421_vm0, %v16686_v50  ;;  %v31218_v30 = vpop.f32.mrb[62].mxu0  ;;  %v34329_v39 = vpack.c.bf16 %v25404_v28, %v25403_v27 }
0x190a   :  { %34302 = vmatprep.subr.bf16.mxu1 %v34301_v2  ;;  %v16877_v40 = vpop.f32.mrb[63].mxu0 }
0x190c   :  { %31203 = vmatmul.mubr.msk.f32.gmra.mrb[70].mxu1 %vm421_vm0, %v31190_v49  ;;  %v25406_v49 = vld [vmem:[%s40541_s7 + $0x7d8] sm:$0xff] }
0x190d   :  { %34304 = vmatpush3.bf16.msra.mxu1 %v34301_v2  ;;  %31227 = vmatprep.mubr.msk.f32.mxu1 %vm421_vm0, %v16867_v31  ;;  %v31243_v43 = vpop.f32.mrb[64].mxu0  ;;  %v34333_v50 = vpack.c.bf16 %v25406_v49, %v25405_v61  ;;  %v25412_v2 = vld [vmem:[%s40542_s8 + $0x6] ss:$0 sm:$0xff] }
0x190e   :  { %34314 = vmatprep.subr.bf16.mxu1 %v34313_v26  ;;  %v17058_v25 = vpop.f32.mrb[65].mxu0 }
0x1910   :  { %31228 = vmatmul.mubr.msk.f32.vlgmr.msra.gmra.mrb[68].mxu1 %vm421_vm0, %v31215_v59 }
0x1911   :  { %34316 = vmatpush3.bf16.msra.mxu1 %v34313_v26  ;;  %31230 = vmatprep.mubr.msk.f32.mxu1 %vm421_vm0, %v16877_v40  ;;  %v31246_v58 = vpop.f32.mrb[66].mxu0 }
0x1912   :  { %34318 = vmatprep.subr.bf16.mxu1 %v34317_v37  ;;  %v17068_v35 = vpop.f32.mrb[67].mxu0 }
0x1914   :  { %31231 = vmatmul.mubr.msk.f32.gmra.mrb[70].mxu1 %vm421_vm0, %v31218_v30 }
0x1915   :  { %34320 = vmatpush3.bf16.msra.mxu1 %v34317_v37  ;;  %31255 = vmatprep.mubr.msk.f32.mxu1 %vm421_vm0, %v17058_v25  ;;  %v31271_v38 = vpop.f32.mrb[68].mxu0 }
0x1916   :  { %34330 = vmatprep.subr.bf16.mxu1 %v34329_v39  ;;  %v17249_v55 = vpop.f32.mrb[69].mxu0 }
0x1918   :  { %31256 = vmatmul.mubr.msk.f32.vlgmr.msra.gmra.mrb[68].mxu1 %vm421_vm0, %v31243_v43 }
0x1919   :  { %34332 = vmatpush3.bf16.msra.mxu1 %v34329_v39  ;;  %31258 = vmatprep.mubr.msk.f32.mxu1 %vm421_vm0, %v17068_v35  ;;  %v31274_v63 = vpop.f32.mrb[70].mxu0  ;;  %v25454_v39 = vld [vmem:[%s40541_s7 + $0x848] sm:$0xff] }
0x191a   :  { %34334 = vmatprep.subr.bf16.mxu1 %v34333_v50  ;;  %v17259_v59 = vpop.f32.mrb[71].mxu0 }
0x191c   :  { %31259 = vmatmul.mubr.msk.f32.gmra.mrb[70].mxu1 %vm421_vm0, %v31246_v58 }
0x191d   :  { %34336 = vmatpush3.bf16.msra.mxu1 %v34333_v50  ;;  %31283 = vmatprep.mubr.msk.f32.mxu1 %vm421_vm0, %v17249_v55  ;;  %v25456_v50 = vld [vmem:[%s40541_s7 + $0x858] sm:$0xff] }
0x1920   :  { %31284 = vmatmul.mubr.msk.f32.vlgmr.msra.gmra.mrb[68].mxu1 %vm421_vm0, %v31271_v38  ;;  %v25455_v38 = vld [vmem:[%s40541_s7 + $0x850] sm:$0xff] }
0x1921   :  { %31286 = vmatprep.mubr.msk.f32.mxu1 %vm421_vm0, %v17259_v59 }
0x1924   :  { %31287 = vmatmul.mubr.msk.f32.gmra.mrb[70].mxu1 %vm421_vm0, %v31274_v63  ;;  %v34397_v63 = vpack.c.bf16 %v25456_v50, %v25455_v38 }
0x19f3   :  { %v31285_v31 = vpop.f32.mrb[68].mxu1 }
0x19f4   :  { %v17383_v9 = vadd.f32 %v31285_v31, %v25412_v2  ;;  %v17351_v16 = vpop.f32.mrb[69].mxu1  ;;  %v25466_v31 = vld [vmem:[%s40541_s7 + $0x868] sm:$0xff] }
0x19f5   :  { %v17382_v30 = vadd.f32 %v25412_v2, %v17351_v16 }
0x19f6   :  { %v17387_v26 = vmax.f32 %v17383_v9, 0.0 }
0x19f7   :  { %v17386_v40 = vmax.f32 %v17382_v30, 0.0  ;;  %v31288_v41 = vpop.f32.mrb[70].mxu1 }
0x19f8   :  { %v17385_v36 = vadd.f32 %v31288_v41, %v25412_v2  ;;  %v17361_v43 = vpop.f32.mrb[71].mxu1 }
0x19f9   :  { %v39272_v37 = vpack.c.bf16 %v17387_v26, %v17386_v40  ;;  %v17384_v25 = vadd.f32 %v25412_v2, %v17361_v43  ;;  %v25465_v2 = vld [vmem:[%s40541_s7 + $0x860] sm:$0xff]  ;;  %v25467_v26 = vld [vmem:[%s40541_s7 + $0x870] sm:$0xff]  ;;  %v25468_v40 = vld [vmem:[%s40541_s7 + $0x878] sm:$0xff] }
0x19fa   :  { %v17389_v27 = vmax.f32 %v17385_v36, 0.0  ;;  %v34409_v16 = vpack.c.bf16 %v25466_v31, %v25465_v2  ;;  %v34413_v36 = vpack.c.bf16 %v25468_v40, %v25467_v26 }
0x19fb   :  { %v17388_v28 = vmax.f32 %v17384_v25, 0.0  ;;  %34338 = vmatprep.subr.bf16.mxu0 %v39272_v37  ;;  %v25478_v25 = vld [vmem:[%s40541_s7 + $0x888] sm:$0xff] }
0x19fc   :  { %34340 = vmatpush3.bf16.msra.mxu0 %v39272_v37 }
0x19fd   :  { %v39276_v58 = vpack.c.bf16 %v17389_v27, %v17388_v28 }
0x19ff   :  { %34342 = vmatprep.subr.bf16.mxu0 %v39276_v58 }
0x1a00   :  { %34344 = vmatpush3.bf16.msra.mxu0 %v39276_v58 }
0x1a01   :  { %34346 = vmatprep.subr.bf16.mxu0 %v39272_v37 }
0x1a03   :  { %31298 = vmatmul.mubr.msk.f32.vlgmr.msra.gmra.mrb[72].mxu0 %vm421_vm0, %v38570_v56  ;;  %v25425_v56 = vld [vmem:[%s40541_s7 + $0x800] sm:$0xff] }
0x1a04   :  { %34348 = vmatpush3.bf16.msra.mxu0 %v39272_v37  ;;  %31300 = vmatprep.mubr.msk.f32.mxu0 %vm421_vm0, %v38578_v60  ;;  %v25426_v60 = vld [vmem:[%s40541_s7 + $0x808] sm:$0xff] }
0x1a05   :  { %34350 = vmatprep.subr.bf16.mxu0 %v39276_v58 }
0x1a07   :  { %31301 = vmatmul.mubr.msk.f32.gmra.mrb[74].mxu0 %vm421_vm0, %v38586_v0  ;;  %v34353_v0 = vpack.c.bf16 %v25426_v60, %v25425_v56  ;;  %v25479_v56 = vld [vmem:[%s40541_s7 + $0x890] sm:$0xff]  ;;  %v25480_v60 = vld [vmem:[%s40541_s7 + $0x898] sm:$0xff] }
0x1a08   :  { %34352 = vmatpush3.bf16.msra.mxu0 %v39276_v58  ;;  %31311 = vmatprep.mubr.msk.f32.mxu0 %vm421_vm0, %v38594_v42  ;;  %v25427_v42 = vld [vmem:[%s40541_s7 + $0x810] sm:$0xff] }
0x1a09   :  { %34370 = vmatprep.subr.bf16.mxu0 %v39272_v37  ;;  %34354 = vmatprep.subr.bf16.mxu1 %v34353_v0 }
0x1a0a   :  { %34356 = vmatpush3.bf16.msra.mxu1 %v34353_v0 }
0x1a0b   :  { %31312 = vmatmul.mubr.msk.f32.vlgmr.msra.gmra.mrb[76].mxu0 %vm421_vm0, %v38602_v45  ;;  %v25428_v45 = vld [vmem:[%s40541_s7 + $0x818] sm:$0xff] }
0x1a0c   :  { %34372 = vmatpush3.bf16.msra.mxu0 %v39272_v37  ;;  %31314 = vmatprep.mubr.msk.f32.mxu0 %vm421_vm0, %v38610_v46  ;;  %v34357_v46 = vpack.c.bf16 %v25428_v45, %v25427_v42  ;;  %v34429_v42 = vpack.c.bf16 %v25480_v60, %v25479_v56 }
0x1a0d   :  { %34374 = vmatprep.subr.bf16.mxu0 %v39276_v58 }
0x1a0e   :  { %34358 = vmatprep.subr.bf16.mxu1 %v34357_v46 }
0x1a0f   :  { %31315 = vmatmul.mubr.msk.f32.gmra.mrb[78].mxu0 %vm421_vm0, %v38618_v48  ;;  %34360 = vmatpush3.bf16.msra.mxu1 %v34357_v46  ;;  %v25417_v48 = vld [vmem:[%s40541_s7 + $0x7e0] sm:$0xff] }
0x1a10   :  { %34376 = vmatpush3.bf16.msra.mxu0 %v39276_v58  ;;  %31353 = vmatprep.mubr.msk.f32.mxu0 %vm421_vm0, %v38626_v51  ;;  %v25418_v51 = vld [vmem:[%s40541_s7 + $0x7e8] sm:$0xff]  ;;  %v25489_v46 = vld [vmem:[%s40541_s7 + $0x8a0] sm:$0xff] }
0x1a11   :  { %34386 = vmatprep.subr.bf16.mxu0 %v39272_v37 }
0x1a13   :  { %31354 = vmatmul.mubr.msk.f32.vlgmr.msra.gmra.mrb[80].mxu0 %vm421_vm0, %v38634_v53  ;;  %v34361_v53 = vpack.c.bf16 %v25418_v51, %v25417_v48  ;;  %v25490_v48 = vld [vmem:[%s40541_s7 + $0x8a8] sm:$0xff] }
0x1a14   :  { %34388 = vmatpush3.bf16.msra.mxu0 %v39272_v37  ;;  %31356 = vmatprep.mubr.msk.f32.mxu0 %vm421_vm0, %v38642_v54 }
0x1a15   :  { %34390 = vmatprep.subr.bf16.mxu0 %v39276_v58  ;;  %34362 = vmatprep.subr.bf16.mxu1 %v34361_v53 }
0x1a17   :  { %31357 = vmatmul.mubr.msk.f32.gmra.mrb[82].mxu0 %vm421_vm0, %v38650_v1 }
0x1a18   :  { %34392 = vmatpush3.bf16.msra.mxu0 %v39276_v58  ;;  %31381 = vmatprep.mubr.msk.f32.mxu0 %vm421_vm0, %v38658_v3 }
0x1a19   :  { %34402 = vmatprep.subr.bf16.mxu0 %v39272_v37 }
0x1a1b   :  { %31382 = vmatmul.mubr.msk.f32.vlgmr.msra.gmra.mrb[84].mxu0 %vm421_vm0, %v38666_v4 }
0x1a1c   :  { %34404 = vmatpush3.bf16.msra.mxu0 %v39272_v37  ;;  %31384 = vmatprep.mubr.msk.f32.mxu0 %vm421_vm0, %v38674_v5  ;;  %v25419_v5 = vld [vmem:[%s40541_s7 + $0x7f0] sm:$0xff] }
0x1a1d   :  { %34406 = vmatprep.subr.bf16.mxu0 %v39276_v58 }
0x1a1f   :  { %31385 = vmatmul.mubr.msk.f32.gmra.mrb[86].mxu0 %vm421_vm0, %v38682_v6  ;;  %v25420_v6 = vld [vmem:[%s40541_s7 + $0x7f8] sm:$0xff] }
0x1a20   :  { %34408 = vmatpush3.bf16.msra.mxu0 %v39276_v58  ;;  %31409 = vmatprep.mubr.msk.f32.mxu0 %vm421_vm0, %v38690_v7 }
0x1a21   :  { %34418 = vmatprep.subr.bf16.mxu0 %v39272_v37 }
0x1a23   :  { %31410 = vmatmul.mubr.msk.f32.vlgmr.msra.gmra.mrb[88].mxu0 %vm421_vm0, %v38698_v8 }
0x1a24   :  { %34420 = vmatpush3.bf16.msra.mxu0 %v39272_v37  ;;  %31412 = vmatprep.mubr.msk.f32.mxu0 %vm421_vm0, %v38706_v10  ;;  %v34365_v10 = vpack.c.bf16 %v25420_v6, %v25419_v5 }
0x1a25   :  { %34422 = vmatprep.subr.bf16.mxu0 %v39276_v58 }
0x1a27   :  { %31413 = vmatmul.mubr.msk.f32.gmra.mrb[90].mxu0 %vm421_vm0, %v38714_v11  ;;  %v25441_v11 = vld [vmem:[%s40541_s7 + $0x820] sm:$0xff] }
0x1a28   :  { %34424 = vmatpush3.bf16.msra.mxu0 %v39276_v58  ;;  %31437 = vmatprep.mubr.msk.f32.mxu0 %vm421_vm0, %v38722_v12  ;;  %v25442_v12 = vld [vmem:[%s40541_s7 + $0x828] sm:$0xff] }
0x1a29   :  { %34434 = vmatprep.subr.bf16.mxu0 %v39272_v37 }
0x1a2b   :  { %31438 = vmatmul.mubr.msk.f32.vlgmr.msra.gmra.mrb[92].mxu0 %vm421_vm0, %v38730_v13 }
0x1a2c   :  { %34436 = vmatpush3.bf16.msra.mxu0 %v39272_v37  ;;  %31440 = vmatprep.mubr.msk.f32.mxu0 %vm421_vm0, %v38738_v14 }
0x1a2d   :  { %34438 = vmatprep.subr.bf16.mxu0 %v39276_v58 }
0x1a2f   :  { %31441 = vmatmul.mubr.msk.f32.gmra.mrb[94].mxu0 %vm421_vm0, %v38746_v15  ;;  %v34377_v15 = vpack.c.bf16 %v25442_v12, %v25441_v11 }
0x1a30   :  { %34440 = vmatpush3.bf16.msra.mxu0 %v39276_v58  ;;  %31465 = vmatprep.mubr.msk.f32.mxu0 %vm421_vm0, %v38754_v17  ;;  %v25443_v17 = vld [vmem:[%s40541_s7 + $0x830] sm:$0xff] }
0x1a31   :  { %34450 = vmatprep.subr.bf16.mxu0 %v39272_v37 }
0x1a33   :  { %31466 = vmatmul.mubr.msk.f32.vlgmr.msra.gmra.mrb[96].mxu0 %vm421_vm0, %v38762_v18  ;;  %v25444_v18 = vld [vmem:[%s40541_s7 + $0x838] sm:$0xff] }
0x1a34   :  { %34452 = vmatpush3.bf16.msra.mxu0 %v39272_v37  ;;  %31468 = vmatprep.mubr.msk.f32.mxu0 %vm421_vm0, %v38770_v19 }
0x1a35   :  { %34454 = vmatprep.subr.bf16.mxu0 %v39276_v58 }
0x1a37   :  { %31469 = vmatmul.mubr.msk.f32.gmra.mrb[98].mxu0 %vm421_vm0, %v38778_v20  ;;  %v34381_v20 = vpack.c.bf16 %v25444_v18, %v25443_v17 }
0x1a38   :  { %34456 = vmatpush3.bf16.msra.mxu0 %v39276_v58  ;;  %31493 = vmatprep.mubr.msk.f32.mxu0 %vm421_vm0, %v38786_v52 }
0x1a39   :  { %34466 = vmatprep.subr.bf16.mxu0 %v39272_v37 }
0x1a3b   :  { %31494 = vmatmul.mubr.msk.f32.vlgmr.msra.gmra.mrb[100].mxu0 %vm421_vm0, %v39074_v57 }
0x1a3c   :  { %34468 = vmatpush3.bf16.msra.mxu0 %v39272_v37  ;;  %31496 = vmatprep.mubr.msk.f32.mxu0 %vm421_vm0, %v39082_v23  ;;  %v25477_v37 = vld [vmem:[%s40541_s7 + $0x880] sm:$0xff] }
0x1a3d   :  { %34470 = vmatprep.subr.bf16.mxu0 %v39276_v58  ;;  %v34425_v28 = vpack.c.bf16 %v25478_v25, %v25477_v37 }
0x1a3f   :  { %31497 = vmatmul.mubr.msk.f32.gmra.mrb[102].mxu0 %vm421_vm0, %v39090_v62 }
0x1a40   :  { %34472 = vmatpush3.bf16.msra.mxu0 %v39276_v58  ;;  %31521 = vmatprep.mubr.msk.f32.mxu0 %vm421_vm0, %v39098_v44 }
0x1a43   :  { %31522 = vmatmul.mubr.msk.f32.vlgmr.msra.gmra.mrb[104].mxu0 %vm421_vm0, %v39105_v34 }
0x1a44   :  { %31524 = vmatprep.mubr.msk.f32.mxu0 %vm421_vm0, %v39112_v32 }
0x1a47   :  { %31525 = vmatmul.mubr.msk.f32.gmra.mrb[106].mxu0 %vm421_vm0, %v39119_v33 }
0x1a48   :  { %31549 = vmatprep.mubr.msk.f32.mxu0 %vm421_vm0, %v38811_v47  ;;  %v25453_v47 = vld [vmem:[%s40541_s7 + $0x840] sm:$0xff] }
0x1a49   :  { %v34393_v61 = vpack.c.bf16 %v25454_v39, %v25453_v47 }
0x1ad6   :  { %v31299_v54 = vpop.f32.mrb[72].mxu0 }
0x1ad7   :  { %v17456_v1 = vpop.f32.mrb[73].mxu0 }
0x1ada   :  { %v31302_v3 = vpop.f32.mrb[74].mxu0 }
0x1adb   :  { %v17466_v4 = vpop.f32.mrb[75].mxu0 }
0x1ade   :  { %v31313_v7 = vpop.f32.mrb[76].mxu0 }
0x1adf   :  { %v17546_v8 = vpop.f32.mrb[77].mxu0 }
0x1ae0   :  { %31325 = vmatprep.mubr.msk.f32.mxu1 %vm421_vm0, %v17546_v8  ;;  %v25502_v8 = vld [vmem:[%s40541_s7 + $0x8c8] sm:$0xff] }
0x1ae1   :  { %31326 = vmatmul.mubr.msk.f32.vlgmr.msra.gmra.mrb[72].mxu1 %vm421_vm0, %v31313_v7  ;;  %v25501_v7 = vld [vmem:[%s40541_s7 + $0x8c0] sm:$0xff] }
0x1ae2   :  { %v31316_v13 = vpop.f32.mrb[78].mxu0  ;;  %34364 = vmatpush3.bf16.msra.mxu1 %v34361_v53  ;;  %v34441_v53 = vpack.c.bf16 %v25490_v48, %v25489_v46  ;;  %v34457_v11 = vpack.c.bf16 %v25502_v8, %v25501_v7  ;;  %v39607_v46 = vld [vmem:[%s40540_s6 + $0x38] sm:$0xff]  ;;  %v39615_v48 = vld [vmem:[%s40540_s6 + $0x40] sm:$0xff]  ;;  %v39687_v7 = vld [vmem:[%s40540_s6 + $0x88] sm:$0xff] }
0x1ae3   :  { %v17556_v14 = vpop.f32.mrb[79].mxu0  ;;  %34366 = vmatprep.subr.bf16.mxu1 %v34365_v10  ;;  %v39695_v8 = vld [vmem:[%s40540_s6 + $0x90] sm:$0xff] }
0x1ae4   :  { %31328 = vmatprep.mubr.msk.f32.mxu1 %vm421_vm0, %v17556_v14  ;;  %v25504_v14 = vld [vmem:[%s40541_s7 + $0x8d8] sm:$0xff] }
0x1ae5   :  { %31329 = vmatmul.mubr.msk.f32.gmra.mrb[74].mxu1 %vm421_vm0, %v31316_v13  ;;  %v25503_v13 = vld [vmem:[%s40541_s7 + $0x8d0] sm:$0xff] }
0x1ae6   :  { %34368 = vmatpush3.bf16.msra.mxu1 %v34365_v10  ;;  %31339 = vmatprep.mubr.msk.f32.mxu1 %vm421_vm0, %v17456_v1  ;;  %v31355_v19 = vpop.f32.mrb[80].mxu0  ;;  %v25491_v1 = vld [vmem:[%s40541_s7 + $0x8b0] sm:$0xff]  ;;  %v34461_v17 = vpack.c.bf16 %v25504_v14, %v25503_v13  ;;  %v39735_v14 = vld [vmem:[%s40540_s6 + $0xb8] sm:$0xff] }
0x1ae7   :  { %34378 = vmatprep.subr.bf16.mxu1 %v34377_v15  ;;  %v17830_v52 = vpop.f32.mrb[81].mxu0  ;;  %v39727_v13 = vld [vmem:[%s40540_s6 + $0xb0] sm:$0xff] }
0x1ae9   :  { %31340 = vmatmul.mubr.msk.f32.vlgmr.msra.gmra.mrb[72].mxu1 %vm421_vm0, %v31299_v54 }
0x1aea   :  { %31342 = vmatprep.mubr.msk.f32.mxu1 %vm421_vm0, %v17466_v4  ;;  %34380 = vmatpush3.bf16.msra.mxu1 %v34377_v15  ;;  %v31358_v35 = vpop.f32.mrb[82].mxu0 }
0x1aeb   :  { %34382 = vmatprep.subr.bf16.mxu1 %v34381_v20  ;;  %v17840_v49 = vpop.f32.mrb[83].mxu0 }
0x1aed   :  { %31343 = vmatmul.mubr.msk.f32.gmra.mrb[74].mxu1 %vm421_vm0, %v31302_v3  ;;  %v25492_v3 = vld [vmem:[%s40541_s7 + $0x8b8] sm:$0xff] }
0x1aee   :  { %34384 = vmatpush3.bf16.msra.mxu1 %v34381_v20  ;;  %31367 = vmatprep.mubr.msk.f32.mxu1 %vm421_vm0, %v17830_v52  ;;  %v31383_v55 = vpop.f32.mrb[84].mxu0  ;;  %v34445_v5 = vpack.c.bf16 %v25492_v3, %v25491_v1  ;;  %v25514_v20 = vld [vmem:[%s40541_s7 + $0x8e8] sm:$0xff]  ;;  %v39647_v1 = vld [vmem:[%s40540_s6 + $0x60] sm:$0xff] }
0x1aef   :  { %34394 = vmatprep.subr.bf16.mxu1 %v34393_v61  ;;  %v18021_v59 = vpop.f32.mrb[85].mxu0  ;;  %v39655_v3 = vld [vmem:[%s40540_s6 + $0x68] sm:$0xff] }
0x1af1   :  { %31368 = vmatmul.mubr.msk.f32.vlgmr.msra.gmra.mrb[72].mxu1 %vm421_vm0, %v31355_v19  ;;  %v25513_v19 = vld [vmem:[%s40541_s7 + $0x8e0] sm:$0xff] }
0x1af2   :  { %34396 = vmatpush3.bf16.msra.mxu1 %v34393_v61  ;;  %31370 = vmatprep.mubr.msk.f32.mxu1 %vm421_vm0, %v17840_v49  ;;  %v31386_v9 = vpop.f32.mrb[86].mxu0  ;;  %v34473_v47 = vpack.c.bf16 %v25514_v20, %v25513_v19  ;;  %v25516_v61 = vld [vmem:[%s40541_s7 + $0x8f8] sm:$0xff]  ;;  %v39775_v20 = vld [vmem:[%s40540_s6 + $0xe0] sm:$0xff] }
0x1af3   :  { %34398 = vmatprep.subr.bf16.mxu1 %v34397_v63  ;;  %v18031_v30 = vpop.f32.mrb[87].mxu0  ;;  %v39767_v19 = vld [vmem:[%s40540_s6 + $0xd8] sm:$0xff] }
0x1af5   :  { %31371 = vmatmul.mubr.msk.f32.gmra.mrb[74].mxu1 %vm421_vm0, %v31358_v35  ;;  %v25515_v35 = vld [vmem:[%s40541_s7 + $0x8f0] sm:$0xff] }
0x1af6   :  { %34400 = vmatpush3.bf16.msra.mxu1 %v34397_v63  ;;  %31395 = vmatprep.mubr.msk.f32.mxu1 %vm421_vm0, %v18021_v59  ;;  %v31411_v41 = vpop.f32.mrb[88].mxu0  ;;  %v34477_v38 = vpack.c.bf16 %v25516_v61, %v25515_v35  ;;  %v25522_v59 = vld [vmem:[%s40542_s8 + $0x7] ss:$0 sm:$0xff] }
0x1af7   :  { %34410 = vmatprep.subr.bf16.mxu1 %v34409_v16  ;;  %v18212_v43 = vpop.f32.mrb[89].mxu0 }
0x1af9   :  { %31396 = vmatmul.mubr.msk.f32.vlgmr.msra.gmra.mrb[72].mxu1 %vm421_vm0, %v31383_v55 }
0x1afa   :  { %34412 = vmatpush3.bf16.msra.mxu1 %v34409_v16  ;;  %31398 = vmatprep.mubr.msk.f32.mxu1 %vm421_vm0, %v18031_v30  ;;  %v31414_v27 = vpop.f32.mrb[90].mxu0 }
0x1afb   :  { %34414 = vmatprep.subr.bf16.mxu1 %v34413_v36  ;;  %v18222_v58 = vpop.f32.mrb[91].mxu0 }
0x1afd   :  { %31399 = vmatmul.mubr.msk.f32.gmra.mrb[74].mxu1 %vm421_vm0, %v31386_v9 }
0x1afe   :  { %34416 = vmatpush3.bf16.msra.mxu1 %v34413_v36  ;;  %31423 = vmatprep.mubr.msk.f32.mxu1 %vm421_vm0, %v18212_v43  ;;  %v31439_v0 = vpop.f32.mrb[92].mxu0 }
0x1aff   :  { %34426 = vmatprep.subr.bf16.mxu1 %v34425_v28  ;;  %v18403_v45 = vpop.f32.mrb[93].mxu0 }
0x1b01   :  { %31424 = vmatmul.mubr.msk.f32.vlgmr.msra.gmra.mrb[72].mxu1 %vm421_vm0, %v31411_v41 }
0x1b02   :  { %34428 = vmatpush3.bf16.msra.mxu1 %v34425_v28  ;;  %31426 = vmatprep.mubr.msk.f32.mxu1 %vm421_vm0, %v18222_v58  ;;  %v31442_v51 = vpop.f32.mrb[94].mxu0 }
0x1b03   :  { %34430 = vmatprep.subr.bf16.mxu1 %v34429_v42  ;;  %v18413_v54 = vpop.f32.mrb[95].mxu0 }
0x1b05   :  { %31427 = vmatmul.mubr.msk.f32.gmra.mrb[74].mxu1 %vm421_vm0, %v31414_v27 }
0x1b06   :  { %34432 = vmatpush3.bf16.msra.mxu1 %v34429_v42  ;;  %31451 = vmatprep.mubr.msk.f32.mxu1 %vm421_vm0, %v18403_v45  ;;  %v31467_v4 = vpop.f32.mrb[96].mxu0  ;;  %v39591_v42 = vld [vmem:[%s40540_s6 + $0x28] sm:$0xff]  ;;  %v39599_v45 = vld [vmem:[%s40540_s6 + $0x30] sm:$0xff] }
0x1b07   :  { %34442 = vmatprep.subr.bf16.mxu1 %v34441_v53  ;;  %v18594_v6 = vpop.f32.mrb[97].mxu0 }
0x1b09   :  { %31452 = vmatmul.mubr.msk.f32.vlgmr.msra.gmra.mrb[72].mxu1 %vm421_vm0, %v31439_v0  ;;  %v39583_v0 = vld [vmem:[%s40540_s6 + $0x20] sm:$0xff] }
0x1b0a   :  { %34444 = vmatpush3.bf16.msra.mxu1 %v34441_v53  ;;  %31454 = vmatprep.mubr.msk.f32.mxu1 %vm421_vm0, %v18413_v54  ;;  %v31470_v10 = vpop.f32.mrb[98].mxu0  ;;  %v39631_v53 = vld [vmem:[%s40540_s6 + $0x50] sm:$0xff]  ;;  %v39639_v54 = vld [vmem:[%s40540_s6 + $0x58] sm:$0xff] }
0x1b0b   :  { %34446 = vmatprep.subr.bf16.mxu1 %v34445_v5  ;;  %v18604_v12 = vpop.f32.mrb[99].mxu0 }
0x1b0d   :  { %31455 = vmatmul.mubr.msk.f32.gmra.mrb[74].mxu1 %vm421_vm0, %v31442_v51  ;;  %v39623_v51 = vld [vmem:[%s40540_s6 + $0x48] sm:$0xff] }
0x1b0e   :  { %34448 = vmatpush3.bf16.msra.mxu1 %v34445_v5  ;;  %31479 = vmatprep.mubr.msk.f32.mxu1 %vm421_vm0, %v18594_v6  ;;  %v31495_v15 = vpop.f32.mrb[100].mxu0  ;;  %v39671_v5 = vld [vmem:[%s40540_s6 + $0x78] sm:$0xff]  ;;  %v39679_v6 = vld [vmem:[%s40540_s6 + $0x80] sm:$0xff] }
0x1b0f   :  { %34458 = vmatprep.subr.bf16.mxu1 %v34457_v11  ;;  %v18785_v18 = vpop.f32.mrb[101].mxu0 }
0x1b11   :  { %31480 = vmatmul.mubr.msk.f32.vlgmr.msra.gmra.mrb[72].mxu1 %vm421_vm0, %v31467_v4  ;;  %v39663_v4 = vld [vmem:[%s40540_s6 + $0x70] sm:$0xff] }
0x1b12   :  { %34460 = vmatpush3.bf16.msra.mxu1 %v34457_v11  ;;  %31482 = vmatprep.mubr.msk.f32.mxu1 %vm421_vm0, %v18604_v12  ;;  %v31498_v52 = vpop.f32.mrb[102].mxu0  ;;  %v39711_v11 = vld [vmem:[%s40540_s6 + $0xa0] sm:$0xff]  ;;  %v39719_v12 = vld [vmem:[%s40540_s6 + $0xa8] sm:$0xff] }
0x1b13   :  { %34462 = vmatprep.subr.bf16.mxu1 %v34461_v17  ;;  %v18795_v39 = vpop.f32.mrb[103].mxu0 }
0x1b15   :  { %31483 = vmatmul.mubr.msk.f32.gmra.mrb[74].mxu1 %vm421_vm0, %v31470_v10  ;;  %v39703_v10 = vld [vmem:[%s40540_s6 + $0x98] sm:$0xff] }
0x1b16   :  { %34464 = vmatpush3.bf16.msra.mxu1 %v34461_v17  ;;  %31507 = vmatprep.mubr.msk.f32.mxu1 %vm421_vm0, %v18785_v18  ;;  %v31523_v49 = vpop.f32.mrb[104].mxu0  ;;  %v39751_v17 = vld [vmem:[%s40540_s6 + $0xc8] sm:$0xff]  ;;  %v39759_v18 = vld [vmem:[%s40540_s6 + $0xd0] sm:$0xff] }
0x1b17   :  { %34474 = vmatprep.subr.bf16.mxu1 %v34473_v47  ;;  %v18976_v50 = vpop.f32.mrb[105].mxu0 }
0x1b19   :  { %31508 = vmatmul.mubr.msk.f32.vlgmr.msra.gmra.mrb[72].mxu1 %vm421_vm0, %v31495_v15  ;;  %v39743_v15 = vld [vmem:[%s40540_s6 + $0xc0] sm:$0xff] }
0x1b1a   :  { %34476 = vmatpush3.bf16.msra.mxu1 %v34473_v47  ;;  %31510 = vmatprep.mubr.msk.f32.mxu1 %vm421_vm0, %v18795_v39  ;;  %v31526_v55 = vpop.f32.mrb[106].mxu0  ;;  %v25528_v47 = vld [vmem:[%s40541_s7 + $0x908] sm:$0xff] }
0x1b1b   :  { %34478 = vmatprep.subr.bf16.mxu1 %v34477_v38  ;;  %v18986_v63 = vpop.f32.mrb[107].mxu0 }
0x1b1d   :  { %31511 = vmatmul.mubr.msk.f32.gmra.mrb[74].mxu1 %vm421_vm0, %v31498_v52  ;;  %v25527_v52 = vld [vmem:[%s40541_s7 + $0x900] sm:$0xff] }
0x1b1e   :  { %34480 = vmatpush3.bf16.msra.mxu1 %v34477_v38  ;;  %31535 = vmatprep.mubr.msk.f32.mxu1 %vm421_vm0, %v18976_v50  ;;  %v34505_v39 = vpack.c.bf16 %v25528_v47, %v25527_v52  ;;  %v25529_v50 = vld [vmem:[%s40541_s7 + $0x910] sm:$0xff]  ;;  %v25575_v47 = vld [vmem:[%s40541_s7 + $0x980] sm:$0xff] }
0x1b21   :  { %31536 = vmatmul.mubr.msk.f32.vlgmr.msra.gmra.mrb[72].mxu1 %vm421_vm0, %v31523_v49 }
0x1b22   :  { %31538 = vmatprep.mubr.msk.f32.mxu1 %vm421_vm0, %v18986_v63 }
0x1b25   :  { %31539 = vmatmul.mubr.msk.f32.gmra.mrb[74].mxu1 %vm421_vm0, %v31526_v55  ;;  %v25530_v55 = vld [vmem:[%s40541_s7 + $0x918] sm:$0xff] }
0x1bf4   :  { %v31537_v2 = vpop.f32.mrb[72].mxu1 }
0x1bf5   :  { %v19110_v31 = vadd.f32 %v31537_v2, %v25522_v59  ;;  %v19078_v9 = vpop.f32.mrb[73].mxu1  ;;  %v34509_v2 = vpack.c.bf16 %v25530_v55, %v25529_v50  ;;  %v25578_v50 = vld [vmem:[%s40541_s7 + $0x998] sm:$0xff] }
0x1bf6   :  { %v19109_v16 = vadd.f32 %v25522_v59, %v19078_v9  ;;  %v25552_v9 = vld [vmem:[%s40541_s7 + $0x948] sm:$0xff] }
0x1bf7   :  { %v19114_v30 = vmax.f32 %v19110_v31, 0.0  ;;  %v25551_v31 = vld [vmem:[%s40541_s7 + $0x940] sm:$0xff] }
0x1bf8   :  { %v19113_v26 = vmax.f32 %v19109_v16, 0.0  ;;  %v31540_v40 = vpop.f32.mrb[74].mxu1 }
0x1bf9   :  { %v39532_v41 = vadd.f32 %v19114_v30, %v38963_v24  ;;  %v19112_v36 = vadd.f32 %v31540_v40, %v25522_v59  ;;  %v19088_v43 = vpop.f32.mrb[75].mxu1  ;;  %v25553_v40 = vld [vmem:[%s40541_s7 + $0x950] sm:$0xff] }
0x1bfa   :  { %v39535_v37 = vadd.f32 %v19113_v26, %v38966_v29  ;;  %v19111_v25 = vadd.f32 %v25522_v59, %v19088_v43  ;;  %v39559_v29 = vld [vmem:[%s40540_s6 + $0x8] sm:$0xff]  ;;  %v34521_v26 = vpack.c.bf16 %v25552_v9, %v25551_v31 }
0x1bfb   :  { %v19116_v27 = vmax.f32 %v19112_v36, 0.0  ;;  %v25554_v36 = vld [vmem:[%s40541_s7 + $0x958] sm:$0xff]  ;;  %v25588_v31 = vld [vmem:[%s40541_s7 + $0x9a8] sm:$0xff] }
0x1bfc   :  { %v39539_v28 = vpack.c.bf16 %v39532_v41, %v39535_v37  ;;  %v19115_v58 = vmax.f32 %v19111_v25, 0.0  ;;  %v34525_v25 = vpack.c.bf16 %v25554_v36, %v25553_v40  ;;  %v25590_v40 = vld [vmem:[%s40541_s7 + $0x9b8] sm:$0xff] }
0x1bfd   :  { %v39542_v56 = vadd.f32 %v19116_v27, %v38973_v21  ;;  %v39567_v21 = vld [vmem:[%s40540_s6 + $0x10] sm:$0xff] }
0x1bfe   :  { %v39545_v60 = vadd.f32 %v19115_v58, %v38976_v22  ;;  %34482 = vmatprep.subr.bf16.mxu0 %v39539_v28  ;;  %v39575_v22 = vld [vmem:[%s40540_s6 + $0x18] sm:$0xff]  ;;  %v25564_v58 = vld [vmem:[%s40541_s7 + $0x968] sm:$0xff] }
0x1bff   :  { %34484 = vmatpush3.bf16.msra.mxu0 %v39539_v28 }
0x1c00   :  { %v39551_v24 = vpack.c.bf16 %v39542_v56, %v39545_v60 }
0x1c02   :  { %34486 = vmatprep.subr.bf16.mxu0 %v39551_v24 }
0x1c03   :  { %34488 = vmatpush3.bf16.msra.mxu0 %v39551_v24 }
0x1c04   :  { %34490 = vmatprep.subr.bf16.mxu0 %v39539_v28 }
0x1c06   :  { %31550 = vmatmul.mubr.msk.f32.vlgmr.msra.gmra.mrb[108].mxu0 %vm421_vm0, %v39559_v29 }
0x1c07   :  { %34492 = vmatpush3.bf16.msra.mxu0 %v39539_v28  ;;  %31552 = vmatprep.mubr.msk.f32.mxu0 %vm421_vm0, %v39567_v21 }
0x1c08   :  { %34494 = vmatprep.subr.bf16.mxu0 %v39551_v24 }
0x1c0a   :  { %31553 = vmatmul.mubr.msk.f32.gmra.mrb[110].mxu0 %vm421_vm0, %v39575_v22 }
0x1c0b   :  { %34496 = vmatpush3.bf16.msra.mxu0 %v39551_v24  ;;  %31563 = vmatprep.mubr.msk.f32.mxu0 %vm421_vm0, %v39583_v0 }
0x1c0c   :  { %34514 = vmatprep.subr.bf16.mxu0 %v39539_v28 }
0x1c0e   :  { %31564 = vmatmul.mubr.msk.f32.vlgmr.msra.gmra.mrb[112].mxu0 %vm421_vm0, %v39591_v42 }
0x1c0f   :  { %34516 = vmatpush3.bf16.msra.mxu0 %v39539_v28  ;;  %31566 = vmatprep.mubr.msk.f32.mxu0 %vm421_vm0, %v39599_v45 }
0x1c10   :  { %34518 = vmatprep.subr.bf16.mxu0 %v39551_v24 }
0x1c12   :  { %31567 = vmatmul.mubr.msk.f32.gmra.mrb[114].mxu0 %vm421_vm0, %v39607_v46 }
0x1c13   :  { %34520 = vmatpush3.bf16.msra.mxu0 %v39551_v24  ;;  %31605 = vmatprep.mubr.msk.f32.mxu0 %vm421_vm0, %v39615_v48 }
0x1c14   :  { %34530 = vmatprep.subr.bf16.mxu0 %v39539_v28 }
0x1c16   :  { %31606 = vmatmul.mubr.msk.f32.vlgmr.msra.gmra.mrb[116].mxu0 %vm421_vm0, %v39623_v51 }
0x1c17   :  { %34532 = vmatpush3.bf16.msra.mxu0 %v39539_v28  ;;  %31608 = vmatprep.mubr.msk.f32.mxu0 %vm421_vm0, %v39631_v53 }
0x1c18   :  { %34534 = vmatprep.subr.bf16.mxu0 %v39551_v24 }
0x1c1a   :  { %31609 = vmatmul.mubr.msk.f32.gmra.mrb[118].mxu0 %vm421_vm0, %v39639_v54 }
0x1c1b   :  { %34536 = vmatpush3.bf16.msra.mxu0 %v39551_v24  ;;  %31633 = vmatprep.mubr.msk.f32.mxu0 %vm421_vm0, %v39647_v1 }
0x1c1c   :  { %34546 = vmatprep.subr.bf16.mxu0 %v39539_v28 }
0x1c1e   :  { %31634 = vmatmul.mubr.msk.f32.vlgmr.msra.gmra.mrb[120].mxu0 %vm421_vm0, %v39655_v3 }
0x1c1f   :  { %34548 = vmatpush3.bf16.msra.mxu0 %v39539_v28  ;;  %31636 = vmatprep.mubr.msk.f32.mxu0 %vm421_vm0, %v39663_v4 }
0x1c20   :  { %34550 = vmatprep.subr.bf16.mxu0 %v39551_v24 }
0x1c22   :  { %31637 = vmatmul.mubr.msk.f32.gmra.mrb[122].mxu0 %vm421_vm0, %v39671_v5 }
0x1c23   :  { %34552 = vmatpush3.bf16.msra.mxu0 %v39551_v24  ;;  %31661 = vmatprep.mubr.msk.f32.mxu0 %vm421_vm0, %v39679_v6 }
0x1c24   :  { %34562 = vmatprep.subr.bf16.mxu0 %v39539_v28 }
0x1c26   :  { %31662 = vmatmul.mubr.msk.f32.vlgmr.msra.gmra.mrb[124].mxu0 %vm421_vm0, %v39687_v7 }
0x1c27   :  { %34564 = vmatpush3.bf16.msra.mxu0 %v39539_v28  ;;  %31664 = vmatprep.mubr.msk.f32.mxu0 %vm421_vm0, %v39695_v8 }
0x1c28   :  { %34566 = vmatprep.subr.bf16.mxu0 %v39551_v24 }
0x1c2a   :  { %31665 = vmatmul.mubr.msk.f32.gmra.mrb[126].mxu0 %vm421_vm0, %v39703_v10 }
0x1c2b   :  { %34568 = vmatpush3.bf16.msra.mxu0 %v39551_v24  ;;  %31689 = vmatprep.mubr.msk.f32.mxu0 %vm421_vm0, %v39711_v11 }
0x1c2c   :  { %34578 = vmatprep.subr.bf16.mxu0 %v39539_v28 }
0x1c2e   :  { %31690 = vmatmul.mubr.msk.f32.vlgmr.msra.gmra.mrb[128].mxu0 %vm421_vm0, %v39719_v12 }
0x1c2f   :  { %34580 = vmatpush3.bf16.msra.mxu0 %v39539_v28  ;;  %31692 = vmatprep.mubr.msk.f32.mxu0 %vm421_vm0, %v39727_v13 }
0x1c30   :  { %34582 = vmatprep.subr.bf16.mxu0 %v39551_v24 }
0x1c32   :  { %31693 = vmatmul.mubr.msk.f32.gmra.mrb[130].mxu0 %vm421_vm0, %v39735_v14 }
0x1c33   :  { %34584 = vmatpush3.bf16.msra.mxu0 %v39551_v24  ;;  %31717 = vmatprep.mubr.msk.f32.mxu0 %vm421_vm0, %v39743_v15 }
0x1c34   :  { %34594 = vmatprep.subr.bf16.mxu0 %v39539_v28 }
0x1c36   :  { %31718 = vmatmul.mubr.msk.f32.vlgmr.msra.gmra.mrb[132].mxu0 %vm421_vm0, %v39751_v17 }
0x1c37   :  { %34596 = vmatpush3.bf16.msra.mxu0 %v39539_v28  ;;  %31720 = vmatprep.mubr.msk.f32.mxu0 %vm421_vm0, %v39759_v18 }
0x1c38   :  { %34598 = vmatprep.subr.bf16.mxu0 %v39551_v24 }
0x1c3a   :  { %31721 = vmatmul.mubr.msk.f32.gmra.mrb[134].mxu0 %vm421_vm0, %v39767_v19 }
0x1c3b   :  { %34600 = vmatpush3.bf16.msra.mxu0 %v39551_v24  ;;  %31745 = vmatprep.mubr.msk.f32.mxu0 %vm421_vm0, %v39775_v20 }
0x1c3c   :  { %34610 = vmatprep.subr.bf16.mxu0 %v39539_v28 }
0x1c3e   :  { %31746 = vmatmul.mubr.msk.f32.vlgmr.msra.gmra.mrb[136].mxu0 %vm421_vm0, %v39074_v57  ;;  %v39800_v57 = vld [vmem:[%s40540_s6] sm:$0xff] }
0x1c3f   :  { %34612 = vmatpush3.bf16.msra.mxu0 %v39539_v28  ;;  %31748 = vmatprep.mubr.msk.f32.mxu0 %vm421_vm0, %v39082_v23  ;;  %v25535_v23 = vld [vmem:[%s40541_s7 + $0x920] sm:$0xff] }
0x1c40   :  { %34614 = vmatprep.subr.bf16.mxu0 %v39551_v24  ;;  %v25563_v28 = vld [vmem:[%s40541_s7 + $0x960] sm:$0xff] }
0x1c42   :  { %31749 = vmatmul.mubr.msk.f32.gmra.mrb[138].mxu0 %vm421_vm0, %v39090_v62  ;;  %v25536_v62 = vld [vmem:[%s40541_s7 + $0x928] sm:$0xff] }
0x1c43   :  { %34616 = vmatpush3.bf16.msra.mxu0 %v39551_v24  ;;  %31773 = vmatprep.mubr.msk.f32.mxu0 %vm421_vm0, %v39098_v44  ;;  %v34497_v44 = vpack.c.bf16 %v25536_v62, %v25535_v23  ;;  %v34537_v23 = vpack.c.bf16 %v25564_v58, %v25563_v28  ;;  %v25600_v28 = vld [vmem:[%s40541_s7 + $0x9c8] sm:$0xff] }
0x1c45   :  { %34498 = vmatprep.subr.bf16.mxu1 %v34497_v44 }
0x1c46   :  { %31774 = vmatmul.mubr.msk.f32.vlgmr.msra.gmra.mrb[140].mxu0 %vm421_vm0, %v39105_v34  ;;  %34500 = vmatpush3.bf16.msra.mxu1 %v34497_v44  ;;  %v25537_v34 = vld [vmem:[%s40541_s7 + $0x930] sm:$0xff] }
0x1c47   :  { %31776 = vmatprep.mubr.msk.f32.mxu0 %vm421_vm0, %v39112_v32  ;;  %v25538_v32 = vld [vmem:[%s40541_s7 + $0x938] sm:$0xff]  ;;  %v25565_v44 = vld [vmem:[%s40541_s7 + $0x970] sm:$0xff] }
0x1c4a   :  { %31777 = vmatmul.mubr.msk.f32.gmra.mrb[142].mxu0 %vm421_vm0, %v39119_v33  ;;  %v34501_v33 = vpack.c.bf16 %v25538_v32, %v25537_v34  ;;  %v25566_v34 = vld [vmem:[%s40541_s7 + $0x978] sm:$0xff] }
0x1c4b   :  { %31801 = vmatprep.mubr.msk.f32.mxu0 %vm421_vm0, %v39800_v57 }
0x1c4c   :  { %34502 = vmatprep.subr.bf16.mxu1 %v34501_v33 }
0x1c4d   :  { %34504 = vmatpush3.bf16.msra.mxu1 %v34501_v33  ;;  %v34541_v33 = vpack.c.bf16 %v25566_v34, %v25565_v44  ;;  %v25602_v44 = vld [vmem:[%s40541_s7 + $0x9d8] sm:$0xff] }
0x1c4e   :  { %34506 = vmatprep.subr.bf16.mxu1 %v34505_v39 }
0x1cd9   :  { %v31551_v35 = vpop.f32.mrb[108].mxu0 }
0x1cda   :  { %v19187_v61 = vpop.f32.mrb[109].mxu0 }
0x1cdd   :  { %v31554_v49 = vpop.f32.mrb[110].mxu0 }
0x1cde   :  { %v19197_v38 = vpop.f32.mrb[111].mxu0 }
0x1ce1   :  { %v31565_v63 = vpop.f32.mrb[112].mxu0 }
0x1ce2   :  { %v19277_v59 = vpop.f32.mrb[113].mxu0 }
0x1ce3   :  { %31577 = vmatprep.mubr.msk.f32.mxu1 %vm421_vm0, %v19277_v59 }
0x1ce4   :  { %31578 = vmatmul.mubr.msk.f32.vlgmr.msra.gmra.mrb[76].mxu1 %vm421_vm0, %v31565_v63 }
0x1ce5   :  { %v31568_v16 = vpop.f32.mrb[114].mxu0  ;;  %34508 = vmatpush3.bf16.msra.mxu1 %v34505_v39  ;;  %v25576_v39 = vld [vmem:[%s40541_s7 + $0x988] sm:$0xff] }
0x1ce6   :  { %v19287_v30 = vpop.f32.mrb[115].mxu0  ;;  %34510 = vmatprep.subr.bf16.mxu1 %v34509_v2 }
0x1ce7   :  { %31580 = vmatprep.mubr.msk.f32.mxu1 %vm421_vm0, %v19287_v30 }
0x1ce8   :  { %31581 = vmatmul.mubr.msk.f32.gmra.mrb[78].mxu1 %vm421_vm0, %v31568_v16 }
0x1ce9   :  { %34512 = vmatpush3.bf16.msra.mxu1 %v34509_v2  ;;  %31591 = vmatprep.mubr.msk.f32.mxu1 %vm421_vm0, %v19187_v61  ;;  %v31607_v43 = vpop.f32.mrb[116].mxu0  ;;  %v34553_v61 = vpack.c.bf16 %v25576_v39, %v25575_v47  ;;  %v25587_v2 = vld [vmem:[%s40541_s7 + $0x9a0] sm:$0xff]  ;;  %v25612_v47 = vld [vmem:[%s40541_s7 + $0x9e8] sm:$0xff] }
0x1cea   :  { %34522 = vmatprep.subr.bf16.mxu1 %v34521_v26  ;;  %v19561_v27 = vpop.f32.mrb[117].mxu0  ;;  %v34569_v16 = vpack.c.bf16 %v25588_v31, %v25587_v2  ;;  %v25624_v2 = vld [vmem:[%s40541_s7 + $0xa08] sm:$0xff] }
0x1cec   :  { %31592 = vmatmul.mubr.msk.f32.vlgmr.msra.gmra.mrb[76].mxu1 %vm421_vm0, %v31551_v35 }
0x1ced   :  { %31594 = vmatprep.mubr.msk.f32.mxu1 %vm421_vm0, %v19197_v38  ;;  %34524 = vmatpush3.bf16.msra.mxu1 %v34521_v26  ;;  %v31610_v24 = vpop.f32.mrb[118].mxu0  ;;  %v25577_v38 = vld [vmem:[%s40541_s7 + $0x990] sm:$0xff] }
0x1cee   :  { %34526 = vmatprep.subr.bf16.mxu1 %v34525_v25  ;;  %v19571_v62 = vpop.f32.mrb[119].mxu0  ;;  %v34557_v63 = vpack.c.bf16 %v25578_v50, %v25577_v38  ;;  %v25589_v26 = vld [vmem:[%s40541_s7 + $0x9b0] sm:$0xff]  ;;  %v25614_v38 = vld [vmem:[%s40541_s7 + $0x9f8] sm:$0xff] }
0x1cf0   :  { %31595 = vmatmul.mubr.msk.f32.gmra.mrb[78].mxu1 %vm421_vm0, %v31554_v49 }
0x1cf1   :  { %34528 = vmatpush3.bf16.msra.mxu1 %v34525_v25  ;;  %31619 = vmatprep.mubr.msk.f32.mxu1 %vm421_vm0, %v19561_v27  ;;  %v31635_v32 = vpop.f32.mrb[120].mxu0  ;;  %v25599_v27 = vld [vmem:[%s40541_s7 + $0x9c0] sm:$0xff] }
0x1cf2   :  { %34538 = vmatprep.subr.bf16.mxu1 %v34537_v23  ;;  %v19752_v52 = vpop.f32.mrb[121].mxu0 }
0x1cf4   :  { %31620 = vmatmul.mubr.msk.f32.vlgmr.msra.gmra.mrb[76].mxu1 %vm421_vm0, %v31607_v43  ;;  %v34573_v43 = vpack.c.bf16 %v25590_v40, %v25589_v26  ;;  %v25626_v26 = vld [vmem:[%s40541_s7 + $0xa18] sm:$0xff] }
0x1cf5   :  { %34540 = vmatpush3.bf16.msra.mxu1 %v34537_v23  ;;  %31622 = vmatprep.mubr.msk.f32.mxu1 %vm421_vm0, %v19571_v62  ;;  %v31638_v35 = vpop.f32.mrb[122].mxu0  ;;  %v25601_v62 = vld [vmem:[%s40541_s7 + $0x9d0] sm:$0xff] }
0x1cf6   :  { %34542 = vmatprep.subr.bf16.mxu1 %v34541_v33  ;;  %v19762_v49 = vpop.f32.mrb[123].mxu0 }
0x1cf8   :  { %31623 = vmatmul.mubr.msk.f32.gmra.mrb[78].mxu1 %vm421_vm0, %v31610_v24  ;;  %v34585_v24 = vpack.c.bf16 %v25600_v28, %v25599_v27  ;;  %v25632_v28 = vld [vmem:[%s40542_s8 + $0x8] ss:$0 sm:$0xff] }
0x1cf9   :  { %34544 = vmatpush3.bf16.msra.mxu1 %v34541_v33  ;;  %31647 = vmatprep.mubr.msk.f32.mxu1 %vm421_vm0, %v19752_v52  ;;  %v31663_v55 = vpop.f32.mrb[124].mxu0  ;;  %v25611_v52 = vld [vmem:[%s40541_s7 + $0x9e0] sm:$0xff] }
0x1cfa   :  { %34554 = vmatprep.subr.bf16.mxu1 %v34553_v61  ;;  %v19943_v59 = vpop.f32.mrb[125].mxu0 }
0x1cfc   :  { %31648 = vmatmul.mubr.msk.f32.vlgmr.msra.gmra.mrb[76].mxu1 %vm421_vm0, %v31635_v32  ;;  %v34589_v32 = vpack.c.bf16 %v25602_v44, %v25601_v62 }
0x1cfd   :  { %34556 = vmatpush3.bf16.msra.mxu1 %v34553_v61  ;;  %31650 = vmatprep.mubr.msk.f32.mxu1 %vm421_vm0, %v19762_v49  ;;  %v31666_v9 = vpop.f32.mrb[126].mxu0  ;;  %v25613_v49 = vld [vmem:[%s40541_s7 + $0x9f0] sm:$0xff] }
0x1cfe   :  { %34558 = vmatprep.subr.bf16.mxu1 %v34557_v63  ;;  %v19953_v30 = vpop.f32.mrb[127].mxu0 }
0x1d00   :  { %31651 = vmatmul.mubr.msk.f32.gmra.mrb[78].mxu1 %vm421_vm0, %v31638_v35  ;;  %v34601_v35 = vpack.c.bf16 %v25612_v47, %v25611_v52 }
0x1d01   :  { %34560 = vmatpush3.bf16.msra.mxu1 %v34557_v63  ;;  %31675 = vmatprep.mubr.msk.f32.mxu1 %vm421_vm0, %v19943_v59  ;;  %v31691_v36 = vpop.f32.mrb[128].mxu0  ;;  %v25623_v59 = vld [vmem:[%s40541_s7 + $0xa00] sm:$0xff] }
0x1d02   :  { %34570 = vmatprep.subr.bf16.mxu1 %v34569_v16  ;;  %v20134_v25 = vpop.f32.mrb[129].mxu0 }
0x1d04   :  { %31676 = vmatmul.mubr.msk.f32.vlgmr.msra.gmra.mrb[76].mxu1 %vm421_vm0, %v31663_v55  ;;  %v34605_v55 = vpack.c.bf16 %v25614_v38, %v25613_v49  ;;  %v40047_v38 = vld [vmem:[%s40540_s6 + $0xe8] sm:$0xff] }
0x1d05   :  { %34572 = vmatpush3.bf16.msra.mxu1 %v34569_v16  ;;  %31678 = vmatprep.mubr.msk.f32.mxu1 %vm421_vm0, %v19953_v30  ;;  %v31694_v58 = vpop.f32.mrb[130].mxu0  ;;  %v25625_v30 = vld [vmem:[%s40541_s7 + $0xa10] sm:$0xff] }
0x1d06   :  { %34574 = vmatprep.subr.bf16.mxu1 %v34573_v43  ;;  %v20144_v23 = vpop.f32.mrb[131].mxu0 }
0x1d08   :  { %31679 = vmatmul.mubr.msk.f32.gmra.mrb[78].mxu1 %vm421_vm0, %v31666_v9  ;;  %v34617_v9 = vpack.c.bf16 %v25624_v2, %v25623_v59  ;;  %v40078_v59 = vld [vmem:[%s40540_s6 + $0x108] sm:$0xff]  ;;  %v40085_v2 = vld [vmem:[%s40540_s6 + $0x110] sm:$0xff] }
0x1d09   :  { %34576 = vmatpush3.bf16.msra.mxu1 %v34573_v43  ;;  %31703 = vmatprep.mubr.msk.f32.mxu1 %vm421_vm0, %v20134_v25  ;;  %v31719_v34 = vpop.f32.mrb[132].mxu0 }
0x1d0a   :  { %34586 = vmatprep.subr.bf16.mxu1 %v34585_v24  ;;  %v20325_v33 = vpop.f32.mrb[133].mxu0 }
0x1d0c   :  { %31704 = vmatmul.mubr.msk.f32.vlgmr.msra.gmra.mrb[76].mxu1 %vm421_vm0, %v31691_v36  ;;  %v34621_v36 = vpack.c.bf16 %v25626_v26, %v25625_v30  ;;  %v25647_v26 = vld [vmem:[%s40541_s7 + $0xa50] sm:$0xff] }
0x1d0d   :  { %34588 = vmatpush3.bf16.msra.mxu1 %v34585_v24  ;;  %31706 = vmatprep.mubr.msk.f32.mxu1 %vm421_vm0, %v20144_v23  ;;  %v31722_v39 = vpop.f32.mrb[134].mxu0 }
0x1d0e   :  { %34590 = vmatprep.subr.bf16.mxu1 %v34589_v32  ;;  %v20335_v61 = vpop.f32.mrb[135].mxu0 }
0x1d10   :  { %31707 = vmatmul.mubr.msk.f32.gmra.mrb[78].mxu1 %vm421_vm0, %v31694_v58 }
0x1d11   :  { %34592 = vmatpush3.bf16.msra.mxu1 %v34589_v32  ;;  %31731 = vmatprep.mubr.msk.f32.mxu1 %vm421_vm0, %v20325_v33  ;;  %v31747_v50 = vpop.f32.mrb[136].mxu0 }
0x1d12   :  { %34602 = vmatprep.subr.bf16.mxu1 %v34601_v35  ;;  %v20516_v63 = vpop.f32.mrb[137].mxu0 }
0x1d14   :  { %31732 = vmatmul.mubr.msk.f32.vlgmr.msra.gmra.mrb[76].mxu1 %vm421_vm0, %v31719_v34 }
0x1d15   :  { %34604 = vmatpush3.bf16.msra.mxu1 %v34601_v35  ;;  %31734 = vmatprep.mubr.msk.f32.mxu1 %vm421_vm0, %v20335_v61  ;;  %v31750_v31 = vpop.f32.mrb[138].mxu0 }
0x1d16   :  { %34606 = vmatprep.subr.bf16.mxu1 %v34605_v55  ;;  %v20526_v16 = vpop.f32.mrb[139].mxu0 }
0x1d18   :  { %31735 = vmatmul.mubr.msk.f32.gmra.mrb[78].mxu1 %vm421_vm0, %v31722_v39 }
0x1d19   :  { %34608 = vmatpush3.bf16.msra.mxu1 %v34605_v55  ;;  %31759 = vmatprep.mubr.msk.f32.mxu1 %vm421_vm0, %v20516_v63  ;;  %v31775_v40 = vpop.f32.mrb[140].mxu0  ;;  %v40063_v55 = vld [vmem:[%s40540_s6 + $0xf8] sm:$0xff]  ;;  %v40071_v63 = vld [vmem:[%s40540_s6 + $0x100] sm:$0xff] }
0x1d1a   :  { %34618 = vmatprep.subr.bf16.mxu1 %v34617_v9  ;;  %v20707_v43 = vpop.f32.mrb[141].mxu0 }
0x1d1c   :  { %31760 = vmatmul.mubr.msk.f32.vlgmr.msra.gmra.mrb[76].mxu1 %vm421_vm0, %v31747_v50  ;;  %v40055_v50 = vld [vmem:[%s40540_s6 + $0xf0] sm:$0xff] }
0x1d1d   :  { %34620 = vmatpush3.bf16.msra.mxu1 %v34617_v9  ;;  %31762 = vmatprep.mubr.msk.f32.mxu1 %vm421_vm0, %v20526_v16  ;;  %v31778_v25 = vpop.f32.mrb[142].mxu0  ;;  %v25645_v9 = vld [vmem:[%s40541_s7 + $0xa40] sm:$0xff]  ;;  %v25646_v16 = vld [vmem:[%s40541_s7 + $0xa48] sm:$0xff] }
0x1d1e   :  { %34622 = vmatprep.subr.bf16.mxu1 %v34621_v36  ;;  %v20717_v27 = vpop.f32.mrb[143].mxu0  ;;  %v34641_v30 = vpack.c.bf16 %v25646_v16, %v25645_v9 }
0x1d20   :  { %31763 = vmatmul.mubr.msk.f32.gmra.mrb[78].mxu1 %vm421_vm0, %v31750_v31  ;;  %v40092_v31 = vld [vmem:[%s40540_s6 + $0x118] sm:$0xff] }
0x1d21   :  { %34624 = vmatpush3.bf16.msra.mxu1 %v34621_v36  ;;  %31787 = vmatprep.mubr.msk.f32.mxu1 %vm421_vm0, %v20707_v43  ;;  %v25637_v36 = vld [vmem:[%s40541_s7 + $0xa20] sm:$0xff]  ;;  %v25638_v43 = vld [vmem:[%s40541_s7 + $0xa28] sm:$0xff] }
0x1d22   :  { %34642 = vmatprep.subr.bf16.mxu1 %v34641_v30 }
0x1d24   :  { %31788 = vmatmul.mubr.msk.f32.vlgmr.msra.gmra.mrb[76].mxu1 %vm421_vm0, %v31775_v40  ;;  %v25648_v40 = vld [vmem:[%s40541_s7 + $0xa58] sm:$0xff] }
0x1d25   :  { %31790 = vmatprep.mubr.msk.f32.mxu1 %vm421_vm0, %v20717_v27  ;;  %34644 = vmatpush3.bf16.msra.mxu1 %v34641_v30 }
0x1d28   :  { %31791 = vmatmul.mubr.msk.f32.gmra.mrb[78].mxu1 %vm421_vm0, %v31778_v25  ;;  %v34649_v25 = vpack.c.bf16 %v25638_v43, %v25637_v36 }
0x1df7   :  { %v31789_v58 = vpop.f32.mrb[76].mxu1 }
0x1df8   :  { %v20841_v24 = vadd.f32 %v31789_v58, %v25632_v28  ;;  %v20809_v23 = vpop.f32.mrb[77].mxu1 }
0x1df9   :  { %v20840_v62 = vadd.f32 %v25632_v28, %v20809_v23  ;;  %v25639_v23 = vld [vmem:[%s40541_s7 + $0xa30] sm:$0xff] }
0x1dfa   :  { %v20845_v44 = vmax.f32 %v20841_v24, 0.0 }
0x1dfb   :  { %v20844_v34 = vmax.f32 %v20840_v62, 0.0  ;;  %v31792_v32 = vpop.f32.mrb[78].mxu1  ;;  %v25640_v62 = vld [vmem:[%s40541_s7 + $0xa38] sm:$0xff] }
0x1dfc   :  { %v20843_v33 = vadd.f32 %v31792_v32, %v25632_v28  ;;  %v20819_v52 = vpop.f32.mrb[79].mxu1  ;;  %v34653_v32 = vpack.c.bf16 %v25640_v62, %v25639_v23  ;;  %v25685_v62 = vld [vmem:[%s40541_s7 + $0xaa0] sm:$0xff] }
0x1dfd   :  { %v39951_v47 = vpack.c.bf16 %v20845_v44, %v20844_v34  ;;  %v20842_v39 = vadd.f32 %v25632_v28, %v20819_v52  ;;  %v25662_v52 = vld [vmem:[%s40541_s7 + $0xa68] sm:$0xff] }
0x1dfe   :  { %v20847_v35 = vmax.f32 %v20843_v33, 0.0  ;;  %v25661_v33 = vld [vmem:[%s40541_s7 + $0xa60] sm:$0xff] }
0x1dff   :  { %v20846_v61 = vmax.f32 %v20842_v39, 0.0  ;;  %34626 = vmatprep.subr.bf16.mxu0 %v39951_v47 }
0x1e00   :  { %34628 = vmatpush3.bf16.msra.mxu0 %v39951_v47 }
0x1e01   :  { %v39955_v49 = vpack.c.bf16 %v20847_v35, %v20846_v61  ;;  %v34665_v35 = vpack.c.bf16 %v25662_v52, %v25661_v33  ;;  %v25663_v61 = vld [vmem:[%s40541_s7 + $0xa70] sm:$0xff]  ;;  %v25688_v52 = vld [vmem:[%s40541_s7 + $0xab8] sm:$0xff] }
0x1e02   :  { %v25687_v33 = vld [vmem:[%s40541_s7 + $0xab0] sm:$0xff] }
0x1e03   :  { %34630 = vmatprep.subr.bf16.mxu0 %v39955_v49 }
0x1e04   :  { %34632 = vmatpush3.bf16.msra.mxu0 %v39955_v49 }
0x1e05   :  { %34634 = vmatprep.subr.bf16.mxu0 %v39951_v47 }
0x1e07   :  { %31802 = vmatmul.mubr.msk.f32.vlgmr.msra.gmra.mrb[144].mxu0 %vm421_vm0, %v39559_v29 }
0x1e08   :  { %34636 = vmatpush3.bf16.msra.mxu0 %v39951_v47  ;;  %31804 = vmatprep.mubr.msk.f32.mxu0 %vm421_vm0, %v39567_v21 }
0x1e09   :  { %34638 = vmatprep.subr.bf16.mxu0 %v39955_v49 }
0x1e0b   :  { %31805 = vmatmul.mubr.msk.f32.gmra.mrb[146].mxu0 %vm421_vm0, %v39575_v22 }
0x1e0c   :  { %34640 = vmatpush3.bf16.msra.mxu0 %v39955_v49  ;;  %31815 = vmatprep.mubr.msk.f32.mxu0 %vm421_vm0, %v39583_v0 }
0x1e0d   :  { %34658 = vmatprep.subr.bf16.mxu0 %v39951_v47 }
0x1e0f   :  { %31816 = vmatmul.mubr.msk.f32.vlgmr.msra.gmra.mrb[148].mxu0 %vm421_vm0, %v39591_v42 }
0x1e10   :  { %34660 = vmatpush3.bf16.msra.mxu0 %v39951_v47  ;;  %31818 = vmatprep.mubr.msk.f32.mxu0 %vm421_vm0, %v39599_v45 }
0x1e11   :  { %34662 = vmatprep.subr.bf16.mxu0 %v39955_v49 }
0x1e13   :  { %31819 = vmatmul.mubr.msk.f32.gmra.mrb[150].mxu0 %vm421_vm0, %v39607_v46 }
0x1e14   :  { %34664 = vmatpush3.bf16.msra.mxu0 %v39955_v49  ;;  %31857 = vmatprep.mubr.msk.f32.mxu0 %vm421_vm0, %v39615_v48 }
0x1e15   :  { %34674 = vmatprep.subr.bf16.mxu0 %v39951_v47 }
0x1e17   :  { %31858 = vmatmul.mubr.msk.f32.vlgmr.msra.gmra.mrb[152].mxu0 %vm421_vm0, %v39623_v51 }
0x1e18   :  { %34676 = vmatpush3.bf16.msra.mxu0 %v39951_v47  ;;  %31860 = vmatprep.mubr.msk.f32.mxu0 %vm421_vm0, %v39631_v53 }
0x1e19   :  { %34678 = vmatprep.subr.bf16.mxu0 %v39955_v49 }
0x1e1b   :  { %31861 = vmatmul.mubr.msk.f32.gmra.mrb[154].mxu0 %vm421_vm0, %v39639_v54 }
0x1e1c   :  { %34680 = vmatpush3.bf16.msra.mxu0 %v39955_v49  ;;  %31885 = vmatprep.mubr.msk.f32.mxu0 %vm421_vm0, %v39647_v1 }
0x1e1d   :  { %34690 = vmatprep.subr.bf16.mxu0 %v39951_v47 }
0x1e1f   :  { %31886 = vmatmul.mubr.msk.f32.vlgmr.msra.gmra.mrb[156].mxu0 %vm421_vm0, %v39655_v3 }
0x1e20   :  { %34692 = vmatpush3.bf16.msra.mxu0 %v39951_v47  ;;  %31888 = vmatprep.mubr.msk.f32.mxu0 %vm421_vm0, %v39663_v4 }
0x1e21   :  { %34694 = vmatprep.subr.bf16.mxu0 %v39955_v49 }
0x1e23   :  { %31889 = vmatmul.mubr.msk.f32.gmra.mrb[158].mxu0 %vm421_vm0, %v39671_v5 }
0x1e24   :  { %34696 = vmatpush3.bf16.msra.mxu0 %v39955_v49  ;;  %31913 = vmatprep.mubr.msk.f32.mxu0 %vm421_vm0, %v39679_v6 }
0x1e25   :  { %34706 = vmatprep.subr.bf16.mxu0 %v39951_v47 }
0x1e27   :  { %31914 = vmatmul.mubr.msk.f32.vlgmr.msra.gmra.mrb[160].mxu0 %vm421_vm0, %v39687_v7 }
0x1e28   :  { %34708 = vmatpush3.bf16.msra.mxu0 %v39951_v47  ;;  %31916 = vmatprep.mubr.msk.f32.mxu0 %vm421_vm0, %v39695_v8 }
0x1e29   :  { %34710 = vmatprep.subr.bf16.mxu0 %v39955_v49 }
0x1e2b   :  { %31917 = vmatmul.mubr.msk.f32.gmra.mrb[162].mxu0 %vm421_vm0, %v39703_v10 }
0x1e2c   :  { %34712 = vmatpush3.bf16.msra.mxu0 %v39955_v49  ;;  %31941 = vmatprep.mubr.msk.f32.mxu0 %vm421_vm0, %v39711_v11 }
0x1e2d   :  { %34722 = vmatprep.subr.bf16.mxu0 %v39951_v47 }
0x1e2f   :  { %31942 = vmatmul.mubr.msk.f32.vlgmr.msra.gmra.mrb[164].mxu0 %vm421_vm0, %v39719_v12 }
0x1e30   :  { %34724 = vmatpush3.bf16.msra.mxu0 %v39951_v47  ;;  %31944 = vmatprep.mubr.msk.f32.mxu0 %vm421_vm0, %v39727_v13 }
0x1e31   :  { %34726 = vmatprep.subr.bf16.mxu0 %v39955_v49 }
0x1e33   :  { %31945 = vmatmul.mubr.msk.f32.gmra.mrb[166].mxu0 %vm421_vm0, %v39735_v14 }
0x1e34   :  { %34728 = vmatpush3.bf16.msra.mxu0 %v39955_v49  ;;  %31969 = vmatprep.mubr.msk.f32.mxu0 %vm421_vm0, %v39743_v15 }
0x1e35   :  { %34738 = vmatprep.subr.bf16.mxu0 %v39951_v47 }
0x1e37   :  { %31970 = vmatmul.mubr.msk.f32.vlgmr.msra.gmra.mrb[168].mxu0 %vm421_vm0, %v39751_v17 }
0x1e38   :  { %34740 = vmatpush3.bf16.msra.mxu0 %v39951_v47  ;;  %31972 = vmatprep.mubr.msk.f32.mxu0 %vm421_vm0, %v39759_v18 }
0x1e39   :  { %34742 = vmatprep.subr.bf16.mxu0 %v39955_v49 }
0x1e3b   :  { %31973 = vmatmul.mubr.msk.f32.gmra.mrb[170].mxu0 %vm421_vm0, %v39767_v19 }
0x1e3c   :  { %34744 = vmatpush3.bf16.msra.mxu0 %v39955_v49  ;;  %31997 = vmatprep.mubr.msk.f32.mxu0 %vm421_vm0, %v39775_v20 }
0x1e3d   :  { %34754 = vmatprep.subr.bf16.mxu0 %v39951_v47 }
0x1e3f   :  { %31998 = vmatmul.mubr.msk.f32.vlgmr.msra.gmra.mrb[172].mxu0 %vm421_vm0, %v40047_v38 }
0x1e40   :  { %34756 = vmatpush3.bf16.msra.mxu0 %v39951_v47  ;;  %32000 = vmatprep.mubr.msk.f32.mxu0 %vm421_vm0, %v40055_v50 }
0x1e41   :  { %34758 = vmatprep.subr.bf16.mxu0 %v39955_v49 }
0x1e43   :  { %32001 = vmatmul.mubr.msk.f32.gmra.mrb[174].mxu0 %vm421_vm0, %v40063_v55 }
0x1e44   :  { %34760 = vmatpush3.bf16.msra.mxu0 %v39955_v49  ;;  %32025 = vmatprep.mubr.msk.f32.mxu0 %vm421_vm0, %v40071_v63  ;;  %v25664_v49 = vld [vmem:[%s40541_s7 + $0xa78] sm:$0xff] }
0x1e45   :  { %v34669_v16 = vpack.c.bf16 %v25664_v49, %v25663_v61  ;;  %v25697_v61 = vld [vmem:[%s40541_s7 + $0xac0] sm:$0xff]  ;;  %v25698_v49 = vld [vmem:[%s40541_s7 + $0xac8] sm:$0xff] }
0x1e47   :  { %32026 = vmatmul.mubr.msk.f32.vlgmr.msra.gmra.mrb[176].mxu0 %vm421_vm0, %v40078_v59 }
0x1e48   :  { %32028 = vmatprep.mubr.msk.f32.mxu0 %vm421_vm0, %v40085_v2 }
0x1e4b   :  { %32029 = vmatmul.mubr.msk.f32.gmra.mrb[178].mxu0 %vm421_vm0, %v40092_v31 }
0x1e4c   :  { %32053 = vmatprep.mubr.msk.f32.mxu0 %vm421_vm0, %v39800_v57  ;;  %v34645_v57 = vpack.c.bf16 %v25648_v40, %v25647_v26  ;;  %v25673_v26 = vld [vmem:[%s40541_s7 + $0xa80] sm:$0xff]  ;;  %v25674_v40 = vld [vmem:[%s40541_s7 + $0xa88] sm:$0xff] }
0x1e4d   :  { %v34681_v36 = vpack.c.bf16 %v25674_v40, %v25673_v26  ;;  %v25699_v26 = vld [vmem:[%s40541_s7 + $0xad0] sm:$0xff]  ;;  %v25700_v40 = vld [vmem:[%s40541_s7 + $0xad8] sm:$0xff] }
0x1e4e   :  { %34646 = vmatprep.subr.bf16.mxu1 %v34645_v57 }
0x1e4f   :  { %34648 = vmatpush3.bf16.msra.mxu1 %v34645_v57 }
0x1e50   :  { %34650 = vmatprep.subr.bf16.mxu1 %v34649_v25 }
0x1eda   :  { %v31803_v27 = vpop.f32.mrb[144].mxu0 }
0x1edb   :  { %v20914_v28 = vpop.f32.mrb[145].mxu0 }
0x1ede   :  { %v31806_v58 = vpop.f32.mrb[146].mxu0 }
0x1edf   :  { %v20924_v24 = vpop.f32.mrb[147].mxu0 }
0x1ee2   :  { %v31817_v44 = vpop.f32.mrb[148].mxu0 }
0x1ee3   :  { %v21004_v34 = vpop.f32.mrb[149].mxu0 }
0x1ee4   :  { %31829 = vmatprep.mubr.msk.f32.mxu1 %vm421_vm0, %v21004_v34 }
0x1ee5   :  { %31830 = vmatmul.mubr.msk.f32.vlgmr.msra.gmra.mrb[80].mxu1 %vm421_vm0, %v31817_v44  ;;  %v25686_v44 = vld [vmem:[%s40541_s7 + $0xaa8] sm:$0xff] }
0x1ee6   :  { %v31820_v47 = vpop.f32.mrb[150].mxu0  ;;  %34652 = vmatpush3.bf16.msra.mxu1 %v34649_v25  ;;  %v25675_v25 = vld [vmem:[%s40541_s7 + $0xa90] sm:$0xff]  ;;  %v34697_v34 = vpack.c.bf16 %v25686_v44, %v25685_v62  ;;  %v25712_v44 = vld [vmem:[%s40541_s7 + $0xaf8] sm:$0xff] }
0x1ee7   :  { %v21014_v39 = vpop.f32.mrb[151].mxu0  ;;  %34654 = vmatprep.subr.bf16.mxu1 %v34653_v32  ;;  %v25711_v62 = vld [vmem:[%s40541_s7 + $0xaf0] sm:$0xff] }
0x1ee8   :  { %31832 = vmatprep.mubr.msk.f32.mxu1 %vm421_vm0, %v21014_v39  ;;  %v34701_v39 = vpack.c.bf16 %v25688_v52, %v25687_v33  ;;  %v25721_v33 = vld [vmem:[%s40541_s7 + $0xb00] sm:$0xff]  ;;  %v25722_v52 = vld [vmem:[%s40541_s7 + $0xb08] sm:$0xff] }
0x1ee9   :  { %31833 = vmatmul.mubr.msk.f32.gmra.mrb[82].mxu1 %vm421_vm0, %v31820_v47 }
0x1eea   :  { %34656 = vmatpush3.bf16.msra.mxu1 %v34653_v32  ;;  %31843 = vmatprep.mubr.msk.f32.mxu1 %vm421_vm0, %v20914_v28  ;;  %v31859_v9 = vpop.f32.mrb[152].mxu0  ;;  %v25676_v28 = vld [vmem:[%s40541_s7 + $0xa98] sm:$0xff] }
0x1eeb   :  { %34666 = vmatprep.subr.bf16.mxu1 %v34665_v35  ;;  %v21288_v30 = vpop.f32.mrb[153].mxu0 }
0x1eed   :  { %31844 = vmatmul.mubr.msk.f32.vlgmr.msra.gmra.mrb[80].mxu1 %vm421_vm0, %v31803_v27 }
0x1eee   :  { %31846 = vmatprep.mubr.msk.f32.mxu1 %vm421_vm0, %v20924_v24  ;;  %34668 = vmatpush3.bf16.msra.mxu1 %v34665_v35  ;;  %v31862_v57 = vpop.f32.mrb[154].mxu0  ;;  %v34685_v24 = vpack.c.bf16 %v25676_v28, %v25675_v25  ;;  %v25709_v25 = vld [vmem:[%s40541_s7 + $0xae0] sm:$0xff]  ;;  %v25710_v28 = vld [vmem:[%s40541_s7 + $0xae8] sm:$0xff] }
0x1eef   :  { %34670 = vmatprep.subr.bf16.mxu1 %v34669_v16  ;;  %v21298_v43 = vpop.f32.mrb[155].mxu0 }
0x1ef1   :  { %31847 = vmatmul.mubr.msk.f32.gmra.mrb[82].mxu1 %vm421_vm0, %v31806_v58 }
0x1ef2   :  { %34672 = vmatpush3.bf16.msra.mxu1 %v34669_v16  ;;  %31871 = vmatprep.mubr.msk.f32.mxu1 %vm421_vm0, %v21288_v30  ;;  %v31887_v27 = vpop.f32.mrb[156].mxu0  ;;  %v34713_v16 = vpack.c.bf16 %v25698_v49, %v25697_v61  ;;  %v25723_v61 = vld [vmem:[%s40541_s7 + $0xb10] sm:$0xff]  ;;  %v25724_v49 = vld [vmem:[%s40541_s7 + $0xb18] sm:$0xff] }
0x1ef3   :  { %34682 = vmatprep.subr.bf16.mxu1 %v34681_v36  ;;  %v21479_v23 = vpop.f32.mrb[157].mxu0 }
0x1ef5   :  { %31872 = vmatmul.mubr.msk.f32.vlgmr.msra.gmra.mrb[80].mxu1 %vm421_vm0, %v31859_v9 }
0x1ef6   :  { %34684 = vmatpush3.bf16.msra.mxu1 %v34681_v36  ;;  %31874 = vmatprep.mubr.msk.f32.mxu1 %vm421_vm0, %v21298_v43  ;;  %v31890_v58 = vpop.f32.mrb[158].mxu0  ;;  %v34717_v36 = vpack.c.bf16 %v25700_v40, %v25699_v26  ;;  %v25733_v26 = vld [vmem:[%s40541_s7 + $0xb20] sm:$0xff]  ;;  %v25734_v40 = vld [vmem:[%s40541_s7 + $0xb28] sm:$0xff] }
0x1ef7   :  { %34686 = vmatprep.subr.bf16.mxu1 %v34685_v24  ;;  %v21489_v32 = vpop.f32.mrb[159].mxu0 }
0x1ef9   :  { %31875 = vmatmul.mubr.msk.f32.gmra.mrb[82].mxu1 %vm421_vm0, %v31862_v57 }
0x1efa   :  { %34688 = vmatpush3.bf16.msra.mxu1 %v34685_v24  ;;  %31899 = vmatprep.mubr.msk.f32.mxu1 %vm421_vm0, %v21479_v23  ;;  %v31915_v47 = vpop.f32.mrb[160].mxu0  ;;  %v34729_v24 = vpack.c.bf16 %v25710_v28, %v25709_v25  ;;  %v25735_v25 = vld [vmem:[%s40541_s7 + $0xb30] sm:$0xff]  ;;  %v25736_v28 = vld [vmem:[%s40541_s7 + $0xb38] sm:$0xff] }
0x1efb   :  { %34698 = vmatprep.subr.bf16.mxu1 %v34697_v34  ;;  %v21670_v35 = vpop.f32.mrb[161].mxu0 }
0x1efd   :  { %31900 = vmatmul.mubr.msk.f32.vlgmr.msra.gmra.mrb[80].mxu1 %vm421_vm0, %v31887_v27 }
0x1efe   :  { %34700 = vmatpush3.bf16.msra.mxu1 %v34697_v34  ;;  %31902 = vmatprep.mubr.msk.f32.mxu1 %vm421_vm0, %v21489_v32  ;;  %v31918_v9 = vpop.f32.mrb[162].mxu0  ;;  %v34733_v34 = vpack.c.bf16 %v25712_v44, %v25711_v62 }
0x1eff   :  { %34702 = vmatprep.subr.bf16.mxu1 %v34701_v39  ;;  %v21680_v30 = vpop.f32.mrb[163].mxu0 }
0x1f01   :  { %31903 = vmatmul.mubr.msk.f32.gmra.mrb[82].mxu1 %vm421_vm0, %v31890_v58 }
0x1f02   :  { %34704 = vmatpush3.bf16.msra.mxu1 %v34701_v39  ;;  %31927 = vmatprep.mubr.msk.f32.mxu1 %vm421_vm0, %v21670_v35  ;;  %v31943_v57 = vpop.f32.mrb[164].mxu0  ;;  %v34745_v39 = vpack.c.bf16 %v25722_v52, %v25721_v33 }
0x1f03   :  { %34714 = vmatprep.subr.bf16.mxu1 %v34713_v16  ;;  %v21861_v43 = vpop.f32.mrb[165].mxu0 }
0x1f05   :  { %31928 = vmatmul.mubr.msk.f32.vlgmr.msra.gmra.mrb[80].mxu1 %vm421_vm0, %v31915_v47 }
0x1f06   :  { %34716 = vmatpush3.bf16.msra.mxu1 %v34713_v16  ;;  %31930 = vmatprep.mubr.msk.f32.mxu1 %vm421_vm0, %v21680_v30  ;;  %v31946_v27 = vpop.f32.mrb[166].mxu0  ;;  %v34749_v16 = vpack.c.bf16 %v25724_v49, %v25723_v61 }
0x1f07   :  { %34718 = vmatprep.subr.bf16.mxu1 %v34717_v36  ;;  %v21871_v23 = vpop.f32.mrb[167].mxu0 }
0x1f09   :  { %31931 = vmatmul.mubr.msk.f32.gmra.mrb[82].mxu1 %vm421_vm0, %v31918_v9 }
0x1f0a   :  { %34720 = vmatpush3.bf16.msra.mxu1 %v34717_v36  ;;  %31955 = vmatprep.mubr.msk.f32.mxu1 %vm421_vm0, %v21861_v43  ;;  %v31971_v58 = vpop.f32.mrb[168].mxu0  ;;  %v34761_v36 = vpack.c.bf16 %v25734_v40, %v25733_v26 }
0x1f0b   :  { %34730 = vmatprep.subr.bf16.mxu1 %v34729_v24  ;;  %v22052_v32 = vpop.f32.mrb[169].mxu0 }
0x1f0d   :  { %31956 = vmatmul.mubr.msk.f32.vlgmr.msra.gmra.mrb[80].mxu1 %vm421_vm0, %v31943_v57 }
0x1f0e   :  { %34732 = vmatpush3.bf16.msra.mxu1 %v34729_v24  ;;  %31958 = vmatprep.mubr.msk.f32.mxu1 %vm421_vm0, %v21871_v23  ;;  %v31974_v47 = vpop.f32.mrb[170].mxu0  ;;  %v34765_v24 = vpack.c.bf16 %v25736_v28, %v25735_v25  ;;  %v25785_v28 = vld [vmem:[%s40541_s7 + $0xbb0] sm:$0xff] }
0x1f0f   :  { %34734 = vmatprep.subr.bf16.mxu1 %v34733_v34  ;;  %v22062_v35 = vpop.f32.mrb[171].mxu0 }
0x1f11   :  { %31959 = vmatmul.mubr.msk.f32.gmra.mrb[82].mxu1 %vm421_vm0, %v31946_v27 }
0x1f12   :  { %34736 = vmatpush3.bf16.msra.mxu1 %v34733_v34  ;;  %31983 = vmatprep.mubr.msk.f32.mxu1 %vm421_vm0, %v22052_v32  ;;  %v31999_v9 = vpop.f32.mrb[172].mxu0 }
0x1f13   :  { %34746 = vmatprep.subr.bf16.mxu1 %v34745_v39  ;;  %v22243_v30 = vpop.f32.mrb[173].mxu0 }
0x1f15   :  { %31984 = vmatmul.mubr.msk.f32.vlgmr.msra.gmra.mrb[80].mxu1 %vm421_vm0, %v31971_v58  ;;  %v25742_v58 = vld [vmem:[%s40542_s8 + $0x9] ss:$0 sm:$0xff] }
0x1f16   :  { %34748 = vmatpush3.bf16.msra.mxu1 %v34745_v39  ;;  %31986 = vmatprep.mubr.msk.f32.mxu1 %vm421_vm0, %v22062_v35  ;;  %v32002_v57 = vpop.f32.mrb[174].mxu0 }
0x1f17   :  { %34750 = vmatprep.subr.bf16.mxu1 %v34749_v16  ;;  %v22253_v43 = vpop.f32.mrb[175].mxu0 }
0x1f19   :  { %31987 = vmatmul.mubr.msk.f32.gmra.mrb[82].mxu1 %vm421_vm0, %v31974_v47 }
0x1f1a   :  { %34752 = vmatpush3.bf16.msra.mxu1 %v34749_v16  ;;  %32011 = vmatprep.mubr.msk.f32.mxu1 %vm421_vm0, %v22243_v30  ;;  %v32027_v27 = vpop.f32.mrb[176].mxu0 }
0x1f1b   :  { %34762 = vmatprep.subr.bf16.mxu1 %v34761_v36  ;;  %v22434_v23 = vpop.f32.mrb[177].mxu0 }
0x1f1d   :  { %32012 = vmatmul.mubr.msk.f32.vlgmr.msra.gmra.mrb[80].mxu1 %vm421_vm0, %v31999_v9 }
0x1f1e   :  { %34764 = vmatpush3.bf16.msra.mxu1 %v34761_v36  ;;  %32014 = vmatprep.mubr.msk.f32.mxu1 %vm421_vm0, %v22253_v43  ;;  %v32030_v62 = vpop.f32.mrb[178].mxu0 }
0x1f1f   :  { %34766 = vmatprep.subr.bf16.mxu1 %v34765_v24  ;;  %v22444_v44 = vpop.f32.mrb[179].mxu0 }
0x1f21   :  { %32015 = vmatmul.mubr.msk.f32.gmra.mrb[82].mxu1 %vm421_vm0, %v32002_v57 }
0x1f22   :  { %34768 = vmatpush3.bf16.msra.mxu1 %v34765_v24  ;;  %32039 = vmatprep.mubr.msk.f32.mxu1 %vm421_vm0, %v22434_v23 }
0x1f25   :  { %32040 = vmatmul.mubr.msk.f32.vlgmr.msra.gmra.mrb[80].mxu1 %vm421_vm0, %v32027_v27  ;;  %v25786_v27 = vld [vmem:[%s40541_s7 + $0xbb8] sm:$0xff] }
0x1f26   :  { %32042 = vmatprep.mubr.msk.f32.mxu1 %vm421_vm0, %v22444_v44  ;;  %v34829_v23 = vpack.c.bf16 %v25786_v27, %v25785_v28  ;;  %v25795_v44 = vld [vmem:[%s40541_s7 + $0xbc0] sm:$0xff] }
0x1f29   :  { %32043 = vmatmul.mubr.msk.f32.gmra.mrb[82].mxu1 %vm421_vm0, %v32030_v62 }
0x1ff8   :  { %v32041_v34 = vpop.f32.mrb[80].mxu1 }
0x1ff9   :  { %v22568_v32 = vadd.f32 %v32041_v34, %v25742_v58  ;;  %v22536_v33 = vpop.f32.mrb[81].mxu1 }
0x1ffa   :  { %v22567_v52 = vadd.f32 %v25742_v58, %v22536_v33 }
0x1ffb   :  { %v22572_v47 = vmax.f32 %v22568_v32, 0.0 }
0x1ffc   :  { %v22571_v39 = vmax.f32 %v22567_v52, 0.0  ;;  %v32044_v35 = vpop.f32.mrb[82].mxu1  ;;  %v25797_v52 = vld [vmem:[%s40541_s7 + $0xbd0] sm:$0xff] }
0x1ffd   :  { %v22576_v61 = vadd.f32 %v22572_v47, %v39532_v41  ;;  %v22570_v49 = vadd.f32 %v32044_v35, %v25742_v58  ;;  %v22546_v9 = vpop.f32.mrb[83].mxu1  ;;  %v25755_v41 = vld [vmem:[%s40541_s7 + $0xb60] sm:$0xff]  ;;  %v25798_v47 = vld [vmem:[%s40541_s7 + $0xbd8] sm:$0xff] }
0x1ffe   :  { %v22575_v16 = vadd.f32 %v22571_v39, %v39535_v37  ;;  %v22569_v30 = vadd.f32 %v25742_v58, %v22546_v9  ;;  %v25756_v37 = vld [vmem:[%s40541_s7 + $0xb68] sm:$0xff]  ;;  %v34845_v35 = vpack.c.bf16 %v25798_v47, %v25797_v52 }
0x1fff   :  { %v22574_v26 = vmax.f32 %v22570_v49, 0.0  ;;  %v25796_v58 = vld [vmem:[%s40541_s7 + $0xbc8] sm:$0xff]  ;;  %v25807_v49 = vld [vmem:[%s40541_s7 + $0xbe0] sm:$0xff] }
0x2000   :  { %v40247_v40 = vpack.c.bf16 %v22576_v61, %v22575_v16  ;;  %v22573_v57 = vmax.f32 %v22569_v30, 0.0  ;;  %v34841_v32 = vpack.c.bf16 %v25796_v58, %v25795_v44  ;;  %v25808_v9 = vld [vmem:[%s40541_s7 + $0xbe8] sm:$0xff] }
0x2001   :  { %v22578_v36 = vadd.f32 %v22574_v26, %v39542_v56  ;;  %v34785_v56 = vpack.c.bf16 %v25756_v37, %v25755_v41  ;;  %v34857_v30 = vpack.c.bf16 %v25808_v9, %v25807_v49  ;;  %v25819_v41 = vld [vmem:[%s40541_s7 + $0xc00] sm:$0xff]  ;;  %v25820_v37 = vld [vmem:[%s40541_s7 + $0xc08] sm:$0xff] }
0x2002   :  { %v22577_v43 = vadd.f32 %v22573_v57, %v39545_v60  ;;  %34770 = vmatprep.subr.bf16.mxu0 %v40247_v40  ;;  %v25757_v60 = vld [vmem:[%s40541_s7 + $0xb70] sm:$0xff]  ;;  %v25810_v57 = vld [vmem:[%s40541_s7 + $0xbf8] sm:$0xff] }
0x2003   :  { %34772 = vmatpush3.bf16.msra.mxu0 %v40247_v40  ;;  %34786 = vmatprep.subr.bf16.mxu1 %v34785_v56 }
0x2004   :  { %v40253_v25 = vpack.c.bf16 %v22578_v36, %v22577_v43  ;;  %34788 = vmatpush3.bf16.msra.mxu1 %v34785_v56 }
0x2006   :  { %34774 = vmatprep.subr.bf16.mxu0 %v40253_v25 }
0x2007   :  { %34776 = vmatpush3.bf16.msra.mxu0 %v40253_v25 }
0x2008   :  { %34778 = vmatprep.subr.bf16.mxu0 %v40247_v40 }
0x200a   :  { %32054 = vmatmul.mubr.msk.f32.vlgmr.msra.gmra.mrb[180].mxu0 %vm421_vm0, %v39559_v29  ;;  %v25758_v29 = vld [vmem:[%s40541_s7 + $0xb78] sm:$0xff] }
0x200b   :  { %34780 = vmatpush3.bf16.msra.mxu0 %v40247_v40  ;;  %32056 = vmatprep.mubr.msk.f32.mxu0 %vm421_vm0, %v39567_v21  ;;  %v34789_v21 = vpack.c.bf16 %v25758_v29, %v25757_v60  ;;  %v34873_v60 = vpack.c.bf16 %v25820_v37, %v25819_v41 }
0x200c   :  { %34782 = vmatprep.subr.bf16.mxu0 %v40253_v25 }
0x200d   :  { %34790 = vmatprep.subr.bf16.mxu1 %v34789_v21 }
0x200e   :  { %32057 = vmatmul.mubr.msk.f32.gmra.mrb[182].mxu0 %vm421_vm0, %v39575_v22  ;;  %34792 = vmatpush3.bf16.msra.mxu1 %v34789_v21  ;;  %v25747_v22 = vld [vmem:[%s40541_s7 + $0xb40] sm:$0xff]  ;;  %v25821_v21 = vld [vmem:[%s40541_s7 + $0xc10] sm:$0xff] }
0x200f   :  { %34784 = vmatpush3.bf16.msra.mxu0 %v40253_v25  ;;  %32067 = vmatprep.mubr.msk.f32.mxu0 %vm421_vm0, %v39583_v0  ;;  %v25748_v0 = vld [vmem:[%s40541_s7 + $0xb48] sm:$0xff] }
0x2010   :  { %34802 = vmatprep.subr.bf16.mxu0 %v40247_v40 }
0x2012   :  { %32068 = vmatmul.mubr.msk.f32.vlgmr.msra.gmra.mrb[184].mxu0 %vm421_vm0, %v39591_v42  ;;  %v34793_v42 = vpack.c.bf16 %v25748_v0, %v25747_v22  ;;  %v25822_v22 = vld [vmem:[%s40541_s7 + $0xc18] sm:$0xff] }
0x2013   :  { %34804 = vmatpush3.bf16.msra.mxu0 %v40247_v40  ;;  %32070 = vmatprep.mubr.msk.f32.mxu0 %vm421_vm0, %v39599_v45  ;;  %v25843_v45 = vld [vmem:[%s40541_s7 + $0xc40] sm:$0xff] }
0x2014   :  { %34806 = vmatprep.subr.bf16.mxu0 %v40253_v25  ;;  %34794 = vmatprep.subr.bf16.mxu1 %v34793_v42 }
0x2016   :  { %32071 = vmatmul.mubr.msk.f32.gmra.mrb[186].mxu0 %vm421_vm0, %v39607_v46  ;;  %v25844_v46 = vld [vmem:[%s40541_s7 + $0xc48] sm:$0xff] }
0x2017   :  { %34808 = vmatpush3.bf16.msra.mxu0 %v40253_v25  ;;  %32109 = vmatprep.mubr.msk.f32.mxu0 %vm421_vm0, %v39615_v48  ;;  %v40383_v48 = vpack.c.bf16 %v25844_v46, %v25843_v45  ;;  %v25831_v46 = vld [vmem:[%s40541_s7 + $0xc20] sm:$0xff] }
0x2018   :  { %34818 = vmatprep.subr.bf16.mxu0 %v40247_v40 }
0x201a   :  { %32110 = vmatmul.mubr.msk.f32.vlgmr.msra.gmra.mrb[188].mxu0 %vm421_vm0, %v39623_v51  ;;  %v25845_v51 = vld [vmem:[%s40541_s7 + $0xc50] sm:$0xff] }
0x201b   :  { %34820 = vmatpush3.bf16.msra.mxu0 %v40247_v40  ;;  %32112 = vmatprep.mubr.msk.f32.mxu0 %vm421_vm0, %v39631_v53  ;;  %v25846_v53 = vld [vmem:[%s40541_s7 + $0xc58] sm:$0xff] }
0x201c   :  { %34822 = vmatprep.subr.bf16.mxu0 %v40253_v25 }
0x201e   :  { %32113 = vmatmul.mubr.msk.f32.gmra.mrb[190].mxu0 %vm421_vm0, %v39639_v54  ;;  %v40393_v54 = vpack.c.bf16 %v25846_v53, %v25845_v51  ;;  %v25832_v51 = vld [vmem:[%s40541_s7 + $0xc28] sm:$0xff] }
0x201f   :  { %34824 = vmatpush3.bf16.msra.mxu0 %v40253_v25  ;;  %32137 = vmatprep.mubr.msk.f32.mxu0 %vm421_vm0, %v39647_v1 }
0x2020   :  { %34834 = vmatprep.subr.bf16.mxu0 %v40247_v40 }
0x2022   :  { %32138 = vmatmul.mubr.msk.f32.vlgmr.msra.gmra.mrb[192].mxu0 %vm421_vm0, %v39655_v3 }
0x2023   :  { %34836 = vmatpush3.bf16.msra.mxu0 %v40247_v40  ;;  %32140 = vmatprep.mubr.msk.f32.mxu0 %vm421_vm0, %v39663_v4 }
0x2024   :  { %34838 = vmatprep.subr.bf16.mxu0 %v40253_v25 }
0x2026   :  { %32141 = vmatmul.mubr.msk.f32.gmra.mrb[194].mxu0 %vm421_vm0, %v39671_v5 }
0x2027   :  { %34840 = vmatpush3.bf16.msra.mxu0 %v40253_v25  ;;  %32165 = vmatprep.mubr.msk.f32.mxu0 %vm421_vm0, %v39679_v6  ;;  %v25749_v6 = vld [vmem:[%s40541_s7 + $0xb50] sm:$0xff] }
0x2028   :  { %34850 = vmatprep.subr.bf16.mxu0 %v40247_v40 }
0x202a   :  { %32166 = vmatmul.mubr.msk.f32.vlgmr.msra.gmra.mrb[196].mxu0 %vm421_vm0, %v39687_v7  ;;  %v25750_v7 = vld [vmem:[%s40541_s7 + $0xb58] sm:$0xff] }
0x202b   :  { %34852 = vmatpush3.bf16.msra.mxu0 %v40247_v40  ;;  %32168 = vmatprep.mubr.msk.f32.mxu0 %vm421_vm0, %v39695_v8 }
0x202c   :  { %34854 = vmatprep.subr.bf16.mxu0 %v40253_v25 }
0x202e   :  { %32169 = vmatmul.mubr.msk.f32.gmra.mrb[198].mxu0 %vm421_vm0, %v39703_v10 }
0x202f   :  { %34856 = vmatpush3.bf16.msra.mxu0 %v40253_v25  ;;  %32193 = vmatprep.mubr.msk.f32.mxu0 %vm421_vm0, %v39711_v11  ;;  %v34797_v11 = vpack.c.bf16 %v25750_v7, %v25749_v6 }
0x2030   :  { %34866 = vmatprep.subr.bf16.mxu0 %v40247_v40 }
0x2032   :  { %32194 = vmatmul.mubr.msk.f32.vlgmr.msra.gmra.mrb[200].mxu0 %vm421_vm0, %v39719_v12  ;;  %v25771_v12 = vld [vmem:[%s40541_s7 + $0xb80] sm:$0xff] }
0x2033   :  { %34868 = vmatpush3.bf16.msra.mxu0 %v40247_v40  ;;  %32196 = vmatprep.mubr.msk.f32.mxu0 %vm421_vm0, %v39727_v13  ;;  %v25772_v13 = vld [vmem:[%s40541_s7 + $0xb88] sm:$0xff] }
0x2034   :  { %34870 = vmatprep.subr.bf16.mxu0 %v40253_v25 }
0x2036   :  { %32197 = vmatmul.mubr.msk.f32.gmra.mrb[202].mxu0 %vm421_vm0, %v39735_v14 }
0x2037   :  { %34872 = vmatpush3.bf16.msra.mxu0 %v40253_v25  ;;  %32221 = vmatprep.mubr.msk.f32.mxu0 %vm421_vm0, %v39743_v15 }
0x2038   :  { %34882 = vmatprep.subr.bf16.mxu0 %v40247_v40 }
0x203a   :  { %32222 = vmatmul.mubr.msk.f32.vlgmr.msra.gmra.mrb[204].mxu0 %vm421_vm0, %v39751_v17  ;;  %v34809_v17 = vpack.c.bf16 %v25772_v13, %v25771_v12 }
0x203b   :  { %34884 = vmatpush3.bf16.msra.mxu0 %v40247_v40  ;;  %32224 = vmatprep.mubr.msk.f32.mxu0 %vm421_vm0, %v39759_v18  ;;  %v25773_v18 = vld [vmem:[%s40541_s7 + $0xb90] sm:$0xff] }
0x203c   :  { %34886 = vmatprep.subr.bf16.mxu0 %v40253_v25 }
0x203e   :  { %32225 = vmatmul.mubr.msk.f32.gmra.mrb[206].mxu0 %vm421_vm0, %v39767_v19  ;;  %v25774_v19 = vld [vmem:[%s40541_s7 + $0xb98] sm:$0xff] }
0x203f   :  { %34888 = vmatpush3.bf16.msra.mxu0 %v40253_v25  ;;  %32249 = vmatprep.mubr.msk.f32.mxu0 %vm421_vm0, %v39775_v20 }
0x2040   :  { %34898 = vmatprep.subr.bf16.mxu0 %v40247_v40 }
0x2042   :  { %32250 = vmatmul.mubr.msk.f32.vlgmr.msra.gmra.mrb[208].mxu0 %vm421_vm0, %v40047_v38  ;;  %v34813_v38 = vpack.c.bf16 %v25774_v19, %v25773_v18 }
0x2043   :  { %34900 = vmatpush3.bf16.msra.mxu0 %v40247_v40  ;;  %32252 = vmatprep.mubr.msk.f32.mxu0 %vm421_vm0, %v40055_v50  ;;  %v25809_v40 = vld [vmem:[%s40541_s7 + $0xbf0] sm:$0xff] }
0x2044   :  { %34902 = vmatprep.subr.bf16.mxu0 %v40253_v25  ;;  %v34861_v43 = vpack.c.bf16 %v25810_v57, %v25809_v40 }
0x2046   :  { %32253 = vmatmul.mubr.msk.f32.gmra.mrb[210].mxu0 %vm421_vm0, %v40063_v55  ;;  %v25783_v55 = vld [vmem:[%s40541_s7 + $0xba0] sm:$0xff] }
0x2047   :  { %34904 = vmatpush3.bf16.msra.mxu0 %v40253_v25  ;;  %32277 = vmatprep.mubr.msk.f32.mxu0 %vm421_vm0, %v40071_v63  ;;  %v25784_v63 = vld [vmem:[%s40541_s7 + $0xba8] sm:$0xff] }
0x2048   :  { %34906 = vmatprep.subr.bf16.mxu0 %v40383_v48 }
0x204a   :  { %32278 = vmatmul.mubr.msk.f32.vlgmr.msra.gmra.mrb[212].mxu0 %vm421_vm0, %v40078_v59 }
0x204b   :  { %32280 = vmatprep.mubr.msk.f32.mxu0 %vm421_vm0, %v40085_v2  ;;  %34908 = vmatpush3.bf16.msra.mxu0 %v40383_v48  ;;  %v34825_v2 = vpack.c.bf16 %v25784_v63, %v25783_v55 }
0x204c   :  { %34910 = vmatprep.subr.bf16.mxu0 %v40393_v54 }
0x204e   :  { %32281 = vmatmul.mubr.msk.f32.gmra.mrb[214].mxu0 %vm421_vm0, %v40092_v31 }
0x204f   :  { %34912 = vmatpush3.bf16.msra.mxu0 %v40393_v54 }
0x20dd   :  { %v32055_v1 = vpop.f32.mrb[180].mxu0 }
0x20de   :  { %v22645_v3 = vpop.f32.mrb[181].mxu0 }
0x20e1   :  { %v32058_v4 = vpop.f32.mrb[182].mxu0 }
0x20e2   :  { %v22655_v5 = vpop.f32.mrb[183].mxu0 }
0x20e5   :  { %v32069_v8 = vpop.f32.mrb[184].mxu0 }
0x20e6   :  { %v22735_v10 = vpop.f32.mrb[185].mxu0 }
0x20e7   :  { %32081 = vmatprep.mubr.msk.f32.mxu1 %vm421_vm0, %v22735_v10 }
0x20e8   :  { %32082 = vmatmul.mubr.msk.f32.vlgmr.msra.gmra.mrb[84].mxu1 %vm421_vm0, %v32069_v8 }
0x20e9   :  { %v32072_v14 = vpop.f32.mrb[186].mxu0  ;;  %34796 = vmatpush3.bf16.msra.mxu1 %v34793_v42  ;;  %v34877_v42 = vpack.c.bf16 %v25822_v22, %v25821_v21 }
0x20ea   :  { %v22745_v15 = vpop.f32.mrb[187].mxu0  ;;  %34798 = vmatprep.subr.bf16.mxu1 %v34797_v11 }
0x20eb   :  { %32084 = vmatprep.mubr.msk.f32.mxu1 %vm421_vm0, %v22745_v15 }
0x20ec   :  { %32085 = vmatmul.mubr.msk.f32.gmra.mrb[86].mxu1 %vm421_vm0, %v32072_v14 }
0x20ed   :  { %34800 = vmatpush3.bf16.msra.mxu1 %v34797_v11  ;;  %32095 = vmatprep.mubr.msk.f32.mxu1 %vm421_vm0, %v22645_v3  ;;  %v32111_v20 = vpop.f32.mrb[188].mxu0  ;;  %v34889_v3 = vpack.c.bf16 %v25832_v51, %v25831_v46 }
0x20ee   :  { %34810 = vmatprep.subr.bf16.mxu1 %v34809_v17  ;;  %v23019_v50 = vpop.f32.mrb[189].mxu0 }
0x20f0   :  { %32096 = vmatmul.mubr.msk.f32.vlgmr.msra.gmra.mrb[84].mxu1 %vm421_vm0, %v32055_v1 }
0x20f1   :  { %32098 = vmatprep.mubr.msk.f32.mxu1 %vm421_vm0, %v22655_v5  ;;  %34812 = vmatpush3.bf16.msra.mxu1 %v34809_v17  ;;  %v32114_v59 = vpop.f32.mrb[190].mxu0  ;;  %v25834_v5 = vld [vmem:[%s40541_s7 + $0xc38] sm:$0xff] }
0x20f2   :  { %34814 = vmatprep.subr.bf16.mxu1 %v34813_v38  ;;  %v23029_v31 = vpop.f32.mrb[191].mxu0 }
0x20f4   :  { %32099 = vmatmul.mubr.msk.f32.gmra.mrb[86].mxu1 %vm421_vm0, %v32058_v4  ;;  %v25833_v4 = vld [vmem:[%s40541_s7 + $0xc30] sm:$0xff] }
0x20f5   :  { %34816 = vmatpush3.bf16.msra.mxu1 %v34813_v38  ;;  %32123 = vmatprep.mubr.msk.f32.mxu1 %vm421_vm0, %v23019_v50  ;;  %v32139_v24 = vpop.f32.mrb[192].mxu0  ;;  %v34893_v8 = vpack.c.bf16 %v25834_v5, %v25833_v4 }
0x20f6   :  { %34826 = vmatprep.subr.bf16.mxu1 %v34825_v2  ;;  %v23210_v62 = vpop.f32.mrb[193].mxu0 }
0x20f8   :  { %32124 = vmatmul.mubr.msk.f32.vlgmr.msra.gmra.mrb[84].mxu1 %vm421_vm0, %v32111_v20 }
0x20f9   :  { %34828 = vmatpush3.bf16.msra.mxu1 %v34825_v2  ;;  %32126 = vmatprep.mubr.msk.f32.mxu1 %vm421_vm0, %v23029_v31  ;;  %v32142_v34 = vpop.f32.mrb[194].mxu0 }
0x20fa   :  { %34830 = vmatprep.subr.bf16.mxu1 %v34829_v23  ;;  %v23220_v33 = vpop.f32.mrb[195].mxu0 }
0x20fc   :  { %32127 = vmatmul.mubr.msk.f32.gmra.mrb[86].mxu1 %vm421_vm0, %v32114_v59 }
0x20fd   :  { %34832 = vmatpush3.bf16.msra.mxu1 %v34829_v23  ;;  %32151 = vmatprep.mubr.msk.f32.mxu1 %vm421_vm0, %v23210_v62  ;;  %v32167_v39 = vpop.f32.mrb[196].mxu0 }
0x20fe   :  { %34842 = vmatprep.subr.bf16.mxu1 %v34841_v32  ;;  %v23401_v61 = vpop.f32.mrb[197].mxu0 }
0x2100   :  { %32152 = vmatmul.mubr.msk.f32.vlgmr.msra.gmra.mrb[84].mxu1 %vm421_vm0, %v32139_v24 }
0x2101   :  { %34844 = vmatpush3.bf16.msra.mxu1 %v34841_v32  ;;  %32154 = vmatprep.mubr.msk.f32.mxu1 %vm421_vm0, %v23220_v33  ;;  %v32170_v16 = vpop.f32.mrb[198].mxu0 }
0x2102   :  { %34846 = vmatprep.subr.bf16.mxu1 %v34845_v35  ;;  %v23411_v26 = vpop.f32.mrb[199].mxu0 }
0x2104   :  { %32155 = vmatmul.mubr.msk.f32.gmra.mrb[86].mxu1 %vm421_vm0, %v32142_v34 }
0x2105   :  { %34848 = vmatpush3.bf16.msra.mxu1 %v34845_v35  ;;  %32179 = vmatprep.mubr.msk.f32.mxu1 %vm421_vm0, %v23401_v61  ;;  %v32195_v36 = vpop.f32.mrb[200].mxu0 }
0x2106   :  { %34858 = vmatprep.subr.bf16.mxu1 %v34857_v30  ;;  %v23592_v25 = vpop.f32.mrb[201].mxu0 }
0x2108   :  { %32180 = vmatmul.mubr.msk.f32.vlgmr.msra.gmra.mrb[84].mxu1 %vm421_vm0, %v32167_v39 }
0x2109   :  { %34860 = vmatpush3.bf16.msra.mxu1 %v34857_v30  ;;  %32182 = vmatprep.mubr.msk.f32.mxu1 %vm421_vm0, %v23411_v26  ;;  %v32198_v56 = vpop.f32.mrb[202].mxu0 }
0x210a   :  { %34862 = vmatprep.subr.bf16.mxu1 %v34861_v43  ;;  %v23602_v29 = vpop.f32.mrb[203].mxu0 }
0x210c   :  { %32183 = vmatmul.mubr.msk.f32.gmra.mrb[86].mxu1 %vm421_vm0, %v32170_v16 }
0x210d   :  { %34864 = vmatpush3.bf16.msra.mxu1 %v34861_v43  ;;  %32207 = vmatprep.mubr.msk.f32.mxu1 %vm421_vm0, %v23592_v25  ;;  %v32223_v0 = vpop.f32.mrb[204].mxu0 }
0x210e   :  { %34874 = vmatprep.subr.bf16.mxu1 %v34873_v60  ;;  %v23783_v45 = vpop.f32.mrb[205].mxu0 }
0x2110   :  { %32208 = vmatmul.mubr.msk.f32.vlgmr.msra.gmra.mrb[84].mxu1 %vm421_vm0, %v32195_v36 }
0x2111   :  { %34876 = vmatpush3.bf16.msra.mxu1 %v34873_v60  ;;  %32210 = vmatprep.mubr.msk.f32.mxu1 %vm421_vm0, %v23602_v29  ;;  %v32226_v53 = vpop.f32.mrb[206].mxu0 }
0x2112   :  { %34878 = vmatprep.subr.bf16.mxu1 %v34877_v42  ;;  %v23793_v1 = vpop.f32.mrb[207].mxu0 }
0x2114   :  { %32211 = vmatmul.mubr.msk.f32.gmra.mrb[86].mxu1 %vm421_vm0, %v32198_v56 }
0x2115   :  { %34880 = vmatpush3.bf16.msra.mxu1 %v34877_v42  ;;  %32235 = vmatprep.mubr.msk.f32.mxu1 %vm421_vm0, %v23783_v45  ;;  %v32251_v6 = vpop.f32.mrb[208].mxu0 }
0x2116   :  { %34890 = vmatprep.subr.bf16.mxu1 %v34889_v3  ;;  %v23974_v7 = vpop.f32.mrb[209].mxu0 }
0x2118   :  { %32236 = vmatmul.mubr.msk.f32.vlgmr.msra.gmra.mrb[84].mxu1 %vm421_vm0, %v32223_v0 }
0x2119   :  { %34892 = vmatpush3.bf16.msra.mxu1 %v34889_v3  ;;  %32238 = vmatprep.mubr.msk.f32.mxu1 %vm421_vm0, %v23793_v1  ;;  %v32254_v10 = vpop.f32.mrb[210].mxu0 }
0x211a   :  { %v23984_v11 = vpop.f32.mrb[211].mxu0  ;;  %34894 = vmatprep.subr.bf16.mxu1 %v34893_v8 }
0x211c   :  { %32239 = vmatmul.mubr.msk.f32.gmra.mrb[86].mxu1 %vm421_vm0, %v32226_v53 }
0x211d   :  { %34896 = vmatpush3.bf16.msra.mxu1 %v34893_v8  ;;  %v32279_v12 = vpop.f32.mrb[212].mxu0  ;;  %32263 = vmatprep.mubr.msk.f32.mxu1 %vm421_vm0, %v23974_v7 }
0x211e   :  { %v24165_v13 = vpop.f32.mrb[213].mxu0  ;;  %34913 = vmatprep.subr.bf16.mxu1 %v40383_v48 }
0x211f   :  { %32291 = vmatprep.mubr.msk.f32.mxu0 %vm421_vm0, %v24165_v13 }
0x2120   :  { %32264 = vmatmul.mubr.msk.f32.vlgmr.msra.gmra.mrb[84].mxu1 %vm421_vm0, %v32251_v6  ;;  %32292 = vmatmul.mubr.msk.f32.vlgmr.msra.gmra.mrb[216].mxu0 %vm421_vm0, %v32279_v12 }
0x2121   :  { %34915 = vmatpush3.bf16.msra.mxu1 %v40383_v48  ;;  %32266 = vmatprep.mubr.msk.f32.mxu1 %vm421_vm0, %v23984_v11  ;;  %v32282_v14 = vpop.f32.mrb[214].mxu0  ;;  %v25852_v48 = vld [vmem:[%s40542_s8 + $0xa] ss:$0 sm:$0xff]  ;;  %s35476_s8 = scalar_lea.vmem %s24312_s15, 512 }
0x2122   :  { %34914 = vmatprep.subr.bf16.mxu1 %v40393_v54  ;;  %v24175_v15 = vpop.f32.mrb[215].mxu0  ;;  %p35477_p0 = scmp.ne.s32.totalorder %s24312_s15, %s35476_s8  ;;  %p35482_p2 = scmp.lt.s32.totalorder %s35476_s8, %s35476_s8 }
0x2124   :  { %32267 = vmatmul.mubr.msk.f32.gmra.mrb[86].mxu1 %vm421_vm0, %v32254_v10  ;;  %p35483_p3 = por %p35482_p2, %p35481_p1 }
0x2125   :  { %34916 = vmatpush3.bf16.msra.mxu1 %v40393_v54  ;;  %32294 = vmatprep.mubr.msk.f32.mxu1 %vm421_vm0, %v24175_v15 }
0x2126   :  { %p35484_p4 = pnand %p35483_p3, %p35477_p0 }
0x212c   :  { %32295 = vmatmul.mubr.msk.f32.vlgmr.msra.gmra.mrb[86].mxu1 %vm421_vm0, %v32282_v14 }
0x21f3   :  { %v32265_v17 = vpop.f32.mrb[84].mxu1  ;;  %v32293_v18 = vpop.f32.mrb[216].mxu0 }
0x21f4   :  { %v34917_v19 = vadd.f32 %v32293_v18, %v32265_v17  ;;  %v24076_v20 = vpop.f32.mrb[85].mxu1  ;;  %v24267_v38 = vpop.f32.mrb[217].mxu0 }
0x21f5   :  { %v34918_v50 = vadd.f32 %v24267_v38, %v24076_v20 }
0x21f6   :  { %v24299_v55 = vadd.f32 %v34917_v19, %v25852_v48 }
0x21f7   :  { %v24298_v63 = vadd.f32 %v34918_v50, %v25852_v48 }
0x21f8   :  { %24303 = vst.msk [vmem:[#allocation2 + $0x8] sm:$0xff] %vm421_vm0, %v24299_v55 }
0x21f9   :  { %24302 = vst.msk [vmem:[#allocation2] sm:$0xff] %vm421_vm0, %v24298_v63 }
0x21ff   :  { %v32296_v54 = vpop.f32.mrb[86].mxu1 }
0x2200   :  { %v24301_v59 = vadd.f32 %v32296_v54, %v25852_v48  ;;  %v24277_v2 = vpop.f32.mrb[87].mxu1 }
0x2201   :  { %v24300_v31 = vadd.f32 %v25852_v48, %v24277_v2 }
0x2202   :  { %24305 = vst.msk [vmem:[#allocation2 + $0x18] sm:$0xff] %vm421_vm0, %v24301_v59 }
0x2203   :  { %24304 = vst.msk [vmem:[#allocation2 + $0x10] sm:$0xff] %vm421_vm0, %v24300_v31 }
0x2204   :  { %35487 = shalt.err (!%p35484_p4)
}
0x2205   :  { %s35488_s18 = scalar_lea.hbm %s40543_s9, 512 }
0x2206   :  { %p35489_p5 = scmp.ne.s32.totalorder %s40543_s9, %s35488_s18  ;;  %p35492_p6 = scmp.lt.u32.totalorder %s35488_s18, %s40543_s9 }
0x2208   :  { %p35494_p7 = pnand %p35492_p6, %p35489_p5 }
0x220a   :  { %35497 = shalt.err (!%p35494_p7)
}
0x220b   :  { %s35501_s22 = smov 128   ;;  %s35502_s4 = smov 8  }
0x220c   :  { %24317 = dma.vmem_to_hbm [thread:$0]  %s24312_s15, 512, %s40543_s9, [#allocation3], %s35501_s22, %s35501_s22, %s35502_s4  }
0x220d   :  { %35498 = dma.done.wait [#allocation3], 512  }
0x220e   :  { %35499 = vsyncadd [#allocation3], 4294966784 }
0x220f   :  { %24321 = vsyncpa [#allocation3], 1 }

</bundles_post_ra>
